<compile_context>
chip_gen: v7x
topology: tpu7x:2x2x1
jax: 0.10.0
libtpu: 0.0.40
codegen_flags: <defaults>
</compile_context>

<pallas_src>
import functools

import jax
import jax.numpy as jnp
from jax.experimental import pallas as pl
from jax.experimental.pallas import tpu as pltpu

KSIZE = 21              # depthwise conv kernel size
PAD = 10                # conv "same" padding
LPAD = 16               # 8-aligned left halo in the in-kernel padded scratch (>= PAD)
BASE_OFF = LPAD - PAD   # tap k reads padded row (t + BASE_OFF + k)
EPS_LN = 1e-6
EPS_GRN = 1e-6

_MXU_ROW_TARGET = 256   # rows (M) per folded matmul call (>=128 already fills v5e's MXU)
_MAX_BATCH_TILE = 8


def _round_up(n, m):
    return ((n + m - 1) // m) * m


def _vmem_limits():
    """Generation-aware (budget, limit): v5e/v6e have 128 MiB VMEM, v7x has 64 MiB."""
    cap = 64 * 1024 * 1024
    try:
        cap = int(pltpu.get_tpu_info().vmem_capacity_bytes)
    except Exception:
        pass
    budget = int(cap * 0.62)                                  # ~40 MiB v7x, ~80 MiB v5e/v6e
    limit = min(int(cap * 0.75), 112 * 1024 * 1024)           # ~48 MiB v7x, ~96 MiB v5e/v6e
    return budget, limit


def _vmem_bytes_estimate(bt, seq, seq_tot, c_dim, i_dim, conv_bytes):
    f32, bf16 = 4, 2
    io = 4 * bt * seq * c_dim * f32                              # x & out blocks, dbl-buffered
    weights = 2 * (KSIZE * c_dim * conv_bytes + 4 * c_dim * f32
                   + 3 * i_dim * f32 + 2 * c_dim * i_dim * bf16)  # conservatively x2
    pad_scratch = bt * seq_tot * c_dim * conv_bytes
    live = (2 * bt * seq_tot + 2 * bt * seq) * c_dim * f32 + 3 * bt * seq * i_dim * f32
    return io + weights + pad_scratch + live


def _choose_batch_tile(batch, seq, seq_tot, c_dim, i_dim, conv_bytes, budget):
    """Smallest batch tile whose folded matmul reaches the MXU row target, VMEM permitting.
    Capped at batch // 2 so there are always >= 2 grid steps (keeps both v7x TCs busy)."""
    cap = max(1, batch // 2) if batch > 1 else 1
    divisors = [d for d in range(1, batch + 1)
                if batch % d == 0 and d <= min(_MAX_BATCH_TILE, cap)]
    fits = [d for d in divisors
            if _vmem_bytes_estimate(d, seq, seq_tot, c_dim, i_dim, conv_bytes) <= budget]
    if not fits:
        return 1
    for d in fits:                       # smallest tile that reaches the MXU row target
        if d * seq >= _MXU_ROW_TARGET:
            return d
    return fits[-1]                      # otherwise: biggest tile that fits VMEM


def _convnext_kernel(x_ref, dww_ref, cvec_ref, w1_ref, ivec_ref, w2_ref, o_ref, xpad_ref,
                     *, bt, seq, seq_tot, gelu_approximate):
    """One grid step: `bt` batch elements, full sequence.

    x_ref:   (bt, C, seq)      raw NCT input block (also the residual source)
    dww_ref: (KSIZE, C)        depthwise conv weights
    cvec_ref:(4, C)            rows = [dw_bias, ln_gamma, ln_beta, pwconv2_bias]
    w1_ref:  (C, I) bf16       pwconv1 weight
    ivec_ref:(3, I)            rows = [pwconv1_bias, grn_gamma, grn_beta]
    w2_ref:  (I, C) bf16       pwconv2 weight
    o_ref:   (bt, C, seq)      NCT output block
    xpad_ref:(bt, seq_tot, C)  VMEM scratch: zero-padded, channel-last input slab
    """
    c_dim = x_ref.shape[1]
    i_dim = w1_ref.shape[1]
    cdt = xpad_ref.dtype                     # f32, or bf16 when conv_bf16 (v6e/v7x option)

    # ---- build the zero-padded channel-last slab in VMEM (no wrapper pad / transpose) ----
    # Halos are re-zeroed every step (tiny) so correctness never depends on which core ran
    # grid step 0 when the "parallel" axis is split across TensorCores.
    xpad_ref[:, :LPAD, :] = jnp.zeros((bt, LPAD, c_dim), cdt)
    xpad_ref[:, LPAD + seq:, :] = jnp.zeros((bt, seq_tot - LPAD - seq, c_dim), cdt)
    for e in range(bt):                      # NCT -> NTC on-chip (XLU transpose, aligned store)
        xpad_ref[e, LPAD:LPAD + seq, :] = x_ref[e].T.astype(cdt)

    # ---- depthwise conv1d (k=21, groups=C): 8-aligned slab decomposition, batched -------
    # Tap k reads padded rows [BASE_OFF + k, BASE_OFF + k + seq).  Writing the offset as
    # 8*q + r needs only one misaligned sublane relayout per residue class r (7 total)
    # instead of 21 misaligned slices; every tap within a slab is an aligned slice.
    xall = xpad_ref[...]                                          # (bt, seq_tot, C)
    acc = jnp.zeros((bt, seq, c_dim), cdt)
    for r in range(8):
        offs = [o for o in range(BASE_OFF, BASE_OFF + KSIZE) if o % 8 == r]
        if not offs:
            continue
        qmax = offs[-1] // 8
        slab = xall[:, r:r + 8 * qmax + seq, :]                   # one relayout per residue
        for o in offs:
            q, k = o // 8, o - BASE_OFF
            acc = acc + slab[:, 8 * q:8 * q + seq, :] * dww_ref[k, :]
    acc = acc.astype(jnp.float32) + cvec_ref[0, :]                # + dwconv bias, f32 onwards

    # ---- LayerNorm over channels (eps = 1e-6) --------------------------------------------
    mean = jnp.mean(acc, axis=-1, keepdims=True)
    cen = acc - mean
    var = jnp.mean(cen * cen, axis=-1, keepdims=True)
    y = cen * jax.lax.rsqrt(var + EPS_LN) * cvec_ref[1, :] + cvec_ref[2, :]

    # ---- pwconv1 (C -> I) on the MXU: bf16 operands, f32 accumulation --------------------
    h = jnp.dot(y.reshape(bt * seq, c_dim).astype(jnp.bfloat16), w1_ref[...],
                preferred_element_type=jnp.float32) + ivec_ref[0, :]
    # tanh GELU = one EUP transcendental; exact erf is a long VPU polynomial (VALU-bound).
    h = jax.nn.gelu(h, approximate=gelu_approximate)

    # ---- GRN: L2 norm over time per (batch, channel), normalized by channel mean ---------
    h3 = h.reshape(bt, seq, i_dim)
    gx = jnp.sqrt(jnp.sum(h3 * h3, axis=1, keepdims=True))        # (bt, 1, I)
    nx = gx / (jnp.mean(gx, axis=-1, keepdims=True) + EPS_GRN)    # (bt, 1, I)
    g3 = h3 * (ivec_ref[1, :] * nx + 1.0) + ivec_ref[2, :]        # grn_g*(h*nx) + grn_b + h

    # ---- pwconv2 (I -> C) on the MXU + bias -----------------------------------------------
    out = jnp.dot(g3.reshape(bt * seq, i_dim).astype(jnp.bfloat16), w2_ref[...],
                  preferred_element_type=jnp.float32) + cvec_ref[3, :]
    out3 = out.reshape(bt, seq, c_dim)

    # ---- NTC -> NCT on-chip + residual straight from the resident input block ------------
    for e in range(bt):
        o_ref[e] = (out3[e].T + x_ref[e].astype(jnp.float32)).astype(o_ref.dtype)


def basic_convnext_block(x_nct, params, *, gelu_approximate=True, conv_bf16=False):
    """x_nct: (B, C, T) float32 in the PyTorch NCT convention.  Returns (B, C, T).

    gelu_approximate=True uses the tanh GELU (one EUP op); False restores torch.nn.GELU's
    exact erf.  conv_bf16=True runs the 21-tap depthwise conv in bf16 (v6e/v7x bf16 VALU);
    keep it False on v5e or for strict numerics.
    """
    batch, c_dim, seq = x_nct.shape
    if seq % 8 != 0 or c_dim % 8 != 0:
        raise ValueError("T and C must be multiples of 8 (pad upstream); C (and ideally T) "
                         "should be multiples of 128 for lane-dense IO")
    i_dim = params["w1"].shape[1]
    seq_tot = _round_up(LPAD + seq + (KSIZE - 1 - PAD), 8)        # padded-slab rows

    conv_dtype = jnp.bfloat16 if conv_bf16 else jnp.float32
    conv_bytes = 2 if conv_bf16 else 4

    # pack tiny per-channel params; matmul weights in bf16 (MXU-native, half DMA/VMEM)
    cvec = jnp.concatenate([params["dw_b"], params["ln_g"],
                            params["ln_b"], params["b2"]], axis=0).astype(jnp.float32)
    ivec = jnp.concatenate([params["b1"], params["grn_g"],
                            params["grn_b"]], axis=0).astype(jnp.float32)
    dww = params["dw_w"].astype(conv_dtype)
    w1 = params["w1"].astype(jnp.bfloat16)
    w2 = params["w2"].astype(jnp.bfloat16)

    budget, limit = _vmem_limits()
    bt = _choose_batch_tile(batch, seq, seq_tot, c_dim, i_dim, conv_bytes, budget)
    grid = (batch // bt,)
    kernel = functools.partial(_convnext_kernel, bt=bt, seq=seq, seq_tot=seq_tot,
                               gelu_approximate=gelu_approximate)

    return pl.pallas_call(
        kernel,
        out_shape=jax.ShapeDtypeStruct((batch, c_dim, seq), x_nct.dtype),
        grid=grid,
        in_specs=[
            pl.BlockSpec((bt, c_dim, seq), lambda b: (b, 0, 0)),   # x (NCT) batch block
            pl.BlockSpec((KSIZE, c_dim), lambda b: (0, 0)),        # depthwise weights
            pl.BlockSpec((4, c_dim), lambda b: (0, 0)),            # dw_b / ln_g / ln_b / b2
            pl.BlockSpec((c_dim, i_dim), lambda b: (0, 0)),        # w1 (bf16)
            pl.BlockSpec((3, i_dim), lambda b: (0, 0)),            # b1 / grn_g / grn_b
            pl.BlockSpec((i_dim, c_dim), lambda b: (0, 0)),        # w2 (bf16)
        ],
        out_specs=pl.BlockSpec((bt, c_dim, seq), lambda b: (b, 0, 0)),
        scratch_shapes=[pltpu.VMEM((bt, seq_tot, c_dim), conv_dtype)],
        compiler_params=pltpu.CompilerParams(
            dimension_semantics=("parallel",),
            vmem_limit_bytes=limit,
        ),
    )(x_nct, dww, cvec, w1, ivec, w2)


def reference_forward(x_nct, params, *, gelu_approximate=False):
    """Pure-JAX f32 reference mirroring the PyTorch module (erf GELU by default)."""
    x = jnp.transpose(x_nct, (0, 2, 1)).astype(jnp.float32)                 # (B, T, C)
    seq = x.shape[1]
    xp = jnp.pad(x, ((0, 0), (PAD, PAD), (0, 0)))
    conv = sum(xp[:, k:k + seq, :] * params["dw_w"][k] for k in range(KSIZE)) + params["dw_b"]
    mean = jnp.mean(conv, axis=-1, keepdims=True)
    var = jnp.mean((conv - mean) ** 2, axis=-1, keepdims=True)
    y = (conv - mean) * jax.lax.rsqrt(var + EPS_LN) * params["ln_g"] + params["ln_b"]
    h = jax.nn.gelu(y @ params["w1"] + params["b1"], approximate=gelu_approximate)
    gx = jnp.sqrt(jnp.sum(h * h, axis=1, keepdims=True))
    nx = gx / (jnp.mean(gx, axis=-1, keepdims=True) + EPS_GRN)
    g = params["grn_g"] * (h * nx) + params["grn_b"] + h
    out = g @ params["w2"] + params["b2"]
    return x_nct + jnp.transpose(out, (0, 2, 1))


def init_params(key, dim, intermediate_dim):
    ks = jax.random.split(key, 8)
    s = 0.1
    return {
        # torch Conv1d weight is (C, 1, K); stored here as (K, C) for lane-friendly broadcast
        "dw_w": s * jax.random.normal(ks[0], (KSIZE, dim), jnp.float32),
        "dw_b": s * jax.random.normal(ks[1], (1, dim), jnp.float32),
        "ln_g": jnp.ones((1, dim), jnp.float32),
        "ln_b": jnp.zeros((1, dim), jnp.float32),
        # torch Linear weight is (out, in); stored transposed (in, out) for row-major matmul
        "w1": s * jax.random.normal(ks[2], (dim, intermediate_dim), jnp.float32),
        "b1": s * jax.random.normal(ks[3], (1, intermediate_dim), jnp.float32),
        "grn_g": s * jax.random.normal(ks[4], (1, intermediate_dim), jnp.float32),
        "grn_b": s * jax.random.normal(ks[5], (1, intermediate_dim), jnp.float32),
        "w2": s * jax.random.normal(ks[6], (intermediate_dim, dim), jnp.float32),
        "b2": s * jax.random.normal(ks[7], (1, dim), jnp.float32),
    }


if __name__ == "__main__":
    # TPU-shaped but small demo: C and T are multiples of 128 (lane-dense IO, square
    # 128x128 on-chip transposes), the batch folds into >=256-row MXU tiles, and the
    # tile chooser yields >= 2 "parallel" grid steps (both v7x TensorCores busy).
    B, DIM, T = 8, 128, 128
    INTERMEDIATE = 256

    key = jax.random.PRNGKey(0)
    kx, kp = jax.random.split(key)
    x = jax.random.normal(kx, (B, DIM, T), jnp.float32)
    params = init_params(kp, DIM, INTERMEDIATE)

    fwd = jax.jit(functools.partial(basic_convnext_block, gelu_approximate=True))
    out = jax.block_until_ready(fwd(x, params))
    assert out.shape == (B, DIM, T)

    # Validate against a reference using the same GELU variant (only bf16 MXU error left).
    ref = jax.block_until_ready(reference_forward(x, params, gelu_approximate=True))
    max_err = float(jnp.max(jnp.abs(out - ref)))
    if max_err > 1e-1:
        raise AssertionError(f"kernel/reference mismatch: max |err| = {max_err:.3e}")
    print("KERNEL_OK")
</pallas_src>

<mosaic_0001>
module attributes {stable_mosaic.version = 11 : i64} {
  func.func @_convnext_kernel(%arg0: i32, %arg1: memref<2x128x128xf32, #tpu.memory_space<vmem>>, %arg2: memref<21x128xf32, #tpu.memory_space<vmem>>, %arg3: memref<4x128xf32, #tpu.memory_space<vmem>>, %arg4: memref<128x256xbf16, #tpu.memory_space<vmem>>, %arg5: memref<3x256xf32, #tpu.memory_space<vmem>>, %arg6: memref<256x128xbf16, #tpu.memory_space<vmem>>, %arg7: memref<2x128x128xf32, #tpu.memory_space<vmem>>, %arg8: memref<2x160x128xf32, #tpu.memory_space<vmem>>) attributes {dimension_semantics = [#tpu.dimension_semantics<parallel>], iteration_bounds = array<i64: 4>, scalar_prefetch = 0 : i64, scratch_operands = 1 : i64, tpu.core_type = #tpu.core_type<tc>, window_params = [{transform_indices = @transform_0, window_bounds = array<i64: 2, 128, 128>}, {pipeline_mode = #tpu.pipeline_mode<synchronous>, transform_indices = @transform_1, window_bounds = array<i64: 21, 128>}, {pipeline_mode = #tpu.pipeline_mode<synchronous>, transform_indices = @transform_2, window_bounds = array<i64: 4, 128>}, {pipeline_mode = #tpu.pipeline_mode<synchronous>, transform_indices = @transform_3, window_bounds = array<i64: 128, 256>}, {pipeline_mode = #tpu.pipeline_mode<synchronous>, transform_indices = @transform_4, window_bounds = array<i64: 3, 256>}, {pipeline_mode = #tpu.pipeline_mode<synchronous>, transform_indices = @transform_5, window_bounds = array<i64: 256, 128>}, {transform_indices = @transform_6, window_bounds = array<i64: 2, 128, 128>}]} {
    %cst = arith.constant 0.000000e+00 : f32
    %0 = vector.broadcast %cst : f32 to vector<2x16x128xf32>
    %c0 = arith.constant 0 : index
    %c0_0 = arith.constant 0 : index
    %c0_1 = arith.constant 0 : index
    %1 = vector.load %arg8[%c0, %c0_0, %c0_1] : memref<2x160x128xf32, #tpu.memory_space<vmem>>, vector<2x16x128xf32>
    tpu.vector_store %arg8[%c0, %c0_0, %c0_1], %0 {strides = array<i32>} : memref<2x160x128xf32, #tpu.memory_space<vmem>>, vector<2x16x128xf32>,
    %cst_2 = arith.constant 0.000000e+00 : f32
    %2 = vector.broadcast %cst_2 : f32 to vector<2x16x128xf32>
    %c0_3 = arith.constant 0 : index
    %c144 = arith.constant 144 : index
    %c0_4 = arith.constant 0 : index
    %3 = vector.load %arg8[%c0_3, %c144, %c0_4] : memref<2x160x128xf32, #tpu.memory_space<vmem>>, vector<2x16x128xf32>
    tpu.vector_store %arg8[%c0_3, %c144, %c0_4], %2 {strides = array<i32>} : memref<2x160x128xf32, #tpu.memory_space<vmem>>, vector<2x16x128xf32>,
    %c0_5 = arith.constant 0 : index
    %c0_6 = arith.constant 0 : index
    %c0_7 = arith.constant 0 : index
    %4 = vector.load %arg1[%c0_5, %c0_6, %c0_7] : memref<2x128x128xf32, #tpu.memory_space<vmem>>, vector<1x128x128xf32>
    %5 = vector.shape_cast %4 : vector<1x128x128xf32> to vector<128x128xf32>
    %6 = tpu.transpose %5, [1, 0] : vector<128x128xf32> -> vector<128x128xf32>
    %c0_8 = arith.constant 0 : index
    %c16 = arith.constant 16 : index
    %c0_9 = arith.constant 0 : index
    %7 = vector.load %arg8[%c0_8, %c16, %c0_9] : memref<2x160x128xf32, #tpu.memory_space<vmem>>, vector<1x128x128xf32>
    %8 = vector.shape_cast %7 : vector<1x128x128xf32> to vector<128x128xf32>
    %9 = vector.shape_cast %6 : vector<128x128xf32> to vector<1x128x128xf32>
    tpu.vector_store %arg8[%c0_8, %c16, %c0_9], %9 {strides = array<i32>} : memref<2x160x128xf32, #tpu.memory_space<vmem>>, vector<1x128x128xf32>,
    %c1 = arith.constant 1 : index
    %c0_10 = arith.constant 0 : index
    %c0_11 = arith.constant 0 : index
    %10 = vector.load %arg1[%c1, %c0_10, %c0_11] : memref<2x128x128xf32, #tpu.memory_space<vmem>>, vector<1x128x128xf32>
    %11 = vector.shape_cast %10 : vector<1x128x128xf32> to vector<128x128xf32>
    %12 = tpu.transpose %11, [1, 0] : vector<128x128xf32> -> vector<128x128xf32>
    %c1_12 = arith.constant 1 : index
    %c16_13 = arith.constant 16 : index
    %c0_14 = arith.constant 0 : index
    %13 = vector.load %arg8[%c1_12, %c16_13, %c0_14] : memref<2x160x128xf32, #tpu.memory_space<vmem>>, vector<1x128x128xf32>
    %14 = vector.shape_cast %13 : vector<1x128x128xf32> to vector<128x128xf32>
    %15 = vector.shape_cast %12 : vector<128x128xf32> to vector<1x128x128xf32>
    tpu.vector_store %arg8[%c1_12, %c16_13, %c0_14], %15 {strides = array<i32>} : memref<2x160x128xf32, #tpu.memory_space<vmem>>, vector<1x128x128xf32>,
    %c0_15 = arith.constant 0 : index
    %c0_16 = arith.constant 0 : index
    %c0_17 = arith.constant 0 : index
    %16 = vector.load %arg8[%c0_15, %c0_16, %c0_17] : memref<2x160x128xf32, #tpu.memory_space<vmem>>, vector<2x160x128xf32>
    %cst_18 = arith.constant 0.000000e+00 : f32
    %17 = vector.broadcast %cst_18 : f32 to vector<2x128x128xf32>
    %18 = vector.extract_strided_slice %16 {offsets = [0, 0, 0], sizes = [2, 152, 128], strides = [1, 1, 1]} : vector<2x160x128xf32> to vector<2x152x128xf32>
    %19 = vector.extract_strided_slice %18 {offsets = [0, 8, 0], sizes = [2, 128, 128], strides = [1, 1, 1]} : vector<2x152x128xf32> to vector<2x128x128xf32>
    %c2 = arith.constant 2 : index
    %c0_19 = arith.constant 0 : index
    %20 = vector.load %arg2[%c2, %c0_19] : memref<21x128xf32, #tpu.memory_space<vmem>>, vector<1x128xf32>
    %21 = vector.shape_cast %20 : vector<1x128xf32> to vector<128xf32>
    %22 = vector.shape_cast %21 : vector<128xf32> to vector<1x1x128xf32>
    %23 = vector.broadcast %22 : vector<1x1x128xf32> to vector<2x128x128xf32>
    %24 = arith.mulf %19, %23 : vector<2x128x128xf32>
    %25 = arith.addf %17, %24 : vector<2x128x128xf32>
    %26 = vector.extract_strided_slice %18 {offsets = [0, 16, 0], sizes = [2, 128, 128], strides = [1, 1, 1]} : vector<2x152x128xf32> to vector<2x128x128xf32>
    %c10 = arith.constant 10 : index
    %c0_20 = arith.constant 0 : index
    %27 = vector.load %arg2[%c10, %c0_20] : memref<21x128xf32, #tpu.memory_space<vmem>>, vector<1x128xf32>
    %28 = vector.shape_cast %27 : vector<1x128xf32> to vector<128xf32>
    %29 = vector.shape_cast %28 : vector<128xf32> to vector<1x1x128xf32>
    %30 = vector.broadcast %29 : vector<1x1x128xf32> to vector<2x128x128xf32>
    %31 = arith.mulf %26, %30 : vector<2x128x128xf32>
    %32 = arith.addf %25, %31 : vector<2x128x128xf32>
    %33 = vector.extract_strided_slice %18 {offsets = [0, 24, 0], sizes = [2, 128, 128], strides = [1, 1, 1]} : vector<2x152x128xf32> to vector<2x128x128xf32>
    %c18 = arith.constant 18 : index
    %c0_21 = arith.constant 0 : index
    %34 = vector.load %arg2[%c18, %c0_21] : memref<21x128xf32, #tpu.memory_space<vmem>>, vector<1x128xf32>
    %35 = vector.shape_cast %34 : vector<1x128xf32> to vector<128xf32>
    %36 = vector.shape_cast %35 : vector<128xf32> to vector<1x1x128xf32>
    %37 = vector.broadcast %36 : vector<1x1x128xf32> to vector<2x128x128xf32>
    %38 = arith.mulf %33, %37 : vector<2x128x128xf32>
    %39 = arith.addf %32, %38 : vector<2x128x128xf32>
    %40 = vector.extract_strided_slice %16 {offsets = [0, 1, 0], sizes = [2, 152, 128], strides = [1, 1, 1]} : vector<2x160x128xf32> to vector<2x152x128xf32>
    %41 = vector.extract_strided_slice %40 {offsets = [0, 8, 0], sizes = [2, 128, 128], strides = [1, 1, 1]} : vector<2x152x128xf32> to vector<2x128x128xf32>
    %c3 = arith.constant 3 : index
    %c0_22 = arith.constant 0 : index
    %42 = vector.load %arg2[%c3, %c0_22] : memref<21x128xf32, #tpu.memory_space<vmem>>, vector<1x128xf32>
    %43 = vector.shape_cast %42 : vector<1x128xf32> to vector<128xf32>
    %44 = vector.shape_cast %43 : vector<128xf32> to vector<1x1x128xf32>
    %45 = vector.broadcast %44 : vector<1x1x128xf32> to vector<2x128x128xf32>
    %46 = arith.mulf %41, %45 : vector<2x128x128xf32>
    %47 = arith.addf %39, %46 : vector<2x128x128xf32>
    %48 = vector.extract_strided_slice %40 {offsets = [0, 16, 0], sizes = [2, 128, 128], strides = [1, 1, 1]} : vector<2x152x128xf32> to vector<2x128x128xf32>
    %c11 = arith.constant 11 : index
    %c0_23 = arith.constant 0 : index
    %49 = vector.load %arg2[%c11, %c0_23] : memref<21x128xf32, #tpu.memory_space<vmem>>, vector<1x128xf32>
    %50 = vector.shape_cast %49 : vector<1x128xf32> to vector<128xf32>
    %51 = vector.shape_cast %50 : vector<128xf32> to vector<1x1x128xf32>
    %52 = vector.broadcast %51 : vector<1x1x128xf32> to vector<2x128x128xf32>
    %53 = arith.mulf %48, %52 : vector<2x128x128xf32>
    %54 = arith.addf %47, %53 : vector<2x128x128xf32>
    %55 = vector.extract_strided_slice %40 {offsets = [0, 24, 0], sizes = [2, 128, 128], strides = [1, 1, 1]} : vector<2x152x128xf32> to vector<2x128x128xf32>
    %c19 = arith.constant 19 : index
    %c0_24 = arith.constant 0 : index
    %56 = vector.load %arg2[%c19, %c0_24] : memref<21x128xf32, #tpu.memory_space<vmem>>, vector<1x128xf32>
    %57 = vector.shape_cast %56 : vector<1x128xf32> to vector<128xf32>
    %58 = vector.shape_cast %57 : vector<128xf32> to vector<1x1x128xf32>
    %59 = vector.broadcast %58 : vector<1x1x128xf32> to vector<2x128x128xf32>
    %60 = arith.mulf %55, %59 : vector<2x128x128xf32>
    %61 = arith.addf %54, %60 : vector<2x128x128xf32>
    %62 = vector.extract_strided_slice %16 {offsets = [0, 2, 0], sizes = [2, 152, 128], strides = [1, 1, 1]} : vector<2x160x128xf32> to vector<2x152x128xf32>
    %63 = vector.extract_strided_slice %62 {offsets = [0, 8, 0], sizes = [2, 128, 128], strides = [1, 1, 1]} : vector<2x152x128xf32> to vector<2x128x128xf32>
    %c4 = arith.constant 4 : index
    %c0_25 = arith.constant 0 : index
    %64 = vector.load %arg2[%c4, %c0_25] : memref<21x128xf32, #tpu.memory_space<vmem>>, vector<1x128xf32>
    %65 = vector.shape_cast %64 : vector<1x128xf32> to vector<128xf32>
    %66 = vector.shape_cast %65 : vector<128xf32> to vector<1x1x128xf32>
    %67 = vector.broadcast %66 : vector<1x1x128xf32> to vector<2x128x128xf32>
    %68 = arith.mulf %63, %67 : vector<2x128x128xf32>
    %69 = arith.addf %61, %68 : vector<2x128x128xf32>
    %70 = vector.extract_strided_slice %62 {offsets = [0, 16, 0], sizes = [2, 128, 128], strides = [1, 1, 1]} : vector<2x152x128xf32> to vector<2x128x128xf32>
    %c12 = arith.constant 12 : index
    %c0_26 = arith.constant 0 : index
    %71 = vector.load %arg2[%c12, %c0_26] : memref<21x128xf32, #tpu.memory_space<vmem>>, vector<1x128xf32>
    %72 = vector.shape_cast %71 : vector<1x128xf32> to vector<128xf32>
    %73 = vector.shape_cast %72 : vector<128xf32> to vector<1x1x128xf32>
    %74 = vector.broadcast %73 : vector<1x1x128xf32> to vector<2x128x128xf32>
    %75 = arith.mulf %70, %74 : vector<2x128x128xf32>
    %76 = arith.addf %69, %75 : vector<2x128x128xf32>
    %77 = vector.extract_strided_slice %62 {offsets = [0, 24, 0], sizes = [2, 128, 128], strides = [1, 1, 1]} : vector<2x152x128xf32> to vector<2x128x128xf32>
    %c20 = arith.constant 20 : index
    %c0_27 = arith.constant 0 : index
    %78 = vector.load %arg2[%c20, %c0_27] : memref<21x128xf32, #tpu.memory_space<vmem>>, vector<1x128xf32>
    %79 = vector.shape_cast %78 : vector<1x128xf32> to vector<128xf32>
    %80 = vector.shape_cast %79 : vector<128xf32> to vector<1x1x128xf32>
    %81 = vector.broadcast %80 : vector<1x1x128xf32> to vector<2x128x128xf32>
    %82 = arith.mulf %77, %81 : vector<2x128x128xf32>
    %83 = arith.addf %76, %82 : vector<2x128x128xf32>
    %84 = vector.extract_strided_slice %16 {offsets = [0, 3, 0], sizes = [2, 144, 128], strides = [1, 1, 1]} : vector<2x160x128xf32> to vector<2x144x128xf32>
    %85 = vector.extract_strided_slice %84 {offsets = [0, 8, 0], sizes = [2, 128, 128], strides = [1, 1, 1]} : vector<2x144x128xf32> to vector<2x128x128xf32>
    %c5 = arith.constant 5 : index
    %c0_28 = arith.constant 0 : index
    %86 = vector.load %arg2[%c5, %c0_28] : memref<21x128xf32, #tpu.memory_space<vmem>>, vector<1x128xf32>
    %87 = vector.shape_cast %86 : vector<1x128xf32> to vector<128xf32>
    %88 = vector.shape_cast %87 : vector<128xf32> to vector<1x1x128xf32>
    %89 = vector.broadcast %88 : vector<1x1x128xf32> to vector<2x128x128xf32>
    %90 = arith.mulf %85, %89 : vector<2x128x128xf32>
    %91 = arith.addf %83, %90 : vector<2x128x128xf32>
    %92 = vector.extract_strided_slice %84 {offsets = [0, 16, 0], sizes = [2, 128, 128], strides = [1, 1, 1]} : vector<2x144x128xf32> to vector<2x128x128xf32>
    %c13 = arith.constant 13 : index
    %c0_29 = arith.constant 0 : index
    %93 = vector.load %arg2[%c13, %c0_29] : memref<21x128xf32, #tpu.memory_space<vmem>>, vector<1x128xf32>
    %94 = vector.shape_cast %93 : vector<1x128xf32> to vector<128xf32>
    %95 = vector.shape_cast %94 : vector<128xf32> to vector<1x1x128xf32>
    %96 = vector.broadcast %95 : vector<1x1x128xf32> to vector<2x128x128xf32>
    %97 = arith.mulf %92, %96 : vector<2x128x128xf32>
    %98 = arith.addf %91, %97 : vector<2x128x128xf32>
    %99 = vector.extract_strided_slice %16 {offsets = [0, 4, 0], sizes = [2, 144, 128], strides = [1, 1, 1]} : vector<2x160x128xf32> to vector<2x144x128xf32>
    %100 = vector.extract_strided_slice %99 {offsets = [0, 8, 0], sizes = [2, 128, 128], strides = [1, 1, 1]} : vector<2x144x128xf32> to vector<2x128x128xf32>
    %c6 = arith.constant 6 : index
    %c0_30 = arith.constant 0 : index
    %101 = vector.load %arg2[%c6, %c0_30] : memref<21x128xf32, #tpu.memory_space<vmem>>, vector<1x128xf32>
    %102 = vector.shape_cast %101 : vector<1x128xf32> to vector<128xf32>
    %103 = vector.shape_cast %102 : vector<128xf32> to vector<1x1x128xf32>
    %104 = vector.broadcast %103 : vector<1x1x128xf32> to vector<2x128x128xf32>
    %105 = arith.mulf %100, %104 : vector<2x128x128xf32>
    %106 = arith.addf %98, %105 : vector<2x128x128xf32>
    %107 = vector.extract_strided_slice %99 {offsets = [0, 16, 0], sizes = [2, 128, 128], strides = [1, 1, 1]} : vector<2x144x128xf32> to vector<2x128x128xf32>
    %c14 = arith.constant 14 : index
    %c0_31 = arith.constant 0 : index
    %108 = vector.load %arg2[%c14, %c0_31] : memref<21x128xf32, #tpu.memory_space<vmem>>, vector<1x128xf32>
    %109 = vector.shape_cast %108 : vector<1x128xf32> to vector<128xf32>
    %110 = vector.shape_cast %109 : vector<128xf32> to vector<1x1x128xf32>
    %111 = vector.broadcast %110 : vector<1x1x128xf32> to vector<2x128x128xf32>
    %112 = arith.mulf %107, %111 : vector<2x128x128xf32>
    %113 = arith.addf %106, %112 : vector<2x128x128xf32>
    %114 = vector.extract_strided_slice %16 {offsets = [0, 5, 0], sizes = [2, 144, 128], strides = [1, 1, 1]} : vector<2x160x128xf32> to vector<2x144x128xf32>
    %115 = vector.extract_strided_slice %114 {offsets = [0, 8, 0], sizes = [2, 128, 128], strides = [1, 1, 1]} : vector<2x144x128xf32> to vector<2x128x128xf32>
    %c7 = arith.constant 7 : index
    %c0_32 = arith.constant 0 : index
    %116 = vector.load %arg2[%c7, %c0_32] : memref<21x128xf32, #tpu.memory_space<vmem>>, vector<1x128xf32>
    %117 = vector.shape_cast %116 : vector<1x128xf32> to vector<128xf32>
    %118 = vector.shape_cast %117 : vector<128xf32> to vector<1x1x128xf32>
    %119 = vector.broadcast %118 : vector<1x1x128xf32> to vector<2x128x128xf32>
    %120 = arith.mulf %115, %119 : vector<2x128x128xf32>
    %121 = arith.addf %113, %120 : vector<2x128x128xf32>
    %122 = vector.extract_strided_slice %114 {offsets = [0, 16, 0], sizes = [2, 128, 128], strides = [1, 1, 1]} : vector<2x144x128xf32> to vector<2x128x128xf32>
    %c15 = arith.constant 15 : index
    %c0_33 = arith.constant 0 : index
    %123 = vector.load %arg2[%c15, %c0_33] : memref<21x128xf32, #tpu.memory_space<vmem>>, vector<1x128xf32>
    %124 = vector.shape_cast %123 : vector<1x128xf32> to vector<128xf32>
    %125 = vector.shape_cast %124 : vector<128xf32> to vector<1x1x128xf32>
    %126 = vector.broadcast %125 : vector<1x1x128xf32> to vector<2x128x128xf32>
    %127 = arith.mulf %122, %126 : vector<2x128x128xf32>
    %128 = arith.addf %121, %127 : vector<2x128x128xf32>
    %129 = vector.extract_strided_slice %16 {offsets = [0, 6, 0], sizes = [2, 144, 128], strides = [1, 1, 1]} : vector<2x160x128xf32> to vector<2x144x128xf32>
    %130 = vector.extract_strided_slice %129 {offsets = [0, 0, 0], sizes = [2, 128, 128], strides = [1, 1, 1]} : vector<2x144x128xf32> to vector<2x128x128xf32>
    %c0_34 = arith.constant 0 : index
    %c0_35 = arith.constant 0 : index
    %131 = vector.load %arg2[%c0_34, %c0_35] : memref<21x128xf32, #tpu.memory_space<vmem>>, vector<1x128xf32>
    %132 = vector.shape_cast %131 : vector<1x128xf32> to vector<128xf32>
    %133 = vector.shape_cast %132 : vector<128xf32> to vector<1x1x128xf32>
    %134 = vector.broadcast %133 : vector<1x1x128xf32> to vector<2x128x128xf32>
    %135 = arith.mulf %130, %134 : vector<2x128x128xf32>
    %136 = arith.addf %128, %135 : vector<2x128x128xf32>
    %137 = vector.extract_strided_slice %129 {offsets = [0, 8, 0], sizes = [2, 128, 128], strides = [1, 1, 1]} : vector<2x144x128xf32> to vector<2x128x128xf32>
    %c8 = arith.constant 8 : index
    %c0_36 = arith.constant 0 : index
    %138 = vector.load %arg2[%c8, %c0_36] : memref<21x128xf32, #tpu.memory_space<vmem>>, vector<1x128xf32>
    %139 = vector.shape_cast %138 : vector<1x128xf32> to vector<128xf32>
    %140 = vector.shape_cast %139 : vector<128xf32> to vector<1x1x128xf32>
    %141 = vector.broadcast %140 : vector<1x1x128xf32> to vector<2x128x128xf32>
    %142 = arith.mulf %137, %141 : vector<2x128x128xf32>
    %143 = arith.addf %136, %142 : vector<2x128x128xf32>
    %144 = vector.extract_strided_slice %129 {offsets = [0, 16, 0], sizes = [2, 128, 128], strides = [1, 1, 1]} : vector<2x144x128xf32> to vector<2x128x128xf32>
    %c16_37 = arith.constant 16 : index
    %c0_38 = arith.constant 0 : index
    %145 = vector.load %arg2[%c16_37, %c0_38] : memref<21x128xf32, #tpu.memory_space<vmem>>, vector<1x128xf32>
    %146 = vector.shape_cast %145 : vector<1x128xf32> to vector<128xf32>
    %147 = vector.shape_cast %146 : vector<128xf32> to vector<1x1x128xf32>
    %148 = vector.broadcast %147 : vector<1x1x128xf32> to vector<2x128x128xf32>
    %149 = arith.mulf %144, %148 : vector<2x128x128xf32>
    %150 = arith.addf %143, %149 : vector<2x128x128xf32>
    %151 = vector.extract_strided_slice %16 {offsets = [0, 7, 0], sizes = [2, 144, 128], strides = [1, 1, 1]} : vector<2x160x128xf32> to vector<2x144x128xf32>
    %152 = vector.extract_strided_slice %151 {offsets = [0, 0, 0], sizes = [2, 128, 128], strides = [1, 1, 1]} : vector<2x144x128xf32> to vector<2x128x128xf32>
    %c1_39 = arith.constant 1 : index
    %c0_40 = arith.constant 0 : index
    %153 = vector.load %arg2[%c1_39, %c0_40] : memref<21x128xf32, #tpu.memory_space<vmem>>, vector<1x128xf32>
    %154 = vector.shape_cast %153 : vector<1x128xf32> to vector<128xf32>
    %155 = vector.shape_cast %154 : vector<128xf32> to vector<1x1x128xf32>
    %156 = vector.broadcast %155 : vector<1x1x128xf32> to vector<2x128x128xf32>
    %157 = arith.mulf %152, %156 : vector<2x128x128xf32>
    %158 = arith.addf %150, %157 : vector<2x128x128xf32>
    %159 = vector.extract_strided_slice %151 {offsets = [0, 8, 0], sizes = [2, 128, 128], strides = [1, 1, 1]} : vector<2x144x128xf32> to vector<2x128x128xf32>
    %c9 = arith.constant 9 : index
    %c0_41 = arith.constant 0 : index
    %160 = vector.load %arg2[%c9, %c0_41] : memref<21x128xf32, #tpu.memory_space<vmem>>, vector<1x128xf32>
    %161 = vector.shape_cast %160 : vector<1x128xf32> to vector<128xf32>
    %162 = vector.shape_cast %161 : vector<128xf32> to vector<1x1x128xf32>
    %163 = vector.broadcast %162 : vector<1x1x128xf32> to vector<2x128x128xf32>
    %164 = arith.mulf %159, %163 : vector<2x128x128xf32>
    %165 = arith.addf %158, %164 : vector<2x128x128xf32>
    %166 = vector.extract_strided_slice %151 {offsets = [0, 16, 0], sizes = [2, 128, 128], strides = [1, 1, 1]} : vector<2x144x128xf32> to vector<2x128x128xf32>
    %c17 = arith.constant 17 : index
    %c0_42 = arith.constant 0 : index
    %167 = vector.load %arg2[%c17, %c0_42] : memref<21x128xf32, #tpu.memory_space<vmem>>, vector<1x128xf32>
    %168 = vector.shape_cast %167 : vector<1x128xf32> to vector<128xf32>
    %169 = vector.shape_cast %168 : vector<128xf32> to vector<1x1x128xf32>
    %170 = vector.broadcast %169 : vector<1x1x128xf32> to vector<2x128x128xf32>
    %171 = arith.mulf %166, %170 : vector<2x128x128xf32>
    %172 = arith.addf %165, %171 : vector<2x128x128xf32>
    %c0_43 = arith.constant 0 : index
    %c0_44 = arith.constant 0 : index
    %173 = vector.load %arg3[%c0_43, %c0_44] : memref<4x128xf32, #tpu.memory_space<vmem>>, vector<1x128xf32>
    %174 = vector.shape_cast %173 : vector<1x128xf32> to vector<128xf32>
    %175 = vector.shape_cast %174 : vector<128xf32> to vector<1x1x128xf32>
    %176 = vector.broadcast %175 : vector<1x1x128xf32> to vector<2x128x128xf32>
    %177 = arith.addf %172, %176 : vector<2x128x128xf32>
    %cst_45 = arith.constant dense<0.000000e+00> : vector<2x128xf32>
    %178 = vector.multi_reduction <add>, %177, %cst_45 [2] : vector<2x128x128xf32> to vector<2x128xf32>
    %179 = vector.shape_cast %178 : vector<2x128xf32> to vector<2x128x1xf32>
    %cst_46 = arith.constant 1.280000e+02 : f32
    %180 = vector.broadcast %cst_46 : f32 to vector<2x128x1xf32>
    %181 = arith.divf %179, %180 : vector<2x128x1xf32>
    %182 = vector.broadcast %181 : vector<2x128x1xf32> to vector<2x128x128xf32>
    %183 = arith.subf %177, %182 : vector<2x128x128xf32>
    %184 = arith.mulf %183, %183 : vector<2x128x128xf32>
    %cst_47 = arith.constant dense<0.000000e+00> : vector<2x128xf32>
    %185 = vector.multi_reduction <add>, %184, %cst_47 [2] : vector<2x128x128xf32> to vector<2x128xf32>
    %186 = vector.shape_cast %185 : vector<2x128xf32> to vector<2x128x1xf32>
    %cst_48 = arith.constant 1.280000e+02 : f32
    %187 = vector.broadcast %cst_48 : f32 to vector<2x128x1xf32>
    %188 = arith.divf %186, %187 : vector<2x128x1xf32>
    %cst_49 = arith.constant 9.99999997E-7 : f32
    %189 = vector.broadcast %cst_49 : f32 to vector<2x128x1xf32>
    %190 = arith.addf %188, %189 : vector<2x128x1xf32>
    %191 = math.rsqrt %190 : vector<2x128x1xf32>
    %192 = vector.broadcast %191 : vector<2x128x1xf32> to vector<2x128x128xf32>
    %193 = arith.mulf %183, %192 : vector<2x128x128xf32>
    %c1_50 = arith.constant 1 : index
    %c0_51 = arith.constant 0 : index
    %194 = vector.load %arg3[%c1_50, %c0_51] : memref<4x128xf32, #tpu.memory_space<vmem>>, vector<1x128xf32>
    %195 = vector.shape_cast %194 : vector<1x128xf32> to vector<128xf32>
    %196 = vector.shape_cast %195 : vector<128xf32> to vector<1x1x128xf32>
    %197 = vector.broadcast %196 : vector<1x1x128xf32> to vector<2x128x128xf32>
    %198 = arith.mulf %193, %197 : vector<2x128x128xf32>
    %c2_52 = arith.constant 2 : index
    %c0_53 = arith.constant 0 : index
    %199 = vector.load %arg3[%c2_52, %c0_53] : memref<4x128xf32, #tpu.memory_space<vmem>>, vector<1x128xf32>
    %200 = vector.shape_cast %199 : vector<1x128xf32> to vector<128xf32>
    %201 = vector.shape_cast %200 : vector<128xf32> to vector<1x1x128xf32>
    %202 = vector.broadcast %201 : vector<1x1x128xf32> to vector<2x128x128xf32>
    %203 = arith.addf %198, %202 : vector<2x128x128xf32>
    %204 = vector.shape_cast %203 : vector<2x128x128xf32> to vector<256x128xf32>
    %205 = arith.truncf %204 : vector<256x128xf32> to vector<256x128xbf16>
    %c0_54 = arith.constant 0 : index
    %c0_55 = arith.constant 0 : index
    %206 = vector.load %arg4[%c0_54, %c0_55] : memref<128x256xbf16, #tpu.memory_space<vmem>>, vector<128x256xbf16>
    %cst_56 = arith.constant dense<0.000000e+00> : vector<256x256xf32>
    %207 = tpu.matmul %205, %206, %cst_56 {dimension_numbers = #tpu.dot_dimension_numbers<[1], [0], [0], [1], [0, 0, 1, 1], [], []>} : vector<256x128xbf16>, vector<128x256xbf16>, vector<256x256xf32> -> vector<256x256xf32>
    %c0_57 = arith.constant 0 : index
    %c0_58 = arith.constant 0 : index
    %208 = vector.load %arg5[%c0_57, %c0_58] : memref<3x256xf32, #tpu.memory_space<vmem>>, vector<1x256xf32>
    %209 = vector.shape_cast %208 : vector<1x256xf32> to vector<256xf32>
    %210 = vector.shape_cast %209 : vector<256xf32> to vector<1x256xf32>
    %211 = vector.broadcast %210 : vector<1x256xf32> to vector<256x256xf32>
    %212 = arith.addf %207, %211 : vector<256x256xf32>
    %213 = arith.mulf %212, %212 : vector<256x256xf32>
    %214 = arith.mulf %212, %213 : vector<256x256xf32>
    %cst_59 = arith.constant 4.471500e-02 : f32
    %215 = vector.broadcast %cst_59 : f32 to vector<256x256xf32>
    %216 = arith.mulf %215, %214 : vector<256x256xf32>
    %217 = arith.addf %212, %216 : vector<256x256xf32>
    %cst_60 = arith.constant 0.797884583 : f32
    %218 = vector.broadcast %cst_60 : f32 to vector<256x256xf32>
    %219 = arith.mulf %218, %217 : vector<256x256xf32>
    %220 = math.tanh %219 : vector<256x256xf32>
    %cst_61 = arith.constant 1.000000e+00 : f32
    %221 = vector.broadcast %cst_61 : f32 to vector<256x256xf32>
    %222 = arith.addf %221, %220 : vector<256x256xf32>
    %cst_62 = arith.constant 5.000000e-01 : f32
    %223 = vector.broadcast %cst_62 : f32 to vector<256x256xf32>
    %224 = arith.mulf %223, %222 : vector<256x256xf32>
    %225 = arith.mulf %212, %224 : vector<256x256xf32>
    %226 = vector.shape_cast %225 : vector<256x256xf32> to vector<2x128x256xf32>
    %227 = arith.mulf %226, %226 : vector<2x128x256xf32>
    %cst_63 = arith.constant dense<0.000000e+00> : vector<2x256xf32>
    %228 = vector.multi_reduction <add>, %227, %cst_63 [1] : vector<2x128x256xf32> to vector<2x256xf32>
    %229 = vector.shape_cast %228 : vector<2x256xf32> to vector<2x1x256xf32>
    %230 = math.sqrt %229 : vector<2x1x256xf32>
    %cst_64 = arith.constant dense<0.000000e+00> : vector<2x1xf32>
    %231 = vector.multi_reduction <add>, %230, %cst_64 [2] : vector<2x1x256xf32> to vector<2x1xf32>
    %232 = vector.shape_cast %231 : vector<2x1xf32> to vector<2x1x1xf32>
    %cst_65 = arith.constant 2.560000e+02 : f32
    %233 = vector.broadcast %cst_65 : f32 to vector<2x1x1xf32>
    %234 = arith.divf %232, %233 : vector<2x1x1xf32>
    %cst_66 = arith.constant 9.99999997E-7 : f32
    %235 = vector.broadcast %cst_66 : f32 to vector<2x1x1xf32>
    %236 = arith.addf %234, %235 : vector<2x1x1xf32>
    %237 = vector.broadcast %236 : vector<2x1x1xf32> to vector<2x1x256xf32>
    %238 = arith.divf %230, %237 : vector<2x1x256xf32>
    %c1_67 = arith.constant 1 : index
    %c0_68 = arith.constant 0 : index
    %239 = vector.load %arg5[%c1_67, %c0_68] : memref<3x256xf32, #tpu.memory_space<vmem>>, vector<1x256xf32>
    %240 = vector.shape_cast %239 : vector<1x256xf32> to vector<256xf32>
    %241 = vector.shape_cast %240 : vector<256xf32> to vector<1x1x256xf32>
    %242 = vector.broadcast %241 : vector<1x1x256xf32> to vector<2x1x256xf32>
    %243 = arith.mulf %242, %238 : vector<2x1x256xf32>
    %cst_69 = arith.constant 1.000000e+00 : f32
    %244 = vector.broadcast %cst_69 : f32 to vector<2x1x256xf32>
    %245 = arith.addf %243, %244 : vector<2x1x256xf32>
    %246 = vector.broadcast %245 : vector<2x1x256xf32> to vector<2x128x256xf32>
    %247 = arith.mulf %226, %246 : vector<2x128x256xf32>
    %c2_70 = arith.constant 2 : index
    %c0_71 = arith.constant 0 : index
    %248 = vector.load %arg5[%c2_70, %c0_71] : memref<3x256xf32, #tpu.memory_space<vmem>>, vector<1x256xf32>
    %249 = vector.shape_cast %248 : vector<1x256xf32> to vector<256xf32>
    %250 = vector.shape_cast %249 : vector<256xf32> to vector<1x1x256xf32>
    %251 = vector.broadcast %250 : vector<1x1x256xf32> to vector<2x128x256xf32>
    %252 = arith.addf %247, %251 : vector<2x128x256xf32>
    %253 = vector.shape_cast %252 : vector<2x128x256xf32> to vector<256x256xf32>
    %254 = arith.truncf %253 : vector<256x256xf32> to vector<256x256xbf16>
    %c0_72 = arith.constant 0 : index
    %c0_73 = arith.constant 0 : index
    %255 = vector.load %arg6[%c0_72, %c0_73] : memref<256x128xbf16, #tpu.memory_space<vmem>>, vector<256x128xbf16>
    %cst_74 = arith.constant dense<0.000000e+00> : vector<256x128xf32>
    %256 = tpu.matmul %254, %255, %cst_74 {dimension_numbers = #tpu.dot_dimension_numbers<[1], [0], [0], [1], [0, 0, 1, 1], [], []>} : vector<256x256xbf16>, vector<256x128xbf16>, vector<256x128xf32> -> vector<256x128xf32>
    %c3_75 = arith.constant 3 : index
    %c0_76 = arith.constant 0 : index
    %257 = vector.load %arg3[%c3_75, %c0_76] : memref<4x128xf32, #tpu.memory_space<vmem>>, vector<1x128xf32>
    %258 = vector.shape_cast %257 : vector<1x128xf32> to vector<128xf32>
    %259 = vector.shape_cast %258 : vector<128xf32> to vector<1x128xf32>
    %260 = vector.broadcast %259 : vector<1x128xf32> to vector<256x128xf32>
    %261 = arith.addf %256, %260 : vector<256x128xf32>
    %262 = vector.shape_cast %261 : vector<256x128xf32> to vector<2x128x128xf32>
    %263 = vector.extract_strided_slice %262 {offsets = [0, 0, 0], sizes = [1, 128, 128], strides = [1, 1, 1]} : vector<2x128x128xf32> to vector<1x128x128xf32>
    %264 = vector.shape_cast %263 : vector<1x128x128xf32> to vector<128x128xf32>
    %265 = tpu.transpose %264, [1, 0] : vector<128x128xf32> -> vector<128x128xf32>
    %c0_77 = arith.constant 0 : index
    %c0_78 = arith.constant 0 : index
    %c0_79 = arith.constant 0 : index
    %266 = vector.load %arg1[%c0_77, %c0_78, %c0_79] : memref<2x128x128xf32, #tpu.memory_space<vmem>>, vector<1x128x128xf32>
    %267 = vector.shape_cast %266 : vector<1x128x128xf32> to vector<128x128xf32>
    %268 = arith.addf %265, %267 : vector<128x128xf32>
    %c0_80 = arith.constant 0 : index
    %c0_81 = arith.constant 0 : index
    %c0_82 = arith.constant 0 : index
    %269 = vector.load %arg7[%c0_80, %c0_81, %c0_82] : memref<2x128x128xf32, #tpu.memory_space<vmem>>, vector<1x128x128xf32>
    %270 = vector.shape_cast %269 : vector<1x128x128xf32> to vector<128x128xf32>
    %271 = vector.shape_cast %268 : vector<128x128xf32> to vector<1x128x128xf32>
    tpu.vector_store %arg7[%c0_80, %c0_81, %c0_82], %271 {strides = array<i32>} : memref<2x128x128xf32, #tpu.memory_space<vmem>>, vector<1x128x128xf32>,
    %272 = vector.extract_strided_slice %262 {offsets = [1, 0, 0], sizes = [1, 128, 128], strides = [1, 1, 1]} : vector<2x128x128xf32> to vector<1x128x128xf32>
    %273 = vector.shape_cast %272 : vector<1x128x128xf32> to vector<128x128xf32>
    %274 = tpu.transpose %273, [1, 0] : vector<128x128xf32> -> vector<128x128xf32>
    %c1_83 = arith.constant 1 : index
    %c0_84 = arith.constant 0 : index
    %c0_85 = arith.constant 0 : index
    %275 = vector.load %arg1[%c1_83, %c0_84, %c0_85] : memref<2x128x128xf32, #tpu.memory_space<vmem>>, vector<1x128x128xf32>
    %276 = vector.shape_cast %275 : vector<1x128x128xf32> to vector<128x128xf32>
    %277 = arith.addf %274, %276 : vector<128x128xf32>
    %c1_86 = arith.constant 1 : index
    %c0_87 = arith.constant 0 : index
    %c0_88 = arith.constant 0 : index
    %278 = vector.load %arg7[%c1_86, %c0_87, %c0_88] : memref<2x128x128xf32, #tpu.memory_space<vmem>>, vector<1x128x128xf32>
    %279 = vector.shape_cast %278 : vector<1x128x128xf32> to vector<128x128xf32>
    %280 = vector.shape_cast %277 : vector<128x128xf32> to vector<1x128x128xf32>
    tpu.vector_store %arg7[%c1_86, %c0_87, %c0_88], %280 {strides = array<i32>} : memref<2x128x128xf32, #tpu.memory_space<vmem>>, vector<1x128x128xf32>,
    return
  }
  func.func @transform_0(%arg0: i32) -> (i32, i32, i32) {
    %c0_i32 = arith.constant 0 : i32
    %c0_i32_0 = arith.constant 0 : i32
    %c0_i32_1 = arith.constant 0 : i32
    return %arg0, %c0_i32, %c0_i32_0 : i32, i32, i32
  }
  func.func @transform_1(%arg0: i32) -> (i32, i32) {
    %c0_i32 = arith.constant 0 : i32
    %c0_i32_0 = arith.constant 0 : i32
    %c0_i32_1 = arith.constant 0 : i32
    return %c0_i32, %c0_i32_0 : i32, i32
  }
  func.func @transform_2(%arg0: i32) -> (i32, i32) {
    %c0_i32 = arith.constant 0 : i32
    %c0_i32_0 = arith.constant 0 : i32
    %c0_i32_1 = arith.constant 0 : i32
    return %c0_i32, %c0_i32_0 : i32, i32
  }
  func.func @transform_3(%arg0: i32) -> (i32, i32) {
    %c0_i32 = arith.constant 0 : i32
    %c0_i32_0 = arith.constant 0 : i32
    %c0_i32_1 = arith.constant 0 : i32
    return %c0_i32, %c0_i32_0 : i32, i32
  }
  func.func @transform_4(%arg0: i32) -> (i32, i32) {
    %c0_i32 = arith.constant 0 : i32
    %c0_i32_0 = arith.constant 0 : i32
    %c0_i32_1 = arith.constant 0 : i32
    return %c0_i32, %c0_i32_0 : i32, i32
  }
  func.func @transform_5(%arg0: i32) -> (i32, i32) {
    %c0_i32 = arith.constant 0 : i32
    %c0_i32_0 = arith.constant 0 : i32
    %c0_i32_1 = arith.constant 0 : i32
    return %c0_i32, %c0_i32_0 : i32, i32
  }
  func.func @transform_6(%arg0: i32) -> (i32, i32, i32) {
    %c0_i32 = arith.constant 0 : i32
    %c0_i32_0 = arith.constant 0 : i32
    %c0_i32_1 = arith.constant 0 : i32
    return %arg0, %c0_i32, %c0_i32_0 : i32, i32, i32
  }
}

</mosaic_0001>

<bundles_post_ra>
// kernel: basic_convnext_block.1
= control target key start
LH: loop header
LB: loop body
LE: loop exit
PB: predicated region body
PF: predicated region fallthrough
CT: control target
= control target key end

     0   :  { %11 = vsyncpa [#allocation4], 0  ;;  %s15874_s0 = inlined_call_operand.hbm [shape: f32[8,128,128], index: 0, kind: input, shape index: {}]   ;;  %s15875_s1 = inlined_call_operand.vmem [shape: f32[21,128], index: 1, kind: input, shape index: {}]   ;;  %s15876_s2 = inlined_call_operand.vmem [shape: f32[4,128], index: 2, kind: input, shape index: {}]   ;;  %s15877_s3 = inlined_call_operand.vmem [shape: bf16[128,256], index: 3, kind: input, shape index: {}]   ;;  %s15878_s4 = inlined_call_operand.vmem [shape: f32[3,256], index: 4, kind: input, shape index: {}]   ;;  %s15879_s5 = inlined_call_operand.vmem [shape: bf16[256,128], index: 5, kind: input, shape index: {}]   ;;  %s15880_s6 = inlined_call_operand.hbm [shape: f32[8,128,128], index: 6, kind: output, shape index: {}]  }
   0x1   :  { %13 = vsyncpa [#allocation4 + $0x1], 0 }
   0x2   :  { %14 = vsyncpa [#allocation5], 0 }
   0x3   :  { %16 = vsyncpa [#allocation5 + $0x1], 0  ;;  %s7414_s21 = smov 0   ;;  %s7416_s22 = smov 0  }
   0x4   :  { %s7418_s23 = smov 0   ;;  %s7420_s24 = smov 0  }
   0x5 LB: > { %s7435_s25 = sadd.s32 4294967295, %s7369_s24   ;;  %s6650_s26 = sadd.s32 4294967294, %s7369_s24   ;;  %s7369_s24 = sphi %s7420_s24, %s17690_s24   ;;  %s7365_s23 = sphi %s7418_s23, %s17689_s23   ;;  %s7361_s22 = sphi %s7416_s22, %s17688_s22   ;;  %s7357_s21 = sphi %s7414_s21, %s17687_s21  }
   0x6   : > { %s7439_s27 = sadd.s32 1, %s7369_s24   ;;  %s29_s28 = sadd.s32 1, %s7365_s23 }
   0x7   : > { %s26_s29 = ssub.s32 %s7369_s24, %s7439_s27  ;;  %p36_p0 = scmp.ne.s32.totalorder %s7365_s23, %s7361_s22 }
   0x8   : > { %p27_p1 = scmp.eq.s32.totalorder %s26_s29, 0  ;;  %p37_p2 = scmp.eq.s32.totalorder %s7369_s24, 0 }
   0x9   : > { %p42_p3 = scmp.ne.s32.totalorder %s7361_s22, %s7357_s21  ;;  %p43_p4 = scmp.eq.s32.totalorder %s7435_s25, 0 }
   0xa   : > { %s7451_s30 = scalar_select %p27_p1, %s7365_s23, %s29_s28  }
   0xb   : > { %p7453_p5 = por %p37_p2, %p36_p0  ;;  %p7457_p6 = por %p43_p4, %p42_p3 }
   0xc   : > { %p171_p7 = scmp.eq.s32.totalorder %s7435_s25, 3  ;;  %p177_p8 = scmp.eq.s32.totalorder %s6650_s26, 3 }
   0xd   : > { %p6901_p9 = scmp.lt.s32.totalorder %s7369_s24, 4  ;;  %s212_s11 = sand.u32 1, %s7365_s23  }
   0xe   : > { %p7463_p10 = por %p171_p7, %p36_p0  ;;  %p7467_p11 = por %p177_p8, %p42_p3 }
   0xf   : > { %s6774_s12 = sshll.u32 %s7369_s24, 12  ;;  %s6653_s13 = sshll.u32 %s212_s11, 8 }
  0x10   : > { %s16407_s9 = scalar_select %p7463_p10, 1, 0 }
  0x11   : > { %s16408_s10 = scalar_select %p7467_p11, 1, 0 }
  0x12   : > { %s7476_s16 = scalar_lea.hbm %s15874_s0, %s6774_s12  ;;  %s216_s17 = scalar_lea.vmem [#allocation3], %s6653_s13 }
  0x13   : > { %s224_s18 = sshll.u32 %s216_s17, 4  ;;  %p7480_p12 = pnand %p6901_p9, %p7453_p5  ;;  %s7484_s18 = int_to_ptr.vmem [resolvable:$true] %s224_s18 }
  0x14   : > { %s7486_s20 = scalar_lea.sflag [#allocation4], %s212_s11  ;;  %s7273_s26 = scalar_lea.hbm %s7476_s16, 4096 }
  0x15   : > { %p7274_p13 = scmp.ne.s32.totalorder %s7476_s16, %s7273_s26  ;;  %p7275_p0 = pneg %p7480_p12 }
  0x16   : > { %s7278_s7 = scalar_lea.hbm %s15874_s0, 16384  ;;  %p7279_p3 = scmp.lt.u32.totalorder %s7476_s16, %s15874_s0 }
  0x17   : > { %p7276_p1 = pnand %p7275_p0, %p7274_p13  ;;  %p7280_p4 = scmp.lt.u32.totalorder %s7278_s7, %s7273_s26 }
  0x18   : > { %p7282_p7 = scmp.lt.u32.totalorder %s7273_s26, %s7476_s16 }
  0x19   : > { %p7277_p2 = pneg %p7276_p1  ;;  %p7281_p5 = por %p7280_p4, %p7279_p3 }
  0x1b   : > { %p7283_p8 = por %p7282_p7, %p7281_p5 }
  0x1d   : > { %p7284_p9 = pnand %p7283_p8, %p7277_p2 }
  0x1f   : > { %7287 = shalt.err (!%p7284_p9)
}
  0x20   : > { %s7288_s11 = scalar_lea.vmem %s7484_s18, 4096  ;;  %s7371_s14 = smov [#allocation3]  }
  0x21   : > { %p7289_p13 = scmp.ne.s32.totalorder %s7484_s18, %s7288_s11  ;;  %s7293_s15 = sshll.u32 %s7371_s14, 4  ;;  %s7294_s15 = int_to_ptr.vmem [resolvable:$false] %s7293_s15 }
  0x22   : > { %s7295_s17 = scalar_lea.vmem %s7294_s15, 8192  ;;  %p7296_p10 = scmp.lt.s32.totalorder %s7484_s18, %s7294_s15 }
  0x23   : > { %p7291_p1 = pnand %p7289_p13, %p7275_p0  ;;  %p7297_p3 = scmp.lt.s32.totalorder %s7295_s17, %s7288_s11 }
  0x25   : > { %p7292_p11 = pneg %p7291_p1  ;;  %p7298_p4 = por %p7297_p3, %p7296_p10 }
  0x27   : > { %p7299_p5 = pnand %p7298_p4, %p7292_p11 }
  0x29   : > { %7302 = shalt.err (!%p7299_p5)
}
  0x2a   : > { %s7372_s26 = smov 128   ;;  %s7373_s28 = smov 8  }
  0x2b   : > { %6896 = dma.hbm_to_vmem [thread:$0]  (!%p7480_p12), %s7476_s16, 4096, %s7484_s18, %s7486_s20, %s7372_s26, %s7372_s26, %s7373_s28  }
  0x2c   : > { %p6657_p0 = scmp.ge.s32.totalorder %s7369_s24, 1  ;;  %p232_p2 = scmp.lt.s32.totalorder %s7369_s24, 5 }
  0x2e   : > { %p233_p7 = pnand %p6657_p0, %p232_p2 }
  0x30   : > { %236 = sbr.rel (%p233_p7) target bundleno = 2165 (0x875), region = 44 }
  0x37   : > { %s7517_s29 = sand.u32 1, %s7361_s22  }
  0x38   : > { %s6658_s7 = sshll.u32 %s7517_s29, 8  ;;  %s239_s12 = scalar_lea.sflag [#allocation4], %s7517_s29 }
  0x39   : > { %s7523_s13 = scalar_lea.vmem [#allocation3], %s6658_s7 }
  0x3a   : > { %7348 = dma.done.wait (%p7457_p6), %s239_s12, 4096  }
  0x3b   : > { %7350 = vsyncadd (%p7457_p6), %s239_s12, 4294963200  ;;  %v282_v0 = vld [vmem:[%s7523_s13] sm:$0xff]  ;;  %v283_v1 = vld [vmem:[%s7523_s13 + $0x8] sm:$0xff]  ;;  %vm732_vm0 = vcmask 1046528   ;;  %vm1342_vm1 = vcmask 1045504   ;;  %vm1952_vm2 = vcmask 1044480  }
  0x3c   : > { %298 = vxpose.xlu0.b32.start [1/16] %v282_v0, 128  ;;  %v6660_v2 = vld [vmem:[%s7523_s13 + $0x80] sm:$0xff]  ;;  %v284_v3 = vld [vmem:[%s7523_s13 + $0x10] sm:$0xff]  ;;  %v6661_v4 = vld [vmem:[%s7523_s13 + $0x88] sm:$0xff]  ;;  %vm2359_vm3 = vcmask 1043456   ;;  %vm2766_vm4 = vcmask 1042432   ;;  %vm3173_vm5 = vcmask 1041408  }
  0x3d   : > { %363 = vxpose.xlu1.b32.start [1/16] %v6660_v2, 128  ;;  %v285_v5 = vld [vmem:[%s7523_s13 + $0x18] sm:$0xff]  ;;  %v6662_v6 = vld [vmem:[%s7523_s13 + $0x90] sm:$0xff]  ;;  %v286_v7 = vld [vmem:[%s7523_s13 + $0x20] sm:$0xff]  ;;  %vm3783_vm6 = vcmask 1040384   ;;  %s15746_s17 = scalar_lea.vmem [#allocation6], %s6658_s7  ;;  %s6776_s7 = sshll.u32 %s7435_s25, 12 }
  0x3e   : > { %v6663_v8 = vld [vmem:[%s7523_s13 + $0x98] sm:$0xff]  ;;  %v287_v9 = vld [vmem:[%s7523_s13 + $0x28] sm:$0xff]  ;;  %v6664_v10 = vld [vmem:[%s7523_s13 + $0xa0] sm:$0xff]  ;;  %s6577_s26 = sshll.u32 %s15746_s17, 4  ;;  %s15828_s8 = scalar_lea.hbm %s15880_s6, %s6776_s7  ;;  %s15830_s26 = int_to_ptr.vmem [resolvable:$true] %s6577_s26 }
  0x3f   : > { %v288_v11 = vld [vmem:[%s7523_s13 + $0x30] sm:$0xff]  ;;  %v6665_v12 = vld [vmem:[%s7523_s13 + $0xa8] sm:$0xff]  ;;  %v289_v13 = vld [vmem:[%s7523_s13 + $0x38] sm:$0xff]  ;;  %s6563_s16 = scalar_lea.sflag [#allocation5], %s7517_s29  ;;  %s7303_s18 = scalar_lea.vmem %s15830_s26, 4096 }
  0x40   : > { %299 = vxpose.xlu0.b32.cont [2/16] %v283_v1, 128  ;;  %v6666_v14 = vld [vmem:[%s7523_s13 + $0xb0] sm:$0xff]  ;;  %v290_v15 = vld [vmem:[%s7523_s13 + $0x40] sm:$0xff]  ;;  %v6667_v16 = vld [vmem:[%s7523_s13 + $0xb8] sm:$0xff]  ;;  %p7304_p6 = scmp.ne.s32.totalorder %s15830_s26, %s7303_s18  ;;  %p17685_p10 = scmp.ne.s32.totalorder %s16407_s9, 0 }
  0x41   : > { %364 = vxpose.xlu1.b32.cont [2/16] %v6661_v4, 128  ;;  %v291_v17 = vld [vmem:[%s7523_s13 + $0x48] sm:$0xff]  ;;  %v6668_v18 = vld [vmem:[%s7523_s13 + $0xc0] sm:$0xff]  ;;  %v292_v19 = vld [vmem:[%s7523_s13 + $0x50] sm:$0xff]  ;;  %s7376_s25 = smov [#allocation6]  }
  0x42   : > { %v6669_v20 = vld [vmem:[%s7523_s13 + $0xc8] sm:$0xff]  ;;  %v293_v21 = vld [vmem:[%s7523_s13 + $0x58] sm:$0xff]  ;;  %v6670_v22 = vld [vmem:[%s7523_s13 + $0xd0] sm:$0xff]  ;;  %p7305_p11 = pnand %p7304_p6, %p17685_p10 }
  0x43   : > { %v294_v23 = vld [vmem:[%s7523_s13 + $0x60] sm:$0xff]  ;;  %v6671_v24 = vld [vmem:[%s7523_s13 + $0xd8] sm:$0xff]  ;;  %v295_v25 = vld [vmem:[%s7523_s13 + $0x68] sm:$0xff] }
  0x44   : > { %300 = vxpose.xlu0.b32.cont [3/16] %v284_v3, 128  ;;  %v6672_v26 = vld [vmem:[%s7523_s13 + $0xe0] sm:$0xff]  ;;  %v296_v27 = vld [vmem:[%s7523_s13 + $0x70] sm:$0xff]  ;;  %v6673_v28 = vld [vmem:[%s7523_s13 + $0xe8] sm:$0xff]  ;;  %p7306_p12 = pneg %p7305_p11 }
  0x45   : > { %365 = vxpose.xlu1.b32.cont [3/16] %v6662_v6, 128  ;;  %v297_v29 = vld [vmem:[%s7523_s13 + $0x78] sm:$0xff]  ;;  %v6674_v30 = vld [vmem:[%s7523_s13 + $0xf0] sm:$0xff]  ;;  %v7564_v32 = vld [vmem:[%s15875_s1 + $0x3] ss:$0 sm:$0xff] }
  0x46   : > { %v6675_v31 = vld [vmem:[%s7523_s13 + $0xf8] sm:$0xff]  ;;  %16410 = vst [vmem:[#allocation9_spill] sm:$0xff] %v7564_v32  ;;  %v7569_v33 = vld [vmem:[%s15875_s1 + $0x4] ss:$0 sm:$0xff]  ;;  %v7574_v34 = vld [vmem:[%s15875_s1 + $0x5] ss:$0 sm:$0xff] }
  0x47   : > { %16411 = vst [vmem:[#allocation10_spill] sm:$0xff] %v7569_v33  ;;  %v7579_v35 = vld [vmem:[%s15875_s1 + $0x6] ss:$0 sm:$0xff]  ;;  %v7584_v36 = vld [vmem:[%s15875_s1 + $0x7] ss:$0 sm:$0xff]  ;;  %v7592_v38 = vmul.f32 0.0, %v7564_v32 }
  0x48   : > { %301 = vxpose.xlu0.b32.cont [4/16] %v285_v5, 128  ;;  %v7589_v37 = vld [vmem:[%s15875_s1 + $0x2] ss:$0 sm:$0xff]  ;;  %v7595_v39 = vmul.f32 0.0, %v7569_v33  ;;  %v7598_v40 = vmul.f32 0.0, %v7574_v34  ;;  %v7603_v41 = vld [vmem:[%s15875_s1] ss:$0 sm:$0xff] }
  0x49   : > { %366 = vxpose.xlu1.b32.cont [4/16] %v6663_v8, 128  ;;  %16412 = vst [vmem:[#allocation11_spill] sm:$0xff] %v7592_v38  ;;  %v7606_v42 = vmul.f32 0.0, %v7579_v35  ;;  %v7609_v43 = vmul.f32 0.0, %v7584_v36  ;;  %v7614_v44 = vld [vmem:[%s15875_s1 + $0x8] ss:$0 sm:$0xff]  ;;  %v7632_v48 = vmul.f32 0.0, %v7589_v37 }
  0x4a   : > { %16413 = vst [vmem:[#allocation12_spill] sm:$0xff] %v7595_v39  ;;  %16414 = vst [vmem:[#allocation13_spill] sm:$0xff] %v7598_v40  ;;  %v7619_v45 = vld [vmem:[%s15875_s1 + $0x1] ss:$0 sm:$0xff]  ;;  %v7624_v46 = vld [vmem:[%s15875_s1 + $0xa] ss:$0 sm:$0xff] }
  0x4b   : > { %16415 = vst [vmem:[#allocation14_spill] sm:$0xff] %v7606_v42  ;;  %16416 = vst [vmem:[#allocation15_spill] sm:$0xff] %v7609_v43  ;;  %v7629_v47 = vld [vmem:[%s15875_s1 + $0x9] ss:$0 sm:$0xff]  ;;  %v7637_v49 = vld [vmem:[%s15875_s1 + $0xb] ss:$0 sm:$0xff] }
  0x4c   : > { %302 = vxpose.xlu0.b32.cont [5/16] %v286_v7, 128  ;;  %16417 = vst [vmem:[#allocation16_spill] sm:$0xff] %v7624_v46  ;;  %16418 = vst [vmem:[#allocation17_spill] sm:$0xff] %v7632_v48  ;;  %v7642_v50 = vld [vmem:[%s15875_s1 + $0xc] ss:$0 sm:$0xff]  ;;  %v3105_v51 = vmul.f32 0.0, %v7603_v41  ;;  %v15884_v52 = vrot.slane %v7592_v38, 1 }
  0x4d   : > { %367 = vxpose.xlu1.b32.cont [5/16] %v6664_v10, 128  ;;  %16419 = vst [vmem:[#allocation18_spill] sm:$0xff] %v7637_v49  ;;  %16420 = vst [vmem:[#allocation19_spill] sm:$0xff] %v7642_v50  ;;  %v15883_v53 = vrot.slane %v7595_v39, 2  ;;  %v7650_v54 = vld [vmem:[%s15875_s1 + $0xd] ss:$0 sm:$0xff]  ;;  %v7653_v55 = vmul.f32 0.0, %v7614_v44 }
  0x4e   : > { %v3715_v56 = vmul.f32 0.0, %v7619_v45  ;;  %v15882_v58 = vrot.slane %v7598_v40, 3  ;;  %v15888_v59 = vrot.slane %v7606_v42, 4  ;;  %v7662_v61 = vmul.f32 0.0, %v7629_v47  ;;  %v7679_v2 = vld [vmem:[%s15875_s1 + $0x12] ss:$0 sm:$0xff] }
  0x4f   : > { %16421 = vst [vmem:[#allocation20_spill] sm:$0xff] %v7653_v55  ;;  %16423 = vst [vmem:[#allocation22_spill] sm:$0xff] %v7679_v2  ;;  %v7684_v3 = vld [vmem:[%s15875_s1 + $0x13] ss:$0 sm:$0xff]  ;;  %v7696_v7 = vrot.slane %v3105_v51, 6 }
  0x50   : > { %303 = vxpose.xlu0.b32.cont [6/16] %v287_v9, 128  ;;  %16422 = vst [vmem:[#allocation21_spill] sm:$0xff] %v7662_v61  ;;  %16424 = vst [vmem:[#allocation23_spill] sm:$0xff] %v7684_v3  ;;  %v7702_v9 = vld [vmem:[%s15875_s1 + $0x14] ss:$0 sm:$0xff] }
  0x51   : > { %368 = vxpose.xlu1.b32.cont [6/16] %v6665_v12, 128  ;;  %16425 = vst [vmem:[#allocation24_spill] sm:$0xff] %v7696_v7  ;;  %16426 = vst [vmem:[#allocation25_spill] sm:$0xff] %v7702_v9  ;;  %v7709_v12 = vrot.slane %v3715_v56, 7 }
  0x53   : > { %16427 = vst [vmem:[#allocation26_spill] sm:$0xff] %v7709_v12 }
  0x54   : > { %304 = vxpose.xlu0.b32.cont [7/16] %v288_v11, 128 }
  0x55   : > { %369 = vxpose.xlu1.b32.cont [7/16] %v6666_v14, 128 }
  0x58   : > { %305 = vxpose.xlu0.b32.cont [8/16] %v289_v13, 128 }
  0x59   : > { %370 = vxpose.xlu1.b32.cont [8/16] %v6667_v16, 128 }
  0x5c   : > { %306 = vxpose.xlu0.b32.cont [9/16] %v290_v15, 128 }
  0x5d   : > { %371 = vxpose.xlu1.b32.cont [9/16] %v6668_v18, 128 }
  0x60   : > { %307 = vxpose.xlu0.b32.cont [10/16] %v291_v17, 128 }
  0x61   : > { %372 = vxpose.xlu1.b32.cont [10/16] %v6669_v20, 128 }
  0x64   : > { %308 = vxpose.xlu0.b32.cont [11/16] %v292_v19, 128 }
  0x65   : > { %373 = vxpose.xlu1.b32.cont [11/16] %v6670_v22, 128 }
  0x68   : > { %309 = vxpose.xlu0.b32.cont [12/16] %v293_v21, 128 }
  0x69   : > { %374 = vxpose.xlu1.b32.cont [12/16] %v6671_v24, 128 }
  0x6c   : > { %310 = vxpose.xlu0.b32.cont [13/16] %v294_v23, 128 }
  0x6d   : > { %375 = vxpose.xlu1.b32.cont [13/16] %v6672_v26, 128 }
  0x70   : > { %311 = vxpose.xlu0.b32.cont [14/16] %v295_v25, 128 }
  0x71   : > { %376 = vxpose.xlu1.b32.cont [14/16] %v6673_v28, 128 }
  0x74   : > { %312 = vxpose.xlu0.b32.cont [15/16] %v296_v27, 128 }
  0x75   : > { %377 = vxpose.xlu1.b32.cont [15/16] %v6674_v30, 128  ;;  %v7742_v30 = vld [vmem:[%s15875_s1 + $0xe] ss:$0 sm:$0xff] }
  0x78   : > { %313 = vxpose.xlu0.b32.end [16/16] %v297_v29, 128 }
  0x79   : > { %378 = vxpose.xlu1.b32.end [16/16] %v6675_v31, 128 }
  0xbc   : > { %v7656_v57 = vpop.trf.xlu0 }
  0xbd   : > { %v526_v62 = vmul.f32 %v7624_v46, %v7656_v57  ;;  %v7668_v63 = vmul.f32 %v7564_v32, %v7656_v57  ;;  %v868_v0 = vmul.f32 %v7637_v49, %v7656_v57  ;;  %v7674_v1 = vmul.f32 %v7569_v33, %v7656_v57 }
  0xbe   : > { %v1478_v4 = vmul.f32 %v7642_v50, %v7656_v57  ;;  %v7690_v5 = vmul.f32 %v7574_v34, %v7656_v57  ;;  %v7694_v6 = vmul.f32 %v7650_v54, %v7656_v57  ;;  %v7706_v10 = vmul.f32 %v7579_v35, %v7656_v57 }
  0xbf   : > { %v15890_v8 = vrot.slane %v7668_v63, 1  ;;  %v558_v14 = vadd.f32 %v526_v62, %v7632_v48  ;;  %v15886_v15 = vrot.slane %v7674_v1, 2  ;;  %v936_v20 = vrot.slane %v868_v0, 1 }
  0xc0   : > { %v7711_v13 = vpop.trf.xlu0  ;;  %v15885_v16 = vrot.slane %v7690_v5, 3  ;;  %v1546_v23 = vrot.slane %v1478_v4, 2  ;;  %v2156_v25 = vrot.slane %v7694_v6, 3  ;;  %v15889_v29 = vrot.slane %v7706_v10, 4 }
  0xc1   : > { %v595_v18 = vmul.f32 %v7679_v2, %v7711_v13  ;;  %v7721_v19 = vmul.f32 %v7637_v49, %v7711_v13  ;;  %v1071_v21 = vmul.f32 %v7684_v3, %v7711_v13  ;;  %v7727_v22 = vmul.f32 %v7642_v50, %v7711_v13 }
  0xc2   : > { %v1681_v24 = vmul.f32 %v7702_v9, %v7711_v13  ;;  %v735_v27 = vsel %vm732_vm0, %v15884_v52, %v15890_v8  ;;  %v1345_v56 = vsel %vm1342_vm1, %v15883_v53, %v15886_v15  ;;  %v1955_v62 = vsel %vm1952_vm2, %v15882_v58, %v15885_v16 }
  0xc3   : > { %v627_v26 = vadd.f32 %v595_v18, %v558_v14  ;;  %v15887_v28 = vrot.slane %v7721_v19, 1  ;;  %v1139_v51 = vrot.slane %v1071_v21, 1  ;;  %v7758_v0 = vmul.f32 %v7650_v54, %v7711_v13  ;;  %v7774_v21 = vld [vmem:[%s15875_s1 + $0xf] ss:$0 sm:$0xff] }
  0xc4   : > { %v7744_v31 = vpop.trf.xlu0  ;;  %v15892_v58 = vrot.slane %v7727_v22, 2  ;;  %v2362_v16 = vsel %vm2359_vm3, %v15888_v59, %v15889_v29  ;;  %v7791_v15 = vmul.f32 %v7584_v36, %v7656_v57  ;;  %v7811_v8 = vmul.f32 %v7614_v44, %v7656_v57 }
  0xc5   : > { %v831_v4 = vadd.f32 %v735_v27, %v627_v26  ;;  %v938_v6 = vsel %vm732_vm0, %v936_v20, %v15887_v28  ;;  %v7765_v14 = vmul.f32 %v7684_v3, %v7744_v31  ;;  %v7769_v18 = vmul.f32 %v7702_v9, %v7744_v31 }
  0xc6   : > { %v1749_v26 = vrot.slane %v1681_v24, 2  ;;  %v2495_v27 = vmul.f32 %v7742_v30, %v7656_v57  ;;  %v7781_v20 = vmul.f32 %v7742_v30, %v7711_v13  ;;  %v2902_v28 = vmul.f32 %v7774_v21, %v7656_v57 }
  0xc7   : > { %v1034_v53 = vadd.f32 %v938_v6, %v831_v4  ;;  %v1140_v52 = vrot.slane %v7765_v14, 1  ;;  %v7799_v4 = vmul.f32 %v7774_v21, %v7711_v13  ;;  %v7804_v6 = vld [vmem:[%s15875_s1 + $0x10] ss:$0 sm:$0xff]  ;;  %v1548_v60 = vsel %vm1342_vm1, %v1546_v23, %v15892_v58 }
  0xc8   : > { %v2563_v17 = vrot.slane %v2495_v27, 4  ;;  %v2970_v59 = vrot.slane %v2902_v28, 5  ;;  %v3512_v42 = vmul.f32 %v7804_v6, %v7656_v57  ;;  %v16429_v23 = vrot.slane %v7769_v18, 2 }
  0xc9   : > { %v1141_v14 = vsel %vm732_vm0, %v1139_v51, %v1140_v52  ;;  %v7820_v51 = vld [vmem:[%s15875_s1 + $0x11] ss:$0 sm:$0xff]  ;;  %v16430_v58 = vrot.slane %v7758_v0, 3  ;;  %v7837_v28 = vmul.f32 %v7629_v47, %v7656_v57  ;;  %v16431_v29 = vrot.slane %v7781_v20, 4 }
  0xca   : > { %v1237_v11 = vadd.f32 %v1141_v14, %v1034_v53  ;;  %16428 = vst [vmem:[#allocation27_spill] sm:$0xff] %v7820_v51  ;;  %v7827_v53 = vmul.f32 %v7804_v6, %v7711_v13  ;;  %v1751_v27 = vsel %vm1342_vm1, %v1749_v26, %v16429_v23  ;;  %v16432_v39 = vrot.slane %v7791_v15, 5 }
  0xcb   : > { %v2158_v24 = vsel %vm1952_vm2, %v2156_v25, %v16430_v58  ;;  %v2565_v40 = vsel %vm2359_vm3, %v2563_v17, %v16431_v29  ;;  %v16434_v26 = vrot.slane %v7799_v4, 5  ;;  %v4122_v58 = vmul.f32 %v7820_v51, %v7656_v57  ;;  %v7852_v25 = vpop.trf.xlu0 }
  0xcc   : > { %v1441_v14 = vadd.f32 %v1345_v56, %v1237_v11  ;;  %v16433_v11 = vrot.slane %v7609_v43, 5  ;;  %v16435_v48 = vrot.slane %v7811_v8, 6  ;;  %v16436_v17 = vrot.slane %v7653_v55, 6 }
  0xcd   : > { %v2972_v23 = vsel %vm2766_vm4, %v2970_v59, %v16434_v26  ;;  %v3580_v43 = vrot.slane %v3512_v42, 6  ;;  %v458_v59 = vmul.f32 %v7589_v37, %v7656_v57  ;;  %v7875_v42 = vmul.f32 %v7564_v32, %v7711_v13 }
  0xce   : > { %v2769_v56 = vsel %vm2766_vm4, %v16433_v11, %v16432_v39  ;;  %v1644_v38 = vadd.f32 %v1548_v60, %v1441_v14  ;;  %v7859_v29 = vsel %vm3173_vm5, %v16436_v17, %v16435_v48  ;;  %v7864_v11 = vmul.f32 %v7820_v51, %v7711_v13 }
  0xcf   : > { %v527_v60 = vmul.f32 %v7624_v46, %v7711_v13  ;;  %v596_v14 = vmul.f32 %v7679_v2, %v7744_v31  ;;  %v7879_v17 = vmul.f32 %v7637_v49, %v7744_v31  ;;  %v4190_v39 = vrot.slane %v4122_v58, 7 }
  0xd0   : > { %v1847_v26 = vadd.f32 %v1751_v27, %v1644_v38  ;;  %v7883_v12 = vmul.f32 %v7684_v3, %v7852_v25  ;;  %v7887_v2 = vmul.f32 %v7569_v33, %v7711_v13  ;;  %v15913_v27 = vrot.slane %v7875_v42, 1 }
  0xd1   : > { %v559_v55 = vadd.f32 %v527_v60, %v458_v59  ;;  %v7893_v32 = vmul.f32 %v7642_v50, %v7744_v31  ;;  %v16437_v58 = vrot.slane %v7827_v53, 6  ;;  %v7901_v33 = vmul.f32 %v7702_v9, %v7852_v25 }
  0xd2   : > { %v2051_v38 = vadd.f32 %v1955_v62, %v1847_v26  ;;  %v15912_v3 = vrot.slane %v7883_v12, 1  ;;  %v16438_v48 = vrot.slane %v7668_v63, 1  ;;  %v16439_v49 = vrot.slane %v7879_v17, 1 }
  0xd3   : > { %v3582_v59 = vsel %vm3173_vm5, %v3580_v43, %v16437_v58  ;;  %v628_v60 = vadd.f32 %v596_v14, %v559_v55  ;;  %v16440_v43 = vrot.slane %v7721_v19, 1  ;;  %v7926_v19 = vmul.f32 %v7650_v54, %v7744_v31 }
  0xd4   : > { %v2254_v62 = vadd.f32 %v2158_v24, %v2051_v38  ;;  %v737_v50 = vsel %vm732_vm0, %v16438_v48, %v15913_v27  ;;  %v1143_v58 = vsel %vm732_vm0, %v1140_v52, %v15912_v3  ;;  %v15914_v24 = vrot.slane %v7887_v2, 2 }
  0xd5   : > { %v940_v55 = vsel %vm732_vm0, %v16440_v43, %v16439_v49  ;;  %v832_v14 = vadd.f32 %v737_v50, %v628_v60  ;;  %v15916_v38 = vrot.slane %v7893_v32, 2  ;;  %v7922_v48 = vmul.f32 %v7574_v34, %v7711_v13 }
  0xd6   : > { %v2458_v26 = vadd.f32 %v2362_v16, %v2254_v62  ;;  %v16441_v49 = vrot.slane %v7837_v28, 7  ;;  %v16442_v50 = vrot.slane %v7662_v61, 7  ;;  %v7935_v16 = vmul.f32 %v7579_v35, %v7711_v13 }
  0xd7   : > { %v1035_v60 = vadd.f32 %v940_v55, %v832_v14  ;;  %v7939_v62 = vmul.f32 %v7742_v30, %v7744_v31  ;;  %v16443_v3 = vrot.slane %v7864_v11, 7  ;;  %v16444_v14 = vrot.slane %v7674_v1, 2 }
  0xd8   : > { %v3989_v52 = vsel %vm3783_vm6, %v16442_v50, %v16441_v49  ;;  %v2661_v43 = vadd.f32 %v2565_v40, %v2458_v26  ;;  %v7949_v49 = vmul.f32 %v7584_v36, %v7711_v13  ;;  %v7959_v26 = vmul.f32 %v7774_v21, %v7744_v31 }
  0xd9   : > { %v7944_v27 = vsel %vm3783_vm6, %v4190_v39, %v16443_v3  ;;  %v1238_v55 = vadd.f32 %v1143_v58, %v1035_v60  ;;  %v1347_v50 = vsel %vm1342_vm1, %v16444_v14, %v15914_v24  ;;  %v16445_v39 = vrot.slane %v7727_v22, 2 }
  0xda   : > { %v2865_v3 = vadd.f32 %v2769_v56, %v2661_v43  ;;  %v16446_v58 = vrot.slane %v7901_v33, 2  ;;  %v16447_v60 = vrot.slane %v7769_v18, 2  ;;  %v15917_v14 = vrot.slane %v7935_v16, 4 }
  0xdb   : > { %v1550_v63 = vsel %vm1342_vm1, %v16445_v39, %v15916_v38  ;;  %v1442_v24 = vadd.f32 %v1347_v50, %v1238_v55  ;;  %v16448_v40 = vrot.slane %v7922_v48, 3  ;;  %v16449_v61 = vrot.slane %v7690_v5, 3 }
  0xdc   : > { %v1753_v1 = vsel %vm1342_vm1, %v16447_v60, %v16446_v58  ;;  %v15918_v43 = vrot.slane %v7939_v62, 4  ;;  %v15920_v22 = vrot.slane %v7949_v49, 5  ;;  %v3068_v39 = vadd.f32 %v2972_v23, %v2865_v3 }
  0xdd   : > { %v1957_v56 = vsel %vm1952_vm2, %v16449_v61, %v16448_v40  ;;  %v15919_v38 = vrot.slane %v7959_v26, 5  ;;  %v7982_v18 = vmul.f32 %v7603_v41, %v7656_v57  ;;  %v7986_v55 = vmul.f32 %v7614_v44, %v7711_v13 }
  0xde   : > { %v1645_v50 = vadd.f32 %v1550_v63, %v1442_v24  ;;  %v16450_v5 = vrot.slane %v7926_v19, 3  ;;  %v16451_v61 = vrot.slane %v7758_v0, 3  ;;  %v7995_v23 = vmul.f32 %v7804_v6, %v7744_v31 }
  0xdf   : > { %v7999_v3 = vmul.f32 %v7619_v45, %v7656_v57  ;;  %v3272_v58 = vadd.f32 %v7696_v7, %v3068_v39  ;;  %v8006_v63 = vmul.f32 %v7629_v47, %v7711_v13  ;;  %v16455_v57 = vrot.slane %v7781_v20, 4 }
  0xe0   : > { %v2160_v40 = vsel %vm1952_vm2, %v16451_v61, %v16450_v5  ;;  %16452 = vst [vmem:[#allocation28_spill] sm:$0xff] %v7995_v23  ;;  %v1848_v0 = vadd.f32 %v1753_v1, %v1645_v50  ;;  %v16454_v5 = vrot.slane %v7706_v10, 4  ;;  %v15927_v60 = vrot.slane %v7995_v23, 6 }
  0xe1   : > { %16453 = vst [vmem:[#allocation29_spill] sm:$0xff] %v7999_v3  ;;  %v2567_v39 = vsel %vm2359_vm3, %v16455_v57, %v15918_v43  ;;  %v3475_v24 = vadd.f32 %v7859_v29, %v3272_v58  ;;  %v16456_v1 = vrot.slane %v7791_v15, 5  ;;  %v16457_v10 = vrot.slane %v7799_v4, 5 }
  0xe2   : > { %v2364_v61 = vsel %vm2359_vm3, %v16454_v5, %v15917_v14  ;;  %v8031_v14 = vpop.trf.xlu0  ;;  %v2052_v57 = vadd.f32 %v1957_v56, %v1848_v0  ;;  %v16458_v43 = vrot.slane %v7982_v18, 6  ;;  %v16459_v15 = vrot.slane %v7986_v55, 6 }
  0xe3   : > { %v2771_v50 = vsel %vm2766_vm4, %v16456_v1, %v15920_v22  ;;  %v2974_v5 = vsel %vm2766_vm4, %v16457_v10, %v15919_v38  ;;  %v16460_v58 = vrot.slane %v7811_v8, 6  ;;  %v8044_v4 = vmul.f32 %v7820_v51, %v7744_v31  ;;  %v16464_v38 = vld [vmem:[#allocation26_spill] sm:$0xff] }
  0xe4   : > { %v3178_v29 = vsel %vm3173_vm5, %v7696_v7, %v16458_v43  ;;  %v3678_v10 = vadd.f32 %v3582_v59, %v3475_v24  ;;  %v459_v56 = vmul.f32 %v7589_v37, %v7711_v13  ;;  %v528_v0 = vmul.f32 %v7624_v46, %v7744_v31  ;;  %v16463_v59 = vld [vmem:[#allocation9_spill] sm:$0xff]  ;;  %v16465_v51 = vld [vmem:[#allocation18_spill] sm:$0xff] }
  0xe5   : > { %v3381_v1 = vsel %vm3173_vm5, %v16460_v58, %v16459_v15  ;;  %v2255_v43 = vadd.f32 %v2160_v40, %v2052_v57  ;;  %v16461_v8 = vrot.slane %v7827_v53, 6  ;;  %v16462_v58 = vld [vmem:[#allocation22_spill] sm:$0xff]  ;;  %v8060_v24 = vmul.f32 %v16463_v59, %v7744_v31  ;;  %v16466_v40 = vld [vmem:[#allocation23_spill] sm:$0xff] }
  0xe6   : > { %v597_v22 = vmul.f32 %v16462_v58, %v7852_v25  ;;  %v3882_v20 = vadd.f32 %v16464_v38, %v3678_v10  ;;  %v560_v7 = vadd.f32 %v528_v0, %v459_v56  ;;  %v8065_v46 = vmul.f32 %v16465_v51, %v7852_v25  ;;  %v16468_v59 = vld [vmem:[#allocation19_spill] sm:$0xff] }
  0xe7   : > { %v3584_v15 = vsel %vm3173_vm5, %v16461_v8, %v15927_v60  ;;  %v8069_v57 = vmul.f32 %v16466_v40, %v8031_v14  ;;  %v2459_v53 = vadd.f32 %v2364_v61, %v2255_v43  ;;  %v16467_v60 = vld [vmem:[#allocation10_spill] sm:$0xff]  ;;  %v8078_v58 = vmul.f32 %v16468_v59, %v7852_v25  ;;  %v8085_v61 = vld [vmem:[%s15876_s2] ss:$0 sm:$0xff] }
  0xe8   : > { %v8074_v23 = vmul.f32 %v16467_v60, %v7744_v31  ;;  %v4085_v10 = vadd.f32 %v3989_v52, %v3882_v20  ;;  %v629_v56 = vadd.f32 %v597_v22, %v560_v7  ;;  %v15931_v0 = vrot.slane %v8065_v46, 1  ;;  %16469 = vst [vmem:[#allocation30_spill] sm:$0xff] %v8085_v61 }
  0xe9   : > { %v2662_v43 = vadd.f32 %v2567_v39, %v2459_v53  ;;  %v16470_v8 = vrot.slane %v7999_v3, 7  ;;  %v16471_v52 = vrot.slane %v8060_v24, 1  ;;  %v16472_v7 = vrot.slane %v7875_v42, 1 }
  0xea   : > { %v4288_v20 = vadd.f32 %v7944_v27, %v4085_v10  ;;  %v16473_v39 = vrot.slane %v7879_v17, 1  ;;  %v15934_v3 = vrot.slane %v8074_v23, 2  ;;  %v16474_v59 = vrot.slane %v8069_v57, 1 }
  0xeb   : > { %v3788_v60 = vsel %vm3783_vm6, %v16464_v38, %v16470_v8  ;;  %v739_v22 = vsel %vm732_vm0, %v16472_v7, %v16471_v52  ;;  %v2866_v8 = vadd.f32 %v2771_v50, %v2662_v43  ;;  %v16475_v38 = vrot.slane %v7883_v12, 1 }
  0xec   : > { %v833_v51 = vadd.f32 %v739_v22, %v629_v56  ;;  %v942_v53 = vsel %vm732_vm0, %v16473_v39, %v15931_v0  ;;  %v15933_v52 = vrot.slane %v8078_v58, 2  ;;  %v8112_v27 = vmul.f32 %v7702_v9, %v8031_v14 }
  0xed   : > { %v1145_v42 = vsel %vm732_vm0, %v16475_v38, %v16474_v59  ;;  %v8115_v10 = vadd.f32 %v8085_v61, %v4288_v20  ;;  %v8119_v56 = vmul.f32 %v7574_v34, %v7744_v31  ;;  %v8123_v50 = vmul.f32 %v7650_v54, %v7852_v25 }
  0xee   : > { %v1036_v17 = vadd.f32 %v942_v53, %v833_v51  ;;  %v3069_v12 = vadd.f32 %v2974_v5, %v2866_v8  ;;  %v8128_v59 = vmul.f32 %v7579_v35, %v7744_v31  ;;  %v8132_v43 = vmul.f32 %v7742_v30, %v7852_v25 }
  0xef   : > { %16476 = vst [vmem:[#allocation31_spill] sm:$0xff] %v8115_v10  ;;  %4357 = vadd.xlane.f32.xlu0 %v8115_v10  ;;  %v16477_v51 = vrot.slane %v8006_v63, 7  ;;  %v16478_v7 = vrot.slane %v7837_v28, 7  ;;  %v15932_v5 = vrot.slane %v8119_v56, 3  ;;  %v8143_v39 = vmul.f32 %v7584_v36, %v7744_v31 }
  0xf0   : > { %v1239_v20 = vadd.f32 %v1145_v42, %v1036_v17  ;;  %v3273_v53 = vadd.f32 %v3178_v29, %v3069_v12  ;;  %v16479_v8 = vrot.slane %v8044_v4, 7  ;;  %v16480_v0 = vrot.slane %v7864_v11, 7 }
  0xf1   : > { %v3991_v22 = vsel %vm3783_vm6, %v16478_v7, %v16477_v51  ;;  %v16481_v28 = vrot.slane %v7887_v2, 2  ;;  %v16482_v42 = vrot.slane %v7893_v32, 2  ;;  %v16483_v29 = vrot.slane %v8112_v27, 2 }
  0xf2   : > { %v4194_v38 = vsel %vm3783_vm6, %v16480_v0, %v16479_v8  ;;  %v16484_v12 = vrot.slane %v7901_v33, 2  ;;  %v15939_v0 = vrot.slane %v8123_v50, 3  ;;  %v15938_v8 = vrot.slane %v8128_v59, 4 }
  0xf3   : > { %v1349_v51 = vsel %vm1342_vm1, %v16481_v28, %v15934_v3  ;;  %v1552_v17 = vsel %vm1342_vm1, %v16482_v42, %v15933_v52  ;;  %v3476_v2 = vadd.f32 %v3381_v1, %v3273_v53  ;;  %v16485_v28 = vrot.slane %v7922_v48, 3 }
  0xf4   : > { %v1443_v7 = vadd.f32 %v1349_v51, %v1239_v20  ;;  %v1755_v11 = vsel %vm1342_vm1, %v16484_v12, %v16483_v29  ;;  %v15937_v42 = vrot.slane %v8132_v43, 4  ;;  %v8175_v20 = vmul.f32 %v7774_v21, %v7852_v25 }
  0xf5   : > { %v1959_v32 = vsel %vm1952_vm2, %v16485_v28, %v15932_v5  ;;  %v15935_v51 = vrot.slane %v8143_v39, 5  ;;  %v8180_v29 = vmul.f32 %v7603_v41, %v7711_v13  ;;  %v8184_v1 = vmul.f32 %v7614_v44, %v7744_v31 }
  0xf6   : > { %v1646_v33 = vadd.f32 %v1552_v17, %v1443_v7  ;;  %v3679_v48 = vadd.f32 %v3584_v15, %v3476_v2  ;;  %v15936_v53 = vrot.slane %v8175_v20, 5  ;;  %v8189_v12 = vmul.f32 %v7804_v6, %v7852_v25 }
  0xf7   : > { %16486 = vst [vmem:[#allocation32_spill] sm:$0xff] %v8184_v1  ;;  %v8193_v17 = vmul.f32 %v7619_v45, %v7711_v13  ;;  %v8199_v52 = vmul.f32 %v7629_v47, %v7744_v31  ;;  %v16488_v2 = vrot.slane %v7926_v19, 3  ;;  %v16489_v13 = vrot.slane %v7935_v16, 4 }
  0xf8   : > { %16487 = vst [vmem:[#allocation33_spill] sm:$0xff] %v8189_v12  ;;  %v1849_v7 = vadd.f32 %v1755_v11, %v1646_v33  ;;  %v3883_v15 = vadd.f32 %v3788_v60, %v3679_v48  ;;  %v16490_v33 = vrot.slane %v7939_v62, 4  ;;  %v16491_v60 = vrot.slane %v7949_v49, 5 }
  0xf9   : > { %v2162_v3 = vsel %vm1952_vm2, %v16488_v2, %v15939_v0  ;;  %v2366_v11 = vsel %vm2359_vm3, %v16489_v13, %v15938_v8  ;;  %v16492_v48 = vrot.slane %v7959_v26, 5  ;;  %v15943_v2 = vrot.slane %v8189_v12, 6  ;;  %v8227_v13 = vpop.trf.xlu0  ;;  %v16502_v0 = vld [vmem:[#allocation18_spill] sm:$0xff]  ;;  %v16504_v26 = vld [vmem:[#allocation28_spill] sm:$0xff] }
  0xfa   : > { %v2569_v5 = vsel %vm2359_vm3, %v16490_v33, %v15937_v42  ;;  %v2053_v28 = vadd.f32 %v1959_v32, %v1849_v7  ;;  %v2773_v19 = vsel %vm2766_vm4, %v16491_v60, %v15935_v51  ;;  %v4086_v62 = vadd.f32 %v3991_v22, %v3883_v15  ;;  %v16497_v15 = vld [vmem:[#allocation16_spill] sm:$0xff] }
  0xfb   : > { %v2976_v16 = vsel %vm2766_vm4, %v16492_v48, %v15936_v53  ;;  %v16493_v33 = vrot.slane %v8180_v29, 6  ;;  %v16494_v32 = vrot.slane %v7982_v18, 6  ;;  %v16495_v49 = vrot.slane %v8184_v1, 6 }
  0xfc   : > { %v16496_v60 = vrot.slane %v7986_v55, 6  ;;  %v2256_v48 = vadd.f32 %v2162_v3, %v2053_v28  ;;  %v460_v22 = vmul.f32 %v7589_v37, %v7744_v31  ;;  %v529_v42 = vmul.f32 %v16497_v15, %v7852_v25  ;;  %v16499_v55 = vld [vmem:[#allocation22_spill] sm:$0xff] }
  0xfd   : > { %v3180_v7 = vsel %vm3173_vm5, %v16494_v32, %v16493_v33  ;;  %v4289_v18 = vadd.f32 %v4194_v38, %v4086_v62  ;;  %v16498_v33 = vld [vmem:[#allocation27_spill] sm:$0xff]  ;;  %v598_v8 = vmul.f32 %v16499_v55, %v8031_v14  ;;  %v8257_v53 = vmul.f32 %v16502_v0, %v8031_v14 }
  0xfe   : > { %v3383_v51 = vsel %vm3173_vm5, %v16496_v60, %v16495_v49  ;;  %v8247_v32 = vmul.f32 %v16498_v33, %v7852_v25  ;;  %v16500_v49 = vld [vmem:[#allocation9_spill] sm:$0xff]  ;;  %v2460_v3 = vadd.f32 %v2366_v11, %v2256_v48  ;;  %v561_v28 = vadd.f32 %v529_v42, %v460_v22  ;;  %v16506_v42 = vld [vmem:[#allocation10_spill] sm:$0xff] }
  0xff   : > { %v8253_v60 = vmul.f32 %v16500_v49, %v7852_v25  ;;  %v8261_v38 = vmul.f32 %v16466_v40, %v8227_v13  ;;  %v8264_v62 = vadd.f32 %v8085_v61, %v4289_v18  ;;  %v16505_v10 = vrot.slane %v16504_v26, 6 }
 0x100   : > { %v8274_v48 = vmul.f32 %v16506_v42, %v7852_v25  ;;  %v2663_v22 = vadd.f32 %v2569_v5, %v2460_v3  ;;  %v630_v0 = vadd.f32 %v598_v8, %v561_v28  ;;  %v15950_v40 = vrot.slane %v8257_v53, 1 }
 0x101   : > { %16501 = vst [vmem:[#allocation16_spill] sm:$0xff] %v8253_v60  ;;  %16503 = vst [vmem:[#allocation27_spill] sm:$0xff] %v8264_v62  ;;  %v3586_v49 = vsel %vm3173_vm5, %v16505_v10, %v15943_v2  ;;  %v15945_v11 = vrot.slane %v8253_v60, 1  ;;  %4359 = vadd.xlane.f32.xlu1 %v8264_v62  ;;  %v16507_v10 = vrot.slane %v8060_v24, 1  ;;  %v16508_v2 = vld [vmem:[#allocation19_spill] sm:$0xff]  ;;  %v8291_v5 = vmul.f32 %v7702_v9, %v8227_v13 }
 0x102   : > { %v8287_v12 = vmul.f32 %v16508_v2, %v8031_v14  ;;  %v2867_v8 = vadd.f32 %v2773_v19, %v2663_v22  ;;  %v16509_v28 = vrot.slane %v8065_v46, 1  ;;  %v15952_v24 = vrot.slane %v8274_v48, 2 }
 0x103   : > { %v741_v26 = vsel %vm732_vm0, %v16507_v10, %v15945_v11  ;;  %v16510_v10 = vrot.slane %v8193_v17, 7  ;;  %v16511_v11 = vld [vmem:[#allocation29_spill] sm:$0xff]  ;;  %v16513_v60 = vrot.slane %v8261_v38, 1  ;;  %v16514_v9 = vrot.slane %v8069_v57, 1 }
 0x104   : > { %v834_v3 = vadd.f32 %v741_v26, %v630_v0  ;;  %v944_v18 = vsel %vm732_vm0, %v16509_v28, %v15950_v40  ;;  %v16512_v1 = vrot.slane %v16511_v11, 7  ;;  %v15951_v19 = vrot.slane %v8287_v12, 2 }
 0x105   : > { %v1147_v0 = vsel %vm732_vm0, %v16514_v9, %v16513_v60  ;;  %v8312_v46 = vmul.f32 %v7574_v34, %v7852_v25  ;;  %v3070_v22 = vadd.f32 %v2976_v16, %v2867_v8  ;;  %v8316_v28 = vmul.f32 %v7650_v54, %v8031_v14 }
 0x106   : > { %v3790_v62 = vsel %vm3783_vm6, %v16512_v1, %v16510_v10  ;;  %v1037_v26 = vadd.f32 %v944_v18, %v834_v3  ;;  %v8320_v1 = vmul.f32 %v7579_v35, %v7852_v25  ;;  %v16515_v57 = vrot.slane %v8199_v52, 7 }
 0x107   : > { %v16516_v9 = vrot.slane %v8006_v63, 7  ;;  %v16517_v11 = vrot.slane %v8247_v32, 7  ;;  %v16518_v10 = vrot.slane %v8044_v4, 7  ;;  %v15953_v18 = vrot.slane %v8291_v5, 2 }
 0x108   : > { %v8335_v8 = vmul.f32 %v7742_v30, %v8031_v14  ;;  %v3274_v3 = vadd.f32 %v3180_v7, %v3070_v22  ;;  %v1240_v40 = vadd.f32 %v1147_v0, %v1037_v26  ;;  %v16519_v63 = vrot.slane %v8074_v23, 2 }
 0x109   : > { %v3993_v60 = vsel %vm3783_vm6, %v16516_v9, %v16515_v57  ;;  %v4196_v16 = vsel %vm3783_vm6, %v16518_v10, %v16517_v11  ;;  %v16520_v4 = vrot.slane %v8078_v58, 2  ;;  %v15954_v11 = vrot.slane %v8312_v46, 3 }
 0x10a   : > { %v1351_v57 = vsel %vm1342_vm1, %v16519_v63, %v15952_v24  ;;  %v8351_v7 = vmul.f32 %v7584_v36, %v7852_v25  ;;  %v8355_v0 = vmul.f32 %v7774_v21, %v8031_v14  ;;  %v3477_v23 = vadd.f32 %v3383_v51, %v3274_v3 }
 0x10b   : > { %v1554_v9 = vsel %vm1342_vm1, %v16520_v4, %v15951_v19  ;;  %v1444_v22 = vadd.f32 %v1351_v57, %v1240_v40  ;;  %v15958_v26 = vrot.slane %v8320_v1, 4  ;;  %v15955_v58 = vrot.slane %v8335_v8, 4 }
 0x10c   : > { %v16521_v63 = vrot.slane %v8112_v27, 2  ;;  %v8368_v10 = vmul.f32 %v7603_v41, %v7744_v31  ;;  %v3680_v51 = vadd.f32 %v3586_v49, %v3477_v23  ;;  %v8372_v3 = vmul.f32 %v7614_v44, %v7852_v25 }
 0x10d   : > { %v1647_v40 = vadd.f32 %v1554_v9, %v1444_v22  ;;  %v8376_v57 = vmul.f32 %v7804_v6, %v8031_v14  ;;  %v16522_v27 = vrot.slane %v8119_v56, 3  ;;  %v16524_v24 = vrot.slane %v8123_v50, 3 }
 0x10e   : > { %v1757_v4 = vsel %vm1342_vm1, %v16521_v63, %v15953_v18  ;;  %v16523_v18 = vrot.slane %v8316_v28, 3  ;;  %v15957_v9 = vrot.slane %v8368_v10, 6  ;;  %v8391_v23 = vmul.f32 %v7619_v45, %v7744_v31 }
 0x10f   : > { %v1961_v63 = vsel %vm1952_vm2, %v16522_v27, %v15954_v11  ;;  %v3884_v22 = vadd.f32 %v3790_v62, %v3680_v51  ;;  %v1850_v19 = vadd.f32 %v1757_v4, %v1647_v40  ;;  %v16526_v56 = vrot.slane %v8128_v59, 4 }
 0x110   : > { %v2164_v49 = vsel %vm1952_vm2, %v16524_v24, %v16523_v18  ;;  %16525 = vst [vmem:[#allocation22_spill] sm:$0xff] %v8391_v23  ;;  %v16527_v50 = vrot.slane %v8132_v43, 4  ;;  %v16528_v18 = vrot.slane %v8351_v7, 5  ;;  %v16529_v11 = vrot.slane %v8143_v39, 5 }
 0x111   : > { %v2368_v27 = vsel %vm2359_vm3, %v16526_v56, %v15958_v26  ;;  %v15960_v62 = vrot.slane %v8372_v3, 6  ;;  %v15956_v4 = vrot.slane %v8391_v23, 7  ;;  %v8412_v59 = vmul.f32 %v7629_v47, %v7852_v25  ;;  %v16539_v23 = vld [vmem:[#allocation23_spill] sm:$0xff] }
 0x112   : > { %v2571_v24 = vsel %vm2359_vm3, %v16527_v50, %v15955_v58  ;;  %v2775_v31 = vsel %vm2766_vm4, %v16529_v11, %v16528_v18  ;;  %v4087_v51 = vadd.f32 %v3993_v60, %v3884_v22  ;;  %v2054_v40 = vadd.f32 %v1961_v63, %v1850_v19  ;;  %v8420_v58 = vpop.trf.xlu0 }
 0x113   : > { %v16530_v43 = vrot.slane %v8355_v0, 5  ;;  %v16531_v56 = vrot.slane %v8175_v20, 5  ;;  %v16532_v11 = vrot.slane %v8180_v29, 6  ;;  %v16533_v19 = vrot.slane %v8193_v17, 7  ;;  %v16534_v17 = vld [vmem:[#allocation32_spill] sm:$0xff] }
 0x114   : > { %v8436_v20 = vmul.f32 %v16498_v33, %v8031_v14  ;;  %v461_v63 = vmul.f32 %v7589_v37, %v7852_v25  ;;  %v4290_v22 = vadd.f32 %v4196_v16, %v4087_v51  ;;  %v530_v29 = vmul.f32 %v16497_v15, %v8031_v14  ;;  %v16537_v16 = vld [vmem:[#allocation18_spill] sm:$0xff] }
 0x115   : > { %v2978_v50 = vsel %vm2766_vm4, %v16531_v56, %v16530_v43  ;;  %v3182_v18 = vsel %vm3173_vm5, %v16532_v11, %v15957_v9  ;;  %v8432_v60 = vsel %vm3783_vm6, %v16533_v19, %v15956_v4  ;;  %v2257_v43 = vadd.f32 %v2164_v49, %v2054_v40  ;;  %v16536_v9 = vld [vmem:[#allocation9_spill] sm:$0xff] }
 0x116   : > { %v599_v56 = vmul.f32 %v16499_v55, %v8227_v13  ;;  %v16535_v11 = vrot.slane %v16534_v17, 6  ;;  %v8452_v26 = vmul.f32 %v16536_v9, %v8031_v14  ;;  %v8456_v49 = vmul.f32 %v16537_v16, %v8227_v13  ;;  %v16545_v9 = vld [vmem:[#allocation16_spill] sm:$0xff] }
 0x117   : > { %v8459_v51 = vadd.f32 %v8085_v61, %v4290_v22  ;;  %v2461_v40 = vadd.f32 %v2368_v27, %v2257_v43  ;;  %v562_v39 = vadd.f32 %v530_v29, %v461_v63  ;;  %v8463_v17 = vmul.f32 %v16539_v23, %v8420_v58  ;;  %v16540_v43 = vld [vmem:[#allocation25_spill] sm:$0xff] }
 0x118   : > { %v3385_v19 = vsel %vm3173_vm5, %v16535_v11, %v15960_v62  ;;  %v8469_v4 = vmul.f32 %v16506_v42, %v8031_v14  ;;  %v8473_v16 = vmul.f32 %v16508_v2, %v8227_v13  ;;  %v8479_v29 = vmul.f32 %v16540_v43, %v8420_v58  ;;  %v16542_v11 = vld [vmem:[#allocation33_spill] sm:$0xff] }
 0x119   : > { %16538 = vst [vmem:[#allocation28_spill] sm:$0xff] %v8459_v51  ;;  %4361 = vadd.xlane.f32.xlu1 %v8459_v51  ;;  %v2664_v27 = vadd.f32 %v2571_v24, %v2461_v40  ;;  %v631_v63 = vadd.f32 %v599_v56, %v562_v39  ;;  %v16541_v62 = vrot.slane %v8376_v57, 6  ;;  %v16543_v61 = vrot.slane %v16542_v11, 6 }
 0x11a   : > { %v16544_v2 = vrot.slane %v8452_v26, 1  ;;  %v16546_v51 = vrot.slane %v16545_v9, 1  ;;  %v16547_v39 = vrot.slane %v8456_v49, 1  ;;  %v16548_v56 = vrot.slane %v8257_v53, 1 }
 0x11b   : > { %v3588_v42 = vsel %vm3173_vm5, %v16543_v61, %v16541_v62  ;;  %v2868_v22 = vadd.f32 %v2775_v31, %v2664_v27  ;;  %v15966_v11 = vrot.slane %v8469_v4, 2  ;;  %v15967_v61 = vrot.slane %v8473_v16, 2 }
 0x11c   : > { %v743_v24 = vsel %vm732_vm0, %v16546_v51, %v16544_v2  ;;  %v946_v40 = vsel %vm732_vm0, %v16548_v56, %v16547_v39  ;;  %v16549_v62 = vrot.slane %v8463_v17, 1  ;;  %v16550_v23 = vrot.slane %v8261_v38, 1 }
 0x11d   : > { %v835_v43 = vadd.f32 %v743_v24, %v631_v63  ;;  %v8507_v51 = vmul.f32 %v7574_v34, %v8031_v14  ;;  %v8511_v53 = vmul.f32 %v7650_v54, %v8227_v13  ;;  %v3071_v31 = vadd.f32 %v2978_v50, %v2868_v22 }
 0x11e   : > { %v1149_v9 = vsel %vm732_vm0, %v16550_v23, %v16549_v62  ;;  %v16551_v27 = vrot.slane %v8412_v59, 7  ;;  %v16552_v63 = vrot.slane %v8199_v52, 7  ;;  %v8520_v23 = vmul.f32 %v7579_v35, %v8031_v14 }
 0x11f   : > { %v1038_v38 = vadd.f32 %v946_v40, %v835_v43  ;;  %v16553_v39 = vrot.slane %v8436_v20, 7  ;;  %v16554_v56 = vrot.slane %v8247_v32, 7  ;;  %v8530_v50 = vmul.f32 %v7742_v30, %v8227_v13 }
 0x120   : > { %v3995_v24 = vsel %vm3783_vm6, %v16552_v63, %v16551_v27  ;;  %v8534_v52 = vmul.f32 %v7584_v36, %v8031_v14  ;;  %v3275_v22 = vadd.f32 %v3182_v18, %v3071_v31  ;;  %v8539_v27 = vmul.f32 %v7774_v21, %v8227_v13 }
 0x121   : > { %v4198_v62 = vsel %vm3783_vm6, %v16554_v56, %v16553_v39  ;;  %v1241_v43 = vadd.f32 %v1149_v9, %v1038_v38  ;;  %v16555_v32 = vrot.slane %v8274_v48, 2  ;;  %v16556_v39 = vrot.slane %v8287_v12, 2 }
 0x122   : > { %v16557_v18 = vrot.slane %v8479_v29, 2  ;;  %v16558_v9 = vrot.slane %v8291_v5, 2  ;;  %v15971_v38 = vrot.slane %v8520_v23, 4  ;;  %v3478_v40 = vadd.f32 %v3385_v19, %v3275_v22 }
 0x123   : > { %v1353_v63 = vsel %vm1342_vm1, %v16555_v32, %v15966_v11  ;;  %v1556_v56 = vsel %vm1342_vm1, %v16556_v39, %v15967_v61  ;;  %v16559_v48 = vrot.slane %v8507_v51, 3  ;;  %v16560_v32 = vrot.slane %v8312_v46, 3 }
 0x124   : > { %v1759_v31 = vsel %vm1342_vm1, %v16558_v9, %v16557_v18  ;;  %v1445_v2 = vadd.f32 %v1353_v63, %v1241_v43  ;;  %v15969_v12 = vrot.slane %v8530_v50, 4  ;;  %v15968_v39 = vrot.slane %v8534_v52, 5 }
 0x125   : > { %v1963_v11 = vsel %vm1952_vm2, %v16560_v32, %v16559_v48  ;;  %v8567_v5 = vmul.f32 %v7603_v41, %v7852_v25  ;;  %v8571_v19 = vmul.f32 %v7614_v44, %v8031_v14  ;;  %v3681_v22 = vadd.f32 %v3588_v42, %v3478_v40 }
 0x126   : > { %v1648_v43 = vadd.f32 %v1556_v56, %v1445_v2  ;;  %v16561_v46 = vrot.slane %v8511_v53, 3  ;;  %v16562_v63 = vrot.slane %v8316_v28, 3  ;;  %v8580_v9 = vmul.f32 %v7804_v6, %v8227_v13 }
 0x127   : > { %v15970_v48 = vrot.slane %v8567_v5, 6  ;;  %v8586_v61 = vmul.f32 %v7619_v45, %v7852_v25  ;;  %v8590_v42 = vmul.f32 %v7629_v47, %v8031_v14  ;;  %v3885_v28 = vadd.f32 %v8432_v60, %v3681_v22 }
 0x128   : > { %v2166_v18 = vsel %vm1952_vm2, %v16562_v63, %v16561_v46  ;;  %16563 = vst [vmem:[#allocation29_spill] sm:$0xff] %v8580_v9  ;;  %v1851_v2 = vadd.f32 %v1759_v31, %v1648_v43  ;;  %v16564_v40 = vrot.slane %v8320_v1, 4  ;;  %v15972_v46 = vrot.slane %v8580_v9, 6 }
 0x129   : > { %v16565_v25 = vrot.slane %v8335_v8, 4  ;;  %v16566_v32 = vrot.slane %v8351_v7, 5  ;;  %v16567_v31 = vrot.slane %v8539_v27, 5  ;;  %v16568_v1 = vrot.slane %v8355_v0, 5 }
 0x12a   : > { %v2370_v56 = vsel %vm2359_vm3, %v16564_v40, %v15971_v38  ;;  %v8616_v43 = vmul.f32 %v16498_v33, %v8227_v13  ;;  %v8618_v40 = vpop.trf.xlu0  ;;  %v4088_v8 = vadd.f32 %v3995_v24, %v3885_v28  ;;  %v16569_v7 = vrot.slane %v8368_v10, 6 }
 0x12b   : > { %v2573_v63 = vsel %vm2359_vm3, %v16565_v25, %v15969_v12  ;;  %v2777_v60 = vsel %vm2766_vm4, %v16566_v32, %v15968_v39  ;;  %v2980_v22 = vsel %vm2766_vm4, %v16568_v1, %v16567_v31  ;;  %v2055_v25 = vadd.f32 %v1963_v11, %v1851_v2 }
 0x12c   : > { %v3184_v32 = vsel %vm3173_vm5, %v16569_v7, %v15970_v48  ;;  %v16570_v39 = vrot.slane %v8571_v19, 6  ;;  %v16571_v0 = vrot.slane %v8372_v3, 6  ;;  %v462_v24 = vmul.f32 %v7589_v37, %v8031_v14  ;;  %v16574_v37 = vld [vmem:[#allocation18_spill] sm:$0xff] }
 0x12d   : > { %v531_v11 = vmul.f32 %v16497_v15, %v8227_v13  ;;  %v4291_v28 = vadd.f32 %v4198_v62, %v4088_v8  ;;  %v2258_v10 = vadd.f32 %v2166_v18, %v2055_v25  ;;  %v16572_v2 = vrot.slane %v8376_v57, 6  ;;  %v16575_v62 = vld [vmem:[#allocation23_spill] sm:$0xff]  ;;  %v16576_v8 = vld [vmem:[#allocation30_spill] sm:$0xff] }
 0x12e   : > { %v3387_v31 = vsel %vm3173_vm5, %v16571_v0, %v16570_v39  ;;  %v600_v39 = vmul.f32 %v16499_v55, %v8420_v58  ;;  %v16573_v0 = vld [vmem:[#allocation9_spill] sm:$0xff]  ;;  %v8649_v38 = vmul.f32 %v16574_v37, %v8420_v58  ;;  %v8653_v18 = vmul.f32 %v16575_v62, %v8618_v40 }
 0x12f   : > { %v3590_v3 = vsel %vm3173_vm5, %v16572_v2, %v15972_v46  ;;  %v563_v7 = vadd.f32 %v531_v11, %v462_v24  ;;  %v8645_v48 = vmul.f32 %v16573_v0, %v8227_v13  ;;  %v8656_v57 = vadd.f32 %v16576_v8, %v4291_v28  ;;  %v16578_v2 = vld [vmem:[#allocation10_spill] sm:$0xff]  ;;  %v16579_v24 = vld [vmem:[#allocation19_spill] sm:$0xff] }
 0x130   : > { %v2462_v25 = vadd.f32 %v2370_v56, %v2258_v10  ;;  %v8660_v46 = vmul.f32 %v16578_v2, %v8227_v13  ;;  %v8664_v11 = vmul.f32 %v16579_v24, %v8420_v58  ;;  %v15976_v1 = vrot.slane %v8649_v38, 1  ;;  %v16580_v2 = vld [vmem:[#allocation25_spill] sm:$0xff] }
 0x131   : > { %16577 = vst [vmem:[#allocation32_spill] sm:$0xff] %v8656_v57  ;;  %v632_v0 = vadd.f32 %v600_v39, %v563_v7  ;;  %v15975_v12 = vrot.slane %v8645_v48, 1  ;;  %4363 = vadd.xlane.f32.xlu1 %v8656_v57  ;;  %v8674_v8 = vmul.f32 %v16580_v2, %v8618_v40  ;;  %v16581_v39 = vrot.slane %v8452_v26, 1  ;;  %v16584_v57 = vld [vmem:[#allocation22_spill] sm:$0xff] }
 0x132   : > { %v2665_v28 = vadd.f32 %v2573_v63, %v2462_v25  ;;  %v16582_v24 = vrot.slane %v8456_v49, 1  ;;  %v8689_v10 = vmul.f32 %v7574_v34, %v8227_v13  ;;  %v16583_v9 = vrot.slane %v8586_v61, 7 }
 0x133   : > { %v745_v7 = vsel %vm732_vm0, %v16581_v39, %v15975_v12  ;;  %v16585_v2 = vrot.slane %v16584_v57, 7  ;;  %v16586_v12 = vrot.slane %v8653_v18, 1  ;;  %v16587_v49 = vrot.slane %v8463_v17, 1 }
 0x134   : > { %v948_v63 = vsel %vm732_vm0, %v16582_v24, %v15976_v1  ;;  %v2869_v56 = vadd.f32 %v2777_v60, %v2665_v28  ;;  %v836_v39 = vadd.f32 %v745_v7, %v632_v0  ;;  %v15989_v1 = vrot.slane %v8674_v8, 2 }
 0x135   : > { %v3794_v26 = vsel %vm3783_vm6, %v16585_v2, %v16583_v9  ;;  %v1151_v24 = vsel %vm732_vm0, %v16587_v49, %v16586_v12  ;;  %v15988_v25 = vrot.slane %v8689_v10, 3  ;;  %v8705_v34 = vmul.f32 %v7650_v54, %v8420_v58 }
 0x136   : > { %v8709_v60 = vmul.f32 %v7579_v35, %v8227_v13  ;;  %v3072_v9 = vadd.f32 %v2980_v22, %v2869_v56  ;;  %v1039_v57 = vadd.f32 %v948_v63, %v836_v39  ;;  %v8713_v0 = vmul.f32 %v7742_v30, %v8420_v58 }
 0x137   : > { %v8717_v17 = vmul.f32 %v7584_v36, %v8227_v13  ;;  %v16588_v12 = vrot.slane %v8590_v42, 7  ;;  %v16589_v28 = vrot.slane %v8412_v59, 7  ;;  %v16590_v2 = vrot.slane %v8616_v43, 7 }
 0x138   : > { %v16591_v35 = vrot.slane %v8436_v20, 7  ;;  %v16592_v56 = vrot.slane %v8660_v46, 2  ;;  %v16593_v7 = vrot.slane %v8469_v4, 2  ;;  %v16594_v36 = vrot.slane %v8664_v11, 2 }
 0x139   : > { %v3997_v54 = vsel %vm3783_vm6, %v16589_v28, %v16588_v12  ;;  %v16595_v39 = vrot.slane %v8473_v16, 2  ;;  %v3276_v49 = vadd.f32 %v3184_v32, %v3072_v9  ;;  %v1242_v12 = vadd.f32 %v1151_v24, %v1039_v57 }
 0x13a   : > { %v4200_v22 = vsel %vm3783_vm6, %v16591_v35, %v16590_v2  ;;  %v1355_v63 = vsel %vm1342_vm1, %v16593_v7, %v16592_v56  ;;  %v16596_v20 = vrot.slane %v8479_v29, 2  ;;  %v15985_v2 = vrot.slane %v8705_v34, 3 }
 0x13b   : > { %v1558_v59 = vsel %vm1342_vm1, %v16595_v39, %v16594_v36  ;;  %v15984_v4 = vrot.slane %v8709_v60, 4  ;;  %v15982_v35 = vrot.slane %v8713_v0, 4  ;;  %v8749_v56 = vmul.f32 %v7774_v21, %v8420_v58 }
 0x13c   : > { %v1761_v28 = vsel %vm1342_vm1, %v16596_v20, %v15989_v1  ;;  %v8753_v16 = vmul.f32 %v7603_v41, %v8031_v14  ;;  %v3479_v32 = vadd.f32 %v3387_v31, %v3276_v49  ;;  %v1446_v24 = vadd.f32 %v1355_v63, %v1242_v12 }
 0x13d   : > { %v16597_v29 = vrot.slane %v8507_v51, 3  ;;  %v15980_v57 = vrot.slane %v8717_v17, 5  ;;  %v15979_v7 = vrot.slane %v8749_v56, 5  ;;  %v8765_v39 = vmul.f32 %v7614_v44, %v8227_v13 }
 0x13e   : > { %v15978_v36 = vrot.slane %v8753_v16, 6  ;;  %v8769_v41 = vmul.f32 %v7804_v6, %v8420_v58  ;;  %v3682_v31 = vadd.f32 %v3590_v3, %v3479_v32  ;;  %v1649_v63 = vadd.f32 %v1558_v59, %v1446_v24 }
 0x13f   : > { %v1965_v9 = vsel %vm1952_vm2, %v16597_v29, %v15988_v25  ;;  %v8773_v51 = vmul.f32 %v7619_v45, %v8031_v14  ;;  %v8777_v49 = vmul.f32 %v7629_v47, %v8227_v13  ;;  %v16598_v12 = vrot.slane %v8511_v53, 3 }
 0x140   : > { %v16599_v20 = vrot.slane %v8520_v23, 4  ;;  %v16600_v45 = vrot.slane %v8530_v50, 4  ;;  %v15977_v47 = vrot.slane %v8765_v39, 6  ;;  %v3886_v59 = vadd.f32 %v3794_v26, %v3682_v31 }
 0x141   : > { %v2168_v44 = vsel %vm1952_vm2, %v16598_v12, %v15985_v2  ;;  %v1852_v32 = vadd.f32 %v1761_v28, %v1649_v63  ;;  %v16601_v53 = vrot.slane %v8534_v52, 5  ;;  %v16602_v23 = vrot.slane %v8539_v27, 5  ;;  %v8805_v12 = vpop.trf.xlu0 }
 0x142   : > { %v2372_v3 = vsel %vm2359_vm3, %v16599_v20, %v15984_v4  ;;  %v2575_v14 = vsel %vm2359_vm3, %v16600_v45, %v15982_v35  ;;  %v16603_v50 = vrot.slane %v8567_v5, 6  ;;  %v15981_v28 = vrot.slane %v8769_v41, 6  ;;  %v8883_v35 = vld [vmem:[%s15875_s1 + $0xc] ss:$0 sm:$0xff] }
 0x143   : > { %v2779_v24 = vsel %vm2766_vm4, %v16601_v53, %v15980_v57  ;;  %v2982_v29 = vsel %vm2766_vm4, %v16602_v23, %v15979_v7  ;;  %v15993_v52 = vrot.slane %v8773_v51, 7  ;;  %v15992_v31 = vrot.slane %v8777_v49, 7  ;;  %v8829_v53 = vld [vmem:[%s15875_s1 + $0x2] ss:$0 sm:$0xff]  ;;  %16611 = vst [vmem:[#allocation9_spill] sm:$0xff] %v8883_v35 }
 0x144   : > { %v3186_v26 = vsel %vm3173_vm5, %v16603_v50, %v15978_v36  ;;  %v4089_v63 = vadd.f32 %v3997_v54, %v3886_v59  ;;  %v2056_v20 = vadd.f32 %v1965_v9, %v1852_v32  ;;  %v16604_v27 = vrot.slane %v8571_v19, 6  ;;  %v8840_v59 = vld [vmem:[%s15875_s1 + $0x3] ss:$0 sm:$0xff] }
 0x145   : > { %v8824_v5 = vmul.f32 %v16498_v33, %v8420_v58  ;;  %v463_v54 = vmul.f32 %v8829_v53, %v8227_v13  ;;  %v532_v9 = vmul.f32 %v16497_v15, %v8420_v58  ;;  %v601_v19 = vmul.f32 %v16499_v55, %v8618_v40  ;;  %v16605_v55 = vld [vmem:[#allocation29_spill] sm:$0xff] }
 0x146   : > { %v8820_v45 = vsel %vm3173_vm5, %v16604_v27, %v15977_v47  ;;  %v8844_v32 = vmul.f32 %v8840_v59, %v8420_v58  ;;  %v4292_v23 = vadd.f32 %v4200_v22, %v4089_v63  ;;  %v2259_v50 = vadd.f32 %v2168_v44, %v2056_v20  ;;  %v8863_v22 = vld [vmem:[%s15875_s1 + $0x4] ss:$0 sm:$0xff] }
 0x147   : > { %v8848_v27 = vmul.f32 %v16574_v37, %v8618_v40  ;;  %v8852_v15 = vmul.f32 %v16575_v62, %v8805_v12  ;;  %v16606_v47 = vrot.slane %v16605_v55, 6  ;;  %v564_v7 = vadd.f32 %v532_v9, %v463_v54  ;;  %16607 = vst [vmem:[#allocation33_spill] sm:$0xff] %v8863_v22  ;;  %v16608_v62 = vld [vmem:[#allocation30_spill] sm:$0xff] }
 0x148   : > { %v15983_v57 = vrot.slane %v8844_v32, 1  ;;  %v8867_v37 = vmul.f32 %v8863_v22, %v8420_v58  ;;  %v8870_v44 = vadd.f32 %v16608_v62, %v4292_v23  ;;  %v2463_v63 = vadd.f32 %v2372_v3, %v2259_v50  ;;  %v16613_v50 = vld [vmem:[#allocation25_spill] sm:$0xff] }
 0x149   : > { %v3592_v36 = vsel %vm3173_vm5, %v16606_v47, %v15981_v28  ;;  %v15987_v20 = vrot.slane %v8848_v27, 1  ;;  %v15986_v47 = vrot.slane %v8852_v15, 1  ;;  %v15991_v54 = vrot.slane %v8824_v5, 7 }
 0x14a   : > { %16609 = vst [vmem:[#allocation16_spill] sm:$0xff] %v8870_v44  ;;  %v633_v9 = vadd.f32 %v601_v19, %v564_v7  ;;  %v16610_v55 = vrot.slane %v8645_v48, 1  ;;  %v8887_v3 = vmul.f32 %v8883_v35, %v8618_v40  ;;  %4365 = vadd.xlane.f32.xlu0 %v8870_v44  ;;  %v2666_v23 = vadd.f32 %v2575_v14, %v2463_v63 }
 0x14b   : > { %v16612_v7 = vrot.slane %v8649_v38, 1  ;;  %v15990_v19 = vrot.slane %v8867_v37, 2  ;;  %v16614_v4 = vrot.slane %v8653_v18, 1  ;;  %v8909_v38 = vld [vmem:[%s15875_s1 + $0x5] ss:$0 sm:$0xff]  ;;  %v8946_v1 = vmul.f32 %v7742_v30, %v8618_v40 }
 0x14c   : > { %v747_v28 = vsel %vm732_vm0, %v16610_v55, %v15983_v57  ;;  %v8898_v55 = vmul.f32 %v16613_v50, %v8805_v12  ;;  %16615 = vst [vmem:[#allocation18_spill] sm:$0xff] %v8909_v38  ;;  %v8913_v63 = vmul.f32 %v8909_v38, %v8420_v58  ;;  %v8919_v18 = vld [vmem:[%s15875_s1 + $0xd] ss:$0 sm:$0xff]  ;;  %v16619_v14 = vrot.slane %v8616_v43, 7 }
 0x14d   : > { %v950_v48 = vsel %vm732_vm0, %v16612_v7, %v15987_v20  ;;  %v837_v57 = vadd.f32 %v747_v28, %v633_v9  ;;  %v1153_v2 = vsel %vm732_vm0, %v16614_v4, %v15986_v47  ;;  %v2870_v7 = vadd.f32 %v2779_v24, %v2666_v23  ;;  %16616 = vst [vmem:[#allocation23_spill] sm:$0xff] %v8919_v18  ;;  %v8928_v9 = vld [vmem:[%s15875_s1 + $0x6] ss:$0 sm:$0xff] }
 0x14e   : > { %v8923_v4 = vmul.f32 %v8919_v18, %v8618_v40  ;;  %v8932_v50 = vmul.f32 %v8928_v9, %v8420_v58  ;;  %v16617_v24 = vrot.slane %v8586_v61, 7  ;;  %v16618_v47 = vrot.slane %v8590_v42, 7 }
 0x14f   : > { %v1040_v25 = vadd.f32 %v950_v48, %v837_v57  ;;  %v3073_v28 = vadd.f32 %v2982_v29, %v2870_v7  ;;  %v4202_v61 = vsel %vm3783_vm6, %v16619_v14, %v15991_v54  ;;  %v16622_v57 = vrot.slane %v8664_v11, 2 }
 0x150   : > { %v3796_v23 = vsel %vm3783_vm6, %v16617_v24, %v15993_v52  ;;  %v3999_v20 = vsel %vm3783_vm6, %v16618_v47, %v15992_v31  ;;  %v16620_v24 = vrot.slane %v8660_v46, 2  ;;  %v16621_v47 = vrot.slane %v8887_v3, 2  ;;  %v8972_v46 = vld [vmem:[%s15875_s1 + $0x7] ss:$0 sm:$0xff]  ;;  %v9019_v52 = vld [vmem:[%s15875_s1 + $0x1] ss:$0 sm:$0xff] }
 0x151   : > { %v1243_v48 = vadd.f32 %v1153_v2, %v1040_v25  ;;  %v16623_v29 = vrot.slane %v8898_v55, 2  ;;  %v16624_v7 = vrot.slane %v8674_v8, 2  ;;  %v15994_v14 = vrot.slane %v8913_v63, 3  ;;  %16625 = vst [vmem:[#allocation10_spill] sm:$0xff] %v8972_v46 }
 0x152   : > { %v1357_v42 = vsel %vm1342_vm1, %v16620_v24, %v15990_v19  ;;  %v1560_v30 = vsel %vm1342_vm1, %v16622_v57, %v16621_v47  ;;  %v8976_v24 = vmul.f32 %v8972_v46, %v8420_v58  ;;  %v3277_v11 = vadd.f32 %v3186_v26, %v3073_v28 }
 0x153   : > { %v1763_v43 = vsel %vm1342_vm1, %v16624_v7, %v16623_v29  ;;  %v15995_v25 = vrot.slane %v8923_v4, 3  ;;  %v15996_v2 = vrot.slane %v8932_v50, 4  ;;  %v8982_v8 = vmul.f32 %v7774_v21, %v8618_v40  ;;  %v8989_v7 = vld [vmem:[%s15875_s1] ss:$0 sm:$0xff]  ;;  %v9000_v21 = vld [vmem:[%s15875_s1 + $0x8] ss:$0 sm:$0xff] }
 0x154   : > { %v1447_v47 = vadd.f32 %v1357_v42, %v1243_v48  ;;  %v15999_v57 = vrot.slane %v8946_v1, 4  ;;  %16626 = vst [vmem:[#allocation19_spill] sm:$0xff] %v8989_v7  ;;  %v8993_v26 = vmul.f32 %v8989_v7, %v8227_v13  ;;  %v3480_v28 = vadd.f32 %v8820_v45, %v3277_v11 }
 0x155   : > { %v9004_v42 = vmul.f32 %v9000_v21, %v8420_v58  ;;  %v9008_v48 = vmul.f32 %v7804_v6, %v8618_v40  ;;  %v16628_v45 = vrot.slane %v8689_v10, 3  ;;  %v9023_v19 = vmul.f32 %v9019_v52, %v8227_v13 }
 0x156   : > { %v1650_v54 = vadd.f32 %v1560_v30, %v1447_v47  ;;  %v3683_v6 = vadd.f32 %v3592_v36, %v3480_v28  ;;  %v16629_v30 = vrot.slane %v8705_v34, 3  ;;  %v16630_v31 = vrot.slane %v8709_v60, 4 }
 0x157   : > { %16627 = vst [vmem:[#allocation22_spill] sm:$0xff] %v9008_v48  ;;  %v1967_v11 = vsel %vm1952_vm2, %v16628_v45, %v15994_v14  ;;  %v15998_v47 = vrot.slane %v9004_v42, 6  ;;  %v15997_v45 = vrot.slane %v9008_v48, 6  ;;  %v16631_v13 = vrot.slane %v8713_v0, 4 }
 0x158   : > { %v2170_v10 = vsel %vm1952_vm2, %v16629_v30, %v15995_v25  ;;  %v1853_v14 = vadd.f32 %v1763_v43, %v1650_v54  ;;  %v2374_v29 = vsel %vm2359_vm3, %v16630_v31, %v15996_v2  ;;  %v16632_v34 = vrot.slane %v8976_v24, 5 }
 0x159   : > { %v2577_v36 = vsel %vm2359_vm3, %v16631_v13, %v15999_v57  ;;  %v16633_v28 = vrot.slane %v8717_v17, 5  ;;  %v3887_v25 = vadd.f32 %v3796_v23, %v3683_v6  ;;  %v16634_v54 = vrot.slane %v8982_v8, 5  ;;  %v9060_v13 = vld [vmem:[%s15875_s1 + $0x9] ss:$0 sm:$0xff]  ;;  %v9066_v23 = vpop.trf.xlu0 }
 0x15a   : > { %v16635_v43 = vrot.slane %v8749_v56, 5  ;;  %v16636_v31 = vrot.slane %v8993_v26, 6  ;;  %v16637_v2 = vrot.slane %v8753_v16, 6  ;;  %v9064_v17 = vmul.f32 %v9060_v13, %v8420_v58 }
 0x15b   : > { %v2781_v30 = vsel %vm2766_vm4, %v16633_v28, %v16632_v34  ;;  %v2057_v56 = vadd.f32 %v1967_v11, %v1853_v14  ;;  %v16638_v6 = vrot.slane %v8765_v39, 6  ;;  %v464_v14 = vmul.f32 %v8829_v53, %v8420_v58  ;;  %v9088_v39 = vld [vmem:[%s15875_s1 + $0xa] ss:$0 sm:$0xff] }
 0x15c   : > { %v2984_v60 = vsel %vm2766_vm4, %v16635_v43, %v16634_v54  ;;  %v3188_v0 = vsel %vm3173_vm5, %v16637_v2, %v16636_v31  ;;  %v16639_v2 = vrot.slane %v8769_v41, 6  ;;  %v4090_v54 = vadd.f32 %v3999_v20, %v3887_v25  ;;  %v9095_v41 = vld [vmem:[%s15875_s1 + $0x12] ss:$0 sm:$0xff] }
 0x15d   : > { %v9073_v16 = vsel %vm3173_vm5, %v16638_v6, %v15998_v47  ;;  %v533_v11 = vmul.f32 %v9088_v39, %v8618_v40  ;;  %v602_v43 = vmul.f32 %v9095_v41, %v8805_v12  ;;  %v2260_v20 = vadd.f32 %v2170_v10, %v2057_v56  ;;  %v9110_v6 = vld [vmem:[%s15875_s1 + $0xb] ss:$0 sm:$0xff] }
 0x15e   : > { %v9080_v34 = vsel %vm3173_vm5, %v16639_v2, %v15997_v45  ;;  %v9101_v25 = vmul.f32 %v16498_v33, %v8618_v40  ;;  %v9105_v31 = vmul.f32 %v8840_v59, %v8618_v40  ;;  %16640 = vst [vmem:[#allocation29_spill] sm:$0xff] %v9110_v6  ;;  %v9114_v2 = vmul.f32 %v9110_v6, %v8805_v12  ;;  %v9120_v33 = vld [vmem:[%s15875_s1 + $0x13] ss:$0 sm:$0xff] }
 0x15f   : > { %v4293_v45 = vadd.f32 %v4202_v61, %v4090_v54  ;;  %v565_v56 = vadd.f32 %v533_v11, %v464_v14  ;;  %16641 = vst [vmem:[#allocation30_spill] sm:$0xff] %v9120_v33  ;;  %v9124_v47 = vmul.f32 %v9120_v33, %v9066_v23  ;;  %v2464_v57 = vadd.f32 %v2374_v29, %v2260_v20 }
 0x160   : > { %v16005_v28 = vrot.slane %v9105_v31, 1  ;;  %v9130_v61 = vmul.f32 %v8863_v22, %v8618_v40  ;;  %v9138_v10 = vmul.f32 %v8883_v35, %v8805_v12  ;;  %v16643_v20 = vrot.slane %v8844_v32, 1  ;;  %v9161_v32 = vld [vmem:[%s15875_s1 + $0x14] ss:$0 sm:$0xff] }
 0x161   : > { %v9133_v54 = vadd.f32 %v16608_v62, %v4293_v45  ;;  %v634_v14 = vadd.f32 %v602_v43, %v565_v56  ;;  %v16004_v11 = vrot.slane %v9124_v47, 1  ;;  %v2667_v48 = vadd.f32 %v2577_v36, %v2464_v57  ;;  %16647 = vst [vmem:[#allocation34_spill] sm:$0xff] %v9161_v32 }
 0x162   : > { %v749_v44 = vsel %vm732_vm0, %v16643_v20, %v16005_v28  ;;  %v16644_v22 = vrot.slane %v9114_v2, 1  ;;  %v16645_v45 = vrot.slane %v8848_v27, 1  ;;  %v16646_v57 = vrot.slane %v8852_v15, 1 }
 0x163   : > { %16642 = vst [vmem:[#allocation25_spill] sm:$0xff] %v9133_v54  ;;  %4367 = vadd.xlane.f32.xlu1 %v9133_v54  ;;  %v838_v56 = vadd.f32 %v749_v44, %v634_v14  ;;  %v9165_v27 = vmul.f32 %v9161_v32, %v9066_v23  ;;  %v9170_v14 = vmul.f32 %v8909_v38, %v8618_v40  ;;  %v16649_v20 = vrot.slane %v9023_v19, 7 }
 0x164   : > { %v952_v43 = vsel %vm732_vm0, %v16645_v45, %v16644_v22  ;;  %v1155_v36 = vsel %vm732_vm0, %v16646_v57, %v16004_v11  ;;  %v2871_v22 = vadd.f32 %v2781_v30, %v2667_v48  ;;  %v9174_v15 = vmul.f32 %v8919_v18, %v8805_v12 }
 0x165   : > { %16648 = vst [vmem:[#allocation35_spill] sm:$0xff] %v9170_v14  ;;  %v16650_v45 = vrot.slane %v8773_v51, 7  ;;  %v1041_v11 = vadd.f32 %v952_v43, %v838_v56  ;;  %v9184_v48 = vmul.f32 %v8928_v9, %v8618_v40  ;;  %v16651_v44 = vrot.slane %v9064_v17, 7  ;;  %v9199_v43 = vld [vmem:[%s15875_s1 + $0xe] ss:$0 sm:$0xff] }
 0x166   : > { %v3074_v30 = vadd.f32 %v2984_v60, %v2871_v22  ;;  %v16652_v29 = vrot.slane %v8777_v49, 7  ;;  %v16653_v18 = vrot.slane %v9101_v25, 7  ;;  %v16654_v51 = vrot.slane %v8824_v5, 7  ;;  %16655 = vst [vmem:[#allocation36_spill] sm:$0xff] %v9199_v43 }
 0x167   : > { %v3798_v57 = vsel %vm3783_vm6, %v16650_v45, %v16649_v20  ;;  %v9203_v60 = vmul.f32 %v9199_v43, %v8805_v12  ;;  %v1244_v56 = vadd.f32 %v1155_v36, %v1041_v11  ;;  %v16656_v49 = vrot.slane %v9130_v61, 2 }
 0x168   : > { %v4001_v54 = vsel %vm3783_vm6, %v16652_v29, %v16651_v44  ;;  %v4204_v20 = vsel %vm3783_vm6, %v16654_v51, %v16653_v18  ;;  %v16657_v29 = vrot.slane %v8867_v37, 2  ;;  %v9213_v18 = vmul.f32 %v8972_v46, %v8618_v40 }
 0x169   : > { %v3278_v44 = vadd.f32 %v3188_v0, %v3074_v30  ;;  %v16658_v45 = vrot.slane %v9138_v10, 2  ;;  %v16659_v51 = vrot.slane %v8887_v3, 2  ;;  %v16660_v11 = vrot.slane %v9165_v27, 2  ;;  %v9231_v0 = vld [vmem:[%s15875_s1 + $0xf] ss:$0 sm:$0xff] }
 0x16a   : > { %v1359_v22 = vsel %vm1342_vm1, %v16657_v29, %v16656_v49  ;;  %v16661_v36 = vrot.slane %v8898_v55, 2  ;;  %v16012_v49 = vrot.slane %v9174_v15, 3  ;;  %v16013_v5 = vrot.slane %v9184_v48, 4 }
 0x16b   : > { %v1562_v28 = vsel %vm1342_vm1, %v16659_v51, %v16658_v45  ;;  %v1448_v29 = vadd.f32 %v1359_v22, %v1244_v56  ;;  %v9235_v3 = vmul.f32 %v9231_v0, %v8805_v12  ;;  %v3481_v55 = vadd.f32 %v9073_v16, %v3278_v44  ;;  %v9256_v16 = vld [vmem:[%s15875_s1 + $0x10] ss:$0 sm:$0xff] }
 0x16c   : > { %v1765_v37 = vsel %vm1342_vm1, %v16661_v36, %v16660_v11  ;;  %v9241_v56 = vmul.f32 %v8989_v7, %v8420_v58  ;;  %v9245_v22 = vmul.f32 %v9000_v21, %v8618_v40  ;;  %v16662_v51 = vrot.slane %v9170_v14, 3  ;;  %16664 = vst [vmem:[#allocation37_spill] sm:$0xff] %v9256_v16 }
 0x16d   : > { %v1651_v45 = vadd.f32 %v1562_v28, %v1448_v29  ;;  %v16663_v11 = vrot.slane %v8913_v63, 3  ;;  %v9260_v44 = vmul.f32 %v9256_v16, %v8805_v12  ;;  %v3684_v30 = vadd.f32 %v9080_v34, %v3481_v55 }
 0x16e   : > { %v16665_v28 = vrot.slane %v8923_v4, 3  ;;  %v16666_v46 = vrot.slane %v8932_v50, 4  ;;  %v9277_v34 = vmul.f32 %v9019_v52, %v8420_v58  ;;  %v9281_v4 = vmul.f32 %v9060_v13, %v8618_v40 }
 0x16f   : > { %v1969_v36 = vsel %vm1952_vm2, %v16663_v11, %v16662_v51  ;;  %v1854_v11 = vadd.f32 %v1765_v37, %v1651_v45  ;;  %v3888_v55 = vadd.f32 %v3798_v57, %v3684_v30  ;;  %v16670_v45 = vrot.slane %v9213_v18, 5 }
 0x170   : > { %v2172_v63 = vsel %vm1952_vm2, %v16665_v28, %v16012_v49  ;;  %v2376_v14 = vsel %vm2359_vm3, %v16666_v46, %v16013_v5  ;;  %16667 = vst [vmem:[#allocation38_spill] sm:$0xff] %v9277_v34  ;;  %v16668_v28 = vrot.slane %v9203_v60, 4  ;;  %v16669_v49 = vrot.slane %v8946_v1, 4 }
 0x171   : > { %v16671_v50 = vrot.slane %v8976_v24, 5  ;;  %v16672_v58 = vrot.slane %v9235_v3, 5  ;;  %v16673_v5 = vrot.slane %v8982_v8, 5  ;;  %v2058_v29 = vadd.f32 %v1969_v36, %v1854_v11  ;;  %v9307_v24 = vld [vmem:[%s15875_s1 + $0x11] ss:$0 sm:$0xff]  ;;  %v9313_v8 = vpop.trf.xlu0 }
 0x172   : > { %v2579_v37 = vsel %vm2359_vm3, %v16669_v49, %v16668_v28  ;;  %v16674_v57 = vrot.slane %v9241_v56, 6  ;;  %v16675_v30 = vrot.slane %v8993_v26, 6  ;;  %v9311_v28 = vmul.f32 %v9307_v24, %v8805_v12 }
 0x173   : > { %v2783_v46 = vsel %vm2766_vm4, %v16671_v50, %v16670_v45  ;;  %v2986_v51 = vsel %vm2766_vm4, %v16673_v5, %v16672_v58  ;;  %v4091_v5 = vadd.f32 %v4001_v54, %v3888_v55  ;;  %v16676_v36 = vrot.slane %v9245_v22, 6 }
 0x174   : > { %v3190_v1 = vsel %vm3173_vm5, %v16675_v30, %v16674_v57  ;;  %v16677_v26 = vrot.slane %v9004_v42, 6  ;;  %v465_v45 = vmul.f32 %v8829_v53, %v8618_v40  ;;  %v534_v50 = vmul.f32 %v9088_v39, %v8805_v12  ;;  %v16679_v30 = vld [vmem:[#allocation33_spill] sm:$0xff] }
 0x175   : > { %v2261_v58 = vadd.f32 %v2172_v63, %v2058_v29  ;;  %v603_v54 = vmul.f32 %v9095_v41, %v9066_v23  ;;  %v4294_v55 = vadd.f32 %v4204_v20, %v4091_v5  ;;  %v9330_v42 = vmul.f32 %v8840_v59, %v8805_v12 }
 0x176   : > { %v3393_v11 = vsel %vm3173_vm5, %v16677_v26, %v16676_v36  ;;  %v566_v49 = vadd.f32 %v534_v50, %v465_v45  ;;  %v9334_v36 = vmul.f32 %v9110_v6, %v9066_v23  ;;  %v9339_v29 = vmul.f32 %v9120_v33, %v9313_v8 }
 0x177   : > { %v2465_v26 = vadd.f32 %v2376_v14, %v2261_v58  ;;  %v9343_v57 = vmul.f32 %v16679_v30, %v8805_v12  ;;  %v9346_v20 = vadd.f32 %v16608_v62, %v4294_v55  ;;  %v16017_v45 = vrot.slane %v9330_v42, 1 }
 0x178   : > { %16678 = vst [vmem:[#allocation39_spill] sm:$0xff] %v9334_v36  ;;  %v635_v5 = vadd.f32 %v603_v54, %v566_v49  ;;  %v16018_v50 = vrot.slane %v9334_v36, 1  ;;  %v9354_v63 = vmul.f32 %v8883_v35, %v9066_v23  ;;  %v16681_v62 = vrot.slane %v9105_v31, 1  ;;  %v16684_v31 = vld [vmem:[#allocation22_spill] sm:$0xff] }
 0x179   : > { %16680 = vst [vmem:[#allocation40_spill] sm:$0xff] %v9346_v20  ;;  %v2668_v6 = vadd.f32 %v2579_v37, %v2465_v26  ;;  %4369 = vadd.xlane.f32.xlu0 %v9346_v20  ;;  %v16682_v37 = vrot.slane %v9114_v2, 1  ;;  %v9369_v55 = vmul.f32 %v9161_v32, %v9313_v8  ;;  %v9373_v26 = vmul.f32 %v8909_v38, %v8805_v12 }
 0x17a   : > { %v751_v49 = vsel %vm732_vm0, %v16681_v62, %v16017_v45  ;;  %v16683_v14 = vrot.slane %v9260_v44, 6  ;;  %v16685_v20 = vrot.slane %v16684_v31, 6  ;;  %v16686_v45 = vrot.slane %v9277_v34, 7  ;;  %v16690_v31 = vld [vmem:[#allocation23_spill] sm:$0xff] }
 0x17b   : > { %v954_v54 = vsel %vm732_vm0, %v16682_v37, %v16018_v50  ;;  %v2872_v58 = vadd.f32 %v2783_v46, %v2668_v6  ;;  %v16687_v2 = vrot.slane %v9023_v19, 7  ;;  %v839_v50 = vadd.f32 %v751_v49, %v635_v5 }
 0x17c   : > { %v3596_v62 = vsel %vm3173_vm5, %v16685_v20, %v16683_v14  ;;  %v16688_v32 = vrot.slane %v9339_v29, 1  ;;  %v16689_v36 = vrot.slane %v9124_v47, 1  ;;  %v9394_v20 = vmul.f32 %v16690_v31, %v9066_v23 }
 0x17d   : > { %v3800_v37 = vsel %vm3783_vm6, %v16687_v2, %v16686_v45  ;;  %v3075_v14 = vadd.f32 %v2986_v51, %v2872_v58  ;;  %v1042_v34 = vadd.f32 %v954_v54, %v839_v50  ;;  %v9398_v19 = vmul.f32 %v8928_v9, %v8805_v12 }
 0x17e   : > { %v1157_v38 = vsel %vm732_vm0, %v16689_v36, %v16688_v32  ;;  %v9402_v5 = vmul.f32 %v9199_v43, %v9066_v23  ;;  %v16691_v47 = vrot.slane %v9281_v4, 7  ;;  %v16692_v32 = vrot.slane %v9064_v17, 7 }
 0x17f   : > { %v16693_v45 = vrot.slane %v9311_v28, 7  ;;  %v16694_v49 = vrot.slane %v9101_v25, 7  ;;  %v16695_v50 = vrot.slane %v9343_v57, 2  ;;  %v16696_v58 = vrot.slane %v9130_v61, 2 }
 0x180   : > { %v4003_v36 = vsel %vm3783_vm6, %v16692_v32, %v16691_v47  ;;  %v16027_v2 = vrot.slane %v9373_v26, 3  ;;  %v3279_v46 = vadd.f32 %v3190_v1, %v3075_v14  ;;  %v1245_v6 = vadd.f32 %v1157_v38, %v1042_v34 }
 0x181   : > { %v4206_v51 = vsel %vm3783_vm6, %v16694_v49, %v16693_v45  ;;  %v1361_v54 = vsel %vm1342_vm1, %v16696_v58, %v16695_v50  ;;  %v16697_v17 = vrot.slane %v9354_v63, 2  ;;  %v16698_v47 = vrot.slane %v9138_v10, 2  ;;  %v16699_v49 = vld [vmem:[#allocation10_spill] sm:$0xff] }
 0x182   : > { %v9429_v43 = vmul.f32 %v16699_v49, %v8805_v12  ;;  %v9433_v61 = vmul.f32 %v9231_v0, %v9066_v23  ;;  %v9437_v38 = vmul.f32 %v8989_v7, %v8618_v40  ;;  %v3482_v34 = vadd.f32 %v3393_v11, %v3279_v46 }
 0x183   : > { %v1564_v32 = vsel %vm1342_vm1, %v16698_v47, %v16697_v17  ;;  %v1449_v10 = vadd.f32 %v1361_v54, %v1245_v6  ;;  %v16700_v1 = vrot.slane %v9369_v55, 2  ;;  %v16701_v14 = vrot.slane %v9165_v27, 2  ;;  %v16702_v54 = vld [vmem:[#allocation35_spill] sm:$0xff] }
 0x184   : > { %v9450_v25 = vmul.f32 %v9000_v21, %v8805_v12  ;;  %v3685_v11 = vadd.f32 %v3596_v62, %v3482_v34  ;;  %v9454_v46 = vmul.f32 %v9256_v16, %v9066_v23  ;;  %v9458_v27 = vmul.f32 %v9019_v52, %v8618_v40 }
 0x185   : > { %v1767_v50 = vsel %vm1342_vm1, %v16701_v14, %v16700_v1  ;;  %v1652_v6 = vadd.f32 %v1564_v32, %v1449_v10  ;;  %v16703_v1 = vrot.slane %v16702_v54, 3  ;;  %v16704_v45 = vrot.slane %v9394_v20, 3 }
 0x186   : > { %v16705_v47 = vrot.slane %v9174_v15, 3  ;;  %v16706_v32 = vrot.slane %v9398_v19, 4  ;;  %v16707_v34 = vrot.slane %v9184_v48, 4  ;;  %v16028_v40 = vrot.slane %v9450_v25, 6 }
 0x187   : > { %v1971_v14 = vsel %vm1952_vm2, %v16703_v1, %v16027_v2  ;;  %v3889_v17 = vadd.f32 %v3800_v37, %v3685_v11  ;;  %v1855_v58 = vadd.f32 %v1767_v50, %v1652_v6  ;;  %v16708_v54 = vrot.slane %v9402_v5, 4  ;;  %v9504_v6 = vpop.trf.xlu0 }
 0x188   : > { %v2174_v62 = vsel %vm1952_vm2, %v16705_v47, %v16704_v45  ;;  %v2378_v10 = vsel %vm2359_vm3, %v16707_v34, %v16706_v32  ;;  %v16709_v1 = vrot.slane %v9203_v60, 4  ;;  %v16710_v15 = vrot.slane %v9429_v43, 5 }
 0x189   : > { %v16711_v45 = vrot.slane %v9213_v18, 5  ;;  %v16712_v48 = vrot.slane %v9433_v61, 5  ;;  %v16713_v32 = vrot.slane %v9235_v3, 5  ;;  %v16714_v37 = vrot.slane %v9437_v38, 6 }
 0x18a   : > { %v2581_v2 = vsel %vm2359_vm3, %v16709_v1, %v16708_v54  ;;  %v16715_v50 = vrot.slane %v9241_v56, 6  ;;  %v9498_v11 = vmul.f32 %v9060_v13, %v8805_v12  ;;  %v9502_v18 = vmul.f32 %v9307_v24, %v9066_v23 }
 0x18b   : > { %v2785_v47 = vsel %vm2766_vm4, %v16711_v45, %v16710_v15  ;;  %v2988_v34 = vsel %vm2766_vm4, %v16713_v32, %v16712_v48  ;;  %v4092_v54 = vadd.f32 %v4003_v36, %v3889_v17  ;;  %v2059_v3 = vadd.f32 %v1971_v14, %v1855_v58 }
 0x18c   : > { %v3192_v60 = vsel %vm3173_vm5, %v16715_v50, %v16714_v37  ;;  %v16716_v56 = vrot.slane %v9245_v22, 6  ;;  %v466_v48 = vmul.f32 %v8829_v53, %v8805_v12  ;;  %v535_v32 = vmul.f32 %v9088_v39, %v9066_v23  ;;  %v16717_v37 = vld [vmem:[#allocation29_spill] sm:$0xff] }
 0x18d   : > { %v604_v36 = vmul.f32 %v9095_v41, %v9313_v8  ;;  %v4295_v58 = vadd.f32 %v4206_v51, %v4092_v54  ;;  %v2262_v17 = vadd.f32 %v2174_v62, %v2059_v3  ;;  %v9521_v14 = vmul.f32 %v8840_v59, %v9066_v23  ;;  %v9536_v51 = vld [vmem:[%s15876_s2] ss:$0 sm:$0xff] }
 0x18e   : > { %v3395_v45 = vsel %vm3173_vm5, %v16716_v56, %v16028_v40  ;;  %v9525_v22 = vmul.f32 %v16717_v37, %v9313_v8  ;;  %v567_v40 = vadd.f32 %v535_v32, %v466_v48  ;;  %v9531_v15 = vmul.f32 %v9120_v33, %v9504_v6  ;;  %16719 = vst [vmem:[#allocation10_spill] sm:$0xff] %v9536_v51 }
 0x18f   : > { %v9539_v62 = vadd.f32 %v9536_v51, %v4295_v58  ;;  %v2466_v54 = vadd.f32 %v2378_v10, %v2262_v17  ;;  %v16035_v3 = vrot.slane %v9521_v14, 1  ;;  %v9546_v32 = vmul.f32 %v16679_v30, %v9066_v23  ;;  %v16724_v51 = vld [vmem:[#allocation34_spill] sm:$0xff] }
 0x190   : > { %16718 = vst [vmem:[#allocation22_spill] sm:$0xff] %v9525_v22  ;;  %v16036_v50 = vrot.slane %v9525_v22, 1  ;;  %v636_v1 = vadd.f32 %v604_v36, %v567_v40  ;;  %v9550_v56 = vmul.f32 %v8883_v35, %v9313_v8  ;;  %v16721_v10 = vrot.slane %v9330_v42, 1  ;;  %v16722_v40 = vld [vmem:[#allocation39_spill] sm:$0xff]  ;;  %v16729_v22 = vld [vmem:[#allocation18_spill] sm:$0xff] }
 0x191   : > { %16720 = vst [vmem:[#allocation35_spill] sm:$0xff] %v9539_v62  ;;  %4371 = vadd.xlane.f32.xlu1 %v9539_v62  ;;  %v2669_v58 = vadd.f32 %v2581_v2, %v2466_v54  ;;  %v16723_v36 = vrot.slane %v16722_v40, 1  ;;  %v9565_v30 = vmul.f32 %v16724_v51, %v9504_v6  ;;  %v16725_v35 = vrot.slane %v9454_v46, 6 }
 0x192   : > { %v753_v17 = vsel %vm732_vm0, %v16721_v10, %v16035_v3  ;;  %v16726_v2 = vrot.slane %v9260_v44, 6  ;;  %v16727_v42 = vrot.slane %v9531_v15, 1  ;;  %v16728_v10 = vrot.slane %v9339_v29, 1 }
 0x193   : > { %v956_v48 = vsel %vm732_vm0, %v16723_v36, %v16036_v50  ;;  %v840_v62 = vadd.f32 %v753_v17, %v636_v1  ;;  %v2873_v36 = vadd.f32 %v2785_v47, %v2669_v58  ;;  %v9581_v51 = vmul.f32 %v16729_v22, %v9066_v23  ;;  %v16731_v1 = vld [vmem:[#allocation38_spill] sm:$0xff] }
 0x194   : > { %v3598_v54 = vsel %vm3173_vm5, %v16726_v2, %v16725_v35  ;;  %v1159_v3 = vsel %vm732_vm0, %v16728_v10, %v16727_v42  ;;  %v9585_v44 = vmul.f32 %v16690_v31, %v9313_v8  ;;  %v16730_v35 = vrot.slane %v9458_v27, 7 }
 0x195   : > { %v16732_v17 = vrot.slane %v16731_v1, 7  ;;  %v1043_v2 = vadd.f32 %v956_v48, %v840_v62  ;;  %v9595_v47 = vmul.f32 %v8928_v9, %v9066_v23  ;;  %v3076_v58 = vadd.f32 %v2988_v34, %v2873_v36  ;;  %v16739_v36 = vld [vmem:[#allocation36_spill] sm:$0xff] }
 0x196   : > { %v16733_v10 = vrot.slane %v9498_v11, 7  ;;  %v16734_v50 = vrot.slane %v9281_v4, 7  ;;  %v16735_v31 = vrot.slane %v9502_v18, 7  ;;  %v16736_v1 = vrot.slane %v9311_v28, 7 }
 0x197   : > { %v3802_v29 = vsel %vm3783_vm6, %v16732_v17, %v16730_v35  ;;  %v16737_v62 = vrot.slane %v9546_v32, 2  ;;  %v16738_v48 = vrot.slane %v9343_v57, 2  ;;  %v1246_v42 = vadd.f32 %v1159_v3, %v1043_v2 }
 0x198   : > { %v4005_v40 = vsel %vm3783_vm6, %v16734_v50, %v16733_v10  ;;  %v4208_v35 = vsel %vm3783_vm6, %v16736_v1, %v16735_v31  ;;  %v9615_v4 = vmul.f32 %v16739_v36, %v9313_v8  ;;  %v9619_v50 = vmul.f32 %v16699_v49, %v9066_v23 }
 0x199   : > { %v1363_v17 = vsel %vm1342_vm1, %v16738_v48, %v16737_v62  ;;  %v3280_v28 = vadd.f32 %v3192_v60, %v3076_v58  ;;  %v16740_v31 = vrot.slane %v9550_v56, 2  ;;  %v16741_v10 = vrot.slane %v9354_v63, 2 }
 0x19a   : > { %v16041_v1 = vrot.slane %v9585_v44, 3  ;;  %v9629_v3 = vmul.f32 %v9231_v0, %v9313_v8  ;;  %v1450_v2 = vadd.f32 %v1363_v17, %v1246_v42  ;;  %v16742_v62 = vrot.slane %v9565_v30, 2 }
 0x19b   : > { %v1566_v57 = vsel %vm1342_vm1, %v16741_v10, %v16740_v31  ;;  %v16743_v48 = vrot.slane %v9369_v55, 2  ;;  %v3483_v63 = vadd.f32 %v3395_v45, %v3280_v28  ;;  %v9641_v10 = vmul.f32 %v8989_v7, %v8805_v12 }
 0x19c   : > { %v9645_v42 = vmul.f32 %v9000_v21, %v9066_v23  ;;  %v1653_v17 = vadd.f32 %v1566_v57, %v1450_v2  ;;  %v16744_v55 = vrot.slane %v9581_v51, 3  ;;  %v9655_v45 = vmul.f32 %v9256_v16, %v9313_v8 }
 0x19d   : > { %v1769_v34 = vsel %vm1342_vm1, %v16743_v48, %v16742_v62  ;;  %v16745_v62 = vrot.slane %v9373_v26, 3  ;;  %v3686_v28 = vadd.f32 %v3598_v54, %v3483_v63  ;;  %v16746_v31 = vrot.slane %v9394_v20, 3 }
 0x19e   : > { %v16044_v57 = vrot.slane %v9641_v10, 6  ;;  %v16042_v2 = vrot.slane %v9645_v42, 6  ;;  %v1856_v26 = vadd.f32 %v1769_v34, %v1653_v17  ;;  %v16043_v16 = vrot.slane %v9655_v45, 6 }
 0x19f   : > { %v1973_v48 = vsel %vm1952_vm2, %v16745_v62, %v16744_v55  ;;  %v2176_v60 = vsel %vm1952_vm2, %v16746_v31, %v16041_v1  ;;  %v16747_v55 = vrot.slane %v9595_v47, 4  ;;  %v16748_v62 = vrot.slane %v9398_v19, 4 }
 0x1a0   : > { %v9672_v54 = vmul.f32 %v9019_v52, %v8805_v12  ;;  %v3890_v20 = vadd.f32 %v3802_v29, %v3686_v28  ;;  %v16749_v63 = vrot.slane %v9615_v4, 4  ;;  %v16750_v31 = vrot.slane %v9402_v5, 4 }
 0x1a1   : > { %v2380_v58 = vsel %vm2359_vm3, %v16748_v62, %v16747_v55  ;;  %v16751_v34 = vrot.slane %v9619_v50, 5  ;;  %v16752_v17 = vrot.slane %v9429_v43, 5  ;;  %v9686_v55 = vmul.f32 %v9060_v13, %v9066_v23 }
 0x1a2   : > { %v2583_v1 = vsel %vm2359_vm3, %v16750_v31, %v16749_v63  ;;  %v2060_v62 = vadd.f32 %v1973_v48, %v1856_v26  ;;  %v16753_v12 = vrot.slane %v9629_v3, 5  ;;  %v16754_v29 = vrot.slane %v9433_v61, 5 }
 0x1a3   : > { %v2787_v19 = vsel %vm2766_vm4, %v16752_v17, %v16751_v34  ;;  %v16755_v5 = vrot.slane %v9437_v38, 6  ;;  %v16756_v43 = vrot.slane %v9450_v25, 6  ;;  %v9703_v34 = vpop.trf.xlu0  ;;  %v4093_v48 = vadd.f32 %v4005_v40, %v3890_v20 }
 0x1a4   : > { %v2990_v28 = vsel %vm2766_vm4, %v16754_v29, %v16753_v12  ;;  %v9707_v61 = vmul.f32 %v9307_v24, %v9313_v8  ;;  %v467_v26 = vmul.f32 %v8829_v53, %v9066_v23  ;;  %v536_v38 = vmul.f32 %v9088_v39, %v9313_v8 }
 0x1a5   : > { %v3194_v63 = vsel %vm3173_vm5, %v16755_v5, %v16044_v57  ;;  %v3397_v31 = vsel %vm3173_vm5, %v16756_v43, %v16042_v2  ;;  %v2263_v17 = vadd.f32 %v2176_v60, %v2060_v62  ;;  %v16757_v25 = vrot.slane %v9454_v46, 6 }
 0x1a6   : > { %v605_v40 = vmul.f32 %v9095_v41, %v9504_v6  ;;  %v4296_v20 = vadd.f32 %v4208_v35, %v4093_v48  ;;  %v568_v43 = vadd.f32 %v536_v38, %v467_v26  ;;  %v9724_v2 = vmul.f32 %v8840_v59, %v9313_v8  ;;  %v16760_v35 = vld [vmem:[#allocation10_spill] sm:$0xff] }
 0x1a7   : > { %v3600_v12 = vsel %vm3173_vm5, %v16757_v25, %v16043_v16  ;;  %v2467_v60 = vadd.f32 %v2380_v58, %v2263_v17  ;;  %v9728_v62 = vmul.f32 %v16717_v37, %v9504_v6  ;;  %v9732_v46 = vmul.f32 %v9120_v33, %v9703_v34  ;;  %v16759_v25 = vld [vmem:[#allocation33_spill] sm:$0xff]  ;;  %v16765_v33 = vld [vmem:[#allocation22_spill] sm:$0xff] }
 0x1a8   : > { %16758 = vst [vmem:[#allocation39_spill] sm:$0xff] %v9724_v2  ;;  %v9736_v16 = vmul.f32 %v16759_v25, %v9313_v8  ;;  %v9739_v48 = vadd.f32 %v16760_v35, %v4296_v20  ;;  %v637_v26 = vadd.f32 %v605_v40, %v568_v43  ;;  %v16048_v38 = vrot.slane %v9724_v2, 1  ;;  %v16762_v58 = vld [vmem:[#allocation9_spill] sm:$0xff] }
 0x1a9   : > { %v9744_v17 = vmul.f32 %v16762_v58, %v9504_v6  ;;  %v2670_v57 = vadd.f32 %v2583_v1, %v2467_v60  ;;  %v16051_v29 = vrot.slane %v9728_v62, 1  ;;  %v16763_v20 = vrot.slane %v9521_v14, 1  ;;  %v16764_v58 = vld [vmem:[#allocation34_spill] sm:$0xff] }
 0x1aa   : > { %16761 = vst [vmem:[#allocation38_spill] sm:$0xff] %v9739_v48  ;;  %4373 = vadd.xlane.f32.xlu0 %v9739_v48  ;;  %v9758_v25 = vmul.f32 %v16764_v58, %v9703_v34  ;;  %v9762_v1 = vmul.f32 %v16729_v22, %v9313_v8  ;;  %v16766_v48 = vrot.slane %v16765_v33, 1  ;;  %v16768_v43 = vrot.slane %v9458_v27, 7  ;;  %v16773_v27 = vld [vmem:[#allocation23_spill] sm:$0xff] }
 0x1ab   : > { %v755_v40 = vsel %vm732_vm0, %v16763_v20, %v16048_v38  ;;  %v2874_v60 = vadd.f32 %v2787_v19, %v2670_v57  ;;  %v16767_v38 = vrot.slane %v9672_v54, 7  ;;  %v16769_v2 = vrot.slane %v9686_v55, 7 }
 0x1ac   : > { %v841_v5 = vadd.f32 %v755_v40, %v637_v26  ;;  %v958_v14 = vsel %vm732_vm0, %v16766_v48, %v16051_v29  ;;  %v16770_v22 = vrot.slane %v9498_v11, 7  ;;  %v16771_v19 = vrot.slane %v9732_v46, 1 }
 0x1ad   : > { %v3804_v58 = vsel %vm3783_vm6, %v16768_v43, %v16767_v38  ;;  %v16772_v33 = vrot.slane %v9531_v15, 1  ;;  %v3077_v40 = vadd.f32 %v2990_v28, %v2874_v60  ;;  %v9788_v20 = vmul.f32 %v16773_v27, %v9504_v6 }
 0x1ae   : > { %v4007_v57 = vsel %vm3783_vm6, %v16770_v22, %v16769_v2  ;;  %v1044_v29 = vadd.f32 %v958_v14, %v841_v5  ;;  %v9792_v38 = vmul.f32 %v8928_v9, %v9313_v8  ;;  %v16774_v11 = vrot.slane %v9707_v61, 7 }
 0x1af   : > { %v1161_v48 = vsel %vm732_vm0, %v16772_v33, %v16771_v19  ;;  %v16775_v22 = vrot.slane %v9502_v18, 7  ;;  %v9802_v28 = vmul.f32 %v16739_v36, %v9504_v6  ;;  %v9806_v5 = vmul.f32 %v16699_v49, %v9313_v8 }
 0x1b0   : > { %v3281_v43 = vadd.f32 %v3194_v63, %v3077_v40  ;;  %v1247_v60 = vadd.f32 %v1161_v48, %v1044_v29  ;;  %v16776_v14 = vrot.slane %v9736_v16, 2  ;;  %v16777_v19 = vrot.slane %v9546_v32, 2 }
 0x1b1   : > { %v4210_v15 = vsel %vm3783_vm6, %v16775_v22, %v16774_v11  ;;  %v16778_v33 = vrot.slane %v9744_v17, 2  ;;  %v16779_v11 = vrot.slane %v9550_v56, 2  ;;  %v9822_v63 = vmul.f32 %v9231_v0, %v9504_v6 }
 0x1b2   : > { %v1365_v18 = vsel %vm1342_vm1, %v16777_v19, %v16776_v14  ;;  %v9826_v29 = vmul.f32 %v8989_v7, %v9066_v23  ;;  %v3484_v32 = vadd.f32 %v3397_v31, %v3281_v43  ;;  %v16780_v40 = vrot.slane %v9758_v25, 2 }
 0x1b3   : > { %v1568_v22 = vsel %vm1342_vm1, %v16779_v11, %v16778_v33  ;;  %v1451_v48 = vadd.f32 %v1365_v18, %v1247_v60  ;;  %v16781_v56 = vrot.slane %v9565_v30, 2  ;;  %v16054_v19 = vrot.slane %v9802_v28, 4  ;;  %v16784_v18 = vld [vmem:[#allocation37_spill] sm:$0xff] }
 0x1b4   : > { %v16782_v33 = vrot.slane %v9762_v1, 3  ;;  %v16783_v11 = vrot.slane %v9581_v51, 3  ;;  %v16055_v2 = vrot.slane %v9806_v5, 5  ;;  %v3687_v43 = vadd.f32 %v3600_v12, %v3484_v32 }
 0x1b5   : > { %v1771_v14 = vsel %vm1342_vm1, %v16781_v56, %v16780_v40  ;;  %v1654_v60 = vadd.f32 %v1568_v22, %v1451_v48  ;;  %v9844_v30 = vmul.f32 %v9000_v21, %v9313_v8  ;;  %v9848_v40 = vmul.f32 %v16784_v18, %v9504_v6 }
 0x1b6   : > { %v1975_v26 = vsel %vm1952_vm2, %v16783_v11, %v16782_v33  ;;  %v16785_v51 = vrot.slane %v9788_v20, 3  ;;  %v16786_v56 = vrot.slane %v9585_v44, 3  ;;  %v16787_v11 = vrot.slane %v9792_v38, 4 }
 0x1b7   : > { %v16788_v31 = vrot.slane %v9595_v47, 4  ;;  %v9862_v22 = vmul.f32 %v9019_v52, %v9066_v23  ;;  %v9866_v32 = vmul.f32 %v9060_v13, %v9313_v8  ;;  %v3891_v48 = vadd.f32 %v3804_v58, %v3687_v43 }
 0x1b8   : > { %v2178_v33 = vsel %vm1952_vm2, %v16786_v56, %v16785_v51  ;;  %v1857_v7 = vadd.f32 %v1771_v14, %v1654_v60  ;;  %v16789_v44 = vrot.slane %v9615_v4, 4  ;;  %v16056_v47 = vrot.slane %v9844_v30, 6 }
 0x1b9   : > { %v2382_v12 = vsel %vm2359_vm3, %v16788_v31, %v16787_v11  ;;  %v16790_v31 = vrot.slane %v9619_v50, 5  ;;  %v16791_v56 = vrot.slane %v9822_v63, 5  ;;  %v16792_v11 = vrot.slane %v9629_v3, 5 }
 0x1ba   : > { %v2585_v51 = vsel %vm2359_vm3, %v16789_v44, %v16054_v19  ;;  %v16793_v14 = vrot.slane %v9826_v29, 6  ;;  %v16794_v4 = vrot.slane %v9641_v10, 6  ;;  %v16057_v60 = vrot.slane %v9848_v40, 6  ;;  %v9890_v44 = vpop.trf.xlu0 }
 0x1bb   : > { %v2789_v23 = vsel %vm2766_vm4, %v16790_v31, %v16055_v2  ;;  %v2992_v58 = vsel %vm2766_vm4, %v16792_v11, %v16791_v56  ;;  %v4094_v19 = vadd.f32 %v4007_v57, %v3891_v48  ;;  %v2061_v50 = vadd.f32 %v1975_v26, %v1857_v7  ;;  %v16800_v31 = vld [vmem:[#allocation33_spill] sm:$0xff] }
 0x1bc   : > { %v3196_v43 = vsel %vm3173_vm5, %v16794_v4, %v16793_v14  ;;  %v16795_v3 = vrot.slane %v9645_v42, 6  ;;  %v9901_v10 = vmul.f32 %v9307_v24, %v9504_v6  ;;  %v468_v11 = vmul.f32 %v8829_v53, %v9313_v8 }
 0x1bd   : > { %v537_v7 = vmul.f32 %v9088_v39, %v9504_v6  ;;  %v4297_v57 = vadd.f32 %v4210_v15, %v4094_v19  ;;  %v2264_v26 = vadd.f32 %v2178_v33, %v2061_v50  ;;  %v606_v48 = vmul.f32 %v9095_v41, %v9703_v34  ;;  %v16798_v15 = vld [vmem:[#allocation30_spill] sm:$0xff] }
 0x1be   : > { %v3399_v56 = vsel %vm3173_vm5, %v16795_v3, %v16056_v47  ;;  %16796 = vst [vmem:[#allocation36_spill] sm:$0xff] %v9901_v10  ;;  %v9911_v42 = vmul.f32 %v8840_v59, %v9504_v6  ;;  %v16797_v14 = vrot.slane %v9655_v45, 6  ;;  %v9920_v47 = vmul.f32 %v16717_v37, %v9703_v34 }
 0x1bf   : > { %v569_v3 = vadd.f32 %v537_v7, %v468_v11  ;;  %v9924_v19 = vmul.f32 %v16798_v15, %v9890_v44  ;;  %v9927_v33 = vadd.f32 %v16760_v35, %v4297_v57  ;;  %v2468_v50 = vadd.f32 %v2382_v12, %v2264_v26  ;;  %v16807_v7 = vld [vmem:[#allocation34_spill] sm:$0xff] }
 0x1c0   : > { %v3602_v4 = vsel %vm3173_vm5, %v16797_v14, %v16057_v60  ;;  %v9932_v45 = vmul.f32 %v16800_v31, %v9504_v6  ;;  %v16801_v60 = vld [vmem:[#allocation9_spill] sm:$0xff]  ;;  %v16802_v12 = vrot.slane %v9862_v22, 7  ;;  %v16803_v26 = vrot.slane %v9672_v54, 7 }
 0x1c1   : > { %16799 = vst [vmem:[#allocation22_spill] sm:$0xff] %v9927_v33  ;;  %v638_v14 = vadd.f32 %v606_v48, %v569_v3  ;;  %v9938_v37 = vmul.f32 %v16801_v60, %v9703_v34  ;;  %4375 = vadd.xlane.f32.xlu1 %v9927_v33  ;;  %v2671_v57 = vadd.f32 %v2585_v51, %v2468_v50  ;;  %v16804_v35 = vrot.slane %v9911_v42, 1  ;;  %v16805_v48 = vld [vmem:[#allocation39_spill] sm:$0xff]  ;;  %v16812_v60 = vld [vmem:[#allocation18_spill] sm:$0xff] }
 0x1c2   : > { %v3806_v2 = vsel %vm3783_vm6, %v16803_v26, %v16802_v12  ;;  %v16806_v3 = vrot.slane %v16805_v48, 1  ;;  %v9953_v31 = vmul.f32 %v16807_v7, %v9890_v44  ;;  %v16808_v51 = vrot.slane %v9920_v47, 1 }
 0x1c3   : > { %v16809_v50 = vrot.slane %v9728_v62, 1  ;;  %v2875_v26 = vadd.f32 %v2789_v23, %v2671_v57  ;;  %v16810_v48 = vrot.slane %v9924_v19, 1  ;;  %v9979_v23 = vmul.f32 %v8928_v9, %v9504_v6 }
 0x1c4   : > { %v757_v11 = vsel %vm732_vm0, %v16806_v3, %v16804_v35  ;;  %v16811_v35 = vrot.slane %v9732_v46, 1  ;;  %v16813_v57 = vrot.slane %v9866_v32, 7  ;;  %v16816_v62 = vrot.slane %v9707_v61, 7 }
 0x1c5   : > { %v842_v33 = vadd.f32 %v757_v11, %v638_v14  ;;  %v960_v54 = vsel %vm732_vm0, %v16809_v50, %v16808_v51  ;;  %v9970_v14 = vmul.f32 %v16812_v60, %v9504_v6  ;;  %v9975_v51 = vmul.f32 %v16773_v27, %v9703_v34 }
 0x1c6   : > { %v1163_v3 = vsel %vm732_vm0, %v16811_v35, %v16810_v48  ;;  %v3078_v46 = vadd.f32 %v2992_v58, %v2875_v26  ;;  %v16814_v50 = vrot.slane %v9686_v55, 7  ;;  %v16817_v58 = vrot.slane %v9932_v45, 2 }
 0x1c7   : > { %v1045_v11 = vadd.f32 %v960_v54, %v842_v33  ;;  %v9989_v33 = vmul.f32 %v16739_v36, %v9703_v34  ;;  %v16815_v54 = vrot.slane %v9901_v10, 7  ;;  %v16818_v26 = vrot.slane %v9736_v16, 2 }
 0x1c8   : > { %v4009_v48 = vsel %vm3783_vm6, %v16814_v50, %v16813_v57  ;;  %v10003_v57 = vmul.f32 %v16699_v49, %v9504_v6  ;;  %v3282_v50 = vadd.f32 %v3196_v43, %v3078_v46  ;;  %v16819_v35 = vrot.slane %v9938_v37, 2 }
 0x1c9   : > { %v4212_v7 = vsel %vm3783_vm6, %v16816_v62, %v16815_v54  ;;  %v1248_v12 = vadd.f32 %v1163_v3, %v1045_v11  ;;  %v1367_v55 = vsel %vm1342_vm1, %v16818_v26, %v16817_v58  ;;  %v16820_v10 = vrot.slane %v9744_v17, 2 }
 0x1ca   : > { %v10013_v3 = vmul.f32 %v9231_v0, %v9703_v34  ;;  %v16821_v11 = vrot.slane %v9953_v31, 2  ;;  %v16822_v54 = vrot.slane %v9758_v25, 2  ;;  %v16823_v43 = vrot.slane %v9970_v14, 3 }
 0x1cb   : > { %v1570_v61 = vsel %vm1342_vm1, %v16820_v10, %v16819_v35  ;;  %v1452_v16 = vadd.f32 %v1367_v55, %v1248_v12  ;;  %v16824_v46 = vrot.slane %v9762_v1, 3  ;;  %v16062_v10 = vrot.slane %v9979_v23, 4  ;;  %v16825_v12 = vld [vmem:[#allocation19_spill] sm:$0xff] }
 0x1cc   : > { %v1773_v58 = vsel %vm1342_vm1, %v16822_v54, %v16821_v11  ;;  %v3485_v35 = vadd.f32 %v3399_v56, %v3282_v50  ;;  %v10030_v55 = vmul.f32 %v16825_v12, %v9313_v8  ;;  %v10035_v54 = vmul.f32 %v9000_v21, %v9504_v6 }
 0x1cd   : > { %v1977_v17 = vsel %vm1952_vm2, %v16824_v46, %v16823_v43  ;;  %v1655_v25 = vadd.f32 %v1570_v61, %v1452_v16  ;;  %v10039_v1 = vmul.f32 %v16784_v18, %v9703_v34  ;;  %v16826_v50 = vrot.slane %v9975_v51, 3 }
 0x1ce   : > { %v3688_v56 = vadd.f32 %v3602_v4, %v3485_v35  ;;  %v16827_v43 = vrot.slane %v9788_v20, 3  ;;  %v10049_v61 = vmul.f32 %v9019_v52, %v9313_v8  ;;  %v16828_v11 = vrot.slane %v9792_v38, 4 }
 0x1cf   : > { %v1858_v16 = vadd.f32 %v1773_v58, %v1655_v25  ;;  %v16064_v4 = vrot.slane %v10035_v54, 6  ;;  %v16063_v35 = vrot.slane %v10039_v1, 6  ;;  %v16831_v8 = vrot.slane %v10003_v57, 5 }
 0x1d0   : > { %v2180_v46 = vsel %vm1952_vm2, %v16827_v43, %v16826_v50  ;;  %v2384_v26 = vsel %vm2359_vm3, %v16828_v11, %v16062_v10  ;;  %v3892_v20 = vadd.f32 %v3806_v2, %v3688_v56  ;;  %v16829_v50 = vrot.slane %v9989_v33, 4 }
 0x1d1   : > { %v16830_v43 = vrot.slane %v9802_v28, 4  ;;  %v16832_v58 = vrot.slane %v9806_v5, 5  ;;  %v10070_v38 = vmul.f32 %v9060_v13, %v9504_v6  ;;  %v2062_v11 = vadd.f32 %v1977_v17, %v1858_v16  ;;  %v16843_v5 = vld [vmem:[#allocation9_spill] sm:$0xff] }
 0x1d2   : > { %v16833_v10 = vrot.slane %v10013_v3, 5  ;;  %v16834_v2 = vrot.slane %v9822_v63, 5  ;;  %v16835_v28 = vrot.slane %v10030_v55, 6  ;;  %v16837_v17 = vrot.slane %v9844_v30, 6 }
 0x1d3   : > { %v2587_v62 = vsel %vm2359_vm3, %v16830_v43, %v16829_v50  ;;  %v2791_v25 = vsel %vm2766_vm4, %v16832_v58, %v16831_v8  ;;  %v16836_v50 = vrot.slane %v9826_v29, 6  ;;  %v10083_v8 = vpop.trf.xlu0  ;;  %v4095_v58 = vadd.f32 %v4009_v48, %v3892_v20 }
 0x1d4   : > { %v2994_v56 = vsel %vm2766_vm4, %v16834_v2, %v16833_v10  ;;  %v3401_v16 = vsel %vm3173_vm5, %v16837_v17, %v16064_v4  ;;  %v16838_v63 = vrot.slane %v9848_v40, 6  ;;  %v10097_v29 = vmul.f32 %v9307_v24, %v9703_v34  ;;  %v16839_v17 = vld [vmem:[#allocation29_spill] sm:$0xff] }
 0x1d5   : > { %v3198_v43 = vsel %vm3173_vm5, %v16836_v50, %v16835_v28  ;;  %v2265_v2 = vadd.f32 %v2180_v46, %v2062_v11  ;;  %v469_v48 = vmul.f32 %v8829_v53, %v9504_v6  ;;  %v538_v20 = vmul.f32 %v9088_v39, %v9703_v34 }
 0x1d6   : > { %v3604_v10 = vsel %vm3173_vm5, %v16838_v63, %v16063_v35  ;;  %v607_v30 = vmul.f32 %v9095_v41, %v9890_v44  ;;  %v4298_v28 = vadd.f32 %v4212_v7, %v4095_v58  ;;  %v10108_v40 = vmul.f32 %v8840_v59, %v9703_v34  ;;  %v16840_v35 = vld [vmem:[#allocation33_spill] sm:$0xff]  ;;  %v16841_v7 = vld [vmem:[#allocation10_spill] sm:$0xff] }
 0x1d7   : > { %v10112_v63 = vmul.f32 %v16839_v17, %v9890_v44  ;;  %v2469_v46 = vadd.f32 %v2384_v26, %v2265_v2  ;;  %v570_v11 = vadd.f32 %v538_v20, %v469_v48  ;;  %v10116_v53 = vmul.f32 %v16798_v15, %v10083_v8 }
 0x1d8   : > { %v10120_v4 = vmul.f32 %v16840_v35, %v9703_v34  ;;  %v10123_v58 = vadd.f32 %v16841_v7, %v4298_v28  ;;  %v16066_v59 = vrot.slane %v10108_v40, 1  ;;  %v10129_v17 = vmul.f32 %v16843_v5, %v9890_v44 }
 0x1d9   : > { %v2672_v26 = vadd.f32 %v2587_v62, %v2469_v46  ;;  %v16844_v2 = vrot.slane %v10049_v61, 7  ;;  %v16845_v48 = vrot.slane %v9862_v22, 7  ;;  %v639_v35 = vadd.f32 %v607_v30, %v570_v11  ;;  %v16849_v30 = vld [vmem:[#allocation34_spill] sm:$0xff] }
 0x1da   : > { %16842 = vst [vmem:[#allocation23_spill] sm:$0xff] %v10123_v58  ;;  %4377 = vadd.xlane.f32.xlu0 %v10123_v58  ;;  %v16846_v50 = vrot.slane %v9911_v42, 1  ;;  %v16847_v62 = vrot.slane %v10112_v63, 1  ;;  %v16848_v46 = vrot.slane %v9920_v47, 1  ;;  %v10151_v11 = vmul.f32 %v16849_v30, %v10083_v8 }
 0x1db   : > { %v3808_v20 = vsel %vm3783_vm6, %v16845_v48, %v16844_v2  ;;  %v2876_v2 = vadd.f32 %v2791_v25, %v2672_v26  ;;  %v1368_v28 = vrot.slane %v10120_v4, 2  ;;  %v16076_v15 = vrot.slane %v10129_v17, 2 }
 0x1dc   : > { %v759_v5 = vsel %vm732_vm0, %v16846_v50, %v16066_v59  ;;  %v962_v22 = vsel %vm732_vm0, %v16848_v46, %v16847_v62  ;;  %v16850_v42 = vrot.slane %v10116_v53, 1  ;;  %v16851_v50 = vrot.slane %v9924_v19, 1 }
 0x1dd   : > { %v843_v48 = vadd.f32 %v759_v5, %v639_v35  ;;  %v10163_v62 = vmul.f32 %v16812_v60, %v9703_v34  ;;  %v10167_v25 = vmul.f32 %v16773_v27, %v9890_v44  ;;  %v3079_v26 = vadd.f32 %v2994_v56, %v2876_v2  ;;  %v16855_v27 = vld [vmem:[#allocation36_spill] sm:$0xff] }
 0x1de   : > { %v1165_v59 = vsel %vm732_vm0, %v16851_v50, %v16850_v42  ;;  %v10171_v5 = vmul.f32 %v8928_v9, %v9703_v34  ;;  %v10175_v19 = vmul.f32 %v16739_v36, %v9890_v44  ;;  %v16852_v46 = vrot.slane %v10070_v38, 7 }
 0x1df   : > { %v1046_v35 = vadd.f32 %v962_v22, %v843_v48  ;;  %v16853_v42 = vrot.slane %v9866_v32, 7  ;;  %v16854_v50 = vrot.slane %v10097_v29, 7  ;;  %v16856_v47 = vrot.slane %v16855_v27, 7 }
 0x1e0   : > { %v16067_v22 = vrot.slane %v10163_v62, 3  ;;  %v10190_v9 = vmul.f32 %v16699_v49, %v9703_v34  ;;  %v3283_v2 = vadd.f32 %v3198_v43, %v3079_v26  ;;  %v16857_v32 = vrot.slane %v9932_v45, 2 }
 0x1e1   : > { %v4011_v60 = vsel %vm3783_vm6, %v16853_v42, %v16852_v46  ;;  %v4214_v56 = vsel %vm3783_vm6, %v16856_v47, %v16854_v50  ;;  %v1249_v48 = vadd.f32 %v1165_v59, %v1046_v35  ;;  %v16858_v42 = vrot.slane %v9938_v37, 2 }
 0x1e2   : > { %v1369_v46 = vsel %vm1342_vm1, %v16857_v32, %v1368_v28  ;;  %v16859_v50 = vrot.slane %v10151_v11, 2  ;;  %v16860_v27 = vrot.slane %v9953_v31, 2  ;;  %v16075_v43 = vrot.slane %v10167_v25, 3 }
 0x1e3   : > { %v1572_v47 = vsel %vm1342_vm1, %v16858_v42, %v16076_v15  ;;  %v16074_v59 = vrot.slane %v10171_v5, 4  ;;  %v10211_v45 = vmul.f32 %v9231_v0, %v9890_v44  ;;  %v3486_v26 = vadd.f32 %v3401_v16, %v3283_v2 }
 0x1e4   : > { %v1775_v49 = vsel %vm1342_vm1, %v16860_v27, %v16859_v50  ;;  %v1453_v35 = vadd.f32 %v1369_v46, %v1249_v48  ;;  %v16861_v37 = vrot.slane %v9970_v14, 3  ;;  %v16072_v31 = vrot.slane %v10175_v19, 4 }
 0x1e5   : > { %v16071_v42 = vrot.slane %v10190_v9, 5  ;;  %v16068_v50 = vrot.slane %v10211_v45, 5  ;;  %v10223_v27 = vmul.f32 %v16825_v12, %v9504_v6  ;;  %v10227_v16 = vmul.f32 %v9000_v21, %v9703_v34 }
 0x1e6   : > { %v1979_v32 = vsel %vm1952_vm2, %v16861_v37, %v16067_v22  ;;  %v3689_v2 = vadd.f32 %v3604_v10, %v3486_v26  ;;  %v1656_v48 = vadd.f32 %v1572_v47, %v1453_v35  ;;  %v10231_v14 = vmul.f32 %v16784_v18, %v9890_v44 }
 0x1e7   : > { %v10235_v46 = vmul.f32 %v9019_v52, %v9504_v6  ;;  %v16862_v37 = vrot.slane %v9975_v51, 3  ;;  %v16070_v22 = vrot.slane %v10223_v27, 6  ;;  %v16069_v21 = vrot.slane %v10227_v16, 6 }
 0x1e8   : > { %v10246_v10 = vmul.f32 %v9060_v13, %v9703_v34  ;;  %v3893_v47 = vadd.f32 %v3808_v20, %v3689_v2  ;;  %v1859_v26 = vadd.f32 %v1775_v49, %v1656_v48  ;;  %v16863_v52 = vrot.slane %v9979_v23, 4  ;;  %v10270_v48 = vpop.trf.xlu0 }
 0x1e9   : > { %v2182_v12 = vsel %vm1952_vm2, %v16862_v37, %v16075_v43  ;;  %v16864_v51 = vrot.slane %v9989_v33, 4  ;;  %v16865_v37 = vrot.slane %v10003_v57, 5  ;;  %v16866_v20 = vrot.slane %v10013_v3, 5 }
 0x1ea   : > { %v2386_v6 = vsel %vm2359_vm3, %v16863_v52, %v16074_v59  ;;  %v16073_v49 = vrot.slane %v10231_v14, 6  ;;  %v16080_v2 = vrot.slane %v10235_v46, 7  ;;  %v4096_v33 = vadd.f32 %v4011_v60, %v3893_v47  ;;  %v10290_v60 = vld [vmem:[%s15875_s1 + $0x2] ss:$0 sm:$0xff] }
 0x1eb   : > { %v2589_v35 = vsel %vm2359_vm3, %v16864_v51, %v16072_v31  ;;  %v2793_v13 = vsel %vm2766_vm4, %v16865_v37, %v16071_v42  ;;  %v2996_v23 = vsel %vm2766_vm4, %v16866_v20, %v16068_v50  ;;  %v2063_v52 = vadd.f32 %v1979_v32, %v1859_v26  ;;  %16869 = vst [vmem:[#allocation37_spill] sm:$0xff] %v10290_v60 }
 0x1ec   : > { %v16867_v57 = vrot.slane %v10030_v55, 6  ;;  %v16868_v3 = vrot.slane %v10035_v54, 6  ;;  %v16084_v20 = vrot.slane %v10246_v10, 7  ;;  %v10285_v50 = vmul.f32 %v9307_v24, %v9890_v44 }
 0x1ed   : > { %v470_v55 = vmul.f32 %v10290_v60, %v9703_v34  ;;  %v539_v32 = vmul.f32 %v9088_v39, %v9890_v44  ;;  %v4299_v54 = vadd.f32 %v4214_v56, %v4096_v33  ;;  %v2266_v47 = vadd.f32 %v2182_v12, %v2063_v52  ;;  %v16871_v12 = vld [vmem:[#allocation29_spill] sm:$0xff] }
 0x1ee   : > { %v3200_v51 = vsel %vm3173_vm5, %v16867_v57, %v16070_v22  ;;  %v3403_v37 = vsel %vm3173_vm5, %v16868_v3, %v16069_v21  ;;  %v608_v26 = vmul.f32 %v9095_v41, %v10083_v8  ;;  %v10301_v57 = vld [vmem:[%s15875_s1 + $0x3] ss:$0 sm:$0xff]  ;;  %v16870_v21 = vrot.slane %v10039_v1, 6  ;;  %v16872_v41 = vld [vmem:[#allocation30_spill] sm:$0xff]  ;;  %v10327_v1 = vld [vmem:[%s15875_s1 + $0x4] ss:$0 sm:$0xff] }
 0x1ef   : > { %v10305_v3 = vmul.f32 %v10301_v57, %v9890_v44  ;;  %v571_v56 = vadd.f32 %v539_v32, %v470_v55  ;;  %v10314_v33 = vmul.f32 %v16871_v12, %v10083_v8  ;;  %v10318_v52 = vmul.f32 %v16872_v41, %v10270_v48 }
 0x1f0   : > { %v3606_v39 = vsel %vm3173_vm5, %v16870_v21, %v16073_v49  ;;  %v10321_v22 = vadd.f32 %v16841_v7, %v4299_v54  ;;  %v2470_v42 = vadd.f32 %v2386_v6, %v2266_v47  ;;  %v10331_v21 = vmul.f32 %v10327_v1, %v9890_v44  ;;  %v10338_v6 = vld [vmem:[%s15875_s1 + $0xc] ss:$0 sm:$0xff] }
 0x1f1   : > { %v16079_v31 = vrot.slane %v10305_v3, 1  ;;  %v640_v55 = vadd.f32 %v608_v26, %v571_v56  ;;  %v16078_v32 = vrot.slane %v10314_v33, 1  ;;  %v16077_v12 = vrot.slane %v10318_v52, 1 }
 0x1f2   : > { %16873 = vst [vmem:[#allocation39_spill] sm:$0xff] %v10321_v22  ;;  %v10342_v54 = vmul.f32 %v10338_v6, %v10083_v8  ;;  %4379 = vadd.xlane.f32.xlu1 %v10321_v22  ;;  %v2673_v47 = vadd.f32 %v2589_v35, %v2470_v42  ;;  %v16874_v26 = vrot.slane %v10049_v61, 7  ;;  %v16875_v41 = vrot.slane %v10108_v40, 1 }
 0x1f3   : > { %v10357_v59 = vmul.f32 %v16849_v30, %v10270_v48  ;;  %v16082_v43 = vrot.slane %v10285_v50, 7  ;;  %v16876_v42 = vrot.slane %v10112_v63, 1  ;;  %v16081_v35 = vrot.slane %v10331_v21, 2 }
 0x1f4   : > { %v3810_v56 = vsel %vm3783_vm6, %v16874_v26, %v16080_v2  ;;  %v761_v49 = vsel %vm732_vm0, %v16875_v41, %v16079_v31  ;;  %v2877_v26 = vadd.f32 %v2793_v13, %v2673_v47  ;;  %v16877_v40 = vrot.slane %v10116_v53, 1  ;;  %v10385_v53 = vld [vmem:[%s15875_s1 + $0xd] ss:$0 sm:$0xff] }
 0x1f5   : > { %v844_v15 = vadd.f32 %v761_v49, %v640_v55  ;;  %v964_v61 = vsel %vm732_vm0, %v16876_v42, %v16078_v32  ;;  %v10375_v49 = vld [vmem:[%s15875_s1 + $0x5] ss:$0 sm:$0xff]  ;;  %16878 = vst [vmem:[#allocation18_spill] sm:$0xff] %v10385_v53  ;;  %v10389_v47 = vmul.f32 %v10385_v53, %v10083_v8  ;;  %v10394_v42 = vld [vmem:[%s15875_s1 + $0x6] ss:$0 sm:$0xff]  ;;  %v10408_v31 = vmul.f32 %v16739_v36, %v10083_v8 }
 0x1f6   : > { %v1167_v41 = vsel %vm732_vm0, %v16877_v40, %v16077_v12  ;;  %v10379_v63 = vmul.f32 %v10375_v49, %v9890_v44  ;;  %16879 = vst [vmem:[#allocation19_spill] sm:$0xff] %v10394_v42  ;;  %v10398_v40 = vmul.f32 %v10394_v42, %v9890_v44  ;;  %v16881_v2 = vrot.slane %v10097_v29, 7 }
 0x1f7   : > { %v1047_v55 = vadd.f32 %v964_v61, %v844_v15  ;;  %v3080_v15 = vadd.f32 %v2996_v23, %v2877_v26  ;;  %v16880_v61 = vrot.slane %v10070_v38, 7  ;;  %v1371_v38 = vsel %vm1342_vm1, %v1368_v28, %v16081_v35  ;;  %v10423_v23 = vld [vmem:[%s15875_s1 + $0x7] ss:$0 sm:$0xff] }
 0x1f8   : > { %v16083_v32 = vrot.slane %v10379_v63, 3  ;;  %v4216_v13 = vsel %vm3783_vm6, %v16881_v2, %v16082_v43  ;;  %16882 = vst [vmem:[#allocation33_spill] sm:$0xff] %v10423_v23  ;;  %v10427_v36 = vmul.f32 %v10423_v23, %v9890_v44  ;;  %v16883_v29 = vrot.slane %v10342_v54, 2 }
 0x1f9   : > { %v4013_v12 = vsel %vm3783_vm6, %v16880_v61, %v16084_v20  ;;  %v1250_v30 = vadd.f32 %v1167_v41, %v1047_v55  ;;  %v3284_v26 = vadd.f32 %v3200_v51, %v3080_v15  ;;  %v16884_v2 = vrot.slane %v10129_v17, 2 }
 0x1fa   : > { %v16085_v4 = vrot.slane %v10389_v47, 3  ;;  %v10437_v28 = vmul.f32 %v9231_v0, %v10083_v8  ;;  %v16885_v61 = vrot.slane %v10357_v59, 2  ;;  %v16886_v35 = vrot.slane %v10151_v11, 2 }
 0x1fb   : > { %v1574_v41 = vsel %vm1342_vm1, %v16884_v2, %v16883_v29  ;;  %v1454_v55 = vadd.f32 %v1371_v38, %v1250_v30  ;;  %v16887_v51 = vrot.slane %v10163_v62, 3  ;;  %v16088_v15 = vrot.slane %v10398_v40, 4  ;;  %v10455_v30 = vld [vmem:[%s15875_s1] ss:$0 sm:$0xff] }
 0x1fc   : > { %v1777_v43 = vsel %vm1342_vm1, %v16886_v35, %v16885_v61  ;;  %v3487_v29 = vadd.f32 %v3403_v37, %v3284_v26  ;;  %v16087_v2 = vrot.slane %v10408_v31, 4  ;;  %v16086_v0 = vrot.slane %v10427_v36, 5  ;;  %v10465_v37 = vld [vmem:[%s15875_s1 + $0x8] ss:$0 sm:$0xff] }
 0x1fd   : > { %v1981_v17 = vsel %vm1952_vm2, %v16887_v51, %v16083_v32  ;;  %v10459_v11 = vmul.f32 %v10455_v30, %v9703_v34  ;;  %v1657_v35 = vadd.f32 %v1574_v41, %v1454_v55  ;;  %v10469_v38 = vmul.f32 %v10465_v37, %v9890_v44  ;;  %v10484_v32 = vld [vmem:[%s15875_s1 + $0x1] ss:$0 sm:$0xff] }
 0x1fe   : > { %v10473_v26 = vmul.f32 %v16784_v18, %v10083_v8  ;;  %v3690_v61 = vadd.f32 %v3606_v39, %v3487_v29  ;;  %v16889_v41 = vrot.slane %v10167_v25, 3  ;;  %v10488_v20 = vmul.f32 %v10484_v32, %v9703_v34 }
 0x1ff   : > { %v1860_v18 = vadd.f32 %v1777_v43, %v1657_v35  ;;  %v16890_v39 = vrot.slane %v10171_v5, 4  ;;  %v16090_v29 = vrot.slane %v10469_v38, 6  ;;  %v16891_v51 = vrot.slane %v10175_v19, 4  ;;  %v10510_v5 = vld [vmem:[%s15875_s1 + $0x9] ss:$0 sm:$0xff] }
 0x200   : > { %16888 = vst [vmem:[#allocation10_spill] sm:$0xff] %v10473_v26  ;;  %v2184_v55 = vsel %vm1952_vm2, %v16889_v41, %v16085_v4  ;;  %v16089_v41 = vrot.slane %v10473_v26, 6  ;;  %v3894_v4 = vadd.f32 %v3810_v56, %v3690_v61  ;;  %v16892_v34 = vrot.slane %v10190_v9, 5  ;;  %16893 = vst [vmem:[#allocation9_spill] sm:$0xff] %v10510_v5 }
 0x201   : > { %v2388_v25 = vsel %vm2359_vm3, %v16890_v39, %v16088_v15  ;;  %v2591_v62 = vsel %vm2359_vm3, %v16891_v51, %v16087_v2  ;;  %v10514_v56 = vmul.f32 %v10510_v5, %v9890_v44  ;;  %v2064_v35 = vadd.f32 %v1981_v17, %v1860_v18 }
 0x202   : > { %v2795_v43 = vsel %vm2766_vm4, %v16892_v34, %v16086_v0  ;;  %v16894_v19 = vrot.slane %v10437_v28, 5  ;;  %v16895_v61 = vrot.slane %v10211_v45, 5  ;;  %v16896_v9 = vrot.slane %v10459_v11, 6 }
 0x203   : > { %v16897_v39 = vrot.slane %v10223_v27, 6  ;;  %v4097_v2 = vadd.f32 %v4013_v12, %v3894_v4  ;;  %v16898_v15 = vrot.slane %v10227_v16, 6  ;;  %v16899_v45 = vrot.slane %v10231_v14, 6  ;;  %v10548_v16 = vld [vmem:[%s15875_s1 + $0xa] ss:$0 sm:$0xff] }
 0x204   : > { %v2998_v51 = vsel %vm2766_vm4, %v16895_v61, %v16894_v19  ;;  %v10541_v27 = vmul.f32 %v9307_v24, %v10083_v8  ;;  %v2267_v19 = vadd.f32 %v2184_v55, %v2064_v35  ;;  %v471_v12 = vmul.f32 %v10290_v60, %v9890_v44  ;;  %v10555_v14 = vld [vmem:[%s15875_s1 + $0x12] ss:$0 sm:$0xff]  ;;  %v10567_v61 = vld [vmem:[%s15875_s1 + $0xb] ss:$0 sm:$0xff] }
 0x205   : > { %v3202_v34 = vsel %vm3173_vm5, %v16897_v39, %v16896_v9  ;;  %v3405_v17 = vsel %vm3173_vm5, %v16898_v15, %v16090_v29  ;;  %v10537_v18 = vsel %vm3173_vm5, %v16899_v45, %v16089_v41  ;;  %v540_v4 = vmul.f32 %v10548_v16, %v10083_v8 }
 0x206   : > { %v609_v24 = vmul.f32 %v10555_v14, %v10270_v48  ;;  %v4300_v15 = vadd.f32 %v4216_v13, %v4097_v2  ;;  %v10562_v35 = vmul.f32 %v10301_v57, %v10083_v8  ;;  %v10571_v9 = vmul.f32 %v10567_v61, %v10270_v48  ;;  %v10576_v13 = vld [vmem:[%s15875_s1 + $0x13] ss:$0 sm:$0xff] }
 0x207   : > { %v2471_v39 = vadd.f32 %v2388_v25, %v2267_v19  ;;  %v572_v45 = vadd.f32 %v540_v4, %v471_v12  ;;  %16900 = vst [vmem:[#allocation34_spill] sm:$0xff] %v10576_v13  ;;  %v1086_v2 = vmul.f32 0.0, %v10576_v13  ;;  %v10581_v41 = vmul.f32 %v10327_v1, %v10083_v8 }
 0x208   : > { %v10584_v29 = vadd.f32 %v16841_v7, %v4300_v15  ;;  %v16096_v55 = vrot.slane %v10562_v35, 1  ;;  %v10590_v25 = vmul.f32 %v10338_v6, %v10270_v48  ;;  %v16902_v12 = vrot.slane %v10488_v20, 7 }
 0x209   : > { %v2674_v19 = vadd.f32 %v2591_v62, %v2471_v39  ;;  %v16903_v4 = vrot.slane %v10235_v46, 7  ;;  %v641_v58 = vadd.f32 %v609_v24, %v572_v45  ;;  %v10597_v13 = vrot.slane %v1086_v2, 1  ;;  %v10614_v24 = vld [vmem:[%s15875_s1 + $0x14] ss:$0 sm:$0xff] }
 0x20a   : > { %16901 = vst [vmem:[#allocation36_spill] sm:$0xff] %v10584_v29  ;;  %4381 = vadd.xlane.f32.xlu0 %v10584_v29  ;;  %v16100_v15 = vrot.slane %v10541_v27, 7  ;;  %v16905_v0 = vrot.slane %v10305_v3, 1  ;;  %v16906_v62 = vrot.slane %v10571_v9, 1  ;;  %v16907_v39 = vrot.slane %v10314_v33, 1  ;;  %16908 = vst [vmem:[#allocation30_spill] sm:$0xff] %v10614_v24 }
 0x20b   : > { %v3812_v22 = vsel %vm3783_vm6, %v16903_v4, %v16902_v12  ;;  %16904 = vst [vmem:[#allocation29_spill] sm:$0xff] %v10597_v13  ;;  %v1696_v45 = vmul.f32 0.0, %v10614_v24  ;;  %v2878_v2 = vadd.f32 %v2795_v43, %v2674_v19  ;;  %v10635_v43 = vmul.f32 %v10394_v42, %v10083_v8 }
 0x20c   : > { %v763_v26 = vsel %vm732_vm0, %v16905_v0, %v16096_v55  ;;  %v966_v46 = vsel %vm732_vm0, %v16907_v39, %v16906_v62  ;;  %v16909_v0 = vrot.slane %v10318_v52, 1  ;;  %v10627_v62 = vmul.f32 %v10375_v49, %v10083_v8  ;;  %v10640_v52 = vld [vmem:[%s15875_s1 + $0xe] ss:$0 sm:$0xff] }
 0x20d   : > { %v845_v12 = vadd.f32 %v763_v26, %v641_v58  ;;  %v10623_v55 = vrot.slane %v1696_v45, 2  ;;  %v10631_v39 = vmul.f32 %v10385_v53, %v10270_v48  ;;  %v3081_v58 = vadd.f32 %v2998_v51, %v2878_v2  ;;  %16911 = vst [vmem:[#allocation42_spill] sm:$0xff] %v10640_v52 }
 0x20e   : > { %v1169_v33 = vsel %vm732_vm0, %v16909_v0, %v10597_v13  ;;  %v10644_v19 = vmul.f32 %v10640_v52, %v10270_v48  ;;  %v16912_v45 = vrot.slane %v10514_v56, 7  ;;  %v16913_v0 = vrot.slane %v10246_v10, 7 }
 0x20f   : > { %16910 = vst [vmem:[#allocation41_spill] sm:$0xff] %v10623_v55  ;;  %v1048_v26 = vadd.f32 %v966_v46, %v845_v12  ;;  %v16914_v46 = vrot.slane %v10285_v50, 7  ;;  %v10659_v3 = vmul.f32 %v10423_v23, %v10083_v8  ;;  %v3285_v4 = vadd.f32 %v3202_v34, %v3081_v58 }
 0x210   : > { %v4015_v51 = vsel %vm3783_vm6, %v16913_v0, %v16912_v45  ;;  %v16915_v24 = vrot.slane %v10581_v41, 2  ;;  %v16916_v10 = vrot.slane %v10331_v21, 2  ;;  %v16917_v0 = vrot.slane %v10590_v25, 2  ;;  %v10680_v21 = vld [vmem:[%s15875_s1 + $0xf] ss:$0 sm:$0xff] }
 0x211   : > { %v4218_v2 = vsel %vm3783_vm6, %v16914_v46, %v16100_v15  ;;  %v1251_v29 = vadd.f32 %v1169_v33, %v1048_v26  ;;  %v16918_v50 = vrot.slane %v10342_v54, 2  ;;  %v16919_v15 = vrot.slane %v10357_v59, 2  ;;  %16920 = vst [vmem:[#allocation43_spill] sm:$0xff] %v10680_v21 }
 0x212   : > { %v1373_v45 = vsel %vm1342_vm1, %v16916_v10, %v16915_v24  ;;  %v16103_v34 = vrot.slane %v10631_v39, 3  ;;  %v10684_v24 = vmul.f32 %v10680_v21, %v10270_v48  ;;  %v3488_v54 = vadd.f32 %v3405_v17, %v3285_v4 }
 0x213   : > { %v1576_v46 = vsel %vm1342_vm1, %v16918_v50, %v16917_v0  ;;  %v1779_v12 = vsel %vm1342_vm1, %v16919_v15, %v10623_v55  ;;  %v1455_v58 = vadd.f32 %v1373_v45, %v1251_v29  ;;  %v16921_v26 = vrot.slane %v10627_v62, 3 }
 0x214   : > { %v16922_v59 = vrot.slane %v10379_v63, 3  ;;  %v10696_v33 = vmul.f32 %v10455_v30, %v9890_v44  ;;  %v10700_v17 = vmul.f32 %v10465_v37, %v10083_v8  ;;  %v3691_v29 = vadd.f32 %v10537_v18, %v3488_v54  ;;  %v10706_v63 = vld [vmem:[%s15875_s1 + $0x10] ss:$0 sm:$0xff] }
 0x215   : > { %v1658_v4 = vadd.f32 %v1576_v46, %v1455_v58  ;;  %v10710_v45 = vmul.f32 %v10706_v63, %v10270_v48  ;;  %v10725_v58 = vmul.f32 %v10510_v5, %v10083_v8  ;;  %v16924_v10 = vrot.slane %v10635_v43, 4 }
 0x216   : > { %v1983_v15 = vsel %vm1952_vm2, %v16922_v59, %v16921_v26  ;;  %v10714_v26 = vmul.f32 %v10484_v32, %v9890_v44  ;;  %v16923_v59 = vrot.slane %v10389_v47, 3  ;;  %v3895_v50 = vadd.f32 %v3812_v22, %v3691_v29 }
 0x217   : > { %v1861_v0 = vadd.f32 %v1779_v12, %v1658_v4  ;;  %v16925_v44 = vrot.slane %v10398_v40, 4  ;;  %v16926_v47 = vrot.slane %v10644_v19, 4  ;;  %v16928_v54 = vrot.slane %v10659_v3, 5 }
 0x218   : > { %v2186_v18 = vsel %vm1952_vm2, %v16923_v59, %v16103_v34  ;;  %v16927_v59 = vrot.slane %v10408_v31, 4  ;;  %v16929_v46 = vrot.slane %v10427_v36, 5  ;;  %v16930_v22 = vrot.slane %v10684_v24, 5  ;;  %v10751_v31 = vld [vmem:[%s15875_s1 + $0x11] ss:$0 sm:$0xff] }
 0x219   : > { %v2390_v55 = vsel %vm2359_vm3, %v16925_v44, %v16924_v10  ;;  %v16931_v12 = vrot.slane %v10437_v28, 5  ;;  %v16108_v10 = vrot.slane %v10710_v45, 6  ;;  %16932 = vst [vmem:[#allocation44_spill] sm:$0xff] %v10751_v31  ;;  %v10755_v29 = vmul.f32 %v10751_v31, %v10270_v48 }
 0x21a   : > { %v2593_v34 = vsel %vm2359_vm3, %v16927_v59, %v16926_v47  ;;  %v2797_v5 = vsel %vm2766_vm4, %v16929_v46, %v16928_v54  ;;  %v4098_v36 = vadd.f32 %v4015_v51, %v3895_v50  ;;  %v2065_v4 = vadd.f32 %v1983_v15, %v1861_v0 }
 0x21b   : > { %v3000_v40 = vsel %vm2766_vm4, %v16931_v12, %v16930_v22  ;;  %v16933_v46 = vrot.slane %v10696_v33, 6  ;;  %v16934_v54 = vrot.slane %v10459_v11, 6  ;;  %v16935_v47 = vrot.slane %v10700_v17, 6 }
 0x21c   : > { %v16936_v59 = vrot.slane %v10469_v38, 6  ;;  %v472_v51 = vmul.f32 %v10290_v60, %v10083_v8  ;;  %v541_v15 = vmul.f32 %v10548_v16, %v10270_v48  ;;  %v4301_v0 = vadd.f32 %v4218_v2, %v4098_v36 }
 0x21d   : > { %v3204_v28 = vsel %vm3173_vm5, %v16934_v54, %v16933_v46  ;;  %v2268_v11 = vadd.f32 %v2186_v18, %v2065_v4  ;;  %v10774_v50 = vmul.f32 0.0, %v10555_v14  ;;  %v680_v46 = vmul.f32 %v10301_v57, %v10270_v48  ;;  %v16941_v4 = vld [vmem:[#allocation10_spill] sm:$0xff] }
 0x21e   : > { %v3407_v22 = vsel %vm3173_vm5, %v16936_v59, %v16935_v47  ;;  %v573_v54 = vadd.f32 %v541_v15, %v472_v51  ;;  %v10780_v47 = vmul.f32 0.0, %v10567_v61  ;;  %v1290_v59 = vmul.f32 %v10327_v1, %v10270_v48 }
 0x21f   : > { %16937 = vst [vmem:[#allocation45_spill] sm:$0xff] %v10774_v50  ;;  %v10785_v12 = vadd.f32 %v16841_v7, %v4301_v0  ;;  %v2472_v2 = vadd.f32 %v2390_v55, %v2268_v11  ;;  %v764_v18 = vrot.slane %v680_v46, 1  ;;  %v10788_v36 = vmul.f32 0.0, %v10338_v6 }
 0x220   : > { %16938 = vst [vmem:[#allocation46_spill] sm:$0xff] %v10780_v47  ;;  %v16942_v44 = vrot.slane %v16941_v4, 6  ;;  %v642_v15 = vadd.f32 %v10774_v50, %v573_v54  ;;  %v16110_v38 = vrot.slane %v10780_v47, 1  ;;  %v1900_v60 = vmul.f32 %v10375_v49, %v10270_v48 }
 0x221   : > { %16939 = vst [vmem:[#allocation47_spill] sm:$0xff] %v10785_v12  ;;  %16940 = vst [vmem:[#allocation48_spill] sm:$0xff] %v10788_v36  ;;  %4383 = vadd.xlane.f32.xlu1 %v10785_v12  ;;  %v2675_v7 = vadd.f32 %v2593_v34, %v2472_v2  ;;  %v16943_v55 = vrot.slane %v10562_v35, 1  ;;  %v1374_v11 = vrot.slane %v1290_v59, 2  ;;  %v10804_v46 = vmul.f32 0.0, %v10385_v53 }
 0x222   : > { %v3610_v51 = vsel %vm3173_vm5, %v16942_v44, %v16108_v10  ;;  %v16945_v44 = vrot.slane %v10714_v26, 7  ;;  %v16946_v54 = vrot.slane %v10488_v20, 7  ;;  %v16947_v12 = vrot.slane %v10571_v9, 1 }
 0x223   : > { %v765_v0 = vsel %vm732_vm0, %v16943_v55, %v764_v18  ;;  %16944 = vst [vmem:[#allocation10_spill] sm:$0xff] %v10804_v46  ;;  %v16112_v35 = vrot.slane %v10788_v36, 2  ;;  %v2879_v2 = vadd.f32 %v2797_v5, %v2675_v7  ;;  %v16948_v59 = vrot.slane %v10725_v58, 7 }
 0x224   : > { %v3814_v4 = vsel %vm3783_vm6, %v16946_v54, %v16945_v44  ;;  %v846_v10 = vadd.f32 %v765_v0, %v642_v15  ;;  %v968_v34 = vsel %vm732_vm0, %v16947_v12, %v16110_v38  ;;  %v16949_v18 = vrot.slane %v10514_v56, 7  ;;  %v10829_v0 = vpop.trf.xlu1 }
 0x225   : > { %v16950_v20 = vrot.slane %v10755_v29, 7  ;;  %v16951_v44 = vrot.slane %v10541_v27, 7  ;;  %v2307_v9 = vmul.f32 %v10394_v42, %v10270_v48  ;;  %v1984_v54 = vrot.slane %v1900_v60, 3 }
 0x226   : > { %v4017_v55 = vsel %vm3783_vm6, %v16949_v18, %v16948_v59  ;;  %v1049_v12 = vadd.f32 %v968_v34, %v846_v10  ;;  %v10832_v5 = vmul.f32 0.0, %v10640_v52  ;;  %v2714_v56 = vmul.f32 %v10423_v23, %v10270_v48 }
 0x227   : > { %v4220_v15 = vsel %vm3783_vm6, %v16951_v44, %v16950_v20  ;;  %v3082_v7 = vadd.f32 %v3000_v40, %v2879_v2  ;;  %v16953_v59 = vrot.slane %v10581_v41, 2  ;;  %v10841_v20 = vmul.f32 0.0, %v10680_v21 }
 0x228   : > { %16952 = vst [vmem:[#allocation49_spill] sm:$0xff] %v10832_v5  ;;  %v1252_v44 = vadd.f32 %v10597_v13, %v1049_v12  ;;  %v16955_v60 = vrot.slane %v10590_v25, 2  ;;  %v2391_v34 = vrot.slane %v2307_v9, 4  ;;  %v3121_v40 = vmul.f32 %v10455_v30, %v10083_v8 }
 0x229   : > { %v1375_v27 = vsel %vm1342_vm1, %v16953_v59, %v1374_v11  ;;  %16954 = vst [vmem:[#allocation50_spill] sm:$0xff] %v10841_v20  ;;  %v3286_v41 = vadd.f32 %v3204_v28, %v3082_v7  ;;  %v2798_v2 = vrot.slane %v2714_v56, 5  ;;  %v3325_v59 = vmul.f32 %v10465_v37, %v10270_v48  ;;  %v10866_v11 = vpop.trf.xlu1 }
 0x22a   : > { %v1578_v10 = vsel %vm1342_vm1, %v16955_v60, %v16112_v35  ;;  %v1456_v38 = vadd.f32 %v1375_v27, %v1252_v44  ;;  %v16956_v12 = vrot.slane %v10627_v62, 3  ;;  %v16114_v25 = vrot.slane %v10841_v20, 5  ;;  %v16961_v44 = vld [vmem:[#allocation9_spill] sm:$0xff] }
 0x22b   : > { %v3205_v36 = vrot.slane %v3121_v40, 6  ;;  %v3489_v60 = vadd.f32 %v3407_v22, %v3286_v41  ;;  %v16957_v9 = vrot.slane %v10804_v46, 3  ;;  %v16958_v35 = vrot.slane %v10631_v39, 3 }
 0x22c   : > { %v1985_v18 = vsel %vm1952_vm2, %v16956_v12, %v1984_v54  ;;  %v3408_v7 = vrot.slane %v3325_v59, 6  ;;  %v10864_v56 = vmul.f32 0.0, %v10706_v63  ;;  %v1659_v27 = vadd.f32 %v1578_v10, %v1456_v38 }
 0x22d   : > { %v2188_v28 = vsel %vm1952_vm2, %v16958_v35, %v16957_v9  ;;  %v16960_v62 = vrot.slane %v10635_v43, 4  ;;  %v10873_v22 = vmul.f32 %v10484_v32, %v10083_v8  ;;  %v10877_v39 = vmul.f32 %v16961_v44, %v10270_v48 }
 0x22e   : > { %16959 = vst [vmem:[#allocation51_spill] sm:$0xff] %v10864_v56  ;;  %v3692_v35 = vadd.f32 %v3610_v51, %v3489_v60  ;;  %v16962_v40 = vrot.slane %v10832_v5, 4  ;;  %v16963_v41 = vrot.slane %v10644_v19, 4  ;;  %v16964_v38 = vrot.slane %v10659_v3, 5 }
 0x22f   : > { %v2392_v54 = vsel %vm2359_vm3, %v16960_v62, %v2391_v34  ;;  %v16113_v10 = vrot.slane %v10864_v56, 6  ;;  %v16965_v34 = vld [vmem:[#allocation41_spill] sm:$0xff]  ;;  %v16966_v48 = vrot.slane %v10684_v24, 5  ;;  %v16967_v12 = vrot.slane %v10696_v33, 6 }
 0x230   : > { %v2595_v59 = vsel %vm2359_vm3, %v16963_v41, %v16962_v40  ;;  %v2799_v43 = vsel %vm2766_vm4, %v16964_v38, %v2798_v2  ;;  %v1862_v8 = vadd.f32 %v16965_v34, %v1659_v27  ;;  %v542_v60 = vmul.f32 %v10548_v16, %v10829_v0  ;;  %v16970_v40 = vld [vmem:[#allocation17_spill] sm:$0xff] }
 0x231   : > { %v3002_v51 = vsel %vm2766_vm4, %v16966_v48, %v16114_v25  ;;  %v3206_v19 = vsel %vm3173_vm5, %v16967_v12, %v3205_v36  ;;  %v3896_v3 = vadd.f32 %v3814_v4, %v3692_v35  ;;  %v16968_v2 = vrot.slane %v10700_v17, 6 }
 0x232   : > { %v10905_v27 = vmul.f32 0.0, %v10751_v31  ;;  %v611_v24 = vmul.f32 %v10555_v14, %v10866_v11  ;;  %v2066_v62 = vadd.f32 %v1985_v18, %v1862_v8  ;;  %v3815_v33 = vrot.slane %v10873_v22, 7  ;;  %v10925_v22 = vpop.trf.xlu1 }
 0x233   : > { %v10902_v9 = vsel %vm3173_vm5, %v16968_v2, %v3408_v7  ;;  %v4018_v36 = vrot.slane %v10877_v39, 7  ;;  %v574_v41 = vadd.f32 %v542_v60, %v16970_v40  ;;  %v4099_v38 = vadd.f32 %v4017_v55, %v3896_v3 }
 0x234   : > { %16969 = vst [vmem:[#allocation9_spill] sm:$0xff] %v10905_v27  ;;  %v16971_v17 = vrot.slane %v10710_v45, 6  ;;  %v10921_v7 = vmul.f32 %v10301_v57, %v10829_v0  ;;  %v885_v18 = vmul.f32 %v10567_v61, %v10829_v0  ;;  %v2269_v39 = vadd.f32 %v2188_v28, %v2066_v62  ;;  %v16972_v45 = vld [vmem:[#allocation34_spill] sm:$0xff]  ;;  %v10946_v62 = vld [vmem:[%s15876_s2] ss:$0 sm:$0xff] }
 0x235   : > { %v643_v35 = vadd.f32 %v611_v24, %v574_v41  ;;  %v10929_v55 = vmul.f32 %v10567_v61, %v10866_v11  ;;  %v1088_v8 = vmul.f32 %v16972_v45, %v10866_v11  ;;  %v4302_v48 = vadd.f32 %v4220_v15, %v4099_v38  ;;  %16973 = vst [vmem:[#allocation17_spill] sm:$0xff] %v10946_v62  ;;  %v16975_v41 = vld [vmem:[#allocation11_spill] sm:$0xff] }
 0x236   : > { %v10917_v4 = vsel %vm3173_vm5, %v16971_v17, %v16113_v10  ;;  %v16116_v12 = vrot.slane %v10921_v7, 1  ;;  %v969_v60 = vrot.slane %v885_v18, 1  ;;  %v10936_v3 = vmul.f32 %v16972_v45, %v10925_v22 }
 0x237   : > { %v2473_v2 = vadd.f32 %v2392_v54, %v2269_v39  ;;  %v16115_v40 = vrot.slane %v10929_v55, 1  ;;  %v1172_v28 = vrot.slane %v1088_v8, 1  ;;  %v10941_v24 = vmul.f32 %v10327_v1, %v10829_v0 }
 0x238   : > { %v10949_v15 = vadd.f32 %v10946_v62, %v4302_v48  ;;  %v16976_v38 = vrot.slane %v16975_v41, 1  ;;  %v16118_v17 = vrot.slane %v10936_v3, 1  ;;  %v1495_v18 = vmul.f32 %v10338_v6, %v10829_v0 }
 0x239   : > { %v2676_v39 = vadd.f32 %v2595_v59, %v2473_v2  ;;  %v971_v10 = vsel %vm732_vm0, %v969_v60, %v16115_v40  ;;  %v16119_v48 = vrot.slane %v10941_v24, 2  ;;  %v16977_v59 = vld [vmem:[#allocation30_spill] sm:$0xff]  ;;  %v16978_v60 = vld [vmem:[#allocation12_spill] sm:$0xff] }
 0x23a   : > { %16974 = vst [vmem:[#allocation34_spill] sm:$0xff] %v10949_v15  ;;  %v768_v54 = vsel %vm732_vm0, %v16976_v38, %v16116_v12  ;;  %4385 = vadd.xlane.f32.xlu0 %v10949_v15  ;;  %v1174_v41 = vsel %vm732_vm0, %v1172_v28, %v16118_v17  ;;  %v10969_v38 = vmul.f32 %v10338_v6, %v10866_v11  ;;  %v1579_v25 = vrot.slane %v1495_v18, 2 }
 0x23b   : > { %v847_v8 = vadd.f32 %v768_v54, %v643_v35  ;;  %v1698_v35 = vmul.f32 %v16977_v59, %v10866_v11  ;;  %v2880_v2 = vadd.f32 %v2799_v43, %v2676_v39  ;;  %v16979_v40 = vrot.slane %v16978_v60, 2 }
 0x23c   : > { %v10980_v56 = vmul.f32 %v16977_v59, %v10925_v22  ;;  %v16123_v28 = vrot.slane %v10969_v38, 2  ;;  %v10985_v18 = vmul.f32 %v10375_v49, %v10829_v0  ;;  %v2105_v43 = vmul.f32 %v10385_v53, %v10829_v0 }
 0x23d   : > { %v1050_v54 = vadd.f32 %v971_v10, %v847_v8  ;;  %v1378_v12 = vsel %vm1342_vm1, %v16979_v40, %v16119_v48  ;;  %v1782_v17 = vrot.slane %v1698_v35, 2  ;;  %v3083_v10 = vadd.f32 %v3002_v51, %v2880_v2 }
 0x23e   : > { %v10992_v40 = vmul.f32 %v10385_v53, %v10866_v11  ;;  %v1581_v60 = vsel %vm1342_vm1, %v1579_v25, %v16123_v28  ;;  %v16125_v35 = vrot.slane %v10985_v18, 3  ;;  %v2189_v48 = vrot.slane %v2105_v43, 3 }
 0x23f   : > { %v1253_v39 = vadd.f32 %v1174_v41, %v1050_v54  ;;  %v11000_v15 = vmul.f32 %v10394_v42, %v10829_v0  ;;  %v3287_v20 = vadd.f32 %v3206_v19, %v3083_v10  ;;  %v16980_v54 = vrot.slane %v10714_v26, 7  ;;  %v11016_v19 = vpop.trf.xlu1 }
 0x240   : > { %v16124_v2 = vrot.slane %v10992_v40, 3  ;;  %v16981_v5 = vrot.slane %v10980_v56, 2  ;;  %v2512_v43 = vmul.f32 %v10640_v52, %v10829_v0  ;;  %v11014_v28 = vmul.f32 %v10640_v52, %v10866_v11 }
 0x241   : > { %v1457_v41 = vadd.f32 %v1378_v12, %v1253_v39  ;;  %v3816_v8 = vsel %vm3783_vm6, %v16980_v54, %v3815_v33  ;;  %v3490_v12 = vadd.f32 %v10902_v9, %v3287_v20  ;;  %v16982_v10 = vrot.slane %v10725_v58, 7 }
 0x242   : > { %v1784_v25 = vsel %vm1342_vm1, %v1782_v17, %v16981_v5  ;;  %v11024_v39 = vmul.f32 %v10423_v23, %v10829_v0  ;;  %v16983_v5 = vld [vmem:[#allocation13_spill] sm:$0xff]  ;;  %v2191_v51 = vsel %vm1952_vm2, %v2189_v48, %v16124_v2  ;;  %v16129_v20 = vrot.slane %v11000_v15, 4 }
 0x243   : > { %v4019_v26 = vsel %vm3783_vm6, %v16982_v10, %v4018_v36  ;;  %v1660_v33 = vadd.f32 %v1581_v60, %v1457_v41  ;;  %v16984_v17 = vrot.slane %v16983_v5, 3  ;;  %v2919_v58 = vmul.f32 %v10680_v21, %v10829_v0  ;;  %v11062_v50 = vpop.trf.xlu1 }
 0x244   : > { %v3693_v9 = vadd.f32 %v10917_v4, %v3490_v12  ;;  %v2596_v60 = vrot.slane %v2512_v43, 4  ;;  %v11040_v41 = vmul.f32 %v10680_v21, %v10866_v11  ;;  %v11046_v48 = vmul.f32 %v10465_v37, %v10829_v0 }
 0x245   : > { %v1988_v54 = vsel %vm1952_vm2, %v16984_v17, %v16125_v35  ;;  %v1863_v36 = vadd.f32 %v1784_v25, %v1660_v33  ;;  %v3529_v17 = vmul.f32 %v10706_v63, %v10829_v0  ;;  %v16986_v4 = vrot.slane %v10905_v27, 7  ;;  %v16988_v33 = vld [vmem:[#allocation14_spill] sm:$0xff] }
 0x246   : > { %16985 = vst [vmem:[#allocation11_spill] sm:$0xff] %v11046_v48  ;;  %v3897_v2 = vadd.f32 %v3816_v8, %v3693_v9  ;;  %v16987_v25 = vrot.slane %v10755_v29, 7  ;;  %v16989_v35 = vrot.slane %v16988_v33, 4  ;;  %v3003_v10 = vrot.slane %v2919_v58, 5 }
 0x247   : > { %v2067_v12 = vadd.f32 %v1988_v54, %v1863_v36  ;;  %v16130_v46 = vrot.slane %v11040_v41, 5  ;;  %v16990_v29 = vrot.slane %v11014_v28, 4  ;;  %v16991_v54 = vrot.slane %v11024_v39, 5  ;;  %v16992_v36 = vld [vmem:[#allocation15_spill] sm:$0xff] }
 0x248   : > { %v4222_v43 = vsel %vm3783_vm6, %v16987_v25, %v16986_v4  ;;  %v2395_v5 = vsel %vm2359_vm3, %v16989_v35, %v16129_v20  ;;  %v4100_v8 = vadd.f32 %v4019_v26, %v3897_v2  ;;  %v16993_v25 = vrot.slane %v16992_v36, 5  ;;  %v16995_v2 = vld [vmem:[#allocation37_spill] sm:$0xff] }
 0x249   : > { %v2270_v9 = vadd.f32 %v2191_v51, %v2067_v12  ;;  %v2598_v4 = vsel %vm2359_vm3, %v2596_v60, %v16990_v29  ;;  %v11074_v35 = vmul.f32 %v10706_v63, %v10866_v11  ;;  %v3613_v58 = vrot.slane %v3529_v17, 6  ;;  %v16997_v29 = vld [vmem:[#allocation20_spill] sm:$0xff] }
 0x24a   : > { %v2802_v33 = vsel %vm2766_vm4, %v16993_v25, %v16991_v54  ;;  %v4303_v20 = vadd.f32 %v4222_v43, %v4100_v8  ;;  %v11078_v51 = vmul.f32 %v16961_v44, %v10829_v0  ;;  %v474_v26 = vmul.f32 %v16995_v2, %v10829_v0 }
 0x24b   : > { %16994 = vst [vmem:[#allocation30_spill] sm:$0xff] %v11074_v35  ;;  %v2474_v47 = vadd.f32 %v2395_v5, %v2270_v9  ;;  %v3005_v60 = vsel %vm2766_vm4, %v3003_v10, %v16130_v46  ;;  %v16996_v12 = vrot.slane %v11046_v48, 6  ;;  %v16998_v54 = vrot.slane %v16997_v29, 6 }
 0x24c   : > { %v4139_v5 = vmul.f32 %v10751_v31, %v10829_v0  ;;  %v543_v17 = vmul.f32 %v10548_v16, %v10866_v11  ;;  %v11095_v43 = vadd.f32 %v10946_v62, %v4303_v20  ;;  %v612_v9 = vmul.f32 %v10555_v14, %v10925_v22  ;;  %v11112_v20 = vpop.trf.xlu1 }
 0x24d   : > { %v3412_v36 = vsel %vm3173_vm5, %v16998_v54, %v16996_v12  ;;  %v2677_v8 = vadd.f32 %v2598_v4, %v2474_v47  ;;  %v11101_v10 = vmul.f32 %v10301_v57, %v10866_v11  ;;  %v11106_v29 = vmul.f32 %v10567_v61, %v10925_v22  ;;  %17000 = vst [vmem:[#allocation13_spill] sm:$0xff] %v11112_v20 }
 0x24e   : > { %16999 = vst [vmem:[#allocation12_spill] sm:$0xff] %v11095_v43  ;;  %v575_v12 = vadd.f32 %v543_v17, %v474_v26  ;;  %v11110_v54 = vmul.f32 %v16972_v45, %v11016_v19  ;;  %4387 = vadd.xlane.f32.xlu1 %v11095_v43  ;;  %v11118_v46 = vmul.f32 %v10327_v1, %v10866_v11  ;;  %v17003_v43 = vrot.slane %v10921_v7, 1  ;;  %v17007_v7 = vld [vmem:[#allocation24_spill] sm:$0xff] }
 0x24f   : > { %v2881_v47 = vadd.f32 %v2802_v33, %v2677_v8  ;;  %v16137_v4 = vrot.slane %v11101_v10, 1  ;;  %v11122_v26 = vmul.f32 %v10338_v6, %v10925_v22  ;;  %v11128_v34 = vmul.f32 %v16977_v59, %v11016_v19 }
 0x250   : > { %17001 = vst [vmem:[#allocation14_spill] sm:$0xff] %v11118_v46  ;;  %v644_v17 = vadd.f32 %v612_v9, %v575_v12  ;;  %v17004_v9 = vrot.slane %v11074_v35, 6  ;;  %v11142_v27 = vmul.f32 %v10751_v31, %v10866_v11 }
 0x251   : > { %17002 = vst [vmem:[#allocation15_spill] sm:$0xff] %v11122_v26  ;;  %v3084_v33 = vadd.f32 %v3005_v60, %v2881_v47  ;;  %v770_v13 = vsel %vm732_vm0, %v17003_v43, %v16137_v4  ;;  %v17005_v60 = vrot.slane %v11106_v29, 1  ;;  %v17006_v47 = vrot.slane %v10929_v55, 1 }
 0x252   : > { %v3615_v12 = vsel %vm3173_vm5, %v3613_v58, %v17004_v9  ;;  %v848_v25 = vadd.f32 %v770_v13, %v644_v17  ;;  %v17008_v43 = vrot.slane %v11110_v54, 1  ;;  %v17009_v4 = vrot.slane %v10936_v3, 1  ;;  %v11160_v13 = vpop.trf.xlu1 }
 0x253   : > { %v973_v8 = vsel %vm732_vm0, %v17006_v47, %v17005_v60  ;;  %v3288_v48 = vadd.f32 %v17007_v7, %v3084_v33  ;;  %v16146_v58 = vrot.slane %v11122_v26, 2  ;;  %v11158_v9 = vmul.f32 %v10375_v49, %v10866_v11  ;;  %17010 = vst [vmem:[#allocation37_spill] sm:$0xff] %v11160_v13 }
 0x254   : > { %v1176_v20 = vsel %vm732_vm0, %v17009_v4, %v17008_v43  ;;  %v1051_v17 = vadd.f32 %v973_v8, %v848_v25  ;;  %v17011_v55 = vrot.slane %v11118_v46, 2  ;;  %v17012_v60 = vrot.slane %v10941_v24, 2 }
 0x255   : > { %v11170_v3 = vmul.f32 %v10385_v53, %v10925_v22  ;;  %v3491_v4 = vadd.f32 %v3412_v36, %v3288_v48  ;;  %v11174_v43 = vmul.f32 %v10394_v42, %v10866_v11  ;;  %v11178_v25 = vmul.f32 %v10640_v52, %v10925_v22 }
 0x256   : > { %v1380_v33 = vsel %vm1342_vm1, %v17012_v60, %v17011_v55  ;;  %v11182_v24 = vmul.f32 %v10423_v23, %v10866_v11  ;;  %v4223_v8 = vrot.slane %v4139_v5, 7  ;;  %v1254_v60 = vadd.f32 %v1176_v20, %v1051_v17  ;;  %v17015_v23 = vld [vmem:[#allocation21_spill] sm:$0xff] }
 0x257   : > { %v11187_v47 = vmul.f32 %v10680_v21, %v10925_v22  ;;  %v3694_v48 = vadd.f32 %v3615_v12, %v3491_v4  ;;  %v17013_v36 = vrot.slane %v10969_v38, 2  ;;  %v17014_v46 = vrot.slane %v11078_v51, 7  ;;  %v17019_v38 = vld [vmem:[#allocation26_spill] sm:$0xff] }
 0x258   : > { %v17016_v5 = vrot.slane %v17015_v23, 7  ;;  %v1458_v20 = vadd.f32 %v1380_v33, %v1254_v60  ;;  %v17017_v17 = vrot.slane %v11128_v34, 2  ;;  %v17018_v21 = vrot.slane %v10980_v56, 2  ;;  %v11210_v23 = vpop.trf.xlu1 }
 0x259   : > { %v1583_v13 = vsel %vm1342_vm1, %v17013_v36, %v16146_v58  ;;  %v16148_v4 = vrot.slane %v11170_v3, 3  ;;  %v3898_v26 = vadd.f32 %v17019_v38, %v3694_v48  ;;  %17020 = vst [vmem:[#allocation20_spill] sm:$0xff] %v11210_v23  ;;  %v16147_v56 = vrot.slane %v11187_v47, 5 }
 0x25a   : > { %v4022_v55 = vsel %vm3783_vm6, %v17016_v5, %v17014_v46  ;;  %v1786_v12 = vsel %vm1342_vm1, %v17018_v21, %v17017_v17  ;;  %v17021_v46 = vrot.slane %v11142_v27, 7  ;;  %v1661_v60 = vadd.f32 %v1583_v13, %v1458_v20 }
 0x25b   : > { %v11218_v21 = vmul.f32 %v10455_v30, %v10829_v0  ;;  %v4101_v48 = vadd.f32 %v4022_v55, %v3898_v26  ;;  %v17022_v5 = vrot.slane %v11158_v9, 3  ;;  %v17023_v17 = vrot.slane %v10985_v18, 3 }
 0x25c   : > { %v4225_v33 = vsel %vm3783_vm6, %v4223_v8, %v17021_v46  ;;  %v1864_v58 = vadd.f32 %v1786_v12, %v1661_v60  ;;  %v17024_v36 = vrot.slane %v10992_v40, 3  ;;  %v11232_v8 = vmul.f32 %v10465_v37, %v10866_v11 }
 0x25d   : > { %v1990_v35 = vsel %vm1952_vm2, %v17023_v17, %v17022_v5  ;;  %v4304_v20 = vadd.f32 %v4225_v33, %v4101_v48  ;;  %v17026_v26 = vrot.slane %v11174_v43, 4  ;;  %v17027_v55 = vrot.slane %v11000_v15, 4 }
 0x25e   : > { %v2193_v13 = vsel %vm1952_vm2, %v17024_v36, %v16148_v4  ;;  %17025 = vst [vmem:[#allocation24_spill] sm:$0xff] %v11232_v8  ;;  %v17028_v46 = vrot.slane %v11178_v25, 4  ;;  %v17029_v12 = vrot.slane %v11014_v28, 4  ;;  %v17030_v40 = vrot.slane %v11182_v24, 5 }
 0x25f   : > { %v2397_v18 = vsel %vm2359_vm3, %v17027_v55, %v17026_v26  ;;  %v17031_v36 = vrot.slane %v11024_v39, 5  ;;  %v2068_v17 = vadd.f32 %v1990_v35, %v1864_v58  ;;  %v17032_v33 = vrot.slane %v11040_v41, 5  ;;  %v11272_v58 = vpop.trf.xlu1 }
 0x260   : > { %v2600_v60 = vsel %vm2359_vm3, %v17029_v12, %v17028_v46  ;;  %v11257_v28 = vmul.f32 %v10706_v63, %v10925_v22  ;;  %v11260_v26 = vadd.f32 %v10946_v62, %v4304_v20  ;;  %v11264_v39 = vmul.f32 %v10484_v32, %v10829_v0  ;;  %17035 = vst [vmem:[#allocation52_spill] sm:$0xff] %v11272_v58 }
 0x261   : > { %v2804_v5 = vsel %vm2766_vm4, %v17031_v36, %v17030_v40  ;;  %v3007_v15 = vsel %vm2766_vm4, %v17032_v33, %v16147_v56  ;;  %v11268_v35 = vmul.f32 %v16961_v44, %v10866_v11  ;;  %v475_v41 = vmul.f32 %v16995_v2, %v10866_v11 }
 0x262   : > { %17033 = vst [vmem:[#allocation21_spill] sm:$0xff] %v11257_v28  ;;  %17034 = vst [vmem:[#allocation26_spill] sm:$0xff] %v11260_v26  ;;  %v2271_v55 = vadd.f32 %v2193_v13, %v2068_v17  ;;  %v544_v20 = vmul.f32 %v10548_v16, %v10925_v22  ;;  %v613_v12 = vmul.f32 %v10555_v14, %v11016_v19  ;;  %4389 = vadd.xlane.f32.xlu0 %v11260_v26 }
 0x263   : > { %v11282_v0 = vmul.f32 %v10301_v57, %v10925_v22  ;;  %v11286_v40 = vmul.f32 %v10567_v61, %v11016_v19  ;;  %v11290_v13 = vmul.f32 %v16972_v45, %v11062_v50  ;;  %v11294_v36 = vmul.f32 %v10327_v1, %v10925_v22 }
 0x264   : > { %v2475_v17 = vadd.f32 %v2397_v18, %v2271_v55  ;;  %v576_v56 = vadd.f32 %v544_v20, %v475_v41  ;;  %v11299_v4 = vmul.f32 %v10338_v6, %v11016_v19  ;;  %v11303_v46 = vmul.f32 %v10751_v31, %v10925_v22 }
 0x265   : > { %17036 = vst [vmem:[#allocation53_spill] sm:$0xff] %v11294_v36  ;;  %v16157_v48 = vrot.slane %v11282_v0, 1  ;;  %v16156_v26 = vrot.slane %v11286_v40, 1  ;;  %v16158_v58 = vrot.slane %v11290_v13, 1  ;;  %v17037_v18 = vrot.slane %v11218_v21, 6 }
 0x266   : > { %v2678_v23 = vadd.f32 %v2600_v60, %v2475_v17  ;;  %v645_v20 = vadd.f32 %v613_v12, %v576_v56  ;;  %v17038_v33 = vrot.slane %v11101_v10, 1  ;;  %v17039_v62 = vrot.slane %v11106_v29, 1  ;;  %v17044_v12 = vld [vmem:[#allocation11_spill] sm:$0xff] }
 0x267   : > { %v3211_v41 = vsel %vm3173_vm5, %v17007_v7, %v17037_v18  ;;  %v16166_v17 = vrot.slane %v11294_v36, 2  ;;  %v11326_v7 = vmul.f32 %v16977_v59, %v11062_v50  ;;  %v11328_v18 = vpop.trf.xlu1  ;;  %v17041_v29 = vrot.slane %v11110_v54, 1  ;;  %v17042_v54 = vld [vmem:[#allocation33_spill] sm:$0xff]  ;;  %v17053_v36 = vld [vmem:[#allocation15_spill] sm:$0xff] }
 0x268   : > { %v772_v31 = vsel %vm732_vm0, %v17038_v33, %v16157_v48  ;;  %v975_v60 = vsel %vm732_vm0, %v17039_v62, %v16156_v26  ;;  %17040 = vst [vmem:[#allocation54_spill] sm:$0xff] %v11328_v18  ;;  %v2882_v56 = vadd.f32 %v2804_v5, %v2678_v23  ;;  %v11339_v26 = vmul.f32 %v10375_v49, %v10925_v22  ;;  %v17046_v18 = vld [vmem:[#allocation14_spill] sm:$0xff] }
 0x269   : > { %v849_v10 = vadd.f32 %v772_v31, %v645_v20  ;;  %v1178_v62 = vsel %vm732_vm0, %v17041_v29, %v16158_v58  ;;  %v11343_v48 = vmul.f32 %v10385_v53, %v11016_v19  ;;  %v11347_v23 = vmul.f32 %v10394_v42, %v10925_v22 }
 0x26a   : > { %v3085_v31 = vadd.f32 %v3007_v15, %v2882_v56  ;;  %v11351_v20 = vmul.f32 %v10640_v52, %v11016_v19  ;;  %v11355_v29 = vmul.f32 %v17042_v54, %v10925_v22  ;;  %v17043_v58 = vrot.slane %v11232_v8, 6  ;;  %v17048_v56 = vld [vmem:[#allocation43_spill] sm:$0xff]  ;;  %v17050_v8 = vld [vmem:[#allocation30_spill] sm:$0xff] }
 0x26b   : > { %v1052_v5 = vadd.f32 %v975_v60, %v849_v10  ;;  %v17045_v55 = vrot.slane %v17044_v12, 6  ;;  %v17047_v42 = vrot.slane %v17046_v18, 2  ;;  %v11370_v10 = vmul.f32 %v17048_v56, %v11016_v19 }
 0x26c   : > { %v3289_v54 = vadd.f32 %v3211_v41, %v3085_v31  ;;  %v17049_v52 = vrot.slane %v11257_v28, 6  ;;  %v17051_v53 = vrot.slane %v17050_v8, 6  ;;  %v17052_v18 = vrot.slane %v11299_v4, 2  ;;  %v11386_v31 = vpop.trf.xlu1 }
 0x26d   : > { %v3414_v33 = vsel %vm3173_vm5, %v17045_v55, %v17043_v58  ;;  %v1382_v15 = vsel %vm1342_vm1, %v17047_v42, %v16166_v17  ;;  %v16171_v58 = vrot.slane %v11303_v46, 7  ;;  %v1255_v55 = vadd.f32 %v1178_v62, %v1052_v5  ;;  %17055 = vst [vmem:[#allocation11_spill] sm:$0xff] %v11386_v31 }
 0x26e   : > { %v3617_v12 = vsel %vm3173_vm5, %v17051_v53, %v17049_v52  ;;  %v17054_v42 = vrot.slane %v17053_v36, 2  ;;  %v16172_v60 = vrot.slane %v11339_v26, 3  ;;  %v3492_v8 = vadd.f32 %v3414_v33, %v3289_v54 }
 0x26f   : > { %v1459_v28 = vadd.f32 %v1382_v15, %v1255_v55  ;;  %v16170_v53 = vrot.slane %v11351_v20, 4  ;;  %v16169_v52 = vrot.slane %v11355_v29, 5  ;;  %v17056_v62 = vrot.slane %v11264_v39, 7 }
 0x270   : > { %v1585_v17 = vsel %vm1342_vm1, %v17054_v42, %v17052_v18  ;;  %v17057_v5 = vrot.slane %v11326_v7, 2  ;;  %v17058_v18 = vrot.slane %v11128_v34, 2  ;;  %v16168_v41 = vrot.slane %v11370_v10, 5 }
 0x271   : > { %v3821_v36 = vsel %vm3783_vm6, %v17019_v38, %v17056_v62  ;;  %v3695_v56 = vadd.f32 %v3617_v12, %v3492_v8  ;;  %v17059_v33 = vrot.slane %v11268_v35, 7  ;;  %v17060_v54 = vrot.slane %v11078_v51, 7 }
 0x272   : > { %v1788_v42 = vsel %vm1342_vm1, %v17058_v18, %v17057_v5  ;;  %v1662_v55 = vadd.f32 %v1585_v17, %v1459_v28  ;;  %v17061_v38 = vrot.slane %v11142_v27, 7  ;;  %v17062_v34 = vrot.slane %v11158_v9, 3 }
 0x273   : > { %v4024_v15 = vsel %vm3783_vm6, %v17060_v54, %v17059_v33  ;;  %v17063_v12 = vrot.slane %v11343_v48, 3  ;;  %v17064_v8 = vrot.slane %v11170_v3, 3  ;;  %v17065_v28 = vrot.slane %v11347_v23, 4 }
 0x274   : > { %v4227_v62 = vsel %vm3783_vm6, %v17061_v38, %v16171_v58  ;;  %v1992_v5 = vsel %vm1952_vm2, %v17062_v34, %v16172_v60  ;;  %v17066_v17 = vrot.slane %v11174_v43, 4  ;;  %v3899_v18 = vadd.f32 %v3821_v36, %v3695_v56 }
 0x275   : > { %v2195_v51 = vsel %vm1952_vm2, %v17064_v8, %v17063_v12  ;;  %v1865_v33 = vadd.f32 %v1788_v42, %v1662_v55  ;;  %v17067_v9 = vrot.slane %v11178_v25, 4  ;;  %v17068_v3 = vrot.slane %v11182_v24, 5  ;;  %v11452_v24 = vpop.trf.xlu1 }
 0x276   : > { %v2399_v27 = vsel %vm2359_vm3, %v17066_v17, %v17065_v28  ;;  %v17069_v43 = vrot.slane %v11187_v47, 5  ;;  %v11442_v56 = vmul.f32 %v10455_v30, %v10866_v11  ;;  %v11446_v25 = vmul.f32 %v10465_v37, %v10925_v22  ;;  %17070 = vst [vmem:[#allocation14_spill] sm:$0xff] %v11452_v24 }
 0x277   : > { %v2602_v54 = vsel %vm2359_vm3, %v17067_v9, %v16170_v53  ;;  %v2806_v38 = vsel %vm2766_vm4, %v17068_v3, %v16169_v52  ;;  %v11450_v36 = vmul.f32 %v10706_v63, %v11016_v19  ;;  %v4102_v42 = vadd.f32 %v4024_v15, %v3899_v18 }
 0x278   : > { %v3009_v34 = vsel %vm2766_vm4, %v17069_v43, %v16168_v41  ;;  %v2069_v55 = vadd.f32 %v1992_v5, %v1865_v33  ;;  %v11456_v47 = vmul.f32 %v10484_v32, %v10866_v11  ;;  %v11460_v12 = vmul.f32 %v16961_v44, %v10925_v22  ;;  %v17071_v33 = vld [vmem:[#allocation13_spill] sm:$0xff] }
 0x279   : > { %v476_v8 = vmul.f32 %v16995_v2, %v10925_v22  ;;  %v545_v28 = vmul.f32 %v10548_v16, %v11016_v19  ;;  %v614_v17 = vmul.f32 %v10555_v14, %v11062_v50  ;;  %v11470_v15 = vmul.f32 %v10301_v57, %v11016_v19 }
 0x27a   : > { %v4305_v5 = vadd.f32 %v4227_v62, %v4102_v42  ;;  %v2272_v11 = vadd.f32 %v2195_v51, %v2069_v55  ;;  %v11474_v18 = vmul.f32 %v10567_v61, %v11062_v50  ;;  %v11478_v9 = vmul.f32 %v16972_v45, %v17071_v33  ;;  %v17072_v62 = vld [vmem:[#allocation17_spill] sm:$0xff] }
 0x27b   : > { %v577_v2 = vadd.f32 %v545_v28, %v476_v8  ;;  %v16173_v3 = vrot.slane %v11470_v15, 1  ;;  %v11483_v43 = vmul.f32 %v10327_v1, %v11016_v19  ;;  %v11487_v57 = vmul.f32 %v10338_v6, %v11062_v50  ;;  %v17074_v28 = vld [vmem:[#allocation44_spill] sm:$0xff] }
 0x27c   : > { %v11490_v51 = vadd.f32 %v17072_v62, %v4305_v5  ;;  %v2476_v42 = vadd.f32 %v2399_v27, %v2272_v11  ;;  %v16174_v55 = vrot.slane %v11474_v18, 1  ;;  %v16175_v41 = vrot.slane %v11478_v9, 1  ;;  %v11504_v5 = vpop.trf.xlu1 }
 0x27d   : > { %v16176_v8 = vrot.slane %v11442_v56, 6  ;;  %v11497_v52 = vmul.f32 %v17074_v28, %v11016_v19  ;;  %v646_v1 = vadd.f32 %v614_v17, %v577_v2  ;;  %v17075_v6 = vrot.slane %v11282_v0, 1  ;;  %17076 = vst [vmem:[#allocation15_spill] sm:$0xff] %v11504_v5 }
 0x27e   : > { %17073 = vst [vmem:[#allocation30_spill] sm:$0xff] %v11490_v51  ;;  %4391 = vadd.xlane.f32.xlu1 %v11490_v51  ;;  %v2679_v27 = vadd.f32 %v2602_v54, %v2476_v42  ;;  %v17077_v11 = vrot.slane %v11286_v40, 1  ;;  %v16177_v60 = vrot.slane %v11483_v43, 2  ;;  %v11515_v17 = vmul.f32 %v16977_v59, %v17071_v33 }
 0x27f   : > { %v774_v53 = vsel %vm732_vm0, %v17075_v6, %v16173_v3  ;;  %v17078_v40 = vrot.slane %v11290_v13, 1  ;;  %v17079_v2 = vrot.slane %v11218_v21, 6  ;;  %v17083_v21 = vld [vmem:[#allocation19_spill] sm:$0xff]  ;;  %v11590_v31 = vmul.f32 %v10455_v30, %v10925_v22 }
 0x280   : > { %v977_v58 = vsel %vm732_vm0, %v17077_v11, %v16174_v55  ;;  %v850_v6 = vadd.f32 %v774_v53, %v646_v1  ;;  %v2883_v54 = vadd.f32 %v2806_v38, %v2679_v27  ;;  %v11528_v55 = vmul.f32 %v10375_v49, %v11016_v19  ;;  %v17080_v27 = vld [vmem:[#allocation18_spill] sm:$0xff]  ;;  %v11564_v38 = vpop.trf.xlu1 }
 0x281   : > { %v1180_v11 = vsel %vm732_vm0, %v17078_v40, %v16175_v41  ;;  %v3213_v53 = vsel %vm3173_vm5, %v17079_v2, %v16176_v8  ;;  %v11538_v42 = vmul.f32 %v17080_v27, %v11062_v50  ;;  %v17081_v40 = vld [vmem:[#allocation53_spill] sm:$0xff]  ;;  %v11548_v0 = vmul.f32 %v17083_v21, %v11016_v19  ;;  %17090 = vst [vmem:[#allocation13_spill] sm:$0xff] %v11564_v38 }
 0x282   : > { %v1053_v1 = vadd.f32 %v977_v58, %v850_v6  ;;  %v3086_v13 = vadd.f32 %v3009_v34, %v2883_v54  ;;  %v17082_v41 = vrot.slane %v17081_v40, 2  ;;  %v17084_v2 = vrot.slane %v11446_v25, 6  ;;  %v17085_v58 = vld [vmem:[#allocation24_spill] sm:$0xff] }
 0x283   : > { %v17086_v6 = vrot.slane %v17085_v58, 6  ;;  %v17087_v34 = vrot.slane %v11487_v57, 2  ;;  %v17088_v54 = vrot.slane %v11299_v4, 2  ;;  %v17091_v58 = vld [vmem:[#allocation33_spill] sm:$0xff]  ;;  %v17093_v4 = vrot.slane %v11450_v36, 6 }
 0x284   : > { %v1384_v49 = vsel %vm1342_vm1, %v17082_v41, %v16177_v60  ;;  %v1256_v8 = vadd.f32 %v1180_v11, %v1053_v1  ;;  %v17089_v41 = vld [vmem:[#allocation42_spill] sm:$0xff]  ;;  %v3290_v21 = vadd.f32 %v3213_v53, %v3086_v13  ;;  %v11569_v51 = vmul.f32 %v17091_v58, %v11016_v19  ;;  %v17092_v11 = vld [vmem:[#allocation43_spill] sm:$0xff] }
 0x285   : > { %v3416_v27 = vsel %vm3173_vm5, %v17086_v6, %v17084_v2  ;;  %v1587_v40 = vsel %vm1342_vm1, %v17088_v54, %v17087_v34  ;;  %v11562_v60 = vmul.f32 %v17089_v41, %v11062_v50  ;;  %v11573_v1 = vmul.f32 %v17092_v11, %v11062_v50  ;;  %v17094_v2 = vld [vmem:[#allocation21_spill] sm:$0xff] }
 0x286   : > { %v17095_v6 = vrot.slane %v17094_v2, 6  ;;  %v16188_v54 = vrot.slane %v11497_v52, 7  ;;  %v1460_v38 = vadd.f32 %v1384_v49, %v1256_v8  ;;  %v16187_v53 = vrot.slane %v11538_v42, 3 }
 0x287   : > { %v3493_v13 = vadd.f32 %v3416_v27, %v3290_v21  ;;  %v17096_v3 = vrot.slane %v11515_v17, 2  ;;  %v17097_v58 = vrot.slane %v11326_v7, 2  ;;  %v17099_v2 = vrot.slane %v11264_v39, 7 }
 0x288   : > { %v3619_v34 = vsel %vm3173_vm5, %v17095_v6, %v17093_v4  ;;  %v17098_v4 = vrot.slane %v11456_v47, 7  ;;  %v17100_v49 = vrot.slane %v11460_v12, 7  ;;  %v17101_v27 = vrot.slane %v11268_v35, 7 }
 0x289   : > { %v1790_v5 = vsel %vm1342_vm1, %v17097_v58, %v17096_v3  ;;  %v1663_v21 = vadd.f32 %v1587_v40, %v1460_v38  ;;  %v16186_v3 = vrot.slane %v11562_v60, 4  ;;  %v3696_v6 = vadd.f32 %v3619_v34, %v3493_v13 }
 0x28a   : > { %v3823_v8 = vsel %vm3783_vm6, %v17099_v2, %v17098_v4  ;;  %v4026_v7 = vsel %vm3783_vm6, %v17101_v27, %v17100_v49  ;;  %v17102_v58 = vrot.slane %v11528_v55, 3  ;;  %v17103_v30 = vrot.slane %v11339_v26, 3  ;;  %v4358_v2 = vpop.xlane.xlu0 %4357  ;;  %v11624_v49 = vpop.trf.xlu1 }
 0x28b   : > { %v16185_v39 = vrot.slane %v11569_v51, 5  ;;  %v16184_v4 = vrot.slane %v11573_v1, 5  ;;  %v17104_v35 = vrot.slane %v11303_v46, 7  ;;  %v1866_v40 = vadd.f32 %v1790_v5, %v1663_v21  ;;  %17106 = vst [vmem:[#allocation44_spill] sm:$0xff] %v11624_v49  ;;  %v12000_v49 = vld [vmem:[%s15875_s1 + $0x11] ss:$0 sm:$0xff] }
 0x28c   : > { %v1994_v24 = vsel %vm1952_vm2, %v17103_v30, %v17102_v58  ;;  %v17105_v34 = vrot.slane %v11343_v48, 3  ;;  %v11622_v13 = vmul.f32 %v10465_v37, %v11016_v19  ;;  %v3900_v27 = vadd.f32 %v3823_v8, %v3696_v6  ;;  %17156 = vst [vmem:[#allocation59_spill] sm:$0xff] %v12000_v49 }
 0x28d   : > { %v4229_v38 = vsel %vm3783_vm6, %v17104_v35, %v16188_v54  ;;  %v17107_v58 = vrot.slane %v11548_v0, 4  ;;  %v17108_v46 = vrot.slane %v11347_v23, 4  ;;  %v16183_v5 = vrot.slane %v11590_v31, 6 }
 0x28e   : > { %v2197_v26 = vsel %vm1952_vm2, %v17105_v34, %v16187_v53  ;;  %v11634_v48 = vmul.f32 %v10706_v63, %v11062_v50  ;;  %v2070_v21 = vadd.f32 %v1994_v24, %v1866_v40  ;;  %v17109_v37 = vrot.slane %v11351_v20, 4 }
 0x28f   : > { %v2401_v30 = vsel %vm2359_vm3, %v17108_v46, %v17107_v58  ;;  %v11643_v8 = vmul.f32 %v10484_v32, %v10925_v22  ;;  %v4422_v23 = vmul.f32 0.0078125, %v4358_v2  ;;  %v4103_v6 = vadd.f32 %v4026_v7, %v3900_v27  ;;  %v11663_v7 = vld [vmem:[%s15875_s1 + $0x2] ss:$0 sm:$0xff]  ;;  %v17113_v58 = vld [vmem:[#allocation31_spill] sm:$0xff] }
 0x290   : > { %v2604_v35 = vsel %vm2359_vm3, %v17109_v37, %v16186_v3  ;;  %v17110_v34 = vrot.slane %v11355_v29, 5  ;;  %v17111_v24 = vrot.slane %v11370_v10, 5  ;;  %v11657_v40 = vmul.f32 %v16961_v44, %v11016_v19 }
 0x291   : > { %v2273_v32 = vadd.f32 %v2197_v26, %v2070_v21  ;;  %v16192_v22 = vrot.slane %v11622_v13, 6  ;;  %v477_v29 = vmul.f32 %v11663_v7, %v11016_v19  ;;  %v546_v10 = vmul.f32 %v10548_v16, %v11062_v50 }
 0x292   : > { %v2808_v63 = vsel %vm2766_vm4, %v17110_v34, %v16185_v39  ;;  %v3011_v20 = vsel %vm2766_vm4, %v17111_v24, %v16184_v4  ;;  %v4306_v2 = vadd.f32 %v4229_v38, %v4103_v6  ;;  %v17112_v44 = vrot.slane %v11442_v56, 6  ;;  %v11679_v34 = vpop.trf.xlu1  ;;  %v11690_v6 = vld [vmem:[%s15875_s1 + $0x3] ss:$0 sm:$0xff] }
 0x293   : > { %v16189_v27 = vrot.slane %v11634_v48, 6  ;;  %v11676_v46 = vsub.f32 %v17113_v58, %v4422_v23  ;;  %v2477_v21 = vadd.f32 %v2401_v30, %v2273_v32  ;;  %v16190_v37 = vrot.slane %v11643_v8, 7  ;;  %17115 = vst [vmem:[#allocation53_spill] sm:$0xff] %v11679_v34 }
 0x294   : > { %v3215_v26 = vsel %vm3173_vm5, %v17112_v44, %v16183_v5  ;;  %v578_v24 = vadd.f32 %v546_v10, %v477_v29  ;;  %v615_v16 = vmul.f32 %v10555_v14, %v17071_v33  ;;  %v11684_v38 = vadd.f32 %v17072_v62, %v4306_v2  ;;  %v17117_v29 = vld [vmem:[#allocation37_spill] sm:$0xff] }
 0x295   : > { %17114 = vst [vmem:[#allocation18_spill] sm:$0xff] %v11676_v46  ;;  %v11694_v30 = vmul.f32 %v11690_v6, %v11062_v50  ;;  %v11698_v23 = vmul.f32 %v10567_v61, %v17071_v33  ;;  %v2680_v32 = vadd.f32 %v2604_v35, %v2477_v21  ;;  %v11702_v10 = vmul.f32 %v16972_v45, %v17117_v29  ;;  %v11707_v2 = vld [vmem:[%s15875_s1 + $0x4] ss:$0 sm:$0xff]  ;;  %v11721_v45 = vld [vmem:[%s15875_s1 + $0xc] ss:$0 sm:$0xff] }
 0x296   : > { %17116 = vst [vmem:[#allocation19_spill] sm:$0xff] %v11684_v38  ;;  %v647_v14 = vadd.f32 %v615_v16, %v578_v24  ;;  %17118 = vst [vmem:[#allocation24_spill] sm:$0xff] %v11707_v2  ;;  %v11711_v44 = vmul.f32 %v11707_v2, %v11062_v50  ;;  %4393 = vadd.xlane.f32.xlu0 %v11684_v38  ;;  %v4486_v61 = vmul.f32 %v11676_v46, %v11676_v46  ;;  %v4360_v16 = vpop.xlane.xlu1 %4359 }
 0x297   : > { %v16194_v35 = vrot.slane %v11694_v30, 1  ;;  %v16193_v58 = vrot.slane %v11698_v23, 1  ;;  %17119 = vst [vmem:[#allocation42_spill] sm:$0xff] %v11721_v45  ;;  %v11725_v21 = vmul.f32 %v11721_v45, %v17071_v33  ;;  %v2884_v24 = vadd.f32 %v2808_v63, %v2680_v32 }
 0x298   : > { %v16191_v5 = vrot.slane %v11702_v10, 1  ;;  %v11731_v39 = vmul.f32 %v16977_v59, %v17117_v29  ;;  %v17120_v3 = vrot.slane %v11446_v25, 6  ;;  %v17121_v54 = vrot.slane %v11450_v36, 6 }
 0x299   : > { %v17122_v32 = vrot.slane %v11470_v15, 1  ;;  %v17123_v59 = vrot.slane %v11474_v18, 1  ;;  %v3087_v4 = vadd.f32 %v3011_v20, %v2884_v24  ;;  %v17125_v18 = vrot.slane %v11478_v9, 1 }
 0x29a   : > { %v3418_v53 = vsel %vm3173_vm5, %v17120_v3, %v16192_v22  ;;  %v3621_v63 = vsel %vm3173_vm5, %v17121_v54, %v16189_v27  ;;  %v17124_v3 = vrot.slane %v11456_v47, 7  ;;  %v11760_v54 = vmul.f32 %v17074_v28, %v11062_v50  ;;  %4518 = vadd.xlane.f32.xlu0 %v4486_v61  ;;  %v11771_v47 = vld [vmem:[%s15875_s1 + $0x5] ss:$0 sm:$0xff] }
 0x29b   : > { %v776_v56 = vsel %vm732_vm0, %v17122_v32, %v16194_v35  ;;  %v979_v25 = vsel %vm732_vm0, %v17123_v59, %v16193_v58  ;;  %v4423_v27 = vmul.f32 0.0078125, %v4360_v16  ;;  %v1182_v32 = vsel %vm732_vm0, %v17125_v18, %v16191_v5  ;;  %v11786_v59 = vld [vmem:[%s15875_s1 + $0xd] ss:$0 sm:$0xff] }
 0x29c   : > { %v3825_v36 = vsel %vm3783_vm6, %v17124_v3, %v16190_v37  ;;  %v851_v15 = vadd.f32 %v776_v56, %v647_v14  ;;  %v16195_v20 = vrot.slane %v11725_v21, 2  ;;  %v11775_v28 = vmul.f32 %v11771_v47, %v11062_v50 }
 0x29d   : > { %v3291_v56 = vadd.f32 %v3215_v26, %v3087_v4  ;;  %v17126_v61 = vrot.slane %v11711_v44, 2  ;;  %v17127_v24 = vrot.slane %v11483_v43, 2  ;;  %v16197_v16 = vrot.slane %v11731_v39, 2  ;;  %v11795_v4 = vld [vmem:[%s15875_s1 + $0x6] ss:$0 sm:$0xff] }
 0x29e   : > { %v1054_v14 = vadd.f32 %v979_v25, %v851_v15  ;;  %v11790_v3 = vmul.f32 %v11786_v59, %v17071_v33  ;;  %17128 = vst [vmem:[#allocation33_spill] sm:$0xff] %v11795_v4  ;;  %v11799_v43 = vmul.f32 %v11795_v4, %v11062_v50  ;;  %v11803_v26 = vmul.f32 %v17089_v41, %v17071_v33  ;;  %v11808_v25 = vld [vmem:[%s15875_s1 + $0x7] ss:$0 sm:$0xff] }
 0x29f   : > { %v1386_v9 = vsel %vm1342_vm1, %v17127_v24, %v17126_v61  ;;  %17129 = vst [vmem:[#allocation43_spill] sm:$0xff] %v11808_v25  ;;  %v11812_v15 = vmul.f32 %v11808_v25, %v11062_v50  ;;  %v3494_v18 = vadd.f32 %v3418_v53, %v3291_v56  ;;  %v17130_v61 = vrot.slane %v11657_v40, 7  ;;  %v17135_v56 = vld [vmem:[#allocation27_spill] sm:$0xff] }
 0x2a0   : > { %v17131_v24 = vrot.slane %v11460_v12, 7  ;;  %v1257_v5 = vadd.f32 %v1182_v32, %v1054_v14  ;;  %v11821_v41 = vmul.f32 %v17092_v11, %v17071_v33  ;;  %v17132_v58 = vrot.slane %v11487_v57, 2  ;;  %v11833_v12 = vld [vmem:[%s15875_s1] ss:$0 sm:$0xff] }
 0x2a1   : > { %17133 = vst [vmem:[#allocation21_spill] sm:$0xff] %v11833_v12  ;;  %v11837_v32 = vmul.f32 %v11833_v12, %v11016_v19  ;;  %v3697_v11 = vadd.f32 %v3621_v63, %v3494_v18  ;;  %v11840_v14 = vsub.f32 %v17135_v56, %v4423_v27  ;;  %v17137_v57 = vrot.slane %v11515_v17, 2 }
 0x2a2   : > { %v4028_v37 = vsel %vm3783_vm6, %v17131_v24, %v17130_v61  ;;  %v1589_v35 = vsel %vm1342_vm1, %v17132_v58, %v16195_v20  ;;  %v1461_v61 = vadd.f32 %v1386_v9, %v1257_v5  ;;  %v4362_v24 = vpop.xlane.xlu1 %4361  ;;  %v16202_v20 = vrot.slane %v11790_v3, 3 }
 0x2a3   : > { %17134 = vst [vmem:[#allocation31_spill] sm:$0xff] %v11837_v32  ;;  %17136 = vst [vmem:[#allocation37_spill] sm:$0xff] %v11840_v14  ;;  %v1792_v58 = vsel %vm1342_vm1, %v17137_v57, %v16197_v16  ;;  %v16201_v53 = vrot.slane %v11799_v43, 4  ;;  %v16200_v46 = vrot.slane %v11812_v15, 5  ;;  %v3901_v63 = vadd.f32 %v3825_v36, %v3697_v11 }
 0x2a4   : > { %v1664_v18 = vadd.f32 %v1589_v35, %v1461_v61  ;;  %v16199_v27 = vrot.slane %v11821_v41, 5  ;;  %v17138_v5 = vrot.slane %v11760_v54, 7  ;;  %v17139_v9 = vrot.slane %v11497_v52, 7  ;;  %v11866_v35 = vld [vmem:[%s15875_s1 + $0x8] ss:$0 sm:$0xff] }
 0x2a5   : > { %v17140_v56 = vrot.slane %v11775_v28, 3  ;;  %v17141_v57 = vrot.slane %v11528_v55, 3  ;;  %v16198_v22 = vrot.slane %v11837_v32, 6  ;;  %v11870_v36 = vmul.f32 %v11866_v35, %v11062_v50 }
 0x2a6   : > { %v4231_v17 = vsel %vm3783_vm6, %v17139_v9, %v17138_v5  ;;  %v4104_v52 = vadd.f32 %v4028_v37, %v3901_v63  ;;  %v11872_v11 = vmul.f32 0.0078125, %v4362_v24  ;;  %v4487_v61 = vmul.f32 %v11840_v14, %v11840_v14 }
 0x2a7   : > { %v1996_v16 = vsel %vm1952_vm2, %v17141_v57, %v17140_v56  ;;  %v1867_v55 = vadd.f32 %v1792_v58, %v1664_v18  ;;  %v17142_v5 = vrot.slane %v11538_v42, 3  ;;  %v17143_v56 = vrot.slane %v11548_v0, 4 }
 0x2a8   : > { %v17144_v37 = vrot.slane %v11803_v26, 4  ;;  %v17145_v24 = vrot.slane %v11562_v60, 4  ;;  %v17146_v58 = vrot.slane %v11569_v51, 5  ;;  %v4307_v18 = vadd.f32 %v4231_v17, %v4104_v52  ;;  %v11904_v60 = vld [vmem:[%s15875_s1 + $0x10] ss:$0 sm:$0xff] }
 0x2a9   : > { %v2199_v9 = vsel %vm1952_vm2, %v17142_v5, %v16202_v20  ;;  %v2403_v57 = vsel %vm2359_vm3, %v17143_v56, %v16201_v53  ;;  %v2071_v5 = vadd.f32 %v1996_v16, %v1867_v55  ;;  %v17147_v0 = vrot.slane %v11573_v1, 5  ;;  %v11919_v1 = vld [vmem:[%s15875_s1 + $0x1] ss:$0 sm:$0xff]  ;;  %v11974_v17 = vld [vmem:[%s15875_s1 + $0x9] ss:$0 sm:$0xff] }
 0x2aa   : > { %v2606_v63 = vsel %vm2359_vm3, %v17145_v24, %v17144_v37  ;;  %v2810_v42 = vsel %vm2766_vm4, %v17146_v58, %v16200_v46  ;;  %v11908_v37 = vmul.f32 %v11904_v60, %v17071_v33  ;;  %v17148_v51 = vrot.slane %v11590_v31, 6  ;;  %v11933_v58 = vld [vmem:[%s15875_s1 + $0xa] ss:$0 sm:$0xff] }
 0x2ab   : > { %v3013_v56 = vsel %vm2766_vm4, %v17147_v0, %v16199_v27  ;;  %v11923_v52 = vmul.f32 %v11919_v1, %v11016_v19  ;;  %v478_v55 = vmul.f32 %v11663_v7, %v11062_v50  ;;  %v11928_v24 = vadd.f32 %v17072_v62, %v4307_v18  ;;  %v11940_v19 = vld [vmem:[%s15875_s1 + $0x12] ss:$0 sm:$0xff]  ;;  %v17153_v27 = vld [vmem:[#allocation20_spill] sm:$0xff] }
 0x2ac   : > { %v3217_v16 = vsel %vm3173_vm5, %v17148_v51, %v16198_v22  ;;  %v2274_v31 = vadd.f32 %v2199_v9, %v2071_v5  ;;  %v547_v0 = vmul.f32 %v11933_v58, %v17071_v33  ;;  %v616_v51 = vmul.f32 %v11940_v19, %v17117_v29  ;;  %v11951_v9 = vld [vmem:[%s15875_s1 + $0xb] ss:$0 sm:$0xff]  ;;  %v11960_v22 = vld [vmem:[%s15875_s1 + $0x13] ss:$0 sm:$0xff]  ;;  %17154 = vst [vmem:[#allocation20_spill] sm:$0xff] %v11974_v17 }
 0x2ad   : > { %17149 = vst [vmem:[#allocation27_spill] sm:$0xff] %v11928_v24  ;;  %v11946_v18 = vmul.f32 %v11690_v6, %v17071_v33  ;;  %17151 = vst [vmem:[#allocation56_spill] sm:$0xff] %v11951_v9  ;;  %v11955_v5 = vmul.f32 %v11951_v9, %v17117_v29  ;;  %v11964_v46 = vmul.f32 %v11960_v22, %v17153_v27  ;;  %4395 = vadd.xlane.f32.xlu1 %v11928_v24 }
 0x2ae   : > { %17152 = vst [vmem:[#allocation57_spill] sm:$0xff] %v11960_v22  ;;  %v11968_v53 = vmul.f32 %v11707_v2, %v17071_v33  ;;  %v2478_v20 = vadd.f32 %v2403_v57, %v2274_v31  ;;  %v11978_v14 = vmul.f32 %v11974_v17, %v11062_v50  ;;  %v579_v38 = vadd.f32 %v547_v0, %v478_v55  ;;  %v11990_v31 = vld [vmem:[%s15875_s1 + $0x14] ss:$0 sm:$0xff] }
 0x2af   : > { %17150 = vst [vmem:[#allocation55_spill] sm:$0xff] %v11946_v18  ;;  %v11982_v34 = vmul.f32 %v11721_v45, %v17117_v29  ;;  %17155 = vst [vmem:[#allocation58_spill] sm:$0xff] %v11990_v31  ;;  %v11994_v24 = vmul.f32 %v11990_v31, %v17153_v27  ;;  %v12004_v57 = vmul.f32 %v12000_v49, %v17071_v33  ;;  %v17157_v2 = vrot.slane %v11946_v18, 1 }
 0x2b0   : > { %v2681_v55 = vadd.f32 %v2606_v63, %v2478_v20  ;;  %v648_v32 = vadd.f32 %v616_v51, %v579_v38  ;;  %v17158_v31 = vrot.slane %v11694_v30, 1  ;;  %v17159_v63 = vrot.slane %v11955_v5, 1 }
 0x2b1   : > { %v17160_v0 = vrot.slane %v11698_v23, 1  ;;  %v16221_v22 = vrot.slane %v11968_v53, 2  ;;  %4520 = vadd.xlane.f32.xlu1 %v4487_v61  ;;  %v17161_v38 = vrot.slane %v11870_v36, 6  ;;  %v17162_v51 = vrot.slane %v11622_v13, 6 }
 0x2b2   : > { %v778_v20 = vsel %vm732_vm0, %v17158_v31, %v17157_v2  ;;  %v2885_v9 = vadd.f32 %v2810_v42, %v2681_v55  ;;  %v4364_v2 = vpop.xlane.xlu1 %4363  ;;  %v17163_v31 = vrot.slane %v11964_v46, 1  ;;  %v17164_v23 = vrot.slane %v11702_v10, 1 }
 0x2b3   : > { %v981_v62 = vsel %vm732_vm0, %v17160_v0, %v17159_v63  ;;  %v3420_v45 = vsel %vm3173_vm5, %v17162_v51, %v17161_v38  ;;  %v852_v18 = vadd.f32 %v778_v20, %v648_v32  ;;  %v12033_v42 = vmul.f32 %v11771_v47, %v17071_v33  ;;  %v12051_v51 = vld [vmem:[%s15875_s1 + $0xe] ss:$0 sm:$0xff] }
 0x2b4   : > { %v1184_v0 = vsel %vm732_vm0, %v17164_v23, %v17163_v31  ;;  %v3088_v13 = vadd.f32 %v3013_v56, %v2885_v9  ;;  %v12037_v32 = vmul.f32 %v11786_v59, %v17117_v29  ;;  %v12041_v20 = vmul.f32 %v11795_v4, %v17071_v33  ;;  %17166 = vst [vmem:[#allocation60_spill] sm:$0xff] %v12051_v51 }
 0x2b5   : > { %v1055_v55 = vadd.f32 %v981_v62, %v852_v18  ;;  %v17165_v10 = vrot.slane %v11711_v44, 2  ;;  %v12055_v62 = vmul.f32 %v12051_v51, %v17117_v29  ;;  %v12059_v56 = vmul.f32 %v11808_v25, %v17071_v33  ;;  %v12064_v18 = vld [vmem:[%s15875_s1 + $0xf] ss:$0 sm:$0xff] }
 0x2b6   : > { %17167 = vst [vmem:[#allocation61_spill] sm:$0xff] %v12064_v18  ;;  %v12068_v44 = vmul.f32 %v12064_v18, %v17117_v29  ;;  %v3292_v9 = vadd.f32 %v3217_v16, %v3088_v13  ;;  %v16231_v31 = vrot.slane %v12004_v57, 7  ;;  %v4425_v23 = vmul.f32 0.0078125, %v4364_v2 }
 0x2b7   : > { %v1388_v38 = vsel %vm1342_vm1, %v17165_v10, %v16221_v22  ;;  %v1258_v10 = vadd.f32 %v1184_v0, %v1055_v55  ;;  %v17168_v22 = vrot.slane %v11908_v37, 6  ;;  %v17169_v30 = vrot.slane %v11634_v48, 6 }
 0x2b8   : > { %v17170_v63 = vrot.slane %v11923_v52, 7  ;;  %v17171_v25 = vrot.slane %v11643_v8, 7  ;;  %v17172_v18 = vrot.slane %v11982_v34, 2  ;;  %v17173_v16 = vrot.slane %v11725_v21, 2  ;;  %v17181_v21 = vld [vmem:[#allocation32_spill] sm:$0xff] }
 0x2b9   : > { %v3623_v61 = vsel %vm3173_vm5, %v17169_v30, %v17168_v22  ;;  %v16230_v2 = vrot.slane %v12033_v42, 3  ;;  %v3495_v0 = vadd.f32 %v3420_v45, %v3292_v9  ;;  %v1462_v55 = vadd.f32 %v1388_v38, %v1258_v10 }
 0x2ba   : > { %v3827_v51 = vsel %vm3783_vm6, %v17171_v25, %v17170_v63  ;;  %v1591_v13 = vsel %vm1342_vm1, %v17173_v16, %v17172_v18  ;;  %v16229_v48 = vrot.slane %v12037_v32, 3  ;;  %v17174_v30 = vrot.slane %v11994_v24, 2  ;;  %v17176_v16 = vld [vmem:[#allocation28_spill] sm:$0xff] }
 0x2bb   : > { %v17175_v8 = vrot.slane %v11731_v39, 2  ;;  %v16228_v63 = vrot.slane %v12055_v62, 4  ;;  %v12099_v45 = vsub.f32 %v17176_v16, %v11872_v11  ;;  %v3698_v38 = vadd.f32 %v3623_v61, %v3495_v0 }
 0x2bc   : > { %v17178_v9 = vrot.slane %v11978_v14, 7  ;;  %v17179_v10 = vrot.slane %v11657_v40, 7  ;;  %v1665_v39 = vadd.f32 %v1591_v13, %v1462_v55  ;;  %v12112_v18 = vsub.f32 %v17181_v21, %v4425_v23 }
 0x2bd   : > { %v1794_v25 = vsel %vm1342_vm1, %v17175_v8, %v17174_v30  ;;  %17177 = vst [vmem:[#allocation28_spill] sm:$0xff] %v12099_v45  ;;  %v17180_v30 = vrot.slane %v11760_v54, 7  ;;  %v17183_v11 = vrot.slane %v11775_v28, 3  ;;  %v12121_v40 = vmul.f32 %v11833_v12, %v11062_v50 }
 0x2be   : > { %v4030_v22 = vsel %vm3783_vm6, %v17179_v10, %v17178_v9  ;;  %17182 = vst [vmem:[#allocation32_spill] sm:$0xff] %v12112_v18  ;;  %v3902_v13 = vadd.f32 %v3827_v51, %v3698_v38  ;;  %v1868_v0 = vadd.f32 %v1794_v25, %v1665_v39  ;;  %v17184_v54 = vrot.slane %v11790_v3, 3 }
 0x2bf   : > { %v4233_v8 = vsel %vm3783_vm6, %v17180_v30, %v16231_v31  ;;  %v1998_v61 = vsel %vm1952_vm2, %v17183_v11, %v16230_v2  ;;  %v17185_v23 = vrot.slane %v12041_v20, 4  ;;  %v17186_v21 = vrot.slane %v11799_v43, 4 }
 0x2c0   : > { %v2201_v55 = vsel %vm1952_vm2, %v17184_v54, %v16229_v48  ;;  %v17187_v16 = vrot.slane %v11803_v26, 4  ;;  %v17188_v51 = vrot.slane %v12059_v56, 5  ;;  %v17189_v25 = vrot.slane %v11812_v15, 5  ;;  %v17197_v48 = vld [vmem:[#allocation24_spill] sm:$0xff] }
 0x2c1   : > { %v2405_v28 = vsel %vm2359_vm3, %v17186_v21, %v17185_v23  ;;  %v17190_v38 = vrot.slane %v12068_v44, 5  ;;  %v17191_v10 = vrot.slane %v11821_v41, 5  ;;  %v12150_v39 = vmul.f32 %v11866_v35, %v17071_v33 }
 0x2c2   : > { %v2608_v9 = vsel %vm2359_vm3, %v17187_v16, %v16228_v63  ;;  %v2812_v3 = vsel %vm2766_vm4, %v17189_v25, %v17188_v51  ;;  %v4105_v30 = vadd.f32 %v4030_v22, %v3902_v13  ;;  %v2072_v26 = vadd.f32 %v1998_v61, %v1868_v0  ;;  %v17192_v51 = vld [vmem:[#allocation56_spill] sm:$0xff] }
 0x2c3   : > { %v3015_v43 = vsel %vm2766_vm4, %v17191_v10, %v17190_v38  ;;  %v12154_v11 = vmul.f32 %v11904_v60, %v17117_v29  ;;  %v12158_v15 = vmul.f32 %v11919_v1, %v11062_v50  ;;  %v12163_v41 = vmul.f32 %v11974_v17, %v17071_v33  ;;  %v17193_v38 = vld [vmem:[#allocation52_spill] sm:$0xff]  ;;  %v17194_v10 = vld [vmem:[#allocation57_spill] sm:$0xff] }
 0x2c4   : > { %v12167_v23 = vmul.f32 %v12000_v49, %v17117_v29  ;;  %v479_v22 = vmul.f32 %v11663_v7, %v17071_v33  ;;  %v4308_v61 = vadd.f32 %v4233_v8, %v4105_v30  ;;  %v2275_v13 = vadd.f32 %v2201_v55, %v2072_v26  ;;  %v17195_v55 = vld [vmem:[#allocation17_spill] sm:$0xff]  ;;  %v17198_v49 = vld [vmem:[#allocation42_spill] sm:$0xff] }
 0x2c5   : > { %v548_v0 = vmul.f32 %v11933_v58, %v17117_v29  ;;  %v617_v50 = vmul.f32 %v11940_v19, %v17153_v27  ;;  %v12178_v16 = vmul.f32 %v11690_v6, %v17117_v29  ;;  %v12182_v25 = vmul.f32 %v17192_v51, %v17153_v27 }
 0x2c6   : > { %v12186_v8 = vmul.f32 %v17194_v10, %v17193_v38  ;;  %v12189_v30 = vadd.f32 %v17195_v55, %v4308_v61  ;;  %v2479_v26 = vadd.f32 %v2405_v28, %v2275_v13  ;;  %v12193_v2 = vmul.f32 %v17197_v48, %v17117_v29  ;;  %v17200_v55 = vld [vmem:[#allocation55_spill] sm:$0xff] }
 0x2c7   : > { %v580_v63 = vadd.f32 %v548_v0, %v479_v22  ;;  %v16238_v31 = vrot.slane %v12178_v16, 1  ;;  %v12200_v17 = vmul.f32 %v17198_v49, %v17153_v27  ;;  %v4488_v28 = vmul.f32 %v12099_v45, %v12099_v45  ;;  %v17206_v45 = vld [vmem:[#allocation31_spill] sm:$0xff] }
 0x2c8   : > { %17196 = vst [vmem:[#allocation56_spill] sm:$0xff] %v12189_v30  ;;  %4397 = vadd.xlane.f32.xlu0 %v12189_v30  ;;  %v2682_v61 = vadd.f32 %v2608_v9, %v2479_v26  ;;  %v17201_v21 = vrot.slane %v17200_v55, 1  ;;  %v17202_v49 = vrot.slane %v12182_v25, 1  ;;  %v17203_v48 = vrot.slane %v11955_v5, 1  ;;  %v17204_v26 = vld [vmem:[#allocation58_spill] sm:$0xff] }
 0x2c9   : > { %17199 = vst [vmem:[#allocation52_spill] sm:$0xff] %v12200_v17  ;;  %v649_v22 = vadd.f32 %v617_v50, %v580_v63  ;;  %v12219_v30 = vmul.f32 %v17204_v26, %v17193_v38  ;;  %v17205_v55 = vrot.slane %v12121_v40, 6  ;;  %v17208_v5 = vrot.slane %v12186_v8, 1  ;;  %v4366_v50 = vpop.xlane.xlu0 %4365 }
 0x2ca   : > { %v780_v54 = vsel %vm732_vm0, %v17201_v21, %v16238_v31  ;;  %v983_v9 = vsel %vm732_vm0, %v17203_v48, %v17202_v49  ;;  %v2886_v63 = vadd.f32 %v2812_v3, %v2682_v61  ;;  %v17207_v21 = vrot.slane %v17206_v45, 6 }
 0x2cb   : > { %v853_v13 = vadd.f32 %v780_v54, %v649_v22  ;;  %v17209_v49 = vrot.slane %v11964_v46, 1  ;;  %v16240_v26 = vrot.slane %v12200_v17, 2  ;;  %v12236_v3 = vmul.f32 %v11771_v47, %v17117_v29 }
 0x2cc   : > { %v3219_v31 = vsel %vm3173_vm5, %v17207_v21, %v17205_v55  ;;  %v3089_v61 = vadd.f32 %v3015_v43, %v2886_v63  ;;  %v17210_v54 = vrot.slane %v12150_v39, 6  ;;  %v17211_v22 = vrot.slane %v11870_v36, 6  ;;  %4522 = vadd.xlane.f32.xlu0 %v4488_v28  ;;  %v17214_v36 = vld [vmem:[#allocation60_spill] sm:$0xff] }
 0x2cd   : > { %v1186_v48 = vsel %vm732_vm0, %v17209_v49, %v17208_v5  ;;  %v1056_v55 = vadd.f32 %v983_v9, %v853_v13  ;;  %v17212_v21 = vrot.slane %v12193_v2, 2  ;;  %v17213_v46 = vrot.slane %v11968_v53, 2  ;;  %v17215_v53 = vld [vmem:[#allocation43_spill] sm:$0xff] }
 0x2ce   : > { %v3422_v45 = vsel %vm3173_vm5, %v17211_v22, %v17210_v54  ;;  %v12251_v0 = vmul.f32 %v11786_v59, %v17153_v27  ;;  %v12255_v43 = vmul.f32 %v11795_v4, %v17117_v29  ;;  %v12259_v28 = vmul.f32 %v17214_v36, %v17153_v27  ;;  %v17216_v54 = vld [vmem:[#allocation61_spill] sm:$0xff] }
 0x2cf   : > { %v1390_v5 = vsel %vm1342_vm1, %v17213_v46, %v17212_v21  ;;  %v3293_v13 = vadd.f32 %v3219_v31, %v3089_v61  ;;  %v1259_v9 = vadd.f32 %v1186_v48, %v1056_v55  ;;  %v12263_v63 = vmul.f32 %v17215_v53, %v17117_v29 }
 0x2d0   : > { %v12267_v22 = vmul.f32 %v17216_v54, %v17153_v27  ;;  %v17217_v21 = vrot.slane %v12154_v11, 6  ;;  %v17218_v46 = vrot.slane %v11908_v37, 6  ;;  %v17219_v31 = vrot.slane %v11982_v34, 2 }
 0x2d1   : > { %v16246_v61 = vrot.slane %v12236_v3, 3  ;;  %v3496_v55 = vadd.f32 %v3422_v45, %v3293_v13  ;;  %v17220_v54 = vrot.slane %v12158_v15, 7  ;;  %v17221_v53 = vrot.slane %v11923_v52, 7 }
 0x2d2   : > { %v3625_v49 = vsel %vm3173_vm5, %v17218_v46, %v17217_v21  ;;  %v1593_v48 = vsel %vm1342_vm1, %v17219_v31, %v16240_v26  ;;  %v17222_v37 = vrot.slane %v12163_v41, 7  ;;  %v17223_v21 = vrot.slane %v11978_v14, 7 }
 0x2d3   : > { %v3829_v36 = vsel %vm3783_vm6, %v17221_v53, %v17220_v54  ;;  %v1463_v17 = vadd.f32 %v1390_v5, %v1259_v9  ;;  %v17224_v34 = vrot.slane %v12219_v30, 2  ;;  %v17225_v31 = vrot.slane %v11994_v24, 2 }
 0x2d4   : > { %v4032_v46 = vsel %vm3783_vm6, %v17223_v21, %v17222_v37  ;;  %v16245_v13 = vrot.slane %v12251_v0, 3  ;;  %v16244_v52 = vrot.slane %v12255_v43, 4  ;;  %v16243_v53 = vrot.slane %v12259_v28, 4 }
 0x2d5   : > { %v1796_v45 = vsel %vm1342_vm1, %v17225_v31, %v17224_v34  ;;  %v3699_v54 = vadd.f32 %v3625_v49, %v3496_v55  ;;  %v1666_v26 = vadd.f32 %v1593_v48, %v1463_v17  ;;  %v16242_v14 = vrot.slane %v12263_v63, 5 }
 0x2d6   : > { %v16241_v37 = vrot.slane %v12267_v22, 5  ;;  %v17226_v5 = vrot.slane %v12167_v23, 7  ;;  %v17227_v9 = vrot.slane %v12004_v57, 7  ;;  %v12306_v21 = vmul.f32 0.0078125, %v4366_v50 }
 0x2d7   : > { %v17228_v34 = vrot.slane %v12033_v42, 3  ;;  %v12315_v17 = vmul.f32 %v11833_v12, %v17071_v33  ;;  %v3903_v49 = vadd.f32 %v3829_v36, %v3699_v54  ;;  %v4489_v48 = vmul.f32 %v12112_v18, %v12112_v18 }
 0x2d8   : > { %v4235_v24 = vsel %vm3783_vm6, %v17227_v9, %v17226_v5  ;;  %v1869_v55 = vadd.f32 %v1796_v45, %v1666_v26  ;;  %v12321_v57 = vmul.f32 %v11866_v35, %v17117_v29  ;;  %v17229_v50 = vrot.slane %v12037_v32, 3 }
 0x2d9   : > { %v2000_v31 = vsel %vm1952_vm2, %v17228_v34, %v16246_v61  ;;  %v17230_v5 = vrot.slane %v12041_v20, 4  ;;  %v17231_v26 = vrot.slane %v12055_v62, 4  ;;  %v12340_v54 = vmul.f32 %v11904_v60, %v17153_v27  ;;  %v17240_v61 = vld [vmem:[#allocation42_spill] sm:$0xff] }
 0x2da   : > { %v2203_v42 = vsel %vm1952_vm2, %v17229_v50, %v16245_v13  ;;  %v4106_v9 = vadd.f32 %v4032_v46, %v3903_v49  ;;  %v2073_v32 = vadd.f32 %v2000_v31, %v1869_v55  ;;  %v17233_v34 = vrot.slane %v12059_v56, 5 }
 0x2db   : > { %v2407_v36 = vsel %vm2359_vm3, %v17230_v5, %v16244_v52  ;;  %v2610_v45 = vsel %vm2359_vm3, %v17231_v26, %v16243_v53  ;;  %17232 = vst [vmem:[#allocation57_spill] sm:$0xff] %v12340_v54  ;;  %v17234_v50 = vrot.slane %v12068_v44, 5  ;;  %v12355_v26 = vmul.f32 %v11919_v1, %v17071_v33 }
 0x2dc   : > { %v2814_v20 = vsel %vm2766_vm4, %v17233_v34, %v16242_v14  ;;  %v480_v46 = vmul.f32 %v11663_v7, %v17117_v29  ;;  %v549_v56 = vmul.f32 %v11933_v58, %v17153_v27  ;;  %v4309_v31 = vadd.f32 %v4235_v24, %v4106_v9  ;;  %v12376_v24 = vld [vmem:[%s15876_s2] ss:$0 sm:$0xff] }
 0x2dd   : > { %v3017_v62 = vsel %vm2766_vm4, %v17234_v50, %v16241_v37  ;;  %v2276_v49 = vadd.f32 %v2203_v42, %v2073_v32  ;;  %v618_v44 = vmul.f32 %v11940_v19, %v17193_v38  ;;  %v12367_v33 = vmul.f32 %v11690_v6, %v17153_v27  ;;  %v17238_v32 = vld [vmem:[#allocation54_spill] sm:$0xff] }
 0x2de   : > { %v581_v50 = vadd.f32 %v549_v56, %v480_v46  ;;  %v12371_v37 = vmul.f32 %v17192_v51, %v17193_v38  ;;  %v12379_v42 = vadd.f32 %v12376_v24, %v4309_v31  ;;  %v12383_v46 = vmul.f32 %v17194_v10, %v17238_v32  ;;  %v17239_v56 = vld [vmem:[#allocation24_spill] sm:$0xff]  ;;  %v17245_v31 = vld [vmem:[#allocation58_spill] sm:$0xff] }
 0x2df   : > { %17235 = vst [vmem:[#allocation17_spill] sm:$0xff] %v12367_v33  ;;  %v2480_v9 = vadd.f32 %v2407_v36, %v2276_v49  ;;  %v12387_v14 = vmul.f32 %v17239_v56, %v17153_v27  ;;  %v16250_v52 = vrot.slane %v12367_v33, 1  ;;  %v12393_v34 = vmul.f32 %v17240_v61, %v17193_v38  ;;  %v17242_v49 = vld [vmem:[#allocation20_spill] sm:$0xff] }
 0x2e0   : > { %17236 = vst [vmem:[#allocation55_spill] sm:$0xff] %v12371_v37  ;;  %17237 = vst [vmem:[#allocation31_spill] sm:$0xff] %v12379_v42  ;;  %v650_v53 = vadd.f32 %v618_v44, %v581_v50  ;;  %v16251_v13 = vrot.slane %v12371_v37, 1  ;;  %4399 = vadd.xlane.f32.xlu1 %v12379_v42  ;;  %v12399_v55 = vmul.f32 %v17242_v49, %v17117_v29  ;;  %v17243_v44 = vrot.slane %v12178_v16, 1 }
 0x2e1   : > { %17241 = vst [vmem:[#allocation54_spill] sm:$0xff] %v12393_v34  ;;  %v2683_v36 = vadd.f32 %v2610_v45, %v2480_v9  ;;  %v17244_v18 = vrot.slane %v12182_v25, 1  ;;  %v12415_v42 = vmul.f32 %v17245_v31, %v17238_v32  ;;  %v17246_v5 = vrot.slane %v12315_v17, 6 }
 0x2e2   : > { %v782_v50 = vsel %vm732_vm0, %v17243_v44, %v16250_v52  ;;  %v17247_v33 = vrot.slane %v12121_v40, 6  ;;  %v17248_v44 = vld [vmem:[#allocation59_spill] sm:$0xff]  ;;  %v17251_v37 = vrot.slane %v12383_v46, 1 }
 0x2e3   : > { %v985_v45 = vsel %vm732_vm0, %v17244_v18, %v16251_v13  ;;  %v2887_v61 = vadd.f32 %v2814_v20, %v2683_v36  ;;  %v12424_v52 = vmul.f32 %v17248_v44, %v17153_v27  ;;  %v854_v25 = vadd.f32 %v782_v50, %v650_v53 }
 0x2e4   : > { %v3221_v16 = vsel %vm3173_vm5, %v17247_v33, %v17246_v5  ;;  %v17249_v18 = vrot.slane %v12321_v57, 6  ;;  %v17250_v13 = vrot.slane %v12150_v39, 6  ;;  %v17252_v20 = vrot.slane %v12186_v8, 1  ;;  %4524 = vadd.xlane.f32.xlu1 %v4489_v48 }
 0x2e5   : > { %v12439_v5 = vmul.f32 %v11771_v47, %v17153_v27  ;;  %v3090_v53 = vadd.f32 %v3017_v62, %v2887_v61  ;;  %v17253_v33 = vrot.slane %v12340_v54, 6  ;;  %v17254_v39 = vrot.slane %v12154_v11, 6  ;;  %v17262_v54 = vld [vmem:[#allocation61_spill] sm:$0xff] }
 0x2e6   : > { %v3424_v9 = vsel %vm3173_vm5, %v17250_v13, %v17249_v18  ;;  %v1188_v36 = vsel %vm732_vm0, %v17252_v20, %v17251_v37  ;;  %v1057_v18 = vadd.f32 %v985_v45, %v854_v25  ;;  %v17255_v8 = vrot.slane %v12387_v14, 2  ;;  %v17257_v45 = vld [vmem:[#allocation60_spill] sm:$0xff] }
 0x2e7   : > { %v3627_v13 = vsel %vm3173_vm5, %v17254_v39, %v17253_v33  ;;  %v17256_v37 = vrot.slane %v12193_v2, 2  ;;  %v12455_v61 = vmul.f32 %v11786_v59, %v17193_v38  ;;  %v12459_v11 = vmul.f32 %v11795_v4, %v17153_v27  ;;  %v17258_v2 = vld [vmem:[#allocation43_spill] sm:$0xff] }
 0x2e8   : > { %v3294_v48 = vadd.f32 %v3221_v16, %v3090_v53  ;;  %v1260_v62 = vadd.f32 %v1188_v36, %v1057_v18  ;;  %v12463_v25 = vmul.f32 %v17257_v45, %v17193_v38  ;;  %v12467_v33 = vmul.f32 %v17258_v2, %v17153_v27  ;;  %v4368_v45 = vpop.xlane.xlu1 %4367 }
 0x2e9   : > { %v1392_v20 = vsel %vm1342_vm1, %v17256_v37, %v17255_v8  ;;  %v17259_v39 = vrot.slane %v12393_v34, 2  ;;  %v17260_v8 = vld [vmem:[#allocation52_spill] sm:$0xff]  ;;  %v12477_v16 = vmul.f32 %v17262_v54, %v17193_v38  ;;  %v12481_v36 = vmul.f32 %v11833_v12, %v17117_v29 }
 0x2ea   : > { %v17261_v37 = vrot.slane %v17260_v8, 2  ;;  %v3497_v53 = vadd.f32 %v3424_v9, %v3294_v48  ;;  %v17264_v18 = vrot.slane %v12355_v26, 7  ;;  %v17265_v2 = vrot.slane %v12158_v15, 7 }
 0x2eb   : > { %17263 = vst [vmem:[#allocation24_spill] sm:$0xff] %v12481_v36  ;;  %v17267_v50 = vrot.slane %v12163_v41, 7  ;;  %v17268_v12 = vrot.slane %v12415_v42, 2  ;;  %v17269_v9 = vrot.slane %v12219_v30, 2  ;;  %v16259_v15 = vrot.slane %v12455_v61, 3 }
 0x2ec   : > { %v1595_v40 = vsel %vm1342_vm1, %v17261_v37, %v17259_v39  ;;  %v3831_v34 = vsel %vm3783_vm6, %v17265_v2, %v17264_v18  ;;  %v1464_v39 = vadd.f32 %v1392_v20, %v1260_v62  ;;  %v17266_v37 = vrot.slane %v12399_v55, 7 }
 0x2ed   : > { %v1798_v48 = vsel %vm1342_vm1, %v17269_v9, %v17268_v12  ;;  %v16258_v2 = vrot.slane %v12459_v11, 4  ;;  %v3700_v18 = vadd.f32 %v3627_v13, %v3497_v53  ;;  %v16257_v20 = vrot.slane %v12463_v25, 4 }
 0x2ee   : > { %v4034_v54 = vsel %vm3783_vm6, %v17267_v50, %v17266_v37  ;;  %v1667_v8 = vadd.f32 %v1595_v40, %v1464_v39  ;;  %v17270_v41 = vrot.slane %v12439_v5, 3  ;;  %v17271_v50 = vrot.slane %v12236_v3, 3  ;;  %v17272_v40 = vld [vmem:[#allocation16_spill] sm:$0xff] }
 0x2ef   : > { %v12512_v9 = vmul.f32 %v11866_v35, %v17153_v27  ;;  %v12516_v13 = vsub.f32 %v17272_v40, %v12306_v21  ;;  %v3904_v53 = vadd.f32 %v3831_v34, %v3700_v18  ;;  %v12518_v39 = vmul.f32 0.0078125, %v4368_v45 }
 0x2f0   : > { %v2002_v37 = vsel %vm1952_vm2, %v17271_v50, %v17270_v41  ;;  %v1870_v62 = vadd.f32 %v1798_v48, %v1667_v8  ;;  %v17274_v3 = vrot.slane %v12424_v52, 7  ;;  %v17275_v41 = vrot.slane %v12167_v23, 7 }
 0x2f1   : > { %17273 = vst [vmem:[#allocation20_spill] sm:$0xff] %v12516_v13  ;;  %v17276_v12 = vrot.slane %v12251_v0, 3  ;;  %v17277_v21 = vrot.slane %v12255_v43, 4  ;;  %v12537_v45 = vmul.f32 %v11904_v60, %v17193_v38  ;;  %v4107_v8 = vadd.f32 %v4034_v54, %v3904_v53 }
 0x2f2   : > { %v4237_v50 = vsel %vm3783_vm6, %v17275_v41, %v17274_v3  ;;  %v2074_v23 = vadd.f32 %v2002_v37, %v1870_v62  ;;  %v17279_v48 = vrot.slane %v12259_v28, 4  ;;  %v17280_v18 = vrot.slane %v12467_v33, 5 }
 0x2f3   : > { %v2205_v30 = vsel %vm1952_vm2, %v17276_v12, %v16259_v15  ;;  %v2409_v34 = vsel %vm2359_vm3, %v17277_v21, %v16258_v2  ;;  %17278 = vst [vmem:[#allocation52_spill] sm:$0xff] %v12537_v45  ;;  %v17281_v12 = vrot.slane %v12263_v63, 5  ;;  %v17282_v40 = vrot.slane %v12477_v16, 5  ;;  %v17290_v2 = vld [vmem:[#allocation17_spill] sm:$0xff] }
 0x2f4   : > { %v2612_v0 = vsel %vm2359_vm3, %v17279_v48, %v16257_v20  ;;  %v17283_v3 = vrot.slane %v12267_v22, 5  ;;  %v17284_v54 = vrot.slane %v12481_v36, 6  ;;  %v17285_v62 = vrot.slane %v12315_v17, 6  ;;  %v17288_v20 = vld [vmem:[#allocation42_spill] sm:$0xff] }
 0x2f5   : > { %v2816_v43 = vsel %vm2766_vm4, %v17281_v12, %v17280_v18  ;;  %v12562_v53 = vmul.f32 %v11919_v1, %v17117_v29  ;;  %v4310_v63 = vadd.f32 %v4237_v50, %v4107_v8  ;;  %v2277_v21 = vadd.f32 %v2205_v30, %v2074_v23 }
 0x2f6   : > { %v3019_v41 = vsel %vm2766_vm4, %v17283_v3, %v17282_v40  ;;  %v3223_v28 = vsel %vm3173_vm5, %v17285_v62, %v17284_v54  ;;  %v481_v48 = vmul.f32 %v11663_v7, %v17153_v27  ;;  %v550_v22 = vmul.f32 %v11933_v58, %v17193_v38  ;;  %v17287_v3 = vld [vmem:[#allocation11_spill] sm:$0xff] }
 0x2f7   : > { %v12571_v17 = vmul.f32 %v17242_v49, %v17153_v27  ;;  %v619_v12 = vmul.f32 %v11940_v19, %v17238_v32  ;;  %v12577_v29 = vmul.f32 %v11690_v6, %v17193_v38  ;;  %v12580_v30 = vadd.f32 %v12376_v24, %v4310_v63 }
 0x2f8   : > { %v2481_v50 = vadd.f32 %v2409_v34, %v2277_v21  ;;  %v582_v8 = vadd.f32 %v550_v22, %v481_v48  ;;  %v12584_v23 = vmul.f32 %v17192_v51, %v17238_v32  ;;  %v12589_v54 = vmul.f32 %v17194_v10, %v17287_v3 }
 0x2f9   : > { %17286 = vst [vmem:[#allocation16_spill] sm:$0xff] %v12580_v30  ;;  %v16263_v40 = vrot.slane %v12577_v29, 1  ;;  %v12593_v62 = vmul.f32 %v17239_v56, %v17193_v38  ;;  %v12597_v63 = vmul.f32 %v17288_v20, %v17238_v32  ;;  %4401 = vadd.xlane.f32.xlu0 %v12580_v30  ;;  %v4490_v21 = vmul.f32 %v12516_v13, %v12516_v13 }
 0x2fa   : > { %v2684_v34 = vadd.f32 %v2612_v0, %v2481_v50  ;;  %v651_v48 = vadd.f32 %v619_v12, %v582_v8  ;;  %v16266_v22 = vrot.slane %v12584_v23, 1  ;;  %v17291_v15 = vrot.slane %v17290_v2, 1  ;;  %v17292_v8 = vld [vmem:[#allocation55_spill] sm:$0xff]  ;;  %v17304_v50 = vld [vmem:[#allocation54_spill] sm:$0xff] }
 0x2fb   : > { %17289 = vst [vmem:[#allocation11_spill] sm:$0xff] %v12597_v63  ;;  %v16265_v37 = vrot.slane %v12589_v54, 1  ;;  %v12612_v30 = vmul.f32 %v17245_v31, %v17287_v3  ;;  %v17293_v13 = vrot.slane %v17292_v8, 1  ;;  %v17296_v31 = vrot.slane %v12383_v46, 1 }
 0x2fc   : > { %v784_v18 = vsel %vm732_vm0, %v17291_v15, %v16263_v40  ;;  %v2888_v0 = vadd.f32 %v2816_v43, %v2684_v34  ;;  %v17294_v15 = vrot.slane %v12512_v9, 6  ;;  %v17295_v40 = vrot.slane %v12321_v57, 6 }
 0x2fd   : > { %v855_v12 = vadd.f32 %v784_v18, %v651_v48  ;;  %v987_v2 = vsel %vm732_vm0, %v17293_v13, %v16266_v22  ;;  %v1190_v43 = vsel %vm732_vm0, %v17296_v31, %v16265_v37  ;;  %v16270_v18 = vrot.slane %v12597_v63, 2  ;;  %4526 = vadd.xlane.f32.xlu0 %v4490_v21  ;;  %v17299_v21 = vld [vmem:[#allocation60_spill] sm:$0xff] }
 0x2fe   : > { %v3426_v36 = vsel %vm3173_vm5, %v17295_v40, %v17294_v15  ;;  %v12633_v34 = vmul.f32 %v11771_v47, %v17193_v38  ;;  %v3091_v48 = vadd.f32 %v3019_v41, %v2888_v0  ;;  %v12638_v57 = vmul.f32 %v17248_v44, %v17193_v38 }
 0x2ff   : > { %v1058_v40 = vadd.f32 %v987_v2, %v855_v12  ;;  %v17297_v8 = vrot.slane %v12593_v62, 2  ;;  %v17298_v46 = vrot.slane %v12387_v14, 2  ;;  %v12648_v37 = vmul.f32 %v11786_v59, %v17238_v32  ;;  %v17300_v14 = vld [vmem:[#allocation43_spill] sm:$0xff] }
 0x300   : > { %v12652_v41 = vmul.f32 %v11795_v4, %v17193_v38  ;;  %v3295_v0 = vadd.f32 %v3223_v28, %v3091_v48  ;;  %v12656_v12 = vmul.f32 %v17299_v21, %v17238_v32  ;;  %v12660_v2 = vmul.f32 %v17300_v14, %v17193_v38  ;;  %v17306_v48 = vld [vmem:[#allocation61_spill] sm:$0xff] }
 0x301   : > { %v1394_v31 = vsel %vm1342_vm1, %v17298_v46, %v17297_v8  ;;  %v1261_v22 = vadd.f32 %v1190_v43, %v1058_v40  ;;  %v17301_v8 = vrot.slane %v12537_v45, 6  ;;  %v17302_v46 = vld [vmem:[#allocation57_spill] sm:$0xff]  ;;  %v17305_v4 = vrot.slane %v17304_v50, 2 }
 0x302   : > { %v17303_v13 = vrot.slane %v17302_v46, 6  ;;  %v12675_v40 = vmul.f32 %v17306_v48, %v17238_v32  ;;  %v17307_v14 = vld [vmem:[#allocation25_spill] sm:$0xff]  ;;  %v3498_v45 = vadd.f32 %v3426_v36, %v3295_v0  ;;  %v17309_v46 = vrot.slane %v12562_v53, 7 }
 0x303   : > { %v1597_v28 = vsel %vm1342_vm1, %v17305_v4, %v16270_v18  ;;  %v12679_v21 = vsub.f32 %v17307_v14, %v12518_v39  ;;  %v1465_v50 = vadd.f32 %v1394_v31, %v1261_v22  ;;  %v16275_v4 = vrot.slane %v12638_v57, 7  ;;  %v4370_v18 = vpop.xlane.xlu0 %4369 }
 0x304   : > { %v3629_v15 = vsel %vm3173_vm5, %v17303_v13, %v17301_v8  ;;  %v17310_v13 = vrot.slane %v12355_v26, 7  ;;  %v17311_v43 = vrot.slane %v12612_v30, 2  ;;  %v17312_v63 = vrot.slane %v12415_v42, 2 }
 0x305   : > { %17308 = vst [vmem:[#allocation17_spill] sm:$0xff] %v12679_v21  ;;  %v16274_v39 = vrot.slane %v12648_v37, 3  ;;  %v3701_v0 = vadd.f32 %v3629_v15, %v3498_v45  ;;  %v1668_v14 = vadd.f32 %v1597_v28, %v1465_v50  ;;  %v16273_v26 = vrot.slane %v12656_v12, 4  ;;  %v17317_v45 = vld [vmem:[#allocation21_spill] sm:$0xff] }
 0x306   : > { %v3833_v8 = vsel %vm3783_vm6, %v17310_v13, %v17309_v46  ;;  %v1800_v48 = vsel %vm1342_vm1, %v17312_v63, %v17311_v43  ;;  %v17313_v22 = vrot.slane %v12571_v17, 7  ;;  %v17314_v31 = vrot.slane %v12399_v55, 7 }
 0x307   : > { %v17315_v42 = vrot.slane %v12633_v34, 3  ;;  %v17316_v63 = vrot.slane %v12439_v5, 3  ;;  %v16272_v36 = vrot.slane %v12675_v40, 5  ;;  %v12709_v15 = vmul.f32 %v17317_v45, %v17153_v27 }
 0x308   : > { %v4036_v13 = vsel %vm3783_vm6, %v17314_v31, %v17313_v22  ;;  %v3905_v28 = vadd.f32 %v3833_v8, %v3701_v0  ;;  %v12711_v50 = vmul.f32 0.0078125, %v4370_v18  ;;  %v1871_v46 = vadd.f32 %v1800_v48, %v1668_v14 }
 0x309   : > { %v2004_v43 = vsel %vm1952_vm2, %v17316_v63, %v17315_v42  ;;  %17318 = vst [vmem:[#allocation55_spill] sm:$0xff] %v12709_v15  ;;  %v17319_v55 = vrot.slane %v12424_v52, 7  ;;  %v4491_v5 = vmul.f32 %v12679_v21, %v12679_v21  ;;  %v17320_v31 = vrot.slane %v12455_v61, 3 }
 0x30a   : > { %v17321_v8 = vrot.slane %v12652_v41, 4  ;;  %v17322_v18 = vrot.slane %v12459_v11, 4  ;;  %v4108_v0 = vadd.f32 %v4036_v13, %v3905_v28  ;;  %v2075_v14 = vadd.f32 %v2004_v43, %v1871_v46 }
 0x30b   : > { %v4239_v22 = vsel %vm3783_vm6, %v17319_v55, %v16275_v4  ;;  %v2207_v42 = vsel %vm1952_vm2, %v17320_v31, %v16274_v39  ;;  %v17323_v52 = vrot.slane %v12463_v25, 4  ;;  %v17324_v55 = vrot.slane %v12660_v2, 5 }
 0x30c   : > { %v2411_v48 = vsel %vm2359_vm3, %v17322_v18, %v17321_v8  ;;  %v17325_v61 = vrot.slane %v12467_v33, 5  ;;  %v17326_v11 = vrot.slane %v12477_v16, 5  ;;  %v12748_v13 = vmul.f32 %v11866_v35, %v17193_v38 }
 0x30d   : > { %v2614_v63 = vsel %vm2359_vm3, %v17323_v52, %v16273_v26  ;;  %v12752_v25 = vmul.f32 %v11904_v60, %v17238_v32  ;;  %v4311_v43 = vadd.f32 %v4239_v22, %v4108_v0  ;;  %v2278_v33 = vadd.f32 %v2207_v42, %v2075_v14  ;;  %v17329_v14 = vld [vmem:[#allocation14_spill] sm:$0xff] }
 0x30e   : > { %v2818_v31 = vsel %vm2766_vm4, %v17325_v61, %v17324_v55  ;;  %v3021_v8 = vsel %vm2766_vm4, %v17326_v11, %v16272_v36  ;;  %v12756_v28 = vmul.f32 %v11919_v1, %v17153_v27  ;;  %v482_v16 = vmul.f32 %v11663_v7, %v17193_v38 }
 0x30f   : > { %17327 = vst [vmem:[#allocation57_spill] sm:$0xff] %v12752_v25  ;;  %v12762_v18 = vmul.f32 %v17242_v49, %v17193_v38  ;;  %v551_v52 = vmul.f32 %v11933_v58, %v17238_v32  ;;  %v620_v55 = vmul.f32 %v11940_v19, %v17287_v3  ;;  %v12770_v22 = vmul.f32 %v11690_v6, %v17238_v32 }
 0x310   : > { %v12773_v27 = vadd.f32 %v12376_v24, %v4311_v43  ;;  %v2482_v42 = vadd.f32 %v2411_v48, %v2278_v33  ;;  %v12777_v0 = vmul.f32 %v17192_v51, %v17287_v3  ;;  %v12781_v61 = vmul.f32 %v17194_v10, %v17329_v14 }
 0x311   : > { %v583_v36 = vadd.f32 %v551_v52, %v482_v16  ;;  %v16280_v26 = vrot.slane %v12770_v22, 1  ;;  %v12787_v39 = vmul.f32 %v17239_v56, %v17238_v32  ;;  %v12794_v4 = vmul.f32 %v17288_v20, %v17287_v3 }
 0x312   : > { %17328 = vst [vmem:[#allocation54_spill] sm:$0xff] %v12773_v27  ;;  %4403 = vadd.xlane.f32.xlu1 %v12773_v27  ;;  %v2685_v48 = vadd.f32 %v2614_v63, %v2482_v42  ;;  %v12798_v16 = vmul.f32 %v17248_v44, %v17238_v32  ;;  %v17331_v11 = vrot.slane %v12577_v29, 1  ;;  %v17332_v63 = vld [vmem:[#allocation58_spill] sm:$0xff]  ;;  %v17333_v43 = vrot.slane %v12709_v15, 6  ;;  %v17334_v27 = vld [vmem:[#allocation24_spill] sm:$0xff] }
 0x313   : > { %17330 = vst [vmem:[#allocation25_spill] sm:$0xff] %v12794_v4  ;;  %v652_v52 = vadd.f32 %v620_v55, %v583_v36  ;;  %v12807_v42 = vmul.f32 %v17332_v63, %v17329_v14  ;;  %v17335_v21 = vrot.slane %v17334_v27, 6  ;;  %v17336_v44 = vrot.slane %v12777_v0, 1 }
 0x314   : > { %v786_v46 = vsel %vm732_vm0, %v17331_v11, %v16280_v26  ;;  %v2889_v33 = vadd.f32 %v2818_v31, %v2685_v48  ;;  %v17337_v36 = vrot.slane %v12584_v23, 1  ;;  %v16282_v29 = vrot.slane %v12787_v39, 2 }
 0x315   : > { %v3225_v20 = vsel %vm3173_vm5, %v17335_v21, %v17333_v43  ;;  %v16284_v11 = vrot.slane %v12752_v25, 6  ;;  %v856_v48 = vadd.f32 %v786_v46, %v652_v52  ;;  %v17338_v27 = vrot.slane %v12781_v61, 1 }
 0x316   : > { %v989_v55 = vsel %vm732_vm0, %v17337_v36, %v17336_v44  ;;  %4528 = vadd.xlane.f32.xlu1 %v4491_v5  ;;  %v3092_v15 = vadd.f32 %v3021_v8, %v2889_v33  ;;  %v17339_v21 = vrot.slane %v12589_v54, 1  ;;  %v12831_v44 = vmul.f32 %v11771_v47, %v17238_v32 }
 0x317   : > { %v17340_v36 = vrot.slane %v12748_v13, 6  ;;  %v17341_v26 = vrot.slane %v12512_v9, 6  ;;  %v1059_v5 = vadd.f32 %v989_v55, %v856_v48  ;;  %v12841_v54 = vmul.f32 %v11786_v59, %v17287_v3  ;;  %v17344_v9 = vld [vmem:[#allocation60_spill] sm:$0xff] }
 0x318   : > { %v1192_v43 = vsel %vm732_vm0, %v17339_v21, %v17338_v27  ;;  %v3296_v33 = vadd.f32 %v3225_v20, %v3092_v15  ;;  %v17342_v52 = vrot.slane %v12593_v62, 2  ;;  %v17343_v21 = vld [vmem:[#allocation33_spill] sm:$0xff]  ;;  %v17345_v55 = vld [vmem:[#allocation52_spill] sm:$0xff] }
 0x319   : > { %v3428_v46 = vsel %vm3173_vm5, %v17341_v26, %v17340_v36  ;;  %v12850_v31 = vmul.f32 %v17343_v21, %v17238_v32  ;;  %v12854_v26 = vmul.f32 %v17344_v9, %v17287_v3  ;;  %v17346_v48 = vrot.slane %v17345_v55, 6  ;;  %v17347_v36 = vld [vmem:[#allocation43_spill] sm:$0xff] }
 0x31a   : > { %v1396_v27 = vsel %vm1342_vm1, %v17342_v52, %v16282_v29  ;;  %v1262_v15 = vadd.f32 %v1192_v43, %v1059_v5  ;;  %v12863_v62 = vmul.f32 %v17347_v36, %v17238_v32  ;;  %v17348_v52 = vld [vmem:[#allocation61_spill] sm:$0xff]  ;;  %v3499_v8 = vadd.f32 %v3428_v46, %v3296_v33  ;;  %v17350_v21 = vld [vmem:[#allocation11_spill] sm:$0xff]  ;;  %v4372_v36 = vpop.xlane.xlu1 %4371 }
 0x31b   : > { %v3631_v20 = vsel %vm3173_vm5, %v17346_v48, %v16284_v11  ;;  %v12867_v29 = vmul.f32 %v17348_v52, %v17287_v3  ;;  %v17349_v9 = vrot.slane %v12794_v4, 2  ;;  %v17351_v25 = vrot.slane %v17350_v21, 2 }
 0x31c   : > { %v17352_v43 = vrot.slane %v12756_v28, 7  ;;  %v17353_v5 = vrot.slane %v12562_v53, 7  ;;  %v17354_v52 = vrot.slane %v12762_v18, 7  ;;  %v17355_v46 = vrot.slane %v12571_v17, 7 }
 0x31d   : > { %v1599_v55 = vsel %vm1342_vm1, %v17351_v25, %v17349_v9  ;;  %v1466_v23 = vadd.f32 %v1396_v27, %v1262_v15  ;;  %v16289_v4 = vrot.slane %v12841_v54, 3  ;;  %v3702_v21 = vadd.f32 %v3631_v20, %v3499_v8  ;;  %v17358_v8 = vld [vmem:[#allocation40_spill] sm:$0xff] }
 0x31e   : > { %v3835_v11 = vsel %vm3783_vm6, %v17353_v5, %v17352_v43  ;;  %v4038_v33 = vsel %vm3783_vm6, %v17355_v46, %v17354_v52  ;;  %v17356_v25 = vrot.slane %v12807_v42, 2  ;;  %v17357_v9 = vrot.slane %v12612_v30, 2 }
 0x31f   : > { %v16288_v53 = vrot.slane %v12850_v31, 4  ;;  %v16287_v43 = vrot.slane %v12854_v26, 4  ;;  %v1669_v5 = vadd.f32 %v1599_v55, %v1466_v23  ;;  %v16286_v17 = vrot.slane %v12863_v62, 5 }
 0x320   : > { %v1802_v48 = vsel %vm1342_vm1, %v17357_v9, %v17356_v25  ;;  %v12898_v27 = vmul.f32 %v17317_v45, %v17193_v38  ;;  %v12902_v20 = vsub.f32 %v17358_v8, %v12711_v50  ;;  %v3906_v30 = vadd.f32 %v3835_v11, %v3702_v21 }
 0x321   : > { %v17360_v15 = vrot.slane %v12831_v44, 3  ;;  %v17361_v46 = vrot.slane %v12633_v34, 3  ;;  %v12911_v23 = vmul.f32 %v11866_v35, %v17238_v32  ;;  %v17362_v55 = vrot.slane %v12798_v16, 7 }
 0x322   : > { %17359 = vst [vmem:[#allocation21_spill] sm:$0xff] %v12902_v20  ;;  %v17363_v45 = vrot.slane %v12638_v57, 7  ;;  %v12918_v52 = vmul.f32 0.0078125, %v4372_v36  ;;  %v1872_v50 = vadd.f32 %v1802_v48, %v1669_v5  ;;  %v17364_v11 = vrot.slane %v12648_v37, 3 }
 0x323   : > { %v2006_v25 = vsel %vm1952_vm2, %v17361_v46, %v17360_v15  ;;  %v4109_v21 = vadd.f32 %v4038_v33, %v3906_v30  ;;  %v17365_v8 = vrot.slane %v12652_v41, 4  ;;  %v17366_v57 = vrot.slane %v12656_v12, 4 }
 0x324   : > { %v4241_v9 = vsel %vm3783_vm6, %v17363_v45, %v17362_v55  ;;  %v2209_v34 = vsel %vm1952_vm2, %v17364_v11, %v16289_v4  ;;  %v12937_v48 = vmul.f32 %v11904_v60, %v17287_v3  ;;  %v2076_v37 = vadd.f32 %v2006_v25, %v1872_v50 }
 0x325   : > { %v2413_v15 = vsel %vm2359_vm3, %v17365_v8, %v16288_v53  ;;  %v2616_v36 = vsel %vm2359_vm3, %v17366_v57, %v16287_v43  ;;  %v17367_v33 = vrot.slane %v12660_v2, 5  ;;  %v17368_v41 = vrot.slane %v12867_v29, 5  ;;  %v17373_v43 = vld [vmem:[#allocation59_spill] sm:$0xff] }
 0x326   : > { %v17369_v30 = vrot.slane %v12675_v40, 5  ;;  %v16292_v12 = vrot.slane %v12898_v27, 6  ;;  %v4312_v55 = vadd.f32 %v4241_v9, %v4109_v21  ;;  %v12953_v25 = vmul.f32 %v11919_v1, %v17193_v38 }
 0x327   : > { %v2820_v5 = vsel %vm2766_vm4, %v17367_v33, %v16286_v17  ;;  %v12957_v2 = vmul.f32 %v17242_v49, %v17238_v32  ;;  %v2279_v50 = vadd.f32 %v2209_v34, %v2076_v37  ;;  %v483_v11 = vmul.f32 %v11663_v7, %v17238_v32  ;;  %v17371_v37 = vld [vmem:[#allocation15_spill] sm:$0xff] }
 0x328   : > { %v3023_v46 = vsel %vm2766_vm4, %v17369_v30, %v17368_v41  ;;  %v552_v40 = vmul.f32 %v11933_v58, %v17287_v3  ;;  %v621_v9 = vmul.f32 %v11940_v19, %v17329_v14  ;;  %v12966_v21 = vadd.f32 %v12376_v24, %v4312_v55 }
 0x329   : > { %v12971_v8 = vmul.f32 %v11690_v6, %v17287_v3  ;;  %v12975_v34 = vmul.f32 %v17192_v51, %v17329_v14  ;;  %v2483_v7 = vadd.f32 %v2413_v15, %v2279_v50  ;;  %v12979_v33 = vmul.f32 %v17194_v10, %v17371_v37  ;;  %v17372_v15 = vld [vmem:[#allocation42_spill] sm:$0xff] }
 0x32a   : > { %17370 = vst [vmem:[#allocation14_spill] sm:$0xff] %v12966_v21  ;;  %v584_v57 = vadd.f32 %v552_v40, %v483_v11  ;;  %v12983_v41 = vmul.f32 %v17239_v56, %v17287_v3  ;;  %4405 = vadd.xlane.f32.xlu0 %v12966_v21  ;;  %v4492_v6 = vmul.f32 %v12902_v20, %v12902_v20  ;;  %v17374_v4 = vrot.slane %v12770_v22, 1 }
 0x32b   : > { %v16291_v30 = vrot.slane %v12971_v8, 1  ;;  %v16294_v55 = vrot.slane %v12975_v34, 1  ;;  %v12992_v50 = vmul.f32 %v17372_v15, %v17329_v14  ;;  %v2686_v11 = vadd.f32 %v2616_v36, %v2483_v7  ;;  %v17376_v15 = vld [vmem:[#allocation55_spill] sm:$0xff] }
 0x32c   : > { %v653_v40 = vadd.f32 %v621_v9, %v584_v57  ;;  %v12997_v56 = vmul.f32 %v17332_v63, %v17371_v37  ;;  %v13001_v53 = vmul.f32 %v17373_v43, %v17287_v3  ;;  %v17375_v36 = vrot.slane %v12777_v0, 1 }
 0x32d   : > { %v788_v38 = vsel %vm732_vm0, %v17374_v4, %v16291_v30  ;;  %v16293_v7 = vrot.slane %v12983_v41, 2  ;;  %v2890_v57 = vadd.f32 %v2820_v5, %v2686_v11  ;;  %v17377_v45 = vrot.slane %v17376_v15, 6  ;;  %v4374_v4 = vpop.xlane.xlu0 %4373 }
 0x32e   : > { %v991_v9 = vsel %vm732_vm0, %v17375_v36, %v16294_v55  ;;  %v857_v22 = vadd.f32 %v788_v38, %v653_v40  ;;  %4530 = vadd.xlane.f32.xlu0 %v4492_v6  ;;  %v17378_v30 = vrot.slane %v12979_v33, 1  ;;  %v17379_v0 = vrot.slane %v12781_v61, 1 }
 0x32f   : > { %v3227_v17 = vsel %vm3173_vm5, %v17377_v45, %v16292_v12  ;;  %v16296_v5 = vrot.slane %v12992_v50, 2  ;;  %v13029_v11 = vmul.f32 %v11771_v47, %v17287_v3  ;;  %v3093_v15 = vadd.f32 %v3023_v46, %v2890_v57  ;;  %v17383_v46 = vld [vmem:[#allocation33_spill] sm:$0xff] }
 0x330   : > { %v1194_v36 = vsel %vm732_vm0, %v17379_v0, %v17378_v30  ;;  %v17380_v45 = vrot.slane %v12911_v23, 6  ;;  %v17381_v38 = vrot.slane %v12748_v13, 6  ;;  %v1060_v6 = vadd.f32 %v991_v9, %v857_v22  ;;  %v17384_v13 = vld [vmem:[#allocation60_spill] sm:$0xff] }
 0x331   : > { %v17382_v61 = vrot.slane %v12787_v39, 2  ;;  %v13044_v47 = vmul.f32 %v11786_v59, %v17329_v14  ;;  %v13048_v57 = vmul.f32 %v17383_v46, %v17287_v3  ;;  %v13052_v0 = vmul.f32 %v17384_v13, %v17329_v14  ;;  %v17386_v39 = vld [vmem:[#allocation61_spill] sm:$0xff] }
 0x332   : > { %v3430_v40 = vsel %vm3173_vm5, %v17381_v38, %v17380_v45  ;;  %v3297_v9 = vadd.f32 %v3227_v17, %v3093_v15  ;;  %v1263_v22 = vadd.f32 %v1194_v36, %v1060_v6  ;;  %v17385_v45 = vld [vmem:[#allocation43_spill] sm:$0xff]  ;;  %v17387_v59 = vrot.slane %v12937_v48, 6  ;;  %v17390_v17 = vld [vmem:[#allocation25_spill] sm:$0xff] }
 0x333   : > { %v1398_v30 = vsel %vm1342_vm1, %v17382_v61, %v16293_v7  ;;  %v13056_v38 = vmul.f32 %v17385_v45, %v17287_v3  ;;  %v13060_v61 = vmul.f32 %v17386_v39, %v17329_v14  ;;  %v17388_v7 = vld [vmem:[#allocation57_spill] sm:$0xff]  ;;  %v17391_v36 = vrot.slane %v17390_v17, 2  ;;  %v17392_v45 = vld [vmem:[#allocation35_spill] sm:$0xff] }
 0x334   : > { %v17389_v55 = vrot.slane %v17388_v7, 6  ;;  %v16302_v6 = vrot.slane %v13029_v11, 3  ;;  %v13076_v12 = vsub.f32 %v17392_v45, %v12918_v52  ;;  %v3500_v20 = vadd.f32 %v3430_v40, %v3297_v9 }
 0x335   : > { %v1601_v15 = vsel %vm1342_vm1, %v17391_v36, %v16296_v5  ;;  %v17394_v21 = vrot.slane %v12953_v25, 7  ;;  %v17395_v7 = vrot.slane %v12756_v28, 7  ;;  %v17396_v39 = vrot.slane %v12997_v56, 2 }
 0x336   : > { %v3633_v46 = vsel %vm3173_vm5, %v17389_v55, %v17387_v59  ;;  %17393 = vst [vmem:[#allocation58_spill] sm:$0xff] %v13076_v12  ;;  %v1467_v59 = vadd.f32 %v1398_v30, %v1263_v22  ;;  %v17397_v17 = vrot.slane %v12807_v42, 2  ;;  %v16301_v5 = vrot.slane %v13044_v47, 3 }
 0x337   : > { %v3837_v55 = vsel %vm3783_vm6, %v17395_v7, %v17394_v21  ;;  %v16300_v52 = vrot.slane %v13048_v57, 4  ;;  %v16299_v40 = vrot.slane %v13052_v0, 4  ;;  %v3703_v9 = vadd.f32 %v3633_v46, %v3500_v20 }
 0x338   : > { %v1804_v36 = vsel %vm1342_vm1, %v17397_v17, %v17396_v39  ;;  %v1670_v45 = vadd.f32 %v1601_v15, %v1467_v59  ;;  %v16298_v28 = vrot.slane %v13056_v38, 5  ;;  %v16297_v21 = vrot.slane %v13060_v61, 5  ;;  %v13111_v15 = vld [vmem:[%s15875_s1] ss:$0 sm:$0xff] }
 0x339   : > { %v17398_v30 = vrot.slane %v12957_v2, 7  ;;  %v17399_v22 = vrot.slane %v12762_v18, 7  ;;  %v17400_v39 = vrot.slane %v13001_v53, 7  ;;  %v17401_v7 = vrot.slane %v12798_v16, 7 }
 0x33a   : > { %v17402_v20 = vrot.slane %v12831_v44, 3  ;;  %v13115_v18 = vmul.f32 %v13111_v15, %v17238_v32  ;;  %v3907_v59 = vadd.f32 %v3837_v55, %v3703_v9  ;;  %v4493_v16 = vmul.f32 %v13076_v12, %v13076_v12 }
 0x33b   : > { %v4040_v42 = vsel %vm3783_vm6, %v17399_v22, %v17398_v30  ;;  %v4243_v17 = vsel %vm3783_vm6, %v17401_v7, %v17400_v39  ;;  %v13117_v30 = vmul.f32 0.0078125, %v4374_v4  ;;  %v1873_v22 = vadd.f32 %v1804_v36, %v1670_v45 }
 0x33c   : > { %v2008_v46 = vsel %vm1952_vm2, %v17402_v20, %v16302_v6  ;;  %v17403_v44 = vrot.slane %v12841_v54, 3  ;;  %v17404_v7 = vrot.slane %v12850_v31, 4  ;;  %v17405_v4 = vrot.slane %v12854_v26, 4 }
 0x33d   : > { %v13138_v36 = vmul.f32 %v11866_v35, %v17287_v3  ;;  %v4110_v9 = vadd.f32 %v4040_v42, %v3907_v59  ;;  %v2077_v54 = vadd.f32 %v2008_v46, %v1873_v22  ;;  %v17406_v45 = vrot.slane %v12863_v62, 5  ;;  %v13162_v62 = vld [vmem:[%s15875_s1 + $0x2] ss:$0 sm:$0xff] }
 0x33e   : > { %v2211_v39 = vsel %vm1952_vm2, %v17403_v44, %v16301_v5  ;;  %v2415_v20 = vsel %vm2359_vm3, %v17404_v7, %v16300_v52  ;;  %v2618_v55 = vsel %vm2359_vm3, %v17405_v4, %v16299_v40  ;;  %v17407_v44 = vrot.slane %v12867_v29, 5 }
 0x33f   : > { %v2822_v31 = vsel %vm2766_vm4, %v17406_v45, %v16298_v28  ;;  %v16308_v7 = vrot.slane %v13115_v18, 6  ;;  %v13153_v35 = vmul.f32 %v11904_v60, %v17329_v14  ;;  %v13157_v42 = vmul.f32 %v11919_v1, %v17238_v32  ;;  %v13174_v1 = vld [vmem:[%s15875_s1 + $0x3] ss:$0 sm:$0xff]  ;;  %v13194_v45 = vld [vmem:[%s15875_s1 + $0x4] ss:$0 sm:$0xff] }
 0x340   : > { %v3025_v26 = vsel %vm2766_vm4, %v17407_v44, %v16297_v21  ;;  %v484_v29 = vmul.f32 %v13162_v62, %v17287_v3  ;;  %v4313_v46 = vadd.f32 %v4243_v17, %v4110_v9  ;;  %v2280_v59 = vadd.f32 %v2211_v39, %v2077_v54  ;;  %v17408_v39 = vld [vmem:[#allocation13_spill] sm:$0xff]  ;;  %17410 = vst [vmem:[#allocation52_spill] sm:$0xff] %v13194_v45 }
 0x341   : > { %v553_v22 = vmul.f32 %v11933_v58, %v17329_v14  ;;  %v622_v60 = vmul.f32 %v11940_v19, %v17371_v37  ;;  %v16306_v4 = vrot.slane %v13138_v36, 6  ;;  %v13178_v32 = vmul.f32 %v13174_v1, %v17329_v14 }
 0x342   : > { %v13182_v17 = vmul.f32 %v17192_v51, %v17371_v37  ;;  %v13186_v58 = vmul.f32 %v17194_v10, %v17408_v39  ;;  %v13189_v19 = vadd.f32 %v12376_v24, %v4313_v46  ;;  %v2484_v9 = vadd.f32 %v2415_v20, %v2280_v59  ;;  %v13206_v20 = vld [vmem:[%s15875_s1 + $0xc] ss:$0 sm:$0xff] }
 0x343   : > { %v585_v54 = vadd.f32 %v553_v22, %v484_v29  ;;  %v13198_v44 = vmul.f32 %v13194_v45, %v17329_v14  ;;  %v16310_v51 = vrot.slane %v13178_v32, 1  ;;  %v13210_v29 = vmul.f32 %v13206_v20, %v17371_v37 }
 0x344   : > { %17409 = vst [vmem:[#allocation24_spill] sm:$0xff] %v13189_v19  ;;  %v16309_v21 = vrot.slane %v13182_v17, 1  ;;  %v16303_v10 = vrot.slane %v13186_v58, 1  ;;  %4407 = vadd.xlane.f32.xlu1 %v13189_v19  ;;  %v2687_v46 = vadd.f32 %v2618_v55, %v2484_v9  ;;  %v16304_v59 = vrot.slane %v13153_v35, 6 }
 0x345   : > { %v13216_v22 = vmul.f32 %v17242_v49, %v17287_v3  ;;  %v654_v28 = vadd.f32 %v622_v60, %v585_v54  ;;  %v17411_v40 = vrot.slane %v12971_v8, 1  ;;  %v17412_v5 = vrot.slane %v12975_v34, 1 }
 0x346   : > { %v16305_v55 = vrot.slane %v13198_v44, 2  ;;  %v13231_v9 = vmul.f32 %v17332_v63, %v17408_v39  ;;  %v2891_v49 = vadd.f32 %v2822_v31, %v2687_v46  ;;  %v16311_v60 = vrot.slane %v13157_v42, 7 }
 0x347   : > { %v790_v52 = vsel %vm732_vm0, %v17411_v40, %v16310_v51  ;;  %v993_v6 = vsel %vm732_vm0, %v17412_v5, %v16309_v21  ;;  %v13236_v8 = vmul.f32 %v17373_v43, %v17329_v14  ;;  %v17413_v34 = vrot.slane %v12898_v27, 6  ;;  %v13252_v43 = vld [vmem:[%s15875_s1 + $0x5] ss:$0 sm:$0xff]  ;;  %v6943_v51 = vld [vmem:[%s15877_s3] ss:$8 sps:$4 sm:$0xff]  }
 0x348   : > { %v858_v40 = vadd.f32 %v790_v52, %v654_v28  ;;  %v17414_v54 = vrot.slane %v12979_v33, 1  ;;  %v16307_v31 = vrot.slane %v13210_v29, 2  ;;  %v13256_v52 = vmul.f32 %v13252_v43, %v17329_v14  ;;  %4532 = vadd.xlane.f32.xlu1 %v4493_v16  ;;  %v6941_v21 = vld [vmem:[%s15877_s3 + $0x4] ss:$8 sps:$4 sm:$0xff]  }
 0x349   : > { %v3229_v5 = vsel %vm3173_vm5, %v17413_v34, %v16308_v7  ;;  %v3094_v27 = vadd.f32 %v3025_v26, %v2891_v49  ;;  %v17415_v28 = vrot.slane %v12911_v23, 6  ;;  %v16312_v46 = vrot.slane %v13216_v22, 7  ;;  %v13278_v23 = vld [vmem:[%s15875_s1 + $0xd] ss:$0 sm:$0xff]  ;;  %4908 = vmatprep.subr.bf16.mxu0 %v6941_v21 }
 0x34a   : > { %v1196_v63 = vsel %vm732_vm0, %v17414_v54, %v16303_v10  ;;  %v1061_v34 = vadd.f32 %v993_v6, %v858_v40  ;;  %v17416_v54 = vrot.slane %v12937_v48, 6  ;;  %v17417_v16 = vrot.slane %v12983_v41, 2  ;;  %v4376_v40 = vpop.xlane.xlu1 %4375  ;;  %v13287_v41 = vld [vmem:[%s15875_s1 + $0x6] ss:$0 sm:$0xff]  ;;  %4909 = vmatpush1.bf16.msra.mxu0 %v6943_v51  ;;  %v17427_v21 = vld [vmem:[#allocation38_spill] sm:$0xff] }
 0x34b   : > { %v3432_v33 = vsel %vm3173_vm5, %v17415_v28, %v16306_v4  ;;  %v16313_v49 = vrot.slane %v13231_v9, 2  ;;  %v13282_v6 = vmul.f32 %v13278_v23, %v17371_v37  ;;  %v3298_v48 = vadd.f32 %v3229_v5, %v3094_v27  ;;  %17418 = vst [vmem:[#allocation11_spill] sm:$0xff] %v13287_v41  ;;  %v13306_v27 = vld [vmem:[%s15875_s1 + $0x7] ss:$0 sm:$0xff] }
 0x34c   : > { %v3635_v10 = vsel %vm3173_vm5, %v17416_v54, %v16304_v59  ;;  %v1400_v26 = vsel %vm1342_vm1, %v17417_v16, %v16305_v55  ;;  %v1264_v28 = vadd.f32 %v1196_v63, %v1061_v34  ;;  %v13291_v54 = vmul.f32 %v13287_v41, %v17329_v14  ;;  %17420 = vst [vmem:[#allocation40_spill] sm:$0xff] %v13306_v27  ;;  %v6947_v51 = vld [vmem:[%s15877_s3 + $0x24] ss:$8 sps:$4 sm:$0xff]  }
 0x34d   : > { %v13295_v16 = vmul.f32 %v17384_v13, %v17371_v37  ;;  %v17419_v59 = vrot.slane %v12992_v50, 2  ;;  %v13310_v34 = vmul.f32 %v13306_v27, %v17329_v14  ;;  %v17421_v13 = vld [vmem:[#allocation61_spill] sm:$0xff]  ;;  %v3501_v4 = vadd.f32 %v3432_v33, %v3298_v48 }
 0x34e   : > { %v13314_v55 = vmul.f32 %v17421_v13, %v17371_v37  ;;  %v17422_v50 = vrot.slane %v12953_v25, 7  ;;  %v1468_v7 = vadd.f32 %v1400_v26, %v1264_v28  ;;  %v17423_v33 = vrot.slane %v12957_v2, 7 }
 0x34f   : > { %v1603_v5 = vsel %vm1342_vm1, %v17419_v59, %v16307_v31  ;;  %v4431_v25 = vmul.f32 0.0078125, %v4376_v40  ;;  %v17424_v13 = vrot.slane %v12997_v56, 2  ;;  %v16314_v28 = vrot.slane %v13282_v6, 3 }
 0x350   : > { %v3839_v59 = vsel %vm3783_vm6, %v17422_v50, %v16311_v60  ;;  %v4042_v48 = vsel %vm3783_vm6, %v17423_v33, %v16312_v46  ;;  %v6944_v50 = vld [vmem:[%s15877_s3 + $0x14] ss:$8 sps:$4 sm:$0xff]   ;;  %v3704_v60 = vadd.f32 %v3635_v10, %v3501_v4  ;;  %v1671_v31 = vadd.f32 %v1603_v5, %v1468_v7  ;;  %v6946_v7 = vld [vmem:[%s15877_s3 + $0x10] ss:$8 sps:$4 sm:$0xff]   ;;  %v13365_v5 = vld [vmem:[%s15875_s1 + $0x8] ss:$0 sm:$0xff] }
 0x351   : > { %v1806_v26 = vsel %vm1342_vm1, %v17424_v13, %v16313_v49  ;;  %v16317_v63 = vrot.slane %v13291_v54, 4  ;;  %v16316_v2 = vrot.slane %v13295_v16, 4  ;;  %v17425_v40 = vrot.slane %v13256_v52, 3  ;;  %4910 = vmatprep.subr.bf16.mxu0 %v6944_v50  ;;  %v13390_v50 = vld [vmem:[%s15875_s1 + $0x10] ss:$0 sm:$0xff] }
 0x352   : > { %v17426_v33 = vrot.slane %v13029_v11, 3  ;;  %v16315_v13 = vrot.slane %v13310_v34, 5  ;;  %v13353_v49 = vmul.f32 %v13111_v15, %v17287_v3  ;;  %v13360_v4 = vsub.f32 %v17427_v21, %v13117_v30  ;;  %4911 = vmatpush1.bf16.msra.mxu0 %v6946_v7  ;;  %v13439_v7 = vld [vmem:[%s15875_s1 + $0xa] ss:$0 sm:$0xff] }
 0x353   : > { %v3908_v11 = vadd.f32 %v3839_v59, %v3704_v60  ;;  %v1874_v10 = vadd.f32 %v1806_v26, %v1671_v31  ;;  %v17430_v30 = vrot.slane %v13001_v53, 7  ;;  %v17431_v31 = vld [vmem:[#allocation22_spill] sm:$0xff]  ;;  %v17433_v26 = vrot.slane %v13044_v47, 3  ;;  %4912 = vmatprep.subr.bf16.mxu0 %v6947_v51 }
 0x354   : > { %v2010_v56 = vsel %vm1952_vm2, %v17426_v33, %v17425_v40  ;;  %17428 = vst [vmem:[#allocation15_spill] sm:$0xff] %v13360_v4  ;;  %v13369_v40 = vmul.f32 %v13365_v5, %v17329_v14  ;;  %v17429_v33 = vrot.slane %v13236_v8, 7  ;;  %v13380_v59 = vsub.f32 %v17431_v31, %v4431_v25 }
 0x355   : > { %v2213_v21 = vsel %vm1952_vm2, %v17433_v26, %v16314_v28  ;;  %v13394_v46 = vmul.f32 %v13390_v50, %v17371_v37  ;;  %v4111_v53 = vadd.f32 %v4042_v48, %v3908_v11  ;;  %v17435_v25 = vrot.slane %v13048_v57, 4  ;;  %v6952_v11 = vld [vmem:[%s15877_s3 + $0x30] ss:$8 sps:$4 sm:$0xff]  }
 0x356   : > { %v4245_v60 = vsel %vm3783_vm6, %v17430_v30, %v17429_v33  ;;  %17432 = vst [vmem:[#allocation42_spill] sm:$0xff] %v13380_v59  ;;  %v2078_v33 = vadd.f32 %v2010_v56, %v1874_v10  ;;  %v17436_v47 = vrot.slane %v13052_v0, 4  ;;  %v17437_v26 = vrot.slane %v13056_v38, 5  ;;  %v13420_v0 = vld [vmem:[%s15875_s1 + $0x1] ss:$0 sm:$0xff] }
 0x357   : > { %17434 = vst [vmem:[#allocation59_spill] sm:$0xff] %v13394_v46  ;;  %v2417_v30 = vsel %vm2359_vm3, %v17435_v25, %v16317_v63  ;;  %v17438_v48 = vrot.slane %v13314_v55, 5  ;;  %v17439_v56 = vrot.slane %v13060_v61, 5  ;;  %v13424_v10 = vmul.f32 %v13420_v0, %v17287_v3  ;;  %v6949_v38 = vld [vmem:[%s15877_s3 + $0x20] ss:$8 sps:$4 sm:$0xff]   ;;  %v17444_v3 = vld [vmem:[#allocation44_spill] sm:$0xff] }
 0x358   : > { %v2620_v31 = vsel %vm2359_vm3, %v17436_v47, %v16316_v2  ;;  %v2824_v28 = vsel %vm2766_vm4, %v17437_v26, %v16315_v13  ;;  %v4314_v25 = vadd.f32 %v4245_v60, %v4111_v53  ;;  %v2281_v61 = vadd.f32 %v2213_v21, %v2078_v33  ;;  %v13446_v21 = vld [vmem:[%s15875_s1 + $0x12] ss:$0 sm:$0xff]  ;;  %v13460_v13 = vld [vmem:[%s15875_s1 + $0xb] ss:$0 sm:$0xff]  ;;  %v13469_v63 = vld [vmem:[%s15875_s1 + $0x13] ss:$0 sm:$0xff]  ;;  %4913 = vmatpush1.bf16.msra.mxu0 %v6949_v38 }
 0x359   : > { %v3027_v57 = vsel %vm2766_vm4, %v17439_v56, %v17438_v48  ;;  %17440 = vst [vmem:[#allocation55_spill] sm:$0xff] %v13424_v10  ;;  %v485_v26 = vmul.f32 %v13162_v62, %v17329_v14  ;;  %v6950_v48 = vld [vmem:[%s15877_s3 + $0x34] ss:$8 sps:$4 sm:$0xff]   ;;  %v554_v60 = vmul.f32 %v13439_v7, %v17371_v37  ;;  %v623_v51 = vmul.f32 %v13446_v21, %v17408_v39 }
 0x35a   : > { %v13452_v53 = vmul.f32 %v13174_v1, %v17371_v37  ;;  %v13455_v33 = vadd.f32 %v12376_v24, %v4314_v25  ;;  %v2485_v56 = vadd.f32 %v2417_v30, %v2281_v61  ;;  %v13464_v2 = vmul.f32 %v13460_v13, %v17408_v39  ;;  %17443 = vst [vmem:[#allocation43_spill] sm:$0xff] %v13469_v63 }
 0x35b   : > { %v13473_v47 = vmul.f32 %v13469_v63, %v17444_v3  ;;  %v4494_v24 = vmul.f32 %v13360_v4, %v13360_v4  ;;  %v586_v30 = vadd.f32 %v554_v60, %v485_v26  ;;  %v13480_v61 = vmul.f32 %v13194_v45, %v17371_v37  ;;  %4914 = vmatprep.subr.bf16.mxu0 %v6950_v48  ;;  %v6953_v48 = vld [vmem:[%s15877_s3 + $0x44] ss:$8 sps:$4 sm:$0xff]  }
 0x35c   : > { %17441 = vst [vmem:[#allocation33_spill] sm:$0xff] %v13455_v33  ;;  %17442 = vst [vmem:[#allocation60_spill] sm:$0xff] %v13464_v2  ;;  %v16324_v25 = vrot.slane %v13452_v53, 1  ;;  %4409 = vadd.xlane.f32.xlu0 %v13455_v33  ;;  %v2688_v12 = vadd.f32 %v2620_v31, %v2485_v56  ;;  %v16328_v19 = vrot.slane %v13464_v2, 1  ;;  %v13490_v26 = vmul.f32 %v13206_v20, %v17408_v39  ;;  %v13501_v31 = vld [vmem:[%s15875_s1 + $0x14] ss:$0 sm:$0xff] }
 0x35d   : > { %v655_v60 = vadd.f32 %v623_v51, %v586_v30  ;;  %v17445_v38 = vrot.slane %v13178_v32, 1  ;;  %17446 = vst [vmem:[#allocation57_spill] sm:$0xff] %v13501_v31  ;;  %v13505_v56 = vmul.f32 %v13501_v31, %v17444_v3  ;;  %v13514_v30 = vld [vmem:[%s15875_s1 + $0x9] ss:$0 sm:$0xff]  ;;  %v17449_v63 = vrot.slane %v13353_v49, 6  ;;  %4915 = vmatpush1.bf16.msra.mxu0 %v6952_v11 }
 0x35e   : > { %v2892_v51 = vadd.f32 %v2824_v28, %v2688_v12  ;;  %17447 = vst [vmem:[#allocation25_spill] sm:$0xff] %v13514_v30  ;;  %v17450_v12 = vrot.slane %v13115_v18, 6  ;;  %v17451_v32 = vrot.slane %v13369_v40, 6  ;;  %v17452_v33 = vrot.slane %v13138_v36, 6  ;;  %v13538_v2 = vld [vmem:[%s15875_s1 + $0x11] ss:$0 sm:$0xff]  ;;  %4916 = vmatprep.subr.bf16.mxu0 %v6953_v48 }
 0x35f   : > { %v792_v4 = vsel %vm732_vm0, %v17445_v38, %v16324_v25  ;;  %v13518_v38 = vmul.f32 %v13514_v30, %v17329_v14  ;;  %v17448_v25 = vrot.slane %v13182_v17, 1  ;;  %v13542_v17 = vmul.f32 %v13538_v2, %v17371_v37  ;;  %v6955_v18 = vld [vmem:[%s15877_s3 + $0x40] ss:$8 sps:$4 sm:$0xff]  }
 0x360   : > { %v3231_v28 = vsel %vm3173_vm5, %v17450_v12, %v17449_v63  ;;  %v3434_v31 = vsel %vm3173_vm5, %v17452_v33, %v17451_v32  ;;  %v3095_v63 = vadd.f32 %v3027_v57, %v2892_v51  ;;  %4534 = vadd.xlane.f32.xlu0 %v4494_v24  ;;  %v17453_v36 = vrot.slane %v13473_v47, 1 }
 0x361   : > { %v995_v45 = vsel %vm732_vm0, %v17448_v25, %v16328_v19  ;;  %v859_v25 = vadd.f32 %v792_v4, %v655_v60  ;;  %v17454_v33 = vrot.slane %v13186_v58, 1  ;;  %v13555_v19 = vmul.f32 %v13252_v43, %v17371_v37  ;;  %v6956_v4 = vld [vmem:[%s15877_s3 + $0x54] ss:$8 sps:$4 sm:$0xff]   ;;  %v13596_v58 = vld [vmem:[%s15875_s1 + $0xf] ss:$0 sm:$0xff]  ;;  %4917 = vmatpush1.bf16.msra.mxu0 %v6955_v18 }
 0x362   : > { %v17455_v57 = vrot.slane %v13480_v61, 2  ;;  %v17456_v24 = vrot.slane %v13198_v44, 2  ;;  %v13568_v51 = vmul.f32 %v13278_v23, %v17408_v39  ;;  %v17458_v48 = vrot.slane %v13394_v46, 6  ;;  %17460 = vst [vmem:[#allocation13_spill] sm:$0xff] %v13596_v58  ;;  %4918 = vmatprep.subr.bf16.mxu0 %v6956_v4  ;;  %v6959_v18 = vld [vmem:[%s15877_s3 + $0x64] ss:$8 sps:$4 sm:$0xff]  }
 0x363   : > { %v1198_v32 = vsel %vm732_vm0, %v17454_v33, %v17453_v36  ;;  %v1062_v11 = vadd.f32 %v995_v45, %v859_v25  ;;  %v3299_v36 = vadd.f32 %v3231_v28, %v3095_v63  ;;  %v13572_v33 = vmul.f32 %v13287_v41, %v17371_v37  ;;  %v13577_v45 = vld [vmem:[%s15875_s1 + $0xe] ss:$0 sm:$0xff] }
 0x364   : > { %v1402_v60 = vsel %vm1342_vm1, %v17456_v24, %v17455_v57  ;;  %17457 = vst [vmem:[#allocation35_spill] sm:$0xff] %v13577_v45  ;;  %v13581_v44 = vmul.f32 %v13577_v45, %v17408_v39  ;;  %v13585_v25 = vmul.f32 %v13306_v27, %v17371_v37  ;;  %v17459_v28 = vrot.slane %v13153_v35, 6  ;;  %v6958_v27 = vld [vmem:[%s15877_s3 + $0x50] ss:$8 sps:$4 sm:$0xff]  }
 0x365   : > { %v1265_v24 = vadd.f32 %v1198_v32, %v1062_v11  ;;  %v13600_v12 = vmul.f32 %v13596_v58, %v17408_v39  ;;  %v3502_v35 = vadd.f32 %v3434_v31, %v3299_v36  ;;  %v17463_v11 = vrot.slane %v13490_v26, 2  ;;  %4919 = vmatpush1.bf16.msra.mxu0 %v6958_v27 }
 0x366   : > { %v3637_v63 = vsel %vm3173_vm5, %v17459_v28, %v17458_v48  ;;  %v17461_v48 = vrot.slane %v13424_v10, 7  ;;  %v17462_v28 = vrot.slane %v13157_v42, 7  ;;  %v17464_v57 = vrot.slane %v13210_v29, 2  ;;  %4920 = vmatprep.subr.bf16.mxu0 %v6959_v18 }
 0x367   : > { %v1469_v36 = vadd.f32 %v1402_v60, %v1265_v24  ;;  %v17465_v42 = vrot.slane %v13505_v56, 2  ;;  %v16338_v29 = vrot.slane %v13568_v51, 3  ;;  %v3705_v10 = vadd.f32 %v3637_v63, %v3502_v35  ;;  %v6961_v63 = vld [vmem:[%s15877_s3 + $0x60] ss:$8 sps:$4 sm:$0xff]  }
 0x368   : > { %v3841_v32 = vsel %vm3783_vm6, %v17462_v28, %v17461_v48  ;;  %v1605_v46 = vsel %vm1342_vm1, %v17464_v57, %v17463_v11  ;;  %v17466_v48 = vrot.slane %v13231_v9, 2  ;;  %v16337_v57 = vrot.slane %v13572_v33, 4 }
 0x369   : > { %v16336_v4 = vrot.slane %v13581_v44, 4  ;;  %v17467_v58 = vrot.slane %v13518_v38, 7  ;;  %v17468_v31 = vrot.slane %v13216_v22, 7  ;;  %v1672_v24 = vadd.f32 %v1605_v46, %v1469_v36  ;;  %v6962_v46 = vld [vmem:[%s15877_s3 + $0x74] ss:$8 sps:$4 sm:$0xff]   ;;  %4921 = vmatpush1.bf16.msra.mxu0 %v6961_v63 }
 0x36a   : > { %v1808_v28 = vsel %vm1342_vm1, %v17466_v48, %v17465_v42  ;;  %v16335_v9 = vrot.slane %v13600_v12, 5  ;;  %v3909_v35 = vadd.f32 %v3841_v32, %v3705_v10  ;;  %v17469_v42 = vrot.slane %v13555_v19, 3  ;;  %4922 = vmatprep.subr.bf16.mxu0 %v6962_v46 }
 0x36b   : > { %v4044_v60 = vsel %vm3783_vm6, %v17468_v31, %v17467_v58  ;;  %v17470_v48 = vrot.slane %v13256_v52, 3  ;;  %v13645_v22 = vmul.f32 %v13111_v15, %v17329_v14  ;;  %v17471_v27 = vrot.slane %v13542_v17, 7 }
 0x36c   : > { %v17472_v58 = vrot.slane %v13236_v8, 7  ;;  %v4495_v52 = vmul.f32 %v13380_v59, %v13380_v59  ;;  %v1875_v32 = vadd.f32 %v1808_v28, %v1672_v24  ;;  %v17473_v31 = vrot.slane %v13282_v6, 3  ;;  %v17485_v59 = vld [vmem:[#allocation57_spill] sm:$0xff] }
 0x36d   : > { %v2012_v11 = vsel %vm1952_vm2, %v17470_v48, %v17469_v42  ;;  %v4112_v36 = vadd.f32 %v4044_v60, %v3909_v35  ;;  %v17474_v42 = vrot.slane %v13291_v54, 4  ;;  %v17475_v8 = vrot.slane %v13295_v16, 4 }
 0x36e   : > { %v4247_v10 = vsel %vm3783_vm6, %v17472_v58, %v17471_v27  ;;  %v2215_v18 = vsel %vm1952_vm2, %v17473_v31, %v16338_v29  ;;  %v17476_v28 = vrot.slane %v13585_v25, 5  ;;  %v17477_v24 = vrot.slane %v13310_v34, 5  ;;  %v6964_v34 = vld [vmem:[%s15877_s3 + $0x70] ss:$8 sps:$4 sm:$0xff]  }
 0x36f   : > { %v2419_v48 = vsel %vm2359_vm3, %v17474_v42, %v16337_v57  ;;  %v2622_v27 = vsel %vm2359_vm3, %v17475_v8, %v16336_v4  ;;  %v2079_v58 = vadd.f32 %v2012_v11, %v1875_v32  ;;  %v17478_v60 = vrot.slane %v13314_v55, 5  ;;  %v17482_v4 = vld [vmem:[#allocation52_spill] sm:$0xff]  ;;  %4923 = vmatpush1.bf16.msra.mxu0 %v6964_v34 }
 0x370   : > { %v2826_v6 = vsel %vm2766_vm4, %v17477_v24, %v17476_v28  ;;  %v13684_v35 = vmul.f32 %v13365_v5, %v17371_v37  ;;  %v13688_v16 = vmul.f32 %v13390_v50, %v17408_v39  ;;  %v4315_v11 = vadd.f32 %v4247_v10, %v4112_v36  ;;  %v13711_v36 = vld [vmem:[%s15876_s2] ss:$0 sm:$0xff]  ;;  %v17481_v24 = vld [vmem:[#allocation43_spill] sm:$0xff] }
 0x371   : > { %v3029_v54 = vsel %vm2766_vm4, %v17478_v60, %v16335_v9  ;;  %v486_v55 = vmul.f32 %v13162_v62, %v17371_v37  ;;  %v555_v31 = vmul.f32 %v13439_v7, %v17408_v39  ;;  %v2282_v42 = vadd.f32 %v2215_v18, %v2079_v58  ;;  %v17480_v18 = vld [vmem:[#allocation53_spill] sm:$0xff] }
 0x372   : > { %v13700_v8 = vmul.f32 %v13420_v0, %v17329_v14  ;;  %v624_v63 = vmul.f32 %v13446_v21, %v17444_v3  ;;  %v13706_v10 = vmul.f32 %v13174_v1, %v17408_v39  ;;  %v13714_v28 = vadd.f32 %v13711_v36, %v4315_v11 }
 0x373   : > { %v587_v46 = vadd.f32 %v555_v31, %v486_v55  ;;  %v13718_v14 = vmul.f32 %v13460_v13, %v17444_v3  ;;  %v13722_v58 = vmul.f32 %v17481_v24, %v17480_v18  ;;  %v2486_v60 = vadd.f32 %v2419_v48, %v2282_v42 }
 0x374   : > { %17479 = vst [vmem:[#allocation61_spill] sm:$0xff] %v13714_v28  ;;  %v16343_v9 = vrot.slane %v13706_v10, 1  ;;  %v13727_v57 = vmul.f32 %v17482_v4, %v17408_v39  ;;  %v13731_v11 = vmul.f32 %v13206_v20, %v17444_v3  ;;  %4411 = vadd.xlane.f32.xlu1 %v13714_v28  ;;  %v13736_v55 = vmul.f32 %v13514_v30, %v17371_v37 }
 0x375   : > { %v656_v31 = vadd.f32 %v624_v63, %v587_v46  ;;  %v16344_v48 = vrot.slane %v13718_v14, 1  ;;  %v2689_v24 = vadd.f32 %v2622_v27, %v2486_v60  ;;  %v17484_v29 = vrot.slane %v13452_v53, 1  ;;  %v17486_v46 = vld [vmem:[#allocation60_spill] sm:$0xff] }
 0x376   : > { %17483 = vst [vmem:[#allocation38_spill] sm:$0xff] %v13731_v11  ;;  %v13748_v28 = vmul.f32 %v17485_v59, %v17480_v18  ;;  %v16345_v30 = vrot.slane %v13684_v35, 6  ;;  %v17487_v42 = vrot.slane %v17486_v46, 1  ;;  %v16346_v60 = vrot.slane %v13731_v11, 2 }
 0x377   : > { %v794_v32 = vsel %vm732_vm0, %v17484_v29, %v16343_v9  ;;  %v2893_v53 = vadd.f32 %v2826_v6, %v2689_v24  ;;  %v17488_v9 = vrot.slane %v13722_v58, 1  ;;  %v17489_v34 = vrot.slane %v13473_v47, 1 }
 0x378   : > { %v860_v63 = vadd.f32 %v794_v32, %v656_v31  ;;  %v997_v27 = vsel %vm732_vm0, %v17487_v42, %v16344_v48  ;;  %v13765_v32 = vmul.f32 %v13252_v43, %v17408_v39  ;;  %4536 = vadd.xlane.f32.xlu1 %v4495_v52  ;;  %v17490_v31 = vrot.slane %v13645_v22, 6 }
 0x379   : > { %v1200_v59 = vsel %vm732_vm0, %v17489_v34, %v17488_v9  ;;  %v17491_v42 = vrot.slane %v13353_v49, 6  ;;  %v13775_v24 = vmul.f32 %v13538_v2, %v17408_v39  ;;  %v3096_v48 = vadd.f32 %v3029_v54, %v2893_v53  ;;  %v4378_v53 = vpop.xlane.xlu0 %4377 }
 0x37a   : > { %v1063_v47 = vadd.f32 %v997_v27, %v860_v63  ;;  %v17492_v9 = vrot.slane %v13727_v57, 2  ;;  %v17493_v34 = vrot.slane %v13480_v61, 2  ;;  %v16351_v29 = vrot.slane %v13748_v28, 2 }
 0x37b   : > { %v3233_v46 = vsel %vm3173_vm5, %v17491_v42, %v17490_v31  ;;  %v13785_v49 = vmul.f32 %v13278_v23, %v17444_v3  ;;  %v17494_v31 = vrot.slane %v13369_v40, 6  ;;  %v17495_v61 = vrot.slane %v13490_v26, 2 }
 0x37c   : > { %v1404_v52 = vsel %vm1342_vm1, %v17493_v34, %v17492_v9  ;;  %v1266_v63 = vadd.f32 %v1200_v59, %v1063_v47  ;;  %v3300_v9 = vadd.f32 %v3233_v46, %v3096_v48  ;;  %v13801_v6 = vmul.f32 %v13287_v41, %v17408_v39  ;;  %v17497_v47 = vld [vmem:[#allocation59_spill] sm:$0xff]  ;;  %v17500_v46 = vld [vmem:[#allocation13_spill] sm:$0xff] }
 0x37d   : > { %v3436_v42 = vsel %vm3173_vm5, %v17494_v31, %v16345_v30  ;;  %v1607_v27 = vsel %vm1342_vm1, %v17495_v61, %v16346_v60  ;;  %v13805_v40 = vmul.f32 %v13577_v45, %v17444_v3  ;;  %v17496_v59 = vrot.slane %v13688_v16, 6  ;;  %v17499_v61 = vld [vmem:[#allocation40_spill] sm:$0xff] }
 0x37e   : > { %v17498_v31 = vrot.slane %v17497_v47, 6  ;;  %v1470_v30 = vadd.f32 %v1404_v52, %v1266_v63  ;;  %v13814_v48 = vmul.f32 %v17499_v61, %v17408_v39  ;;  %v13818_v60 = vmul.f32 %v17500_v46, %v17444_v3  ;;  %v17503_v63 = vld [vmem:[#allocation55_spill] sm:$0xff] }
 0x37f   : > { %v3503_v54 = vadd.f32 %v3436_v42, %v3300_v9  ;;  %v17501_v34 = vrot.slane %v13505_v56, 2  ;;  %v16356_v47 = vrot.slane %v13785_v49, 3  ;;  %v4432_v41 = vmul.f32 0.0078125, %v4378_v53 }
 0x380   : > { %v3639_v26 = vsel %vm3173_vm5, %v17498_v31, %v17496_v59  ;;  %v17502_v52 = vrot.slane %v13700_v8, 7  ;;  %v17504_v59 = vrot.slane %v17503_v63, 7  ;;  %v16357_v61 = vrot.slane %v13775_v24, 7 }
 0x381   : > { %v1810_v45 = vsel %vm1342_vm1, %v17501_v34, %v16351_v29  ;;  %v1673_v46 = vadd.f32 %v1607_v27, %v1470_v30  ;;  %v3706_v11 = vadd.f32 %v3639_v26, %v3503_v54  ;;  %v17505_v42 = vrot.slane %v13765_v32, 3 }
 0x382   : > { %v3843_v31 = vsel %vm3783_vm6, %v17504_v59, %v17502_v52  ;;  %v17506_v9 = vrot.slane %v13555_v19, 3  ;;  %v16355_v34 = vrot.slane %v13801_v6, 4  ;;  %v16354_v53 = vrot.slane %v13805_v40, 4 }
 0x383   : > { %v17507_v29 = vrot.slane %v13736_v55, 7  ;;  %v17508_v63 = vrot.slane %v13518_v38, 7  ;;  %v1876_v59 = vadd.f32 %v1810_v45, %v1673_v46  ;;  %v16353_v30 = vrot.slane %v13814_v48, 5  ;;  %v13859_v46 = vpop.xlane.xlu0 %4381 }
 0x384   : > { %v2014_v56 = vsel %vm1952_vm2, %v17506_v9, %v17505_v42  ;;  %v16352_v54 = vrot.slane %v13818_v60, 5  ;;  %v3910_v27 = vadd.f32 %v3843_v31, %v3706_v11  ;;  %v17509_v19 = vrot.slane %v13568_v51, 3  ;;  %v17510_v42 = vld [vmem:[#allocation23_spill] sm:$0xff] }
 0x385   : > { %v4046_v52 = vsel %vm3783_vm6, %v17508_v63, %v17507_v29  ;;  %v13852_v9 = vsub.f32 %v17510_v42, %v4432_v41  ;;  %v17512_v38 = vrot.slane %v13542_v17, 7  ;;  %v2080_v29 = vadd.f32 %v2014_v56, %v1876_v59  ;;  %v4380_v56 = vpop.xlane.xlu1 %4379 }
 0x386   : > { %v2217_v26 = vsel %vm1952_vm2, %v17509_v19, %v16356_v47  ;;  %v4113_v63 = vadd.f32 %v4046_v52, %v3910_v27  ;;  %v17513_v11 = vrot.slane %v13572_v33, 4  ;;  %v17514_v41 = vrot.slane %v13581_v44, 4 }
 0x387   : > { %17511 = vst [vmem:[#allocation22_spill] sm:$0xff] %v13852_v9  ;;  %v4249_v45 = vsel %vm3783_vm6, %v17512_v38, %v16357_v61  ;;  %v13873_v17 = vmul.f32 %v13111_v15, %v17371_v37  ;;  %v2283_v59 = vadd.f32 %v2217_v26, %v2080_v29  ;;  %v17515_v52 = vrot.slane %v13585_v25, 5 }
 0x388   : > { %v2421_v51 = vsel %vm2359_vm3, %v17513_v11, %v16355_v34  ;;  %v2624_v31 = vsel %vm2359_vm3, %v17514_v41, %v16354_v53  ;;  %v17516_v27 = vrot.slane %v13600_v12, 5  ;;  %v13887_v19 = vmul.f32 %v13365_v5, %v17408_v39 }
 0x389   : > { %v2828_v33 = vsel %vm2766_vm4, %v17515_v52, %v16353_v30  ;;  %v4316_v42 = vadd.f32 %v4249_v45, %v4113_v63  ;;  %v487_v26 = vmul.f32 %v13162_v62, %v17408_v39  ;;  %v556_v38 = vmul.f32 %v13439_v7, %v17444_v3  ;;  %v13907_v63 = vpop.xlane.xlu0 %4385  ;;  %v13923_v30 = vpop.xlane.xlu1 %4383 }
 0x38a   : > { %v3031_v44 = vsel %vm2766_vm4, %v17516_v27, %v16352_v54  ;;  %v625_v25 = vmul.f32 %v13446_v21, %v17480_v18  ;;  %v2487_v29 = vadd.f32 %v2421_v51, %v2283_v59  ;;  %v13897_v12 = vmul.f32 %v13390_v50, %v17444_v3 }
 0x38b   : > { %v13901_v11 = vmul.f32 %v13174_v1, %v17444_v3  ;;  %v13905_v45 = vmul.f32 %v13460_v13, %v17480_v18  ;;  %v13910_v41 = vadd.f32 %v13711_v36, %v4316_v42  ;;  %v16360_v21 = vrot.slane %v13873_v17, 6 }
 0x38c   : > { %v588_v51 = vadd.f32 %v556_v38, %v487_v26  ;;  %v13915_v59 = vmul.f32 %v17482_v4, %v17444_v3  ;;  %v2690_v52 = vadd.f32 %v2624_v31, %v2487_v29  ;;  %v13921_v13 = vmul.f32 %v13206_v20, %v17480_v18 }
 0x38d   : > { %17517 = vst [vmem:[#allocation44_spill] sm:$0xff] %v13910_v41  ;;  %v16358_v27 = vrot.slane %v13901_v11, 1  ;;  %v16359_v54 = vrot.slane %v13905_v45, 1  ;;  %4413 = vadd.xlane.f32.xlu0 %v13910_v41  ;;  %v16361_v42 = vrot.slane %v13887_v19, 6  ;;  %v13929_v26 = vmul.f32 %v13420_v0, %v17371_v37 }
 0x38e   : > { %v4496_v31 = vmul.f32 %v13852_v9, %v13852_v9  ;;  %v657_v38 = vadd.f32 %v625_v25, %v588_v51  ;;  %v2894_v29 = vadd.f32 %v2828_v33, %v2690_v52  ;;  %v17518_v20 = vrot.slane %v13706_v10, 1  ;;  %v17521_v10 = vld [vmem:[#allocation25_spill] sm:$0xff] }
 0x38f   : > { %v17519_v34 = vrot.slane %v13718_v14, 1  ;;  %v16362_v37 = vrot.slane %v13915_v59, 2  ;;  %v17520_v61 = vrot.slane %v13645_v22, 6  ;;  %v16364_v25 = vrot.slane %v13897_v12, 6 }
 0x390   : > { %v796_v53 = vsel %vm732_vm0, %v17518_v20, %v16358_v27  ;;  %v13952_v51 = vmul.f32 %v17521_v10, %v17408_v39  ;;  %v3097_v20 = vadd.f32 %v3031_v44, %v2894_v29  ;;  %v17522_v27 = vld [vmem:[#allocation29_spill] sm:$0xff]  ;;  %v17523_v14 = vrot.slane %v13722_v58, 1  ;;  %v17531_v44 = vld [vmem:[#allocation11_spill] sm:$0xff] }
 0x391   : > { %v999_v47 = vsel %vm732_vm0, %v17519_v34, %v16359_v54  ;;  %v3235_v33 = vsel %vm3173_vm5, %v17520_v61, %v16360_v21  ;;  %v861_v52 = vadd.f32 %v796_v53, %v657_v38  ;;  %v13961_v22 = vmul.f32 %v13252_v43, %v17444_v3  ;;  %v13963_v61 = vpop.xlane.xlu0 %4389  ;;  %4538 = vadd.xlane.f32.xlu0 %v4496_v31 }
 0x392   : > { %v1202_v34 = vsel %vm732_vm0, %v17523_v14, %v17522_v27  ;;  %v17524_v21 = vrot.slane %v13684_v35, 6  ;;  %v13973_v58 = vmul.f32 %v13538_v2, %v17444_v3  ;;  %v3301_v29 = vadd.f32 %v3235_v33, %v3097_v20  ;;  %v17529_v20 = vld [vmem:[#allocation38_spill] sm:$0xff] }
 0x393   : > { %v1064_v38 = vadd.f32 %v999_v47, %v861_v52  ;;  %v17525_v14 = vrot.slane %v13727_v57, 2  ;;  %v13982_v35 = vmul.f32 %v13278_v23, %v17480_v18  ;;  %v17528_v57 = vrot.slane %v13921_v13, 2 }
 0x394   : > { %v3438_v53 = vsel %vm3173_vm5, %v17524_v21, %v16361_v42  ;;  %v13984_v21 = vpop.xlane.xlu1 %4387  ;;  %v17527_v42 = vrot.slane %v13688_v16, 6  ;;  %v14000_v9 = vmul.f32 %v17531_v44, %v17444_v3  ;;  %v17532_v16 = vrot.slane %v13929_v26, 7 }
 0x395   : > { %v1406_v54 = vsel %vm1342_vm1, %v17525_v14, %v16362_v37  ;;  %17526 = vst [vmem:[#allocation53_spill] sm:$0xff] %v13984_v21  ;;  %v1267_v33 = vadd.f32 %v1202_v34, %v1064_v38  ;;  %v3504_v52 = vadd.f32 %v3438_v53, %v3301_v29  ;;  %v17530_v14 = vrot.slane %v17529_v20, 2  ;;  %v17534_v38 = vld [vmem:[#allocation35_spill] sm:$0xff]  ;;  %v14017_v21 = vpop.xlane.xlu0 %4393 }
 0x396   : > { %v3641_v31 = vsel %vm3173_vm5, %v17527_v42, %v16364_v25  ;;  %v17533_v42 = vrot.slane %v13700_v8, 7  ;;  %v16368_v34 = vrot.slane %v13973_v58, 7  ;;  %v14010_v29 = vmul.f32 %v17534_v38, %v17480_v18 }
 0x397   : > { %v1609_v37 = vsel %vm1342_vm1, %v17530_v14, %v17528_v57  ;;  %v1471_v53 = vadd.f32 %v1406_v54, %v1267_v33  ;;  %v4433_v57 = vmul.f32 0.0078125, %v4380_v56  ;;  %v3707_v20 = vadd.f32 %v3641_v31, %v3504_v52  ;;  %v17535_v14 = vld [vmem:[#allocation41_spill] sm:$0xff] }
 0x398   : > { %v3845_v25 = vsel %vm3783_vm6, %v17533_v42, %v17532_v16  ;;  %v17536_v23 = vrot.slane %v13748_v28, 2  ;;  %v17537_v8 = vrot.slane %v13952_v51, 7  ;;  %v17538_v16 = vrot.slane %v13736_v55, 7  ;;  %v17539_v42 = vld [vmem:[#allocation40_spill] sm:$0xff]  ;;  %v14034_v41 = vpop.xlane.xlu1 %4391 }
 0x399   : > { %v1674_v33 = vadd.f32 %v1609_v37, %v1471_v53  ;;  %v14026_v56 = vmul.f32 %v17539_v42, %v17444_v3  ;;  %v3911_v31 = vadd.f32 %v3845_v25, %v3707_v20  ;;  %v17540_v28 = vrot.slane %v13961_v22, 3  ;;  %17542 = vst [vmem:[#allocation43_spill] sm:$0xff] %v14034_v41  ;;  %v17544_v25 = vld [vmem:[#allocation13_spill] sm:$0xff] }
 0x39a   : > { %v1812_v47 = vsel %vm1342_vm1, %v17536_v23, %v17535_v14  ;;  %v4048_v54 = vsel %vm3783_vm6, %v17538_v16, %v17537_v8  ;;  %v17541_v52 = vrot.slane %v13765_v32, 3  ;;  %v17543_v55 = vrot.slane %v13775_v24, 7  ;;  %v17545_v32 = vld [vmem:[#allocation39_spill] sm:$0xff]  ;;  %v14054_v24 = vpop.xlane.xlu0 %4518 }
 0x39b   : > { %v1877_v53 = vadd.f32 %v1812_v47, %v1674_v33  ;;  %v16366_v8 = vrot.slane %v14010_v29, 4  ;;  %v14044_v20 = vmul.f32 %v17544_v25, %v17480_v18  ;;  %v14047_v16 = vsub.f32 %v17545_v32, %v4433_v57 }
 0x39c   : > { %v2016_v23 = vsel %vm1952_vm2, %v17541_v52, %v17540_v28  ;;  %v4251_v37 = vsel %vm3783_vm6, %v17543_v55, %v16368_v34  ;;  %v4114_v28 = vadd.f32 %v4048_v54, %v3911_v31  ;;  %v17546_v52 = vrot.slane %v13982_v35, 3 }
 0x39d   : > { %v17547_v38 = vrot.slane %v13785_v49, 3  ;;  %v2081_v55 = vadd.f32 %v2016_v23, %v1877_v53  ;;  %v16367_v47 = vrot.slane %v14026_v56, 5  ;;  %v14059_v33 = vmul.f32 %v13111_v15, %v17408_v39 }
 0x39e   : > { %v488_v57 = vmul.f32 %v13162_v62, %v17444_v3  ;;  %v4317_v25 = vadd.f32 %v4251_v37, %v4114_v28  ;;  %v17548_v54 = vrot.slane %v14000_v9, 4  ;;  %v17549_v31 = vrot.slane %v13801_v6, 4 }
 0x39f   : > { %v2219_v41 = vsel %vm1952_vm2, %v17547_v38, %v17546_v52  ;;  %v557_v38 = vmul.f32 %v13439_v7, %v17480_v18  ;;  %v697_v23 = vmul.f32 %v13174_v1, %v17480_v18  ;;  %v17550_v32 = vrot.slane %v13805_v40, 4  ;;  %v14087_v52 = vpop.xlane.xlu1 %4395 }
 0x3a0   : > { %v2423_v49 = vsel %vm2359_vm3, %v17549_v31, %v17548_v54  ;;  %v2284_v53 = vadd.f32 %v2219_v41, %v2081_v55  ;;  %v3032_v37 = vrot.slane %v14044_v20, 5  ;;  %v1307_v6 = vmul.f32 %v17482_v4, %v17480_v18  ;;  %v17552_v31 = vld [vmem:[#allocation45_spill] sm:$0xff] }
 0x3a1   : > { %v2626_v62 = vsel %vm2359_vm3, %v17550_v32, %v16366_v8  ;;  %v14081_v28 = vadd.f32 %v13711_v36, %v4317_v25  ;;  %v14085_v7 = vmul.f32 %v13365_v5, %v17444_v3  ;;  %v589_v1 = vadd.f32 %v557_v38, %v488_v57 }
 0x3a2   : > { %v797_v41 = vrot.slane %v697_v23, 1  ;;  %v4497_v40 = vmul.f32 %v14047_v16, %v14047_v16  ;;  %v2488_v55 = vadd.f32 %v2423_v49, %v2284_v53  ;;  %v17551_v54 = vrot.slane %v13814_v48, 5  ;;  %v14106_v53 = vpop.xlane.xlu0 %4397  ;;  %v17554_v48 = vld [vmem:[#allocation46_spill] sm:$0xff] }
 0x3a3   : > { %4415 = vadd.xlane.f32.xlu1 %v14081_v28  ;;  %v3236_v25 = vrot.slane %v14059_v33, 6  ;;  %v14100_v57 = vmul.f32 %v13390_v50, %v17480_v18  ;;  %v658_v38 = vadd.f32 %v17552_v31, %v589_v1  ;;  %v17553_v23 = vrot.slane %v13901_v11, 1 }
 0x3a4   : > { %v2830_v4 = vsel %vm2766_vm4, %v17551_v54, %v16367_v47  ;;  %v2691_v32 = vadd.f32 %v2626_v62, %v2488_v55  ;;  %v17555_v8 = vrot.slane %v17554_v48, 1  ;;  %v17556_v54 = vrot.slane %v13905_v45, 1  ;;  %v4521_v55 = vpop.xlane.xlu1 %4520 }
 0x3a5   : > { %v798_v49 = vsel %vm732_vm0, %v17553_v23, %v797_v41  ;;  %v1407_v34 = vrot.slane %v1307_v6, 2  ;;  %v17557_v50 = vrot.slane %v13818_v60, 5  ;;  %v3439_v11 = vrot.slane %v14085_v7, 6 }
 0x3a6   : > { %v1001_v47 = vsel %vm732_vm0, %v17556_v54, %v17555_v8  ;;  %v14121_v41 = vmul.f32 %v13420_v0, %v17408_v39  ;;  %v862_v62 = vadd.f32 %v798_v49, %v658_v38  ;;  %v2895_v31 = vadd.f32 %v2830_v4, %v2691_v32 }
 0x3a7   : > { %v3033_v1 = vsel %vm2766_vm4, %v17557_v50, %v3032_v37  ;;  %v1917_v45 = vmul.f32 %v13252_v43, %v17480_v18  ;;  %4540 = vadd.xlane.f32.xlu1 %v4497_v40  ;;  %v17558_v8 = vrot.slane %v13873_v17, 6  ;;  %v3642_v6 = vrot.slane %v14100_v57, 6  ;;  %v17561_v50 = vld [vmem:[#allocation48_spill] sm:$0xff] }
 0x3a8   : > { %v14133_v23 = vmul.f32 %v17521_v10, %v17444_v3  ;;  %v1065_v39 = vadd.f32 %v1001_v47, %v862_v62  ;;  %v3098_v38 = vadd.f32 %v3033_v1, %v2895_v31  ;;  %v14137_v4 = vmul.f32 %v13538_v2, %v17480_v18  ;;  %v4523_v47 = vpop.xlane.xlu0 %4522 }
 0x3a9   : > { %v3237_v60 = vsel %vm3173_vm5, %v17558_v8, %v3236_v25  ;;  %v17559_v43 = vrot.slane %v13915_v59, 2  ;;  %v17560_v17 = vrot.slane %v13887_v19, 6  ;;  %v3846_v32 = vrot.slane %v14121_v41, 7 }
 0x3aa   : > { %v1268_v48 = vadd.f32 %v17522_v27, %v1065_v39  ;;  %v3302_v54 = vadd.f32 %v3237_v60, %v3098_v38  ;;  %v17562_v1 = vrot.slane %v17561_v50, 2  ;;  %v17563_v2 = vrot.slane %v13921_v13, 2  ;;  %v14163_v39 = vpop.xlane.xlu1 %4399  ;;  %v17567_v50 = vld [vmem:[#allocation36_spill] sm:$0xff] }
 0x3ab   : > { %v1408_v40 = vsel %vm1342_vm1, %v17559_v43, %v1407_v34  ;;  %v3440_v49 = vsel %vm3173_vm5, %v17560_v17, %v3439_v11  ;;  %v2017_v62 = vrot.slane %v1917_v45, 3  ;;  %v2324_v34 = vmul.f32 %v17531_v44, %v17480_v18 }
 0x3ac   : > { %v1611_v59 = vsel %vm1342_vm1, %v17563_v2, %v17562_v1  ;;  %v4434_v19 = vmul.f32 0.0078125, %v13859_v46  ;;  %v17564_v31 = vrot.slane %v13897_v12, 6  ;;  %v4049_v8 = vrot.slane %v14133_v23, 7  ;;  %v14187_v2 = vpop.xlane.xlu0 %4401  ;;  %v17589_v23 = vld [vmem:[#allocation28_spill] sm:$0xff] }
 0x3ad   : > { %v1472_v60 = vadd.f32 %v1408_v40, %v1268_v48  ;;  %v3505_v13 = vadd.f32 %v3440_v49, %v3302_v54  ;;  %v4252_v38 = vrot.slane %v14137_v4, 7  ;;  %v17565_v44 = vrot.slane %v13929_v26, 7 }
 0x3ae   : > { %v3643_v27 = vsel %vm3173_vm5, %v17564_v31, %v3642_v6  ;;  %v2731_v12 = vmul.f32 %v17539_v42, %v17480_v18  ;;  %v17566_v17 = vrot.slane %v13961_v22, 3  ;;  %v2424_v48 = vrot.slane %v2324_v34, 4  ;;  %v17570_v34 = vld [vmem:[#allocation10_spill] sm:$0xff] }
 0x3af   : > { %v3847_v46 = vsel %vm3783_vm6, %v17565_v44, %v3846_v32  ;;  %v1675_v45 = vadd.f32 %v1611_v59, %v1472_v60  ;;  %v3708_v43 = vadd.f32 %v3643_v27, %v3505_v13  ;;  %v14177_v49 = vsub.f32 %v17567_v50, %v4434_v19  ;;  %v17573_v27 = vld [vmem:[#allocation49_spill] sm:$0xff] }
 0x3b0   : > { %v2018_v40 = vsel %vm1952_vm2, %v17566_v17, %v2017_v62  ;;  %v17568_v54 = vrot.slane %v13952_v51, 7  ;;  %v3138_v42 = vmul.f32 %v13111_v15, %v17444_v3  ;;  %v17569_v59 = vrot.slane %v13973_v58, 7  ;;  %v4525_v58 = vpop.xlane.xlu1 %4524 }
 0x3b1   : > { %v1878_v1 = vadd.f32 %v17535_v14, %v1675_v45  ;;  %v3912_v22 = vadd.f32 %v3847_v46, %v3708_v43  ;;  %v17571_v19 = vrot.slane %v17570_v34, 3  ;;  %v17572_v51 = vrot.slane %v13982_v35, 3  ;;  %v17577_v35 = vld [vmem:[#allocation50_spill] sm:$0xff] }
 0x3b2   : > { %v4050_v26 = vsel %vm3783_vm6, %v17568_v54, %v4049_v8  ;;  %v4253_v62 = vsel %vm3783_vm6, %v17569_v59, %v4252_v38  ;;  %v17574_v14 = vrot.slane %v17573_v27, 4  ;;  %v17575_v60 = vrot.slane %v14010_v29, 4 }
 0x3b3   : > { %v2221_v31 = vsel %vm1952_vm2, %v17572_v51, %v17571_v19  ;;  %v2082_v13 = vadd.f32 %v2018_v40, %v1878_v1  ;;  %v2831_v44 = vrot.slane %v2731_v12, 5  ;;  %v4582_v46 = vmul.f32 0.0078125, %v14054_v24 }
 0x3b4   : > { %v2628_v15 = vsel %vm2359_vm3, %v17575_v60, %v17574_v14  ;;  %v4583_v45 = vmul.f32 0.0078125, %v4521_v55  ;;  %v4115_v43 = vadd.f32 %v4050_v26, %v3912_v22  ;;  %v17576_v17 = vrot.slane %v14000_v9, 4 }
 0x3b5   : > { %v17578_v54 = vrot.slane %v17577_v35, 5  ;;  %v3342_v29 = vmul.f32 %v13365_v5, %v17480_v18  ;;  %v2285_v40 = vadd.f32 %v2221_v31, %v2082_v13  ;;  %v3238_v12 = vrot.slane %v3138_v42, 6  ;;  %v14227_v31 = vpop.xlane.xlu1 %4403 }
 0x3b6   : > { %v2425_v50 = vsel %vm2359_vm3, %v17576_v17, %v2424_v48  ;;  %v4614_v1 = vadd.f32 1e-06, %v4582_v46  ;;  %v4615_v24 = vadd.f32 1e-06, %v4583_v45  ;;  %v4318_v55 = vadd.f32 %v4253_v62, %v4115_v43  ;;  %v17581_v17 = vld [vmem:[#allocation26_spill] sm:$0xff] }
 0x3b7   : > { %v3035_v59 = vsel %vm2766_vm4, %v3032_v37, %v17578_v54  ;;  %v4436_v26 = vmul.f32 0.0078125, %v13907_v63  ;;  %v4584_v22 = vmul.f32 0.0078125, %v4523_v47  ;;  %v4585_v9 = vmul.f32 0.0078125, %v4525_v58  ;;  %v4527_v37 = vpop.xlane.xlu0 %4526 }
 0x3b8   : > { %v2489_v34 = vadd.f32 %v2425_v50, %v2285_v40  ;;  %v17579_v48 = vrot.slane %v14026_v56, 5  ;;  %v3748_v20 = vmul.f32 %v13420_v0, %v17444_v3  ;;  %6981 = vrsqrt.f32 %v4614_v1  ;;  %v17580_v0 = vld [vmem:[#allocation34_spill] sm:$0xff]  ;;  %v17584_v40 = vld [vmem:[#allocation19_spill] sm:$0xff]  ;;  %v14262_v1 = vld [vmem:[%s15876_s2 + $0x1] ss:$0 sm:$0xff] }
 0x3b9   : > { %v14222_v5 = vadd.f32 %v13711_v36, %v4318_v55  ;;  %v3441_v42 = vrot.slane %v3342_v29, 6  ;;  %6983 = vrsqrt.f32 %v4615_v24  ;;  %v4616_v62 = vadd.f32 1e-06, %v4584_v22  ;;  %v4529_v58 = vpop.xlane.xlu1 %4528  ;;  %v17585_v55 = vld [vmem:[#allocation18_spill] sm:$0xff] }
 0x3ba   : > { %v2832_v19 = vsel %vm2766_vm4, %v17579_v48, %v2831_v44  ;;  %v2692_v51 = vadd.f32 %v2628_v15, %v2489_v34  ;;  %v4498_v63 = vmul.f32 %v14177_v49, %v14177_v49  ;;  %v4438_v47 = vmul.f32 0.0078125, %v13963_v61 }
 0x3bb   : > { %v4617_v56 = vadd.f32 1e-06, %v4585_v9  ;;  %4417 = vadd.xlane.f32.xlu0 %v14222_v5  ;;  %v14231_v3 = vsub.f32 %v17580_v0, %v4436_v26  ;;  %6985 = vrsqrt.f32 %v4616_v62  ;;  %v4586_v27 = vmul.f32 0.0078125, %v4527_v37 }
 0x3bc   : > { %v2896_v14 = vadd.f32 %v2832_v19, %v2692_v51  ;;  %v7374_v60 = vmov 0   ;;  %v3239_v15 = vsel %vm3173_vm5, %v3236_v25, %v3238_v12  ;;  %v3952_v61 = vmul.f32 %v17521_v10, %v17480_v18  ;;  %v17582_v18 = vld [vmem:[#allocation51_spill] sm:$0xff] }
 0x3bd   : > { %6987 = vrsqrt.f32 %v4617_v56  ;;  %4940 = vmatprep.mubr.bf16.mxu0 %v7374_v60  ;;  %v4618_v13 = vadd.f32 1e-06, %v4586_v27  ;;  %v3848_v46 = vrot.slane %v3748_v20, 7  ;;  %v4440_v45 = vmul.f32 0.0078125, %v14017_v21  ;;  %v14277_v20 = vld [vmem:[%s15876_s2 + $0x2] ss:$0 sm:$0xff] }
 0x3be   : > { %v3099_v44 = vadd.f32 %v3035_v59, %v2896_v14  ;;  %v3442_v43 = vsel %vm3173_vm5, %v3439_v11, %v3441_v42  ;;  %v14244_v50 = vsub.f32 %v17581_v17, %v4438_v47  ;;  %v4500_v33 = vmul.f32 %v14231_v3, %v14231_v3  ;;  %v17587_v42 = vld [vmem:[#allocation9_spill] sm:$0xff]  ;;  %v17590_v47 = vld [vmem:[#allocation56_spill] sm:$0xff] }
 0x3bf   : > { %4542 = vadd.xlane.f32.xlu0 %v4498_v63  ;;  %v4587_v25 = vmul.f32 0.0078125, %v4529_v58  ;;  %v17583_v10 = vrot.slane %v17582_v18, 6  ;;  %v4051_v54 = vrot.slane %v3952_v61, 7  ;;  %6989 = vrsqrt.f32 %v4618_v13  ;;  %v17591_v27 = vld [vmem:[#allocation32_spill] sm:$0xff]  ;;  %v17592_v61 = vld [vmem:[#allocation47_spill] sm:$0xff] }
 0x3c0   : > { %v3303_v35 = vadd.f32 %v3239_v15, %v3099_v44  ;;  %v3849_v29 = vsel %vm3783_vm6, %v3846_v32, %v3848_v46  ;;  %v14257_v12 = vsub.f32 %v17584_v40, %v4440_v45  ;;  %v4442_v24 = vmul.f32 0.0078125, %v14106_v53  ;;  %v17586_v32 = vld [vmem:[#allocation37_spill] sm:$0xff]  ;;  %v4406_v40 = vpop.xlane.xlu0 %4405 }
 0x3c1   : > { %v3645_v21 = vsel %vm3173_vm5, %v3642_v6, %v17583_v10  ;;  %v4619_v7 = vadd.f32 1e-06, %v4587_v25  ;;  %v4502_v6 = vmul.f32 %v14244_v50, %v14244_v50  ;;  %v4435_v34 = vmul.f32 0.0078125, %v13923_v30  ;;  %v17593_v44 = vld [vmem:[#allocation53_spill] sm:$0xff]  ;;  %v17594_v25 = vld [vmem:[#allocation16_spill] sm:$0xff] }
 0x3c2   : > { %v6982_v59 = vpop.eup %6981  ;;  %v3506_v11 = vadd.f32 %v3442_v43, %v3303_v35  ;;  %v4052_v48 = vsel %vm3783_vm6, %v4049_v8, %v4051_v54  ;;  %v17588_v62 = vrot.slane %v17587_v42, 7  ;;  %v4504_v8 = vmul.f32 %v14257_v12, %v14257_v12  ;;  %v17595_v54 = vld [vmem:[#allocation12_spill] sm:$0xff] }
 0x3c3   : > { %v6984_v57 = vpop.eup %6983  ;;  %4546 = vadd.xlane.f32.xlu0 %v4500_v33  ;;  %6991 = vrsqrt.f32 %v4619_v7  ;;  %v4678_v41 = vmul.f32 %v6982_v59, %v17585_v55  ;;  %v14289_v56 = vsub.f32 %v17590_v47, %v4442_v24  ;;  %v4444_v0 = vmul.f32 0.0078125, %v14187_v2  ;;  %v17598_v24 = vld [vmem:[#allocation17_spill] sm:$0xff] }
 0x3c4   : > { %v3709_v26 = vadd.f32 %v3645_v21, %v3506_v11  ;;  %v4679_v22 = vmul.f32 %v6984_v57, %v17586_v32  ;;  %v4255_v51 = vsel %vm3783_vm6, %v4252_v38, %v17588_v62  ;;  %v14296_v13 = vsub.f32 %v17592_v61, %v4435_v34  ;;  %v17596_v11 = vld [vmem:[#allocation43_spill] sm:$0xff]  ;;  %v17597_v57 = vld [vmem:[#allocation20_spill] sm:$0xff] }
 0x3c5   : > { %v6986_v9 = vpop.eup %6985  ;;  %v4715_v19 = vmul.f32 %v14262_v1, %v4678_v41  ;;  %v4437_v46 = vmul.f32 0.0078125, %v17593_v44  ;;  %v4506_v2 = vmul.f32 %v14289_v56, %v14289_v56  ;;  %v14304_v35 = vsub.f32 %v17594_v25, %v4444_v0 }
 0x3c6   : > { %v3913_v37 = vadd.f32 %v3849_v29, %v3709_v26  ;;  %v4716_v30 = vmul.f32 %v14262_v1, %v4679_v22  ;;  %v4680_v63 = vmul.f32 %v6986_v9, %v17589_v23  ;;  %v4499_v59 = vmul.f32 %v14296_v13, %v14296_v13  ;;  %v17599_v9 = vld [vmem:[#allocation14_spill] sm:$0xff] }
 0x3c7   : > { %v6988_v53 = vpop.eup %6987  ;;  %4550 = vadd.xlane.f32.xlu0 %v4502_v6  ;;  %v4752_v4 = vadd.f32 %v14277_v20, %v4715_v19  ;;  %v14311_v7 = vsub.f32 %v17595_v54, %v4437_v46  ;;  %v4439_v29 = vmul.f32 0.0078125, %v17596_v11  ;;  %v4508_v41 = vmul.f32 %v14304_v35, %v14304_v35  ;;  %v17605_v54 = vld [vmem:[#allocation21_spill] sm:$0xff] }
 0x3c8   : > { %v4681_v14 = vmul.f32 %v6988_v53, %v17591_v27  ;;  %v4116_v15 = vadd.f32 %v4052_v48, %v3913_v37  ;;  %v4753_v38 = vadd.f32 %v14277_v20, %v4716_v30  ;;  %v4717_v17 = vmul.f32 %v14262_v1, %v4680_v63  ;;  %v17600_v48 = vld [vmem:[#allocation30_spill] sm:$0xff]  ;;  %v17601_v30 = vld [vmem:[#allocation27_spill] sm:$0xff] }
 0x3c9   : > { %v6990_v33 = vpop.eup %6989  ;;  %v4446_v26 = vmul.f32 0.0078125, %v4406_v40  ;;  %v14328_v19 = vsub.f32 %v17600_v48, %v4439_v29  ;;  %v4501_v53 = vmul.f32 %v14311_v7, %v14311_v7  ;;  %v4441_v37 = vmul.f32 0.0078125, %v14087_v52  ;;  %v17602_v27 = vld [vmem:[#allocation31_spill] sm:$0xff]  ;;  %v17606_v40 = vld [vmem:[#allocation58_spill] sm:$0xff] }
 0x3ca   : > { %v4718_v45 = vmul.f32 %v14262_v1, %v4681_v14  ;;  %v4319_v58 = vadd.f32 %v4255_v51, %v4116_v15  ;;  %v4784_v43 = vpack.c.bf16 %v4753_v38, %v4752_v4  ;;  %v4682_v6 = vmul.f32 %v6990_v33, %v17597_v57  ;;  %v4531_v4 = vpop.xlane.xlu0 %4530  ;;  %v17603_v38 = vld [vmem:[#allocation54_spill] sm:$0xff] }
 0x3cb   : > { %4554 = vadd.xlane.f32.xlu0 %v4504_v8  ;;  %v14325_v34 = vsub.f32 %v17599_v9, %v4446_v26  ;;  %v14339_v23 = vsub.f32 %v17601_v30, %v4441_v37  ;;  %v4503_v63 = vmul.f32 %v14328_v19, %v14328_v19  ;;  %v4443_v52 = vmul.f32 0.0078125, %v14163_v39 }
 0x3cc   : > { %v14307_v18 = vadd.f32 %v13711_v36, %v4319_v58  ;;  %4941 = vmatmul.mubr.bf16.vlgmr.msra.gmra.mrb[0].mxu0 %v4784_v43  ;;  %v4755_v10 = vadd.f32 %v14277_v20, %v4718_v45  ;;  %v4754_v36 = vadd.f32 %v14277_v20, %v4717_v17  ;;  %v4719_v42 = vmul.f32 %v14262_v1, %v4682_v6 }
 0x3cd   : > { %v6992_v21 = vpop.eup %6991  ;;  %4950 = vmatprep.mubr.bf16.mxu0 %v7374_v60  ;;  %v4510_v62 = vmul.f32 %v14325_v34, %v14325_v34  ;;  %v4505_v0 = vmul.f32 %v14339_v23, %v14339_v23  ;;  %v14348_v14 = vsub.f32 %v17602_v27, %v4443_v52  ;;  %v4445_v15 = vmul.f32 0.0078125, %v14227_v31  ;;  %v17604_v31 = vld [vmem:[#allocation24_spill] sm:$0xff]  ;;  %v17609_v27 = vld [vmem:[#allocation15_spill] sm:$0xff] }
 0x3ce   : > { %4419 = vadd.xlane.f32.xlu1 %v14307_v18  ;;  %v4683_v55 = vmul.f32 %v6992_v21, %v17598_v24  ;;  %v4785_v32 = vpack.c.bf16 %v4755_v10, %v4754_v36  ;;  %v4756_v8 = vadd.f32 %v14277_v20, %v4719_v42  ;;  %v4588_v44 = vmul.f32 0.0078125, %v4531_v4 }
 0x3cf   : > { %4558 = vadd.xlane.f32.xlu0 %v4506_v2  ;;  %v4507_v39 = vmul.f32 %v14348_v14, %v14348_v14  ;;  %v14355_v61 = vsub.f32 %v17603_v38, %v4445_v15 }
 0x3d0   : > { %v4720_v22 = vmul.f32 %v14262_v1, %v4683_v55  ;;  %v4620_v45 = vadd.f32 1e-06, %v4588_v44  ;;  %v17607_v55 = vld [vmem:[#allocation33_spill] sm:$0xff] }
 0x3d1   : > { %v4509_v46 = vmul.f32 %v14355_v61, %v14355_v61  ;;  %v4408_v58 = vpop.xlane.xlu1 %4407 }
 0x3d2   : > { %4544 = vadd.xlane.f32.xlu1 %v4499_v59  ;;  %v4757_v51 = vadd.f32 %v14277_v20, %v4720_v22  ;;  %v4447_v43 = vmul.f32 0.0078125, %v4408_v58  ;;  %6993 = vrsqrt.f32 %v4620_v45 }
 0x3d3   : > { %4562 = vadd.xlane.f32.xlu0 %v4508_v41 }
 0x3d4   : > { %4951 = vmatmul.mubr.bf16.gmra.mrb[4].mxu0 %v4785_v32  ;;  %v4786_v47 = vpack.c.bf16 %v4757_v51, %v4756_v8  ;;  %v14360_v17 = vsub.f32 %v17604_v31, %v4447_v43  ;;  %v17608_v51 = vld [vmem:[#allocation61_spill] sm:$0xff]  ;;  %v17611_v43 = vld [vmem:[#allocation44_spill] sm:$0xff] }
 0x3d5   : > { %4960 = vmatprep.mubr.bf16.mxu0 %v7374_v60  ;;  %v4533_v33 = vpop.xlane.xlu1 %4532 }
 0x3d6   : > { %4548 = vadd.xlane.f32.xlu1 %v4501_v53  ;;  %v4589_v2 = vmul.f32 0.0078125, %v4533_v33  ;;  %v4511_v25 = vmul.f32 %v14360_v17, %v14360_v17 }
 0x3d7   : > { %4566 = vadd.xlane.f32.xlu0 %v4510_v62 }
 0x3d8   : > { %v4621_v10 = vadd.f32 1e-06, %v4589_v2 }
 0x3da   : > { %4552 = vadd.xlane.f32.xlu1 %v4503_v63  ;;  %6995 = vrsqrt.f32 %v4621_v10 }
 0x3dc   : > { %4961 = vmatmul.mubr.bf16.gmra.mrb[8].mxu0 %v4786_v47  ;;  %v6994_v21 = vpop.eup %6993 }
 0x3dd   : > { %4970 = vmatprep.mubr.bf16.mxu0 %v7374_v60  ;;  %v4684_v59 = vmul.f32 %v6994_v21, %v17605_v54 }
 0x3de   : > { %4556 = vadd.xlane.f32.xlu1 %v4505_v0 }
 0x3df   : > { %v4721_v57 = vmul.f32 %v14262_v1, %v4684_v59 }
 0x3e1   : > { %v4758_v26 = vadd.f32 %v14277_v20, %v4721_v57 }
 0x3e2   : > { %4560 = vadd.xlane.f32.xlu1 %v4507_v39  ;;  %v17610_v39 = vld [vmem:[#allocation42_spill] sm:$0xff] }
 0x3e4   : > { %v6996_v11 = vpop.eup %6995 }
 0x3e5   : > { %v4685_v36 = vmul.f32 %v6996_v11, %v17606_v40 }
 0x3e6   : > { %4564 = vadd.xlane.f32.xlu1 %v4509_v46 }
 0x3e7   : > { %v4722_v24 = vmul.f32 %v14262_v1, %v4685_v36 }
 0x3e9   : > { %v4410_v29 = vpop.xlane.xlu0 %4409  ;;  %v4759_v32 = vadd.f32 %v14277_v20, %v4722_v24 }
 0x3ea   : > { %4568 = vadd.xlane.f32.xlu1 %v4511_v25  ;;  %v4448_v6 = vmul.f32 0.0078125, %v4410_v29 }
 0x3eb   : > { %v4787_v9 = vpack.c.bf16 %v4759_v32, %v4758_v26  ;;  %v17612_v26 = vld [vmem:[#allocation22_spill] sm:$0xff] }
 0x3ec   : > { %v14369_v41 = vsub.f32 %v17607_v55, %v4448_v6 }
 0x3ed   : > { %4971 = vmatmul.mubr.bf16.gmra.mrb[12].mxu0 %v4787_v9  ;;  %v4535_v48 = vpop.xlane.xlu0 %4534 }
 0x3ee   : > { %v4512_v22 = vmul.f32 %v14369_v41, %v14369_v41  ;;  %4980 = vmatprep.mubr.bf16.mxu0 %v7374_v60  ;;  %v4590_v53 = vmul.f32 0.0078125, %v4535_v48 }
 0x3f0   : > { %4570 = vadd.xlane.f32.xlu0 %v4512_v22  ;;  %v4622_v37 = vadd.f32 1e-06, %v4590_v53 }
 0x3f2   : > { %6997 = vrsqrt.f32 %v4622_v37 }
 0x3fc   : > { %v6998_v0 = vpop.eup %6997 }
 0x3fd   : > { %v4686_v15 = vmul.f32 %v6998_v0, %v17609_v27 }
 0x3ff   : > { %v4723_v44 = vmul.f32 %v14262_v1, %v4686_v15 }
 0x401   : > { %v4412_v42 = vpop.xlane.xlu1 %4411  ;;  %v4760_v33 = vadd.f32 %v14277_v20, %v4723_v44 }
 0x402   : > { %v4449_v62 = vmul.f32 0.0078125, %v4412_v42 }
 0x404   : > { %v14377_v30 = vsub.f32 %v17608_v51, %v4449_v62 }
 0x405   : > { %v4537_v63 = vpop.xlane.xlu1 %4536 }
 0x406   : > { %v4591_v52 = vmul.f32 0.0078125, %v4537_v63  ;;  %v4513_v8 = vmul.f32 %v14377_v30, %v14377_v30 }
 0x408   : > { %v4623_v47 = vadd.f32 1e-06, %v4591_v52  ;;  %4572 = vadd.xlane.f32.xlu1 %v4513_v8 }
 0x40a   : > { %6999 = vrsqrt.f32 %v4623_v47 }
 0x414   : > { %v7000_v4 = vpop.eup %6999 }
 0x415   : > { %v4687_v38 = vmul.f32 %v7000_v4, %v17610_v39 }
 0x417   : > { %v4724_v58 = vmul.f32 %v14262_v1, %v4687_v38 }
 0x419   : > { %v4761_v2 = vadd.f32 %v14277_v20, %v4724_v58 }
 0x41a   : > { %v4414_v46 = vpop.xlane.xlu0 %4413 }
 0x41b   : > { %v4450_v45 = vmul.f32 0.0078125, %v4414_v46  ;;  %v4788_v10 = vpack.c.bf16 %v4761_v2, %v4760_v33 }
 0x41d   : > { %v14386_v31 = vsub.f32 %v17611_v43, %v4450_v45  ;;  %4981 = vmatmul.mubr.bf16.gmra.mrb[16].mxu0 %v4788_v10 }
 0x41e   : > { %4990 = vmatprep.mubr.bf16.mxu0 %v7374_v60  ;;  %v4539_v21 = vpop.xlane.xlu0 %4538 }
 0x41f   : > { %v4514_v25 = vmul.f32 %v14386_v31, %v14386_v31  ;;  %v4592_v54 = vmul.f32 0.0078125, %v4539_v21 }
 0x421   : > { %4574 = vadd.xlane.f32.xlu0 %v4514_v25  ;;  %v4624_v59 = vadd.f32 1e-06, %v4592_v54 }
 0x423   : > { %7001 = vrsqrt.f32 %v4624_v59 }
 0x42d   : > { %v7002_v55 = vpop.eup %7001 }
 0x42e   : > { %v4688_v32 = vmul.f32 %v7002_v55, %v17612_v26 }
 0x430   : > { %v4416_v11 = vpop.xlane.xlu1 %4415  ;;  %v4725_v48 = vmul.f32 %v14262_v1, %v4688_v32 }
 0x431   : > { %v4451_v29 = vmul.f32 0.0078125, %v4416_v11 }
 0x432   : > { %v4762_v62 = vadd.f32 %v14277_v20, %v4725_v48 }
 0x433   : > { %v14394_v40 = vsub.f32 %v14081_v28, %v4451_v29 }
 0x434   : > { %v4541_v36 = vpop.xlane.xlu1 %4540 }
 0x435   : > { %v4593_v57 = vmul.f32 0.0078125, %v4541_v36  ;;  %v4515_v6 = vmul.f32 %v14394_v40, %v14394_v40 }
 0x437   : > { %v4625_v24 = vadd.f32 1e-06, %v4593_v57  ;;  %4576 = vadd.xlane.f32.xlu1 %v4515_v6 }
 0x439   : > { %7003 = vrsqrt.f32 %v4625_v24 }
 0x443   : > { %v7004_v22 = vpop.eup %7003 }
 0x444   : > { %v4689_v9 = vmul.f32 %v7004_v22, %v14047_v16 }
 0x446   : > { %v4726_v37 = vmul.f32 %v14262_v1, %v4689_v9 }
 0x448   : > { %v4418_v53 = vpop.xlane.xlu0 %4417  ;;  %v4763_v51 = vadd.f32 %v14277_v20, %v4726_v37 }
 0x449   : > { %v4452_v28 = vmul.f32 0.0078125, %v4418_v53 }
 0x44a   : > { %v4789_v52 = vpack.c.bf16 %v4763_v51, %v4762_v62 }
 0x44b   : > { %v14403_v42 = vsub.f32 %v14222_v5, %v4452_v28 }
 0x44c   : > { %4991 = vmatmul.mubr.bf16.gmra.mrb[20].mxu0 %v4789_v52  ;;  %v4543_v16 = vpop.xlane.xlu0 %4542 }
 0x44d   : > { %v4516_v63 = vmul.f32 %v14403_v42, %v14403_v42  ;;  %5000 = vmatprep.mubr.bf16.mxu0 %v7374_v60  ;;  %v4594_v8 = vmul.f32 0.0078125, %v4543_v16 }
 0x44f   : > { %4578 = vadd.xlane.f32.xlu0 %v4516_v63  ;;  %v4626_v47 = vadd.f32 1e-06, %v4594_v8 }
 0x450   : > { %v4547_v27 = vpop.xlane.xlu0 %4546 }
 0x451   : > { %7005 = vrsqrt.f32 %v4626_v47  ;;  %v4596_v4 = vmul.f32 0.0078125, %v4547_v27 }
 0x453   : > { %v4628_v45 = vadd.f32 1e-06, %v4596_v4 }
 0x454   : > { %v4551_v43 = vpop.xlane.xlu0 %4550 }
 0x455   : > { %v4598_v25 = vmul.f32 0.0078125, %v4551_v43 }
 0x457   : > { %v4630_v54 = vadd.f32 1e-06, %v4598_v25 }
 0x458   : > { %v4555_v11 = vpop.xlane.xlu0 %4554 }
 0x459   : > { %v4600_v24 = vmul.f32 0.0078125, %v4555_v11 }
 0x45b   : > { %v4420_v0 = vpop.xlane.xlu1 %4419  ;;  %v4632_v37 = vadd.f32 1e-06, %v4600_v24 }
 0x45c   : > { %v4453_v15 = vmul.f32 0.0078125, %v4420_v0  ;;  %v4559_v53 = vpop.xlane.xlu0 %4558 }
 0x45e   : > { %v14411_v5 = vsub.f32 %v14307_v18, %v4453_v15  ;;  %v7006_v18 = vpop.eup %7005 }
 0x45f   : > { %v4545_v39 = vpop.xlane.xlu1 %4544  ;;  %v4690_v36 = vmul.f32 %v7006_v18, %v14177_v49 }
 0x460   : > { %v4595_v38 = vmul.f32 0.0078125, %v4545_v39  ;;  %v4517_v44 = vmul.f32 %v14411_v5, %v14411_v5 }
 0x461   : > { %v4727_v26 = vmul.f32 %v14262_v1, %v4690_v36 }
 0x462   : > { %v4627_v46 = vadd.f32 1e-06, %v4595_v38  ;;  %4580 = vadd.xlane.f32.xlu1 %v4517_v44  ;;  %v4563_v38 = vpop.xlane.xlu0 %4562 }
 0x463   : > { %v4549_v58 = vpop.xlane.xlu1 %4548  ;;  %v4764_v49 = vadd.f32 %v14277_v20, %v4727_v26 }
 0x464   : > { %7007 = vrsqrt.f32 %v4627_v46  ;;  %v4597_v33 = vmul.f32 0.0078125, %v4549_v58  ;;  %v4604_v58 = vmul.f32 0.0078125, %v4563_v38 }
 0x465   : > { %7009 = vrsqrt.f32 %v4628_v45 }
 0x466   : > { %v4629_v2 = vadd.f32 1e-06, %v4597_v33 }
 0x467   : > { %v4553_v10 = vpop.xlane.xlu1 %4552 }
 0x468   : > { %7011 = vrsqrt.f32 %v4629_v2  ;;  %v4599_v21 = vmul.f32 0.0078125, %v4553_v10 }
 0x46a   : > { %v4631_v59 = vadd.f32 1e-06, %v4599_v21 }
 0x46b   : > { %v4557_v29 = vpop.xlane.xlu1 %4556 }
 0x46c   : > { %7013 = vrsqrt.f32 %v4631_v59  ;;  %v4601_v57 = vmul.f32 0.0078125, %v4557_v29 }
 0x46d   : > { %7015 = vrsqrt.f32 %v4630_v54 }
 0x46e   : > { %v7008_v6 = vpop.eup %7007  ;;  %v4633_v9 = vadd.f32 1e-06, %v4601_v57 }
 0x46f   : > { %v4691_v55 = vmul.f32 %v7008_v6, %v14296_v13  ;;  %v4561_v32 = vpop.xlane.xlu1 %4560  ;;  %v7010_v22 = vpop.eup %7009  ;;  %v4602_v13 = vmul.f32 0.0078125, %v4559_v53 }
 0x470   : > { %v4603_v62 = vmul.f32 0.0078125, %v4561_v32  ;;  %v4692_v63 = vmul.f32 %v7010_v22, %v14231_v3  ;;  %7017 = vrsqrt.f32 %v4633_v9 }
 0x471   : > { %v4728_v48 = vmul.f32 %v14262_v1, %v4691_v55  ;;  %7019 = vrsqrt.f32 %v4632_v37  ;;  %v4634_v39 = vadd.f32 1e-06, %v4602_v13 }
 0x472   : > { %v7012_v28 = vpop.eup %7011  ;;  %v4635_v0 = vadd.f32 1e-06, %v4603_v62  ;;  %v4729_v27 = vmul.f32 %v14262_v1, %v4692_v63 }
 0x473   : > { %v4765_v51 = vadd.f32 %v14277_v20, %v4728_v48  ;;  %v4693_v52 = vmul.f32 %v7012_v28, %v14311_v7  ;;  %v4565_v15 = vpop.xlane.xlu1 %4564 }
 0x474   : > { %7021 = vrsqrt.f32 %v4635_v0  ;;  %v4605_v44 = vmul.f32 0.0078125, %v4565_v15  ;;  %v4766_v46 = vadd.f32 %v14277_v20, %v4729_v27 }
 0x475   : > { %v4790_v16 = vpack.c.bf16 %v4765_v51, %v4764_v49  ;;  %v4730_v8 = vmul.f32 %v14262_v1, %v4693_v52  ;;  %7023 = vrsqrt.f32 %v4634_v39 }
 0x476   : > { %v7014_v47 = vpop.eup %7013  ;;  %v4637_v25 = vadd.f32 1e-06, %v4605_v44 }
 0x477   : > { %5001 = vmatmul.mubr.bf16.gmra.mrb[24].mxu0 %v4790_v16  ;;  %v7016_v4 = vpop.eup %7015  ;;  %v4767_v3 = vadd.f32 %v14277_v20, %v4730_v8  ;;  %v4695_v7 = vmul.f32 %v7014_v47, %v14328_v19  ;;  %v4569_v18 = vpop.xlane.xlu1 %4568  ;;  %v4636_v19 = vadd.f32 1e-06, %v4604_v58 }
 0x478   : > { %5010 = vmatprep.mubr.bf16.mxu0 %v7374_v60  ;;  %v4694_v45 = vmul.f32 %v7016_v4, %v14244_v50  ;;  %v4567_v50 = vpop.xlane.xlu0 %4566  ;;  %7025 = vrsqrt.f32 %v4637_v25  ;;  %v4607_v11 = vmul.f32 0.0078125, %v4569_v18 }
 0x479   : > { %v4791_v43 = vpack.c.bf16 %v4767_v3, %v4766_v46  ;;  %v4732_v33 = vmul.f32 %v14262_v1, %v4695_v7  ;;  %7027 = vrsqrt.f32 %v4636_v19  ;;  %v4606_v6 = vmul.f32 0.0078125, %v4567_v50 }
 0x47a   : > { %v7018_v2 = vpop.eup %7017  ;;  %v4731_v10 = vmul.f32 %v14262_v1, %v4694_v45  ;;  %v4639_v32 = vadd.f32 1e-06, %v4607_v11 }
 0x47b   : > { %v7020_v21 = vpop.eup %7019  ;;  %v4769_v54 = vadd.f32 %v14277_v20, %v4732_v33  ;;  %v4697_v59 = vmul.f32 %v7018_v2, %v14339_v23  ;;  %v4638_v9 = vadd.f32 1e-06, %v4606_v6 }
 0x47c   : > { %v4768_v29 = vadd.f32 %v14277_v20, %v4731_v10  ;;  %v4696_v36 = vmul.f32 %v7020_v21, %v14257_v12  ;;  %7029 = vrsqrt.f32 %v4639_v32 }
 0x47d   : > { %v4734_v55 = vmul.f32 %v14262_v1, %v4697_v59  ;;  %7031 = vrsqrt.f32 %v4638_v9  ;;  %v4571_v13 = vpop.xlane.xlu0 %4570 }
 0x47e   : > { %v7022_v57 = vpop.eup %7021  ;;  %v4792_v24 = vpack.c.bf16 %v4769_v54, %v4768_v29  ;;  %v4733_v22 = vmul.f32 %v14262_v1, %v4696_v36  ;;  %v4608_v15 = vmul.f32 0.0078125, %v4571_v13 }
 0x47f   : > { %5011 = vmatmul.mubr.bf16.gmra.mrb[28].mxu0 %v4791_v43  ;;  %v7024_v26 = vpop.eup %7023  ;;  %v4699_v23 = vmul.f32 %v7022_v57, %v14348_v14  ;;  %v4771_v48 = vadd.f32 %v14277_v20, %v4734_v55 }
 0x480   : > { %5020 = vmatprep.mubr.bf16.mxu0 %v7374_v60  ;;  %v4698_v12 = vmul.f32 %v7024_v26, %v14289_v56  ;;  %v4770_v53 = vadd.f32 %v14277_v20, %v4733_v22  ;;  %v4640_v3 = vadd.f32 1e-06, %v4608_v15 }
 0x481   : > { %v4736_v28 = vmul.f32 %v14262_v1, %v4699_v23 }
 0x482   : > { %v7026_v37 = vpop.eup %7025  ;;  %v4793_v62 = vpack.c.bf16 %v4771_v48, %v4770_v53  ;;  %v4735_v49 = vmul.f32 %v14262_v1, %v4698_v12  ;;  %7033 = vrsqrt.f32 %v4640_v3  ;;  %v4816_v3 = vld [vmem:[%s15878_s4] ss:$4 sm:$0x3] }
 0x483   : > { %v7028_v51 = vpop.eup %7027  ;;  %v4773_v14 = vadd.f32 %v14277_v20, %v4736_v28  ;;  %v4701_v63 = vmul.f32 %v7026_v37, %v14355_v61 }
 0x484   : > { %v4772_v56 = vadd.f32 %v14277_v20, %v4735_v49  ;;  %v4700_v52 = vmul.f32 %v7028_v51, %v14304_v35 }
 0x485   : > { %v4738_v8 = vmul.f32 %v14262_v1, %v4701_v63 }
 0x486   : > { %v4794_v16 = vpack.c.bf16 %v4773_v14, %v4772_v56  ;;  %v7030_v47 = vpop.eup %7029  ;;  %v4737_v0 = vmul.f32 %v14262_v1, %v4700_v52 }
 0x487   : > { %5021 = vmatmul.mubr.bf16.gmra.mrb[32].mxu0 %v4792_v24  ;;  %v7032_v27 = vpop.eup %7031  ;;  %v4775_v4 = vadd.f32 %v14277_v20, %v4738_v8  ;;  %v4703_v61 = vmul.f32 %v7030_v47, %v14360_v17 }
 0x488   : > { %5030 = vmatprep.mubr.bf16.mxu0 %v7374_v60  ;;  %v4774_v39 = vadd.f32 %v14277_v20, %v4737_v0  ;;  %v4702_v35 = vmul.f32 %v7032_v27, %v14325_v34  ;;  %v4818_v27 = vlaneseq }
 0x489   : > { %v4740_v38 = vmul.f32 %v14262_v1, %v4703_v61 }
 0x48a   : > { %v4795_v7 = vpack.c.bf16 %v4775_v4, %v4774_v39  ;;  %v4739_v44 = vmul.f32 %v14262_v1, %v4702_v35  ;;  %v14510_v4 = vshrl.u32 %v4818_v27, 7 }
 0x48b   : > { %v4777_v45 = vadd.f32 %v14277_v20, %v4740_v38 }
 0x48c   : > { %v4776_v34 = vadd.f32 %v14277_v20, %v4739_v44  ;;  %v7034_v21 = vpop.eup %7033  ;;  %v14513_v39 = vsub.s32 0, %v14510_v4 }
 0x48d   : > { %v4704_v50 = vmul.f32 %v7034_v21, %v14369_v41 }
 0x48e   : > { %v4796_v10 = vpack.c.bf16 %v4777_v45, %v4776_v34 }
 0x48f   : > { %5031 = vmatmul.mubr.bf16.gmra.mrb[36].mxu0 %v4793_v62  ;;  %v4741_v36 = vmul.f32 %v14262_v1, %v4704_v50 }
 0x490   : > { %5040 = vmatprep.mubr.bf16.mxu0 %v7374_v60 }
 0x491   : > { %v4778_v32 = vadd.f32 %v14277_v20, %v4741_v36 }
 0x495   : > { %v4573_v46 = vpop.xlane.xlu1 %4572 }
 0x496   : > { %v4609_v17 = vmul.f32 0.0078125, %v4573_v46 }
 0x497   : > { %5041 = vmatmul.mubr.bf16.gmra.mrb[40].mxu0 %v4794_v16 }
 0x498   : > { %5050 = vmatprep.mubr.bf16.mxu0 %v7374_v60  ;;  %v4641_v2 = vadd.f32 1e-06, %v4609_v17 }
 0x49a   : > { %7035 = vrsqrt.f32 %v4641_v2 }
 0x49f   : > { %5051 = vmatmul.mubr.bf16.gmra.mrb[44].mxu0 %v4795_v7  ;;  %v14461_v58 = vpop.f32.mrb[0].mxu0  ;;  %v14519_v7 = vsub.s32 1, %v14510_v4 }
 0x4a0   : > { %5060 = vmatprep.mubr.bf16.mxu0 %v7374_v60  ;;  %v14464_v43 = vpop.f32.mrb[1].mxu0 }
 0x4a1   : > { %v14467_v33 = vpop.f32.mrb[2].mxu0  ;;  %v14525_v38 = vrot.slane %v4816_v3, %v14519_v7 }
 0x4a2   : > { %v14469_v25 = vpop.f32.mrb[3].mxu0 }
 0x4a3   : > { %v14533_v45 = vadd.f32 %v14464_v43, %v14525_v38  ;;  %v14550_v50 = vadd.f32 %v14469_v25, %v14525_v38 }
 0x4a4   : > { %v7036_v11 = vpop.eup %7035 }
 0x4a5   : > { %v4705_v29 = vmul.f32 %v7036_v11, %v14377_v30  ;;  %v5104_v25 = vmul.f32 %v14550_v50, %v14550_v50 }
 0x4a7   : > { %5061 = vmatmul.mubr.bf16.gmra.mrb[48].mxu0 %v4796_v10  ;;  %v14471_v18 = vpop.f32.mrb[4].mxu0  ;;  %v4742_v24 = vmul.f32 %v14262_v1, %v4705_v29 }
 0x4a8   : > { %5070 = vmatprep.mubr.bf16.mxu0 %v7374_v60  ;;  %v14474_v19 = vpop.f32.mrb[5].mxu0 }
 0x4a9   : > { %v14476_v54 = vpop.f32.mrb[6].mxu0  ;;  %v4779_v22 = vadd.f32 %v14277_v20, %v4742_v24 }
 0x4aa   : > { %v14478_v59 = vpop.f32.mrb[7].mxu0 }
 0x4ab   : > { %v4797_v41 = vpack.c.bf16 %v4779_v22, %v4778_v32 }
 0x4ae   : > { %v4575_v30 = vpop.xlane.xlu0 %4574 }
 0x4af   : > { %v14483_v57 = vpop.f32.mrb[8].mxu0  ;;  %5071 = vmatmul.mubr.bf16.gmra.mrb[52].mxu0 %v4797_v41  ;;  %v4610_v23 = vmul.f32 0.0078125, %v4575_v30 }
 0x4b0   : > { %v14485_v6 = vpop.f32.mrb[9].mxu0  ;;  %5080 = vmatprep.mubr.bf16.mxu0 %v7374_v60 }
 0x4b1   : > { %v14488_v55 = vpop.f32.mrb[10].mxu0  ;;  %v4642_v9 = vadd.f32 1e-06, %v4610_v23 }
 0x4b2   : > { %v14490_v26 = vpop.f32.mrb[11].mxu0 }
 0x4b3   : > { %7037 = vrsqrt.f32 %v4642_v9 }
 0x4bd   : > { %v7038_v28 = vpop.eup %7037 }
 0x4be   : > { %v4706_v62 = vmul.f32 %v7038_v28, %v14386_v31 }
 0x4c0   : > { %v14495_v37 = vpop.f32.mrb[12].mxu0  ;;  %v4743_v52 = vmul.f32 %v14262_v1, %v4706_v62 }
 0x4c1   : > { %v14498_v49 = vpop.f32.mrb[13].mxu0 }
 0x4c2   : > { %v14500_v51 = vpop.f32.mrb[14].mxu0  ;;  %v4780_v16 = vadd.f32 %v14277_v20, %v4743_v52 }
 0x4c3   : > { %v14502_v14 = vpop.f32.mrb[15].mxu0 }
 0x4c4   : > { %v4577_v48 = vpop.xlane.xlu1 %4576 }
 0x4c5   : > { %v4611_v12 = vmul.f32 0.0078125, %v4577_v48 }
 0x4c7   : > { %v4643_v53 = vadd.f32 1e-06, %v4611_v12  ;;  %v5168_v12 = vmul.f32 %v5104_v25, %v14550_v50 }
 0x4c9   : > { %7039 = vrsqrt.f32 %v4643_v53 }
 0x4d3   : > { %v7040_v63 = vpop.eup %7039 }
 0x4d4   : > { %v4707_v56 = vmul.f32 %v7040_v63, %v14394_v40  ;;  %v5232_v63 = vmul.f32 0.044715, %v5168_v12 }
 0x4d6   : > { %v4744_v13 = vmul.f32 %v14262_v1, %v4707_v56  ;;  %v14588_v56 = vadd.f32 %v14478_v59, %v14525_v38 }
 0x4d8   : > { %v4781_v8 = vadd.f32 %v14277_v20, %v4744_v13 }
 0x4da   : > { %v4798_v47 = vpack.c.bf16 %v4781_v8, %v4780_v16 }
 0x4dc   : > { %5081 = vmatmul.mubr.bf16.gmra.mrb[56].mxu0 %v4798_v47  ;;  %v4579_v31 = vpop.xlane.xlu0 %4578 }
 0x4dd   : > { %5090 = vmatprep.mubr.bf16.mxu0 %v7374_v60  ;;  %v4612_v0 = vmul.f32 0.0078125, %v4579_v31  ;;  %v14522_v60 = vrot.slane %v4816_v3, %v14513_v39  ;;  %v5296_v31 = vadd.f32 %v5232_v63, %v14550_v50  ;;  %v14606_v3 = vadd.f32 %v14485_v6, %v14525_v38 }
 0x4df   : > { %v4644_v15 = vadd.f32 1e-06, %v4612_v0  ;;  %v14529_v46 = vadd.f32 %v14461_v58, %v14522_v60  ;;  %v14540_v2 = vadd.f32 %v14467_v33, %v14522_v60  ;;  %v14570_v23 = vadd.f32 %v14471_v18, %v14522_v60 }
 0x4e0   : > { %v14583_v18 = vadd.f32 %v14476_v54, %v14522_v60  ;;  %v5108_v0 = vmul.f32 %v14588_v56, %v14588_v56  ;;  %v14601_v59 = vadd.f32 %v14483_v57, %v14522_v60  ;;  %v5110_v6 = vmul.f32 %v14606_v3, %v14606_v3 }
 0x4e1   : > { %7041 = vrsqrt.f32 %v4644_v15  ;;  %v5101_v58 = vmul.f32 %v14529_v46, %v14529_v46  ;;  %v5103_v36 = vmul.f32 %v14540_v2, %v14540_v2  ;;  %v14645_v12 = vadd.f32 %v14500_v51, %v14522_v60 }
 0x4e2   : > { %v5107_v47 = vmul.f32 %v14583_v18, %v14583_v18 }
 0x4e3   : > { %v5165_v32 = vmul.f32 %v5101_v58, %v14529_v46  ;;  %v5109_v58 = vmul.f32 %v14601_v59, %v14601_v59 }
 0x4e5   : > { %v5229_v48 = vmul.f32 0.044715, %v5165_v32  ;;  %v5173_v32 = vmul.f32 %v5109_v58, %v14601_v59 }
 0x4eb   : > { %v7042_v44 = vpop.eup %7041 }
 0x4ec   : > { %v4708_v34 = vmul.f32 %v7042_v44, %v14403_v42  ;;  %v5102_v42 = vmul.f32 %v14533_v45, %v14533_v45  ;;  %v5360_v44 = vmul.f32 0.7978846, %v5296_v31 }
 0x4ee   : > { %v4745_v29 = vmul.f32 %v14262_v1, %v4708_v34  ;;  %v5166_v22 = vmul.f32 %v5102_v42, %v14533_v45  ;;  %v5172_v34 = vmul.f32 %v5108_v0, %v14588_v56 }
 0x4ef   : > { %v4581_v40 = vpop.xlane.xlu1 %4580 }
 0x4f0   : > { %v4613_v61 = vmul.f32 0.0078125, %v4581_v40  ;;  %v14535_v17 = vpop.f32.mrb[16].mxu0  ;;  %v4782_v41 = vadd.f32 %v14277_v20, %v4745_v29  ;;  %v5230_v53 = vmul.f32 0.044715, %v5166_v22  ;;  %v14621_v29 = vadd.f32 %v14490_v26, %v14525_v38 }
 0x4f1   : > { %v14542_v10 = vpop.f32.mrb[17].mxu0 }
 0x4f2   : > { %v4645_v35 = vadd.f32 1e-06, %v4613_v61  ;;  %v14544_v21 = vpop.f32.mrb[18].mxu0  ;;  %v5294_v52 = vadd.f32 %v5230_v53, %v14533_v45 }
 0x4f3   : > { %v14552_v43 = vpop.f32.mrb[19].mxu0 }
 0x4f4   : > { %7043 = vrsqrt.f32 %v4645_v35  ;;  %v5358_v27 = vmul.f32 0.7978846, %v5294_v52  ;;  %v5171_v35 = vmul.f32 %v5107_v47, %v14583_v18 }
 0x4fe   : > { %v7044_v11 = vpop.eup %7043 }
 0x4ff   : > { %v4709_v33 = vmul.f32 %v7044_v11, %v14411_v5  ;;  %v5167_v5 = vmul.f32 %v5103_v36, %v14540_v2  ;;  %v14614_v11 = vadd.f32 %v14488_v55, %v14522_v60  ;;  %v5236_v36 = vmul.f32 0.044715, %v5172_v34 }
 0x500   : > { %v14630_v55 = vadd.f32 %v14498_v49, %v14525_v38 }
 0x501   : > { %v4746_v24 = vmul.f32 %v14262_v1, %v4709_v33  ;;  %v14574_v1 = vadd.f32 %v14474_v19, %v14525_v38  ;;  %v5231_v28 = vmul.f32 0.044715, %v5167_v5  ;;  %v5293_v19 = vadd.f32 %v5229_v48, %v14529_v46 }
 0x502   : > { %v5235_v33 = vmul.f32 0.044715, %v5171_v35  ;;  %v5111_v22 = vmul.f32 %v14614_v11, %v14614_v11  ;;  %v5112_v5 = vmul.f32 %v14621_v29, %v14621_v29  ;;  %v5237_v48 = vmul.f32 0.044715, %v5173_v32 }
 0x503   : > { %v4783_v30 = vadd.f32 %v14277_v20, %v4746_v24  ;;  %v5105_v20 = vmul.f32 %v14570_v23, %v14570_v23  ;;  %v5106_v62 = vmul.f32 %v14574_v1, %v14574_v1  ;;  %v5295_v13 = vadd.f32 %v5231_v28, %v14540_v2 }
 0x504   : > { %v5357_v54 = vmul.f32 0.7978846, %v5293_v19  ;;  %v14625_v24 = vadd.f32 %v14495_v37, %v14522_v60  ;;  %v5299_v26 = vadd.f32 %v5235_v33, %v14583_v18  ;;  %v5300_v37 = vadd.f32 %v5236_v36, %v14588_v56 }
 0x505   : > { %v4799_v9 = vpack.c.bf16 %v4783_v30, %v4782_v41  ;;  %v5169_v16 = vmul.f32 %v5105_v20, %v14570_v23  ;;  %v5170_v8 = vmul.f32 %v5106_v62, %v14574_v1  ;;  %v5359_v15 = vmul.f32 0.7978846, %v5295_v13 }
 0x506   : > { %7045 = vtanh.f32 %v5357_v54  ;;  %v5174_v30 = vmul.f32 %v5110_v6, %v14606_v3  ;;  %v5114_v49 = vmul.f32 %v14630_v55, %v14630_v55  ;;  %v5175_v28 = vmul.f32 %v5111_v22, %v14614_v11 }
 0x507   : > { %5091 = vmatmul.mubr.bf16.gmra.mrb[60].mxu0 %v4799_v9  ;;  %v5233_v40 = vmul.f32 0.044715, %v5169_v16  ;;  %v5234_v61 = vmul.f32 0.044715, %v5170_v8  ;;  %7047 = vtanh.f32 %v5358_v27  ;;  %v5113_v9 = vmul.f32 %v14625_v24, %v14625_v24 }
 0x508   : > { %7049 = vtanh.f32 %v5359_v15  ;;  %v14650_v20 = vadd.f32 %v14502_v14, %v14525_v38  ;;  %v5363_v19 = vmul.f32 0.7978846, %v5299_v26  ;;  %v5238_v63 = vmul.f32 0.044715, %v5174_v30 }
 0x509   : > { %v5297_v57 = vadd.f32 %v5233_v40, %v14570_v23  ;;  %v5298_v42 = vadd.f32 %v5234_v61, %v14574_v1  ;;  %7051 = vtanh.f32 %v5360_v44  ;;  %v5176_v52 = vmul.f32 %v5112_v5, %v14621_v29 }
 0x50a   : > { %v5364_v16 = vmul.f32 0.7978846, %v5300_v37  ;;  %v5177_v8 = vmul.f32 %v5113_v9, %v14625_v24  ;;  %v5301_v51 = vadd.f32 %v5237_v48, %v14601_v59  ;;  %v5178_v47 = vmul.f32 %v5114_v49, %v14630_v55 }
 0x50b   : > { %v5361_v25 = vmul.f32 0.7978846, %v5297_v57  ;;  %v5362_v41 = vmul.f32 0.7978846, %v5298_v42  ;;  %v5115_v54 = vmul.f32 %v14645_v12, %v14645_v12  ;;  %v5239_v14 = vmul.f32 0.044715, %v5175_v28 }
 0x50c   : > { %v5116_v0 = vmul.f32 %v14650_v20, %v14650_v20  ;;  %v5302_v15 = vadd.f32 %v5238_v63, %v14606_v3  ;;  %v5240_v40 = vmul.f32 0.044715, %v5176_v52  ;;  %v5241_v44 = vmul.f32 0.044715, %v5177_v8 }
 0x50d   : > { %7053 = vtanh.f32 %v5361_v25  ;;  %v5365_v58 = vmul.f32 0.7978846, %v5301_v51  ;;  %v5242_v57 = vmul.f32 0.044715, %v5178_v47  ;;  %v5179_v42 = vmul.f32 %v5115_v54, %v14645_v12 }
 0x50e   : > { %7055 = vtanh.f32 %v5362_v41  ;;  %v5303_v6 = vadd.f32 %v5239_v14, %v14614_v11  ;;  %v5180_v36 = vmul.f32 %v5116_v0, %v14650_v20  ;;  %v14666_v32 = vadd.f32 %v14535_v17, %v14522_v60 }
 0x50f   : > { %7057 = vtanh.f32 %v5363_v19  ;;  %v5366_v22 = vmul.f32 0.7978846, %v5302_v15  ;;  %v5304_v41 = vadd.f32 %v5240_v40, %v14621_v29  ;;  %v14671_v26 = vadd.f32 %v14542_v10, %v14525_v38 }
 0x510   : > { %v7046_v53 = vpop.eup %7045  ;;  %7059 = vtanh.f32 %v5364_v16  ;;  %v5305_v49 = vadd.f32 %v5241_v44, %v14625_v24  ;;  %v5243_v19 = vmul.f32 0.044715, %v5179_v42  ;;  %v5367_v63 = vmul.f32 0.7978846, %v5303_v6 }
 0x511   : > { %v7048_v62 = vpop.eup %7047  ;;  %v5485_v27 = vadd.f32 1.0, %v7046_v53  ;;  %7061 = vtanh.f32 %v5365_v58  ;;  %v5244_v52 = vmul.f32 0.044715, %v5180_v36  ;;  %v5117_v10 = vmul.f32 %v14666_v32, %v14666_v32 }
 0x512   : > { %v7050_v13 = vpop.eup %7049  ;;  %v5486_v61 = vadd.f32 1.0, %v7048_v62  ;;  %v5306_v62 = vadd.f32 %v5242_v57, %v14630_v55  ;;  %7063 = vtanh.f32 %v5366_v22  ;;  %v5368_v8 = vmul.f32 0.7978846, %v5304_v41 }
 0x513   : > { %v7052_v31 = vpop.eup %7051  ;;  %v5487_v35 = vadd.f32 1.0, %v7050_v13  ;;  %v5549_v37 = vmul.f32 0.5, %v5485_v27  ;;  %v14683_v13 = vadd.f32 %v14544_v21, %v14522_v60  ;;  %v5118_v51 = vmul.f32 %v14671_v26, %v14671_v26 }
 0x514   : > { %v5488_v34 = vadd.f32 1.0, %v7052_v31  ;;  %v5550_v9 = vmul.f32 0.5, %v5486_v61  ;;  %v5369_v31 = vmul.f32 0.7978846, %v5305_v49  ;;  %v14692_v14 = vadd.f32 %v14552_v43, %v14525_v38 }
 0x515   : > { %v5551_v48 = vmul.f32 0.5, %v5487_v35  ;;  %v14688_v47 = vmul.f32 %v5549_v37, %v14529_v46  ;;  %v5370_v15 = vmul.f32 0.7978846, %v5306_v62  ;;  %v5307_v40 = vadd.f32 %v5243_v19, %v14645_v12 }
 0x516   : > { %v5552_v28 = vmul.f32 0.5, %v5488_v34  ;;  %v14695_v27 = vmul.f32 %v5550_v9, %v14533_v45  ;;  %7065 = vtanh.f32 %v5367_v63  ;;  %v5308_v46 = vadd.f32 %v5244_v52, %v14650_v20 }
 0x517   : > { %v7054_v5 = vpop.eup %7053  ;;  %v14698_v21 = vmul.f32 %v5551_v48, %v14540_v2  ;;  %v5181_v35 = vmul.f32 %v5117_v10, %v14666_v32  ;;  %v5119_v43 = vmul.f32 %v14683_v13, %v14683_v13  ;;  %7067 = vtanh.f32 %v5368_v8 }
 0x518   : > { %v7056_v17 = vpop.eup %7055  ;;  %v5489_v16 = vadd.f32 1.0, %v7054_v5  ;;  %v14706_v44 = vmul.f32 %v5552_v28, %v14550_v50  ;;  %v5182_v2 = vmul.f32 %v5118_v51, %v14671_v26  ;;  %7069 = vtanh.f32 %v5369_v31 }
 0x519   : > { %v5490_v54 = vadd.f32 1.0, %v7056_v17  ;;  %v7058_v0 = vpop.eup %7057  ;;  %v5120_v57 = vmul.f32 %v14692_v14, %v14692_v14  ;;  %7071 = vtanh.f32 %v5370_v15  ;;  %v5371_v6 = vmul.f32 0.7978846, %v5307_v40 }
 0x51a   : > { %v7060_v61 = vpop.eup %7059  ;;  %v5553_v45 = vmul.f32 0.5, %v5489_v16  ;;  %v5491_v58 = vadd.f32 1.0, %v7058_v0  ;;  %v5372_v22 = vmul.f32 0.7978846, %v5308_v46  ;;  %v5245_v41 = vmul.f32 0.044715, %v5181_v35 }
 0x51b   : > { %v5554_v34 = vmul.f32 0.5, %v5490_v54  ;;  %v5492_v42 = vadd.f32 1.0, %v7060_v61  ;;  %v5183_v50 = vmul.f32 %v5119_v43, %v14683_v13  ;;  %v7062_v37 = vpop.eup %7061  ;;  %v5677_v9 = vmul.f32 %v14688_v47, %v14688_v47 }
 0x51c   : > { %v5679_v48 = vmul.f32 %v14698_v21, %v14698_v21  ;;  %v14723_v49 = vmul.f32 %v5553_v45, %v14570_v23  ;;  %v5246_v17 = vmul.f32 0.044715, %v5182_v2  ;;  %v5680_v28 = vmul.f32 %v14706_v44, %v14706_v44  ;;  %v7064_v19 = vpop.eup %7063 }
 0x51d   : > { %v5555_v62 = vmul.f32 0.5, %v5491_v58  ;;  %v14731_v63 = vmul.f32 %v5554_v34, %v14574_v1  ;;  %v5556_v52 = vmul.f32 0.5, %v5492_v42  ;;  %7073 = vtanh.f32 %v5371_v6 }
 0x51e   : > { %17613 = vst [vmem:[#allocation52_spill] sm:$0xff] %v14723_v49  ;;  %7075 = vtanh.f32 %v5372_v22  ;;  %v5309_v10 = vadd.f32 %v5245_v41, %v14666_v32  ;;  %v5247_v16 = vmul.f32 0.044715, %v5183_v50  ;;  %v5741_v51 = vadd.f32 %v5679_v48, %v5677_v9 }
 0x51f   : > { %v4992_v33 = vpop.f32.mrb[20].mxu0  ;;  %v5681_v54 = vmul.f32 %v14723_v49, %v14723_v49  ;;  %v5493_v31 = vadd.f32 1.0, %v7062_v37  ;;  %v5310_v1 = vadd.f32 %v5246_v17, %v14671_v26  ;;  %v5494_v40 = vadd.f32 1.0, %v7064_v19 }
 0x520   : > { %v4994_v25 = vpop.f32.mrb[21].mxu0  ;;  %v14712_v36 = vadd.f32 %v4992_v33, %v14522_v60  ;;  %v5678_v33 = vmul.f32 %v14695_v27, %v14695_v27  ;;  %v7066_v0 = vpop.eup %7065  ;;  %v5682_v43 = vmul.f32 %v14731_v63, %v14731_v63  ;;  %v14748_v45 = vmul.f32 %v5555_v62, %v14583_v18 }
 0x521   : > { %v14673_v30 = vpop.f32.mrb[22].mxu0  ;;  %v14716_v5 = vadd.f32 %v4994_v25, %v14525_v38  ;;  %v5184_v25 = vmul.f32 %v5120_v57, %v14692_v14  ;;  %v7068_v35 = vpop.eup %7067  ;;  %v14756_v57 = vmul.f32 %v5556_v52, %v14588_v56  ;;  %v5373_v42 = vmul.f32 0.7978846, %v5309_v10 }
 0x522   : > { %v14676_v53 = vpop.f32.mrb[23].mxu0  ;;  %v5121_v23 = vmul.f32 %v14712_v36, %v14712_v36  ;;  %v5762_v15 = vadd.f32 %v5680_v28, %v5678_v33  ;;  %v14743_v46 = vadd.f32 %v14673_v30, %v14522_v60  ;;  %17614 = vst [vmem:[#allocation57_spill] sm:$0xff] %v14748_v45  ;;  %v7070_v58 = vpop.eup %7069  ;;  %v5311_v30 = vadd.f32 %v5247_v16, %v14683_v13 }
 0x523   : > { %v5122_v8 = vmul.f32 %v14716_v5, %v14716_v5  ;;  %v5248_v61 = vmul.f32 0.044715, %v5184_v25  ;;  %v14753_v34 = vadd.f32 %v14676_v53, %v14525_v38  ;;  %v7072_v22 = vpop.eup %7071  ;;  %v5742_v41 = vadd.f32 %v5741_v51, %v5681_v54 }
 0x524   : > { %v5185_v2 = vmul.f32 %v5121_v23, %v14712_v36  ;;  %v5557_v50 = vmul.f32 0.5, %v5493_v31  ;;  %v5495_v18 = vadd.f32 1.0, %v7066_v0  ;;  %v5374_v37 = vmul.f32 0.7978846, %v5310_v1 }
 0x525   : > { %v5186_v6 = vmul.f32 %v5122_v8, %v14716_v5  ;;  %v5558_v9 = vmul.f32 0.5, %v5494_v40  ;;  %v5496_v48 = vadd.f32 1.0, %v7068_v35  ;;  %v5312_v17 = vadd.f32 %v5248_v61, %v14692_v14 }
 0x526   : > { %v5123_v53 = vmul.f32 %v14743_v46, %v14743_v46  ;;  %v5683_v56 = vmul.f32 %v14748_v45, %v14748_v45  ;;  %v5497_v33 = vadd.f32 1.0, %v7070_v58  ;;  %v5249_v28 = vmul.f32 0.044715, %v5185_v2 }
 0x527   : > { %v5124_v62 = vmul.f32 %v14753_v34, %v14753_v34  ;;  %v5498_v25 = vadd.f32 1.0, %v7072_v22  ;;  %7077 = vtanh.f32 %v5373_v42  ;;  %v5375_v19 = vmul.f32 0.7978846, %v5311_v30  ;;  %v7074_v23 = vpop.eup %7073 }
 0x528   : > { %v5250_v52 = vmul.f32 0.044715, %v5186_v6  ;;  %v5763_v10 = vadd.f32 %v5762_v15, %v5682_v43  ;;  %v14768_v16 = vmul.f32 %v5557_v50, %v14601_v59  ;;  %v5559_v8 = vmul.f32 0.5, %v5495_v18  ;;  %v7076_v51 = vpop.eup %7075 }
 0x529   : > { %7079 = vtanh.f32 %v5374_v37  ;;  %v14771_v54 = vmul.f32 %v5558_v9, %v14606_v3  ;;  %v5560_v31 = vmul.f32 0.5, %v5496_v48  ;;  %v5376_v1 = vmul.f32 0.7978846, %v5312_v17 }
 0x52a   : > { %17615 = vst [vmem:[#allocation60_spill] sm:$0xff] %v14768_v16  ;;  %v5187_v0 = vmul.f32 %v5123_v53, %v14743_v46  ;;  %v5684_v40 = vmul.f32 %v14756_v57, %v14756_v57  ;;  %v5561_v61 = vmul.f32 0.5, %v5497_v33  ;;  %v5313_v35 = vadd.f32 %v5249_v28, %v14712_v36 }
 0x52b   : > { %17616 = vst [vmem:[#allocation59_spill] sm:$0xff] %v14771_v54  ;;  %v5188_v15 = vmul.f32 %v5124_v62, %v14753_v34  ;;  %v5562_v59 = vmul.f32 0.5, %v5498_v25  ;;  %v5499_v43 = vadd.f32 1.0, %v7074_v23  ;;  %7081 = vtanh.f32 %v5375_v19 }
 0x52c   : > { %v5314_v2 = vadd.f32 %v5250_v52, %v14716_v5  ;;  %v5685_v3 = vmul.f32 %v14768_v16, %v14768_v16  ;;  %v14782_v58 = vmul.f32 %v5559_v8, %v14614_v11  ;;  %v5500_v42 = vadd.f32 1.0, %v7076_v51 }
 0x52d   : > { %v5686_v30 = vmul.f32 %v14771_v54, %v14771_v54  ;;  %v14787_v6 = vmul.f32 %v5560_v31, %v14621_v29  ;;  %7083 = vtanh.f32 %v5376_v1  ;;  %v5251_v22 = vmul.f32 0.044715, %v5187_v0 }
 0x52e   : > { %17617 = vst [vmem:[#allocation55_spill] sm:$0xff] %v14782_v58  ;;  %v5743_v50 = vadd.f32 %v5742_v41, %v5683_v56  ;;  %v5764_v18 = vadd.f32 %v5763_v10, %v5684_v40  ;;  %v5377_v37 = vmul.f32 0.7978846, %v5313_v35  ;;  %v5252_v9 = vmul.f32 0.044715, %v5188_v15 }
 0x52f   : > { %17618 = vst [vmem:[#allocation23_spill] sm:$0xff] %v14787_v6  ;;  %v14790_v48 = vmul.f32 %v5561_v61, %v14625_v24  ;;  %v14793_v17 = vmul.f32 %v5562_v59, %v14630_v55  ;;  %v5563_v11 = vmul.f32 0.5, %v5499_v43  ;;  %v5378_v53 = vmul.f32 0.7978846, %v5314_v2 }
 0x530   : > { %v5744_v33 = vadd.f32 %v5743_v50, %v5685_v3  ;;  %v5564_v28 = vmul.f32 0.5, %v5500_v42  ;;  %v5765_v25 = vadd.f32 %v5764_v18, %v5686_v30  ;;  %v5687_v29 = vmul.f32 %v14782_v58, %v14782_v58 }
 0x531   : > { %17619 = vst [vmem:[#allocation25_spill] sm:$0xff] %v14790_v48  ;;  %17620 = vst [vmem:[#allocation29_spill] sm:$0xff] %v14793_v17  ;;  %v7078_v62 = vpop.eup %7077  ;;  %v5688_v41 = vmul.f32 %v14787_v6, %v14787_v6  ;;  %v5315_v56 = vadd.f32 %v5251_v22, %v14743_v46  ;;  %7085 = vtanh.f32 %v5377_v37  ;;  %v5316_v24 = vadd.f32 %v5252_v9, %v14753_v34 }
 0x532   : > { %v5689_v55 = vmul.f32 %v14790_v48, %v14790_v48  ;;  %v5690_v52 = vmul.f32 %v14793_v17, %v14793_v17  ;;  %v14806_v23 = vmul.f32 %v5563_v11, %v14645_v12  ;;  %7087 = vtanh.f32 %v5378_v53 }
 0x533   : > { %v7080_v19 = vpop.eup %7079  ;;  %v14809_v10 = vmul.f32 %v5564_v28, %v14650_v20  ;;  %v5501_v8 = vadd.f32 1.0, %v7078_v62  ;;  %v5745_v31 = vadd.f32 %v5744_v33, %v5687_v29  ;;  %v5766_v1 = vadd.f32 %v5765_v25, %v5688_v41 }
 0x534   : > { %17621 = vst [vmem:[#allocation38_spill] sm:$0xff] %v14806_v23  ;;  %v5502_v0 = vadd.f32 1.0, %v7080_v19  ;;  %v5379_v40 = vmul.f32 0.7978846, %v5315_v56  ;;  %v5380_v61 = vmul.f32 0.7978846, %v5316_v24  ;;  %v5691_v2 = vmul.f32 %v14806_v23, %v14806_v23 }
 0x535   : > { %17622 = vst [vmem:[#allocation11_spill] sm:$0xff] %v14809_v10  ;;  %v7082_v51 = vpop.eup %7081  ;;  %v5746_v59 = vadd.f32 %v5745_v31, %v5689_v55  ;;  %v5767_v43 = vadd.f32 %v5766_v1, %v5690_v52  ;;  %v5692_v20 = vmul.f32 %v14809_v10, %v14809_v10  ;;  %v5565_v42 = vmul.f32 0.5, %v5501_v8 }
 0x536   : > { %v5503_v30 = vadd.f32 1.0, %v7082_v51  ;;  %v5566_v18 = vmul.f32 0.5, %v5502_v0  ;;  %7089 = vtanh.f32 %v5379_v40 }
 0x537   : > { %v7084_v15 = vpop.eup %7083  ;;  %7091 = vtanh.f32 %v5380_v61  ;;  %v14834_v41 = vadd.f32 %v5746_v59, %v5691_v2  ;;  %v14836_v56 = vadd.f32 %v5767_v43, %v5692_v20  ;;  %v14842_v52 = vmul.f32 %v5565_v42, %v14666_v32 }
 0x538   : > { %v5504_v53 = vadd.f32 1.0, %v7084_v15  ;;  %v5567_v8 = vmul.f32 0.5, %v5503_v30  ;;  %v14846_v1 = vmul.f32 %v5566_v18, %v14671_v26 }
 0x539   : > { %17623 = vst [vmem:[#allocation35_spill] sm:$0xff] %v14842_v52 }
 0x53a   : > { %17624 = vst [vmem:[#allocation41_spill] sm:$0xff] %v14846_v1  ;;  %v5568_v0 = vmul.f32 0.5, %v5504_v53 }
 0x53b   : > { %v7086_v29 = vpop.eup %7085 }
 0x53c   : > { %v7088_v55 = vpop.eup %7087  ;;  %v5505_v15 = vadd.f32 1.0, %v7086_v29 }
 0x54a   : > { %v5002_v35 = vpop.f32.mrb[24].mxu0 }
 0x54b   : > { %v14814_v12 = vadd.f32 %v5002_v35, %v14522_v60  ;;  %v5004_v3 = vpop.f32.mrb[25].mxu0 }
 0x54c   : > { %v14819_v22 = vadd.f32 %v5004_v3, %v14525_v38  ;;  %v5006_v50 = vpop.f32.mrb[26].mxu0  ;;  %v5506_v3 = vadd.f32 1.0, %v7088_v55 }
 0x54d   : > { %v5125_v37 = vmul.f32 %v14814_v12, %v14814_v12  ;;  %v14824_v9 = vadd.f32 %v5006_v50, %v14522_v60  ;;  %v5008_v11 = vpop.f32.mrb[27].mxu0 }
 0x54e   : > { %v5126_v33 = vmul.f32 %v14819_v22, %v14819_v22  ;;  %v14829_v28 = vadd.f32 %v5008_v11, %v14525_v38 }
 0x54f   : > { %v5189_v62 = vmul.f32 %v5125_v37, %v14814_v12  ;;  %v5127_v25 = vmul.f32 %v14824_v9, %v14824_v9 }
 0x550   : > { %v5190_v19 = vmul.f32 %v5126_v33, %v14819_v22  ;;  %v5128_v24 = vmul.f32 %v14829_v28, %v14829_v28 }
 0x551   : > { %v5253_v51 = vmul.f32 0.044715, %v5189_v62  ;;  %v5191_v31 = vmul.f32 %v5127_v25, %v14824_v9 }
 0x552   : > { %v5254_v40 = vmul.f32 0.044715, %v5190_v19  ;;  %v5192_v61 = vmul.f32 %v5128_v24, %v14829_v28  ;;  %v5012_v35 = vpop.f32.mrb[28].mxu0  ;;  %v7090_v19 = vpop.eup %7089 }
 0x553   : > { %v5317_v59 = vadd.f32 %v5253_v51, %v14814_v12  ;;  %v5255_v43 = vmul.f32 0.044715, %v5191_v31  ;;  %v14851_v2 = vadd.f32 %v5012_v35, %v14522_v60  ;;  %v5014_v32 = vpop.f32.mrb[29].mxu0  ;;  %v7092_v31 = vpop.eup %7091 }
 0x554   : > { %v5318_v20 = vadd.f32 %v5254_v40, %v14819_v22  ;;  %v5256_v42 = vmul.f32 0.044715, %v5192_v61  ;;  %v14855_v26 = vadd.f32 %v5014_v32, %v14525_v38  ;;  %v5016_v30 = vpop.f32.mrb[30].mxu0 }
 0x555   : > { %v5381_v50 = vmul.f32 0.7978846, %v5317_v59  ;;  %v5319_v18 = vadd.f32 %v5255_v43, %v14824_v9  ;;  %v5129_v37 = vmul.f32 %v14851_v2, %v14851_v2  ;;  %v14861_v11 = vadd.f32 %v5016_v30, %v14522_v60  ;;  %v5018_v53 = vpop.f32.mrb[31].mxu0 }
 0x556   : > { %v5382_v33 = vmul.f32 0.7978846, %v5318_v20  ;;  %v5320_v62 = vadd.f32 %v5256_v42, %v14829_v28  ;;  %v5130_v25 = vmul.f32 %v14855_v26, %v14855_v26  ;;  %v14867_v29 = vadd.f32 %v5018_v53, %v14525_v38 }
 0x557   : > { %7093 = vtanh.f32 %v5381_v50  ;;  %v5383_v24 = vmul.f32 0.7978846, %v5319_v18  ;;  %v5193_v55 = vmul.f32 %v5129_v37, %v14851_v2  ;;  %v5131_v51 = vmul.f32 %v14861_v11, %v14861_v11 }
 0x558   : > { %7095 = vtanh.f32 %v5382_v33  ;;  %v5384_v40 = vmul.f32 0.7978846, %v5320_v62  ;;  %v5194_v61 = vmul.f32 %v5130_v25, %v14855_v26  ;;  %v5132_v35 = vmul.f32 %v14867_v29, %v14867_v29 }
 0x559   : > { %v5569_v59 = vmul.f32 0.5, %v5505_v15  ;;  %7097 = vtanh.f32 %v5383_v24  ;;  %v5257_v43 = vmul.f32 0.044715, %v5193_v55  ;;  %v5195_v32 = vmul.f32 %v5131_v51, %v14861_v11 }
 0x55a   : > { %v5507_v20 = vadd.f32 1.0, %v7090_v19  ;;  %7099 = vtanh.f32 %v5384_v40  ;;  %v5258_v42 = vmul.f32 0.044715, %v5194_v61  ;;  %v5196_v30 = vmul.f32 %v5132_v35, %v14867_v29  ;;  %v14877_v50 = vpop.f32.mrb[32].mxu0 }
 0x55b   : > { %v5570_v18 = vmul.f32 0.5, %v5506_v3  ;;  %v5508_v37 = vadd.f32 1.0, %v7092_v31  ;;  %v5321_v53 = vadd.f32 %v5257_v43, %v14851_v2  ;;  %v5259_v33 = vmul.f32 0.044715, %v5195_v32  ;;  %v14880_v62 = vpop.f32.mrb[33].mxu0 }
 0x55c   : > { %v5693_v15 = vmul.f32 %v14842_v52, %v14842_v52  ;;  %v14885_v25 = vmul.f32 %v5567_v8, %v14683_v13  ;;  %v5322_v19 = vadd.f32 %v5258_v42, %v14855_v26  ;;  %v5260_v24 = vmul.f32 0.044715, %v5196_v30  ;;  %v14888_v55 = vpop.f32.mrb[34].mxu0 }
 0x55d   : > { %v5694_v3 = vmul.f32 %v14846_v1, %v14846_v1  ;;  %v14893_v51 = vmul.f32 %v5568_v0, %v14692_v14  ;;  %v5385_v31 = vmul.f32 0.7978846, %v5321_v53  ;;  %v5323_v40 = vadd.f32 %v5259_v33, %v14861_v11  ;;  %v14896_v61 = vpop.f32.mrb[35].mxu0 }
 0x55e   : > { %17625 = vst [vmem:[#allocation40_spill] sm:$0xff] %v14885_v25  ;;  %v14899_v35 = vmul.f32 %v5569_v59, %v14712_v36  ;;  %v5571_v13 = vmul.f32 0.5, %v5507_v20  ;;  %v5386_v8 = vmul.f32 0.7978846, %v5322_v19  ;;  %v5324_v43 = vadd.f32 %v5260_v24, %v14867_v29 }
 0x55f   : > { %17626 = vst [vmem:[#allocation13_spill] sm:$0xff] %v14893_v51  ;;  %v14903_v32 = vmul.f32 %v5570_v18, %v14716_v5  ;;  %v5572_v42 = vmul.f32 0.5, %v5508_v37  ;;  %7101 = vtanh.f32 %v5385_v31  ;;  %v5387_v30 = vmul.f32 0.7978846, %v5323_v40 }
 0x560   : > { %17627 = vst [vmem:[#allocation39_spill] sm:$0xff] %v14899_v35  ;;  %v5748_v14 = vadd.f32 %v14834_v41, %v5693_v15  ;;  %v5695_v0 = vmul.f32 %v14885_v25, %v14885_v25  ;;  %7103 = vtanh.f32 %v5386_v8  ;;  %v5388_v53 = vmul.f32 0.7978846, %v5324_v43 }
 0x561   : > { %17628 = vst [vmem:[#allocation45_spill] sm:$0xff] %v14903_v32  ;;  %v7094_v33 = vpop.eup %7093  ;;  %v5769_v36 = vadd.f32 %v14836_v56, %v5694_v3  ;;  %v5696_v59 = vmul.f32 %v14893_v51, %v14893_v51  ;;  %7105 = vtanh.f32 %v5387_v30  ;;  %v5697_v5 = vmul.f32 %v14899_v35, %v14899_v35 }
 0x562   : > { %v7096_v20 = vpop.eup %7095  ;;  %v14914_v18 = vmul.f32 %v5571_v13, %v14743_v46  ;;  %v5509_v41 = vadd.f32 1.0, %v7094_v33  ;;  %7107 = vtanh.f32 %v5388_v53  ;;  %v14916_v37 = vpop.f32.mrb[36].mxu0  ;;  %v5698_v19 = vmul.f32 %v14903_v32, %v14903_v32 }
 0x563   : > { %v7098_v15 = vpop.eup %7097  ;;  %v14921_v56 = vmul.f32 %v5572_v42, %v14753_v34  ;;  %v5510_v24 = vadd.f32 1.0, %v7096_v20  ;;  %v14923_v3 = vpop.f32.mrb[37].mxu0  ;;  %v5749_v40 = vadd.f32 %v5748_v14, %v5695_v0  ;;  %v5770_v13 = vadd.f32 %v5769_v36, %v5696_v59 }
 0x564   : > { %17629 = vst [vmem:[#allocation46_spill] sm:$0xff] %v14914_v18  ;;  %v7100_v31 = vpop.eup %7099  ;;  %v5573_v8 = vmul.f32 0.5, %v5509_v41  ;;  %v5511_v43 = vadd.f32 1.0, %v7098_v15  ;;  %v14925_v46 = vpop.f32.mrb[38].mxu0  ;;  %v5699_v32 = vmul.f32 %v14914_v18, %v14914_v18 }
 0x565   : > { %17630 = vst [vmem:[#allocation48_spill] sm:$0xff] %v14921_v56  ;;  %v5574_v30 = vmul.f32 0.5, %v5510_v24  ;;  %v5512_v53 = vadd.f32 1.0, %v7100_v31  ;;  %v14927_v33 = vpop.f32.mrb[39].mxu0  ;;  %v5750_v35 = vadd.f32 %v5749_v40, %v5697_v5  ;;  %v5771_v20 = vadd.f32 %v5770_v13, %v5698_v19 }
 0x566   : > { %v14932_v34 = vmul.f32 %v5573_v8, %v14814_v12  ;;  %v5575_v42 = vmul.f32 0.5, %v5511_v43  ;;  %v5700_v14 = vmul.f32 %v14921_v56, %v14921_v56 }
 0x567   : > { %v14937_v0 = vmul.f32 %v5574_v30, %v14819_v22  ;;  %v5576_v36 = vmul.f32 0.5, %v5512_v53  ;;  %v5751_v24 = vadd.f32 %v5750_v35, %v5699_v32 }
 0x568   : > { %17631 = vst [vmem:[#allocation36_spill] sm:$0xff] %v14932_v34  ;;  %v5701_v59 = vmul.f32 %v14932_v34, %v14932_v34  ;;  %v14942_v5 = vmul.f32 %v5575_v42, %v14824_v9  ;;  %v5772_v8 = vadd.f32 %v5771_v20, %v5700_v14 }
 0x569   : > { %17632 = vst [vmem:[#allocation10_spill] sm:$0xff] %v14937_v0  ;;  %v7102_v41 = vpop.eup %7101  ;;  %v5702_v12 = vmul.f32 %v14937_v0, %v14937_v0  ;;  %v14947_v15 = vmul.f32 %v5576_v36, %v14829_v28 }
 0x56a   : > { %17633 = vst [vmem:[#allocation49_spill] sm:$0xff] %v14942_v5  ;;  %v7104_v19 = vpop.eup %7103  ;;  %v5513_v31 = vadd.f32 1.0, %v7102_v41  ;;  %v14949_v40 = vpop.f32.mrb[40].mxu0  ;;  %v5752_v9 = vadd.f32 %v5751_v24, %v5701_v59  ;;  %v5703_v53 = vmul.f32 %v14942_v5, %v14942_v5 }
 0x56b   : > { %17634 = vst [vmem:[#allocation50_spill] sm:$0xff] %v14947_v15  ;;  %v7106_v22 = vpop.eup %7105  ;;  %v5514_v43 = vadd.f32 1.0, %v7104_v19  ;;  %v14951_v13 = vpop.f32.mrb[41].mxu0  ;;  %v5773_v28 = vadd.f32 %v5772_v8, %v5702_v12  ;;  %v5704_v35 = vmul.f32 %v14947_v15, %v14947_v15 }
 0x56c   : > { %v7108_v30 = vpop.eup %7107  ;;  %v5577_v42 = vmul.f32 0.5, %v5513_v31  ;;  %v5515_v34 = vadd.f32 1.0, %v7106_v22  ;;  %v14955_v0 = vpop.f32.mrb[42].mxu0  ;;  %v5753_v24 = vadd.f32 %v5752_v9, %v5703_v53 }
 0x56d   : > { %v5578_v32 = vmul.f32 0.5, %v5514_v43  ;;  %v5516_v36 = vadd.f32 1.0, %v7108_v30  ;;  %v14959_v41 = vpop.f32.mrb[43].mxu0  ;;  %v5774_v22 = vadd.f32 %v5773_v28, %v5704_v35 }
 0x56e   : > { %v14962_v20 = vmul.f32 %v5577_v42, %v14851_v2  ;;  %v5579_v14 = vmul.f32 0.5, %v5515_v34 }
 0x56f   : > { %v14965_v59 = vmul.f32 %v5578_v32, %v14855_v26  ;;  %v5580_v19 = vmul.f32 0.5, %v5516_v36 }
 0x570   : > { %17635 = vst [vmem:[#allocation34_spill] sm:$0xff] %v14962_v20  ;;  %v5705_v31 = vmul.f32 %v14962_v20, %v14962_v20  ;;  %v14970_v12 = vmul.f32 %v5579_v14, %v14861_v11  ;;  %v15024_v20 = vadd.f32 %v14916_v37, %v14522_v60 }
 0x571   : > { %17636 = vst [vmem:[#allocation26_spill] sm:$0xff] %v14965_v59  ;;  %v5706_v8 = vmul.f32 %v14965_v59, %v14965_v59  ;;  %v14975_v43 = vmul.f32 %v5580_v19, %v14867_v29  ;;  %v14991_v19 = vadd.f32 %v14877_v50, %v14522_v60  ;;  %v15007_v50 = vadd.f32 %v14888_v55, %v14522_v60 }
 0x572   : > { %17637 = vst [vmem:[#allocation51_spill] sm:$0xff] %v14970_v12  ;;  %v5754_v2 = vadd.f32 %v5753_v24, %v5705_v31  ;;  %v5707_v26 = vmul.f32 %v14970_v12, %v14970_v12  ;;  %v14979_v34 = vpop.f32.mrb[44].mxu0 }
 0x573   : > { %17638 = vst [vmem:[#allocation19_spill] sm:$0xff] %v14975_v43  ;;  %v5775_v30 = vadd.f32 %v5774_v22, %v5706_v8  ;;  %v5708_v9 = vmul.f32 %v14975_v43, %v14975_v43  ;;  %v14983_v53 = vpop.f32.mrb[45].mxu0  ;;  %v5135_v12 = vmul.f32 %v15007_v50, %v15007_v50 }
 0x574   : > { %v5755_v11 = vadd.f32 %v5754_v2, %v5707_v26  ;;  %v14985_v42 = vpop.f32.mrb[46].mxu0 }
 0x575   : > { %v5776_v28 = vadd.f32 %v5775_v30, %v5708_v9  ;;  %v14987_v35 = vpop.f32.mrb[47].mxu0  ;;  %v5133_v9 = vmul.f32 %v14991_v19, %v14991_v19 }
 0x576   : > { %v5756_v29 = vrot.slane %v5755_v11, 4 }
 0x577   : > { %v5777_v32 = vrot.slane %v5776_v28, 4 }
 0x578   : > { %v5757_v36 = vadd.f32 %v5756_v29, %v5755_v11  ;;  %v15003_v11 = vadd.f32 %v14880_v62, %v14525_v38 }
 0x579   : > { %v5778_v14 = vadd.f32 %v5777_v32, %v5776_v28  ;;  %v15013_v32 = vadd.f32 %v14896_v61, %v14525_v38 }
 0x57a   : > { %v5758_v24 = vrot.slane %v5757_v36, 2  ;;  %v14993_v31 = vpop.f32.mrb[48].mxu0  ;;  %v5134_v62 = vmul.f32 %v15003_v11, %v15003_v11 }
 0x57b   : > { %v5779_v22 = vrot.slane %v5778_v14, 2  ;;  %v14995_v8 = vpop.f32.mrb[49].mxu0  ;;  %v5136_v55 = vmul.f32 %v15013_v32, %v15013_v32 }
 0x57c   : > { %v5759_v2 = vadd.f32 %v5758_v24, %v5757_v36  ;;  %v14997_v26 = vpop.f32.mrb[50].mxu0 }
 0x57d   : > { %v5780_v30 = vadd.f32 %v5779_v22, %v5778_v14  ;;  %v15009_v28 = vpop.f32.mrb[51].mxu0  ;;  %v5197_v22 = vmul.f32 %v5133_v9, %v14991_v19  ;;  %v15030_v9 = vadd.f32 %v14923_v3, %v14525_v38  ;;  %v15043_v3 = vadd.f32 %v14925_v46, %v14522_v60 }
 0x57e   : > { %v5760_v29 = vrot.slane %v5759_v2, 1  ;;  %v15057_v46 = vadd.f32 %v14927_v33, %v14525_v38 }
 0x57f   : > { %v5781_v36 = vrot.slane %v5780_v30, 1  ;;  %v5261_v61 = vmul.f32 0.044715, %v5197_v22  ;;  %v5138_v22 = vmul.f32 %v15030_v9, %v15030_v9 }
 0x580   : > { %v5761_v14 = vadd.f32 %v5760_v29, %v5759_v2  ;;  %v5198_v2 = vmul.f32 %v5134_v62, %v15003_v11  ;;  %v5200_v29 = vmul.f32 %v5136_v55, %v15013_v32 }
 0x581   : > { %v5782_v24 = vadd.f32 %v5781_v36, %v5780_v30  ;;  %v5199_v30 = vmul.f32 %v5135_v12, %v15007_v50  ;;  %v5137_v36 = vmul.f32 %v15024_v20, %v15024_v20  ;;  %v5325_v43 = vadd.f32 %v5261_v61, %v14991_v19 }
 0x582   : > { %7109 = vrsqrt.f32 %v5761_v14  ;;  %v5262_v37 = vmul.f32 0.044715, %v5198_v2  ;;  %v5264_v5 = vmul.f32 0.044715, %v5200_v29  ;;  %v15039_v12 = vpop.f32.mrb[52].mxu0  ;;  %v5202_v29 = vmul.f32 %v5138_v22, %v15030_v9 }
 0x583   : > { %7111 = vrsqrt.f32 %v5782_v24  ;;  %v5263_v59 = vmul.f32 0.044715, %v5199_v30  ;;  %v5201_v62 = vmul.f32 %v5137_v36, %v15024_v20  ;;  %v15045_v55 = vpop.f32.mrb[53].mxu0  ;;  %v5389_v61 = vmul.f32 0.7978846, %v5325_v43 }
 0x584   : > { %v15047_v15 = vpop.f32.mrb[54].mxu0  ;;  %v5326_v2 = vadd.f32 %v5262_v37, %v15003_v11  ;;  %v5328_v25 = vadd.f32 %v5264_v5, %v15013_v32  ;;  %v5139_v43 = vmul.f32 %v15043_v3, %v15043_v3  ;;  %vm5827_vm7 = vcmp.eq.f32.partialorder %v5761_v14, inf }
 0x585   : > { %v5327_v30 = vadd.f32 %v5263_v59, %v15007_v50  ;;  %v15052_v56 = vpop.f32.mrb[55].mxu0  ;;  %v5265_v52 = vmul.f32 0.044715, %v5201_v62  ;;  %v5830_v37 = vand.u32 2147483648, %v5761_v14  ;;  %vm5829_vm8 = vcmp.eq.f32.partialorder %v5761_v14, 0.0 }
 0x586   : > { %vm5834_vm9 = vcmp.eq.f32.partialorder %v5782_v24, inf  ;;  %v5837_v22 = vand.u32 2147483648, %v5782_v24  ;;  %v5266_v23 = vmul.f32 0.044715, %v5202_v29  ;;  %vm5836_vm10 = vcmp.eq.f32.partialorder %v5782_v24, 0.0 }
 0x587   : > { %v5390_v62 = vmul.f32 0.7978846, %v5326_v2  ;;  %v5391_v33 = vmul.f32 0.7978846, %v5327_v30  ;;  %7113 = vtanh.f32 %v5389_v61  ;;  %v5203_v29 = vmul.f32 %v5139_v43, %v15043_v3 }
 0x589   : > { %7115 = vtanh.f32 %v5390_v62  ;;  %v5267_v61 = vmul.f32 0.044715, %v5203_v29 }
 0x58a   : > { %7117 = vtanh.f32 %v5391_v33 }
 0x58b   : > { %v5331_v30 = vadd.f32 %v5267_v61, %v15043_v3 }
 0x58c   : > { %v7110_v18 = vpop.eup %7109 }
 0x58d   : > { %v7112_v36 = vpop.eup %7111  ;;  %v5826_v51 = vmul.f32 %v7110_v18, %v5761_v14  ;;  %v5140_v18 = vmul.f32 %v15057_v46, %v15057_v46 }
 0x58e   : > { %v5833_v1 = vmul.f32 %v7112_v36, %v5782_v24  ;;  %v5392_v36 = vmul.f32 0.7978846, %v5328_v25  ;;  %v15079_v25 = vadd.f32 %v14951_v13, %v14525_v38 }
 0x58f   : > { %v5828_v59 = vsel %vm5827_vm7, %v5761_v14, %v5826_v51  ;;  %v5329_v51 = vadd.f32 %v5265_v52, %v15024_v20  ;;  %v5330_v14 = vadd.f32 %v5266_v23, %v15030_v9 }
 0x590   : > { %v15061_v48 = vsel %vm5829_vm8, %v5830_v37, %v5828_v59  ;;  %v5835_v5 = vsel %vm5834_vm9, %v5782_v24, %v5833_v1  ;;  %v15074_v1 = vadd.f32 %v14949_v40, %v14522_v60  ;;  %v5204_v24 = vmul.f32 %v5140_v18, %v15057_v46 }
 0x591   : > { %v15063_v10 = vsel %vm5836_vm10, %v5837_v22, %v5835_v5  ;;  %7119 = vtanh.f32 %v5392_v36  ;;  %v5393_v2 = vmul.f32 0.7978846, %v5329_v51  ;;  %v5394_v52 = vmul.f32 0.7978846, %v5330_v14  ;;  %v7114_v13 = vpop.eup %7113 }
 0x592   : > { %v5853_v17 = vadd.f32 %v15063_v10, %v15061_v48  ;;  %v5141_v23 = vmul.f32 %v15074_v1, %v15074_v1  ;;  %v5142_v40 = vmul.f32 %v15079_v25, %v15079_v25  ;;  %v15089_v37 = vadd.f32 %v14955_v0, %v14522_v60 }
 0x593   : > { %7121 = vtanh.f32 %v5393_v2  ;;  %v15094_v22 = vadd.f32 %v14959_v41, %v14525_v38  ;;  %v7116_v5 = vpop.eup %7115  ;;  %v5395_v18 = vmul.f32 0.7978846, %v5331_v30  ;;  %v5517_v14 = vadd.f32 1.0, %v7114_v13 }
 0x594   : > { %5854 = vadd.xlane.f32.xlu0 %v5853_v17  ;;  %v5268_v17 = vmul.f32 0.044715, %v5204_v24  ;;  %7123 = vtanh.f32 %v5394_v52  ;;  %v5205_v43 = vmul.f32 %v5141_v23, %v15074_v1  ;;  %v5206_v62 = vmul.f32 %v5142_v40, %v15079_v25  ;;  %v7118_v33 = vpop.eup %7117 }
 0x595   : > { %v5143_v29 = vmul.f32 %v15089_v37, %v15089_v37  ;;  %v5518_v0 = vadd.f32 1.0, %v7116_v5  ;;  %v5144_v2 = vmul.f32 %v15094_v22, %v15094_v22  ;;  %v15103_v41 = vadd.f32 %v14979_v34, %v14522_v60 }
 0x596   : > { %v5332_v59 = vadd.f32 %v5268_v17, %v15057_v46  ;;  %v5269_v36 = vmul.f32 0.044715, %v5205_v43  ;;  %v5519_v52 = vadd.f32 1.0, %v7118_v33  ;;  %v5270_v61 = vmul.f32 0.044715, %v5206_v62 }
 0x597   : > { %v15107_v23 = vadd.f32 %v14983_v53, %v14525_v38  ;;  %7125 = vtanh.f32 %v5395_v18  ;;  %v5581_v43 = vmul.f32 0.5, %v5517_v14  ;;  %v5207_v13 = vmul.f32 %v5143_v29, %v15089_v37 }
 0x598   : > { %v5396_v24 = vmul.f32 0.7978846, %v5332_v59  ;;  %v5333_v40 = vadd.f32 %v5269_v36, %v15074_v1  ;;  %v5582_v5 = vmul.f32 0.5, %v5518_v0  ;;  %v5208_v34 = vmul.f32 %v5144_v2, %v15094_v22 }
 0x599   : > { %v5145_v62 = vmul.f32 %v15103_v41, %v15103_v41  ;;  %v5583_v33 = vmul.f32 0.5, %v5519_v52  ;;  %v5334_v53 = vadd.f32 %v5270_v61, %v15079_v25  ;;  %v5146_v18 = vmul.f32 %v15107_v23, %v15107_v23 }
 0x59a   : > { %7127 = vtanh.f32 %v5396_v24  ;;  %v5397_v58 = vmul.f32 0.7978846, %v5333_v40  ;;  %v15119_v14 = vadd.f32 %v14985_v42, %v14522_v60  ;;  %v15122_v29 = vmul.f32 %v5581_v43, %v14991_v19 }
 0x59b   : > { %v7120_v51 = vpop.eup %7119  ;;  %v5271_v24 = vmul.f32 0.044715, %v5207_v13  ;;  %v15126_v2 = vadd.f32 %v14987_v35, %v14525_v38  ;;  %v15129_v52 = vmul.f32 %v5582_v5, %v15003_v11  ;;  %v5272_v61 = vmul.f32 0.044715, %v5208_v34 }
 0x59c   : > { %v5520_v17 = vadd.f32 1.0, %v7120_v51  ;;  %17639 = vst [vmem:[#allocation18_spill] sm:$0xff] %v15122_v29  ;;  %v15134_v40 = vadd.f32 %v14993_v31, %v14522_v60  ;;  %v15137_v42 = vmul.f32 %v5583_v33, %v15007_v50  ;;  %v5398_v19 = vmul.f32 0.7978846, %v5334_v53 }
 0x59d   : > { %v7122_v30 = vpop.eup %7121  ;;  %17640 = vst [vmem:[#allocation37_spill] sm:$0xff] %v15129_v52  ;;  %v15142_v35 = vadd.f32 %v14995_v8, %v14525_v38  ;;  %7129 = vtanh.f32 %v5397_v58  ;;  %v5147_v13 = vmul.f32 %v15119_v14, %v15119_v14  ;;  %v5148_v50 = vmul.f32 %v15126_v2, %v15126_v2 }
 0x59e   : > { %v7124_v59 = vpop.eup %7123  ;;  %v5584_v51 = vmul.f32 0.5, %v5520_v17  ;;  %v5521_v36 = vadd.f32 1.0, %v7122_v30  ;;  %v5209_v17 = vmul.f32 %v5145_v62, %v15103_v41  ;;  %17641 = vst [vmem:[#allocation9_spill] sm:$0xff] %v15137_v42  ;;  %v5210_v30 = vmul.f32 %v5146_v18, %v15107_v23 }
 0x59f   : > { %v5522_v0 = vadd.f32 1.0, %v7124_v59  ;;  %v5335_v59 = vadd.f32 %v5271_v24, %v15089_v37  ;;  %v5709_v34 = vmul.f32 %v15122_v29, %v15122_v29  ;;  %v5336_v8 = vadd.f32 %v5272_v61, %v15094_v22 }
 0x5a0   : > { %v15145_v11 = vmul.f32 %v5584_v51, %v15013_v32  ;;  %v5585_v43 = vmul.f32 0.5, %v5521_v36  ;;  %v5273_v62 = vmul.f32 0.044715, %v5209_v17  ;;  %v5149_v32 = vmul.f32 %v15134_v40, %v15134_v40 }
 0x5a1   : > { %v5586_v31 = vmul.f32 0.5, %v5522_v0  ;;  %v7126_v5 = vpop.eup %7125  ;;  %v5710_v58 = vmul.f32 %v15129_v52, %v15129_v52  ;;  %7131 = vtanh.f32 %v5398_v19  ;;  %v5274_v33 = vmul.f32 0.044715, %v5210_v30 }
 0x5a2   : > { %17642 = vst [vmem:[#allocation28_spill] sm:$0xff] %v15145_v11  ;;  %v5150_v53 = vmul.f32 %v15142_v35, %v15142_v35  ;;  %v5711_v51 = vmul.f32 %v15137_v42, %v15137_v42  ;;  %v5712_v36 = vmul.f32 %v15145_v11, %v15145_v11  ;;  %v15166_v0 = vmul.f32 %v5585_v43, %v15024_v20 }
 0x5a3   : > { %v5211_v24 = vmul.f32 %v5147_v13, %v15119_v14  ;;  %v15170_v61 = vmul.f32 %v5586_v31, %v15030_v9  ;;  %v5523_v17 = vadd.f32 1.0, %v7126_v5  ;;  %v5399_v19 = vmul.f32 0.7978846, %v5335_v59 }
 0x5a4   : > { %v7128_v18 = vpop.eup %7127  ;;  %17643 = vst [vmem:[#allocation56_spill] sm:$0xff] %v15166_v0  ;;  %v5212_v30 = vmul.f32 %v5148_v50, %v15126_v2  ;;  %v5400_v52 = vmul.f32 0.7978846, %v5336_v8  ;;  %v5337_v16 = vadd.f32 %v5273_v62, %v15103_v41  ;;  %v5213_v42 = vmul.f32 %v5149_v32, %v15134_v40 }
 0x5a5   : > { %17644 = vst [vmem:[#allocation32_spill] sm:$0xff] %v15170_v61  ;;  %v15177_v11 = vadd.f32 %v14997_v26, %v14522_v60  ;;  %v5524_v43 = vadd.f32 1.0, %v7128_v18  ;;  %v5338_v13 = vadd.f32 %v5274_v33, %v15107_v23  ;;  %v5214_v9 = vmul.f32 %v5150_v53, %v15142_v35 }
 0x5a6   : > { %v5783_v59 = vadd.f32 %v5711_v51, %v5709_v34  ;;  %v5804_v50 = vadd.f32 %v5712_v36, %v5710_v58  ;;  %v5713_v5 = vmul.f32 %v15166_v0, %v15166_v0  ;;  %v5275_v8 = vmul.f32 0.044715, %v5211_v24 }
 0x5a7   : > { %v5714_v26 = vmul.f32 %v15170_v61, %v15170_v61  ;;  %v5587_v32 = vmul.f32 0.5, %v5523_v17  ;;  %7133 = vtanh.f32 %v5399_v19  ;;  %v5276_v18 = vmul.f32 0.044715, %v5212_v30  ;;  %v7130_v6 = vpop.eup %7129 }
 0x5a8   : > { %7135 = vtanh.f32 %v5400_v52  ;;  %v5401_v33 = vmul.f32 0.7978846, %v5337_v16  ;;  %v5277_v53 = vmul.f32 0.044715, %v5213_v42  ;;  %v5151_v34 = vmul.f32 %v15177_v11, %v15177_v11 }
 0x5a9   : > { %v5588_v58 = vmul.f32 0.5, %v5524_v43  ;;  %v5402_v51 = vmul.f32 0.7978846, %v5338_v13  ;;  %v5278_v36 = vmul.f32 0.044715, %v5214_v9  ;;  %v15193_v24 = vadd.f32 %v15009_v28, %v14525_v38 }
 0x5aa   : > { %v15195_v0 = vadd.f32 %v5783_v59, %v5713_v5  ;;  %v5339_v17 = vadd.f32 %v5275_v8, %v15119_v14  ;;  %v15200_v19 = vadd.f32 %v15039_v12, %v14522_v60  ;;  %v15202_v52 = vadd.f32 %v5804_v50, %v5714_v26 }
 0x5ab   : > { %v7132_v16 = vpop.eup %7131  ;;  %v5525_v42 = vadd.f32 1.0, %v7130_v6  ;;  %v5340_v30 = vadd.f32 %v5276_v18, %v15126_v2  ;;  %v15207_v43 = vadd.f32 %v15045_v55, %v14525_v38  ;;  %v15210_v28 = vmul.f32 %v5587_v32, %v15043_v3  ;;  %v6965_v18 = vld [vmem:[%s15879_s5 + $0x40] sm:$0xff]  }
 0x5ac   : > { %7137 = vtanh.f32 %v5401_v33  ;;  %v5341_v13 = vadd.f32 %v5277_v53, %v15134_v40  ;;  %v5215_v9 = vmul.f32 %v5151_v34, %v15177_v11  ;;  %v15215_v12 = vmul.f32 %v5588_v58, %v15057_v46  ;;  %v6966_v33 = vld [vmem:[%s15879_s5] sm:$0xff]   ;;  %6777 = vmatprep.subr.bf16.mxu1 %v6965_v18 }
 0x5ad   : > { %17645 = vst [vmem:[#allocation47_spill] sm:$0xff] %v15210_v28  ;;  %7139 = vtanh.f32 %v5402_v51  ;;  %v5342_v6 = vadd.f32 %v5278_v36, %v15142_v35  ;;  %v5152_v59 = vmul.f32 %v15193_v24, %v15193_v24  ;;  %v5526_v50 = vadd.f32 1.0, %v7132_v16  ;;  %6778 = vmatpush3.bf16.msra.mxu1 %v6966_v33 }
 0x5ae   : > { %17646 = vst [vmem:[#allocation53_spill] sm:$0xff] %v15215_v12  ;;  %v5403_v55 = vmul.f32 0.7978846, %v5339_v17  ;;  %v5153_v3 = vmul.f32 %v15200_v19, %v15200_v19  ;;  %v15224_v5 = vadd.f32 %v15047_v15, %v14522_v60  ;;  %v5589_v8 = vmul.f32 0.5, %v5525_v42  ;;  %v6967_v15 = vld [vmem:[%s15879_s5 + $0x48] sm:$0xff]  }
 0x5af   : > { %v5082_v29 = vpop.f32.mrb[56].mxu0  ;;  %v5404_v26 = vmul.f32 0.7978846, %v5340_v30  ;;  %v5154_v46 = vmul.f32 %v15207_v43, %v15207_v43  ;;  %v15230_v32 = vadd.f32 %v15052_v56, %v14525_v38  ;;  %v5715_v53 = vmul.f32 %v15210_v28, %v15210_v28  ;;  %6779 = vmatprep.subr.bf16.mxu1 %v6967_v15 }
 0x5b0   : > { %v5084_v20 = vpop.f32.mrb[57].mxu0  ;;  %v5405_v34 = vmul.f32 0.7978846, %v5341_v13  ;;  %v5279_v58 = vmul.f32 0.044715, %v5215_v9  ;;  %v15244_v56 = vadd.f32 %v5082_v29, %v14522_v60  ;;  %v5716_v36 = vmul.f32 %v15215_v12, %v15215_v12  ;;  %v6968_v9 = vld [vmem:[%s15879_s5 + $0x8] sm:$0xff]  }
 0x5b1   : > { %v15181_v31 = vpop.f32.mrb[58].mxu0  ;;  %v7134_v51 = vpop.eup %7133  ;;  %v5406_v17 = vmul.f32 0.7978846, %v5342_v6  ;;  %v5216_v16 = vmul.f32 %v5152_v59, %v15193_v24  ;;  %v15250_v42 = vadd.f32 %v5084_v20, %v14525_v38  ;;  %v5590_v61 = vmul.f32 0.5, %v5526_v50  ;;  %v6969_v50 = vld [vmem:[%s15879_s5 + $0x50] sm:$0xff]   ;;  %6780 = vmatpush3.bf16.msra.mxu1 %v6968_v9 }
 0x5b2   : > { %v15185_v62 = vpop.f32.mrb[59].mxu0  ;;  %v7136_v30 = vpop.eup %7135  ;;  %7141 = vtanh.f32 %v5403_v55  ;;  %v5217_v13 = vmul.f32 %v5153_v3, %v15200_v19  ;;  %v5155_v29 = vmul.f32 %v15224_v5, %v15224_v5  ;;  %v15259_v6 = vmul.f32 %v5589_v8, %v15074_v1  ;;  %6781 = vmatprep.subr.bf16.mxu1 %v6969_v50  ;;  %v6972_v50 = vld [vmem:[%s15879_s5 + $0x18] sm:$0xff]  }
 0x5b3   : > { %7143 = vtanh.f32 %v5404_v26  ;;  %v5218_v20 = vmul.f32 %v5154_v46, %v15207_v43  ;;  %v5156_v59 = vmul.f32 %v15230_v32, %v15230_v32  ;;  %v5343_v55 = vadd.f32 %v5279_v58, %v15177_v11 }
 0x5b4   : > { %17647 = vst [vmem:[#allocation16_spill] sm:$0xff] %v15259_v6  ;;  %7145 = vtanh.f32 %v5405_v34  ;;  %v5157_v3 = vmul.f32 %v15244_v56, %v15244_v56  ;;  %v15272_v1 = vadd.f32 %v15181_v31, %v14522_v60  ;;  %v5280_v8 = vmul.f32 0.044715, %v5216_v16  ;;  %v6970_v31 = vld [vmem:[%s15879_s5 + $0x10] sm:$0xff]  }
 0x5b5   : > { %7147 = vtanh.f32 %v5406_v17  ;;  %v5158_v26 = vmul.f32 %v15250_v42, %v15250_v42  ;;  %v15278_v46 = vadd.f32 %v15185_v62, %v14525_v38  ;;  %v5527_v33 = vadd.f32 1.0, %v7134_v51  ;;  %v6971_v51 = vld [vmem:[%s15879_s5 + $0x58] sm:$0xff]   ;;  %6782 = vmatpush3.bf16.msra.mxu1 %v6970_v31 }
 0x5b6   : > { %v7138_v18 = vpop.eup %7137  ;;  %v5528_v15 = vadd.f32 1.0, %v7136_v30  ;;  %v5281_v34 = vmul.f32 0.044715, %v5217_v13  ;;  %v5219_v58 = vmul.f32 %v5155_v29, %v15224_v5  ;;  %v5785_v16 = vadd.f32 %v15195_v0, %v5715_v53  ;;  %6783 = vmatprep.subr.bf16.mxu1 %v6971_v51 }
 0x5b7   : > { %v7140_v17 = vpop.eup %7139  ;;  %v15286_v28 = vmul.f32 %v5590_v61, %v15079_v25  ;;  %v5282_v12 = vmul.f32 0.044715, %v5218_v20  ;;  %v5220_v62 = vmul.f32 %v5156_v59, %v15230_v32  ;;  %v15293_v30 = vadd.f32 %v15202_v52, %v5716_v36 }
 0x5b8   : > { %v5407_v13 = vmul.f32 0.7978846, %v5343_v55  ;;  %v5221_v29 = vmul.f32 %v5157_v3, %v15244_v56  ;;  %v5159_v0 = vmul.f32 %v15272_v1, %v15272_v1  ;;  %v5717_v25 = vmul.f32 %v15259_v6, %v15259_v6 }
 0x5b9   : > { %17648 = vst [vmem:[#allocation12_spill] sm:$0xff] %v15286_v28  ;;  %v5344_v61 = vadd.f32 %v5280_v8, %v15193_v24  ;;  %v5222_v53 = vmul.f32 %v5158_v26, %v15250_v42  ;;  %v5160_v9 = vmul.f32 %v15278_v46, %v15278_v46  ;;  %v5591_v20 = vmul.f32 0.5, %v5527_v33  ;;  %v6973_v33 = vld [vmem:[%s15879_s5 + $0x60] sm:$0xff]   ;;  %6784 = vmatpush3.bf16.msra.mxu1 %v6972_v50 }
 0x5ba   : > { %v5592_v59 = vmul.f32 0.5, %v5528_v15  ;;  %v5345_v52 = vadd.f32 %v5281_v34, %v15200_v19  ;;  %v5283_v36 = vmul.f32 0.044715, %v5219_v58  ;;  %v5718_v55 = vmul.f32 %v15286_v28, %v15286_v28  ;;  %6785 = vmatprep.subr.bf16.mxu1 %v6973_v33 }
 0x5bb   : > { %v5529_v3 = vadd.f32 1.0, %v7138_v18  ;;  %v5346_v8 = vadd.f32 %v5282_v12, %v15207_v43  ;;  %v5284_v26 = vmul.f32 0.044715, %v5220_v62  ;;  %v5530_v34 = vadd.f32 1.0, %v7140_v17 }
 0x5bc   : > { %v7142_v15 = vpop.eup %7141  ;;  %7149 = vtanh.f32 %v5407_v13  ;;  %v5285_v58 = vmul.f32 0.044715, %v5221_v29  ;;  %v5223_v31 = vmul.f32 %v5159_v0, %v15272_v1  ;;  %v5786_v54 = vadd.f32 %v5785_v16, %v5717_v25  ;;  %v6974_v13 = vld [vmem:[%s15879_s5 + $0x20] sm:$0xff]  }
 0x5bd   : > { %v7144_v6 = vpop.eup %7143  ;;  %v5408_v45 = vmul.f32 0.7978846, %v5344_v61  ;;  %v5286_v49 = vmul.f32 0.044715, %v5222_v53  ;;  %v5224_v18 = vmul.f32 %v5160_v9, %v15278_v46  ;;  %v15317_v12 = vmul.f32 %v5591_v20, %v15089_v37  ;;  %v6975_v37 = vld [vmem:[%s15879_s5 + $0x68] sm:$0xff]   ;;  %6786 = vmatpush3.bf16.msra.mxu1 %v6974_v13 }
 0x5be   : > { %v7146_v28 = vpop.eup %7145  ;;  %v15320_v62 = vmul.f32 %v5592_v59, %v15094_v22  ;;  %v5409_v51 = vmul.f32 0.7978846, %v5345_v52  ;;  %v5347_v17 = vadd.f32 %v5283_v36, %v15224_v5  ;;  %v5593_v29 = vmul.f32 0.5, %v5529_v3  ;;  %6787 = vmatprep.subr.bf16.mxu1 %v6975_v37 }
 0x5bf   : > { %v7148_v16 = vpop.eup %7147  ;;  %v5531_v0 = vadd.f32 1.0, %v7142_v15  ;;  %v5410_v25 = vmul.f32 0.7978846, %v5346_v8  ;;  %v5348_v61 = vadd.f32 %v5284_v26, %v15230_v32  ;;  %v5594_v22 = vmul.f32 0.5, %v5530_v34  ;;  %v6976_v26 = vld [vmem:[%s15879_s5 + $0x28] sm:$0xff]  }
 0x5c0   : > { %v5532_v53 = vadd.f32 1.0, %v7144_v6  ;;  %v5349_v9 = vadd.f32 %v5285_v58, %v15244_v56  ;;  %v5287_v20 = vmul.f32 0.044715, %v5223_v31  ;;  %v5533_v59 = vadd.f32 1.0, %v7146_v28 }
 0x5c1   : > { %7151 = vtanh.f32 %v5408_v45  ;;  %v5350_v52 = vadd.f32 %v5286_v49, %v15250_v42  ;;  %v5288_v36 = vmul.f32 0.044715, %v5224_v18  ;;  %v5719_v50 = vmul.f32 %v15317_v12, %v15317_v12  ;;  %v6977_v49 = vld [vmem:[%s15879_s5 + $0x70] sm:$0xff]   ;;  %6788 = vmatpush3.bf16.msra.mxu1 %v6976_v26 }
 0x5c2   : > { %v5534_v3 = vadd.f32 1.0, %v7148_v16  ;;  %7153 = vtanh.f32 %v5409_v51  ;;  %v5411_v8 = vmul.f32 0.7978846, %v5347_v17  ;;  %v15338_v6 = vmul.f32 %v5593_v29, %v15103_v41  ;;  %6789 = vmatprep.subr.bf16.mxu1 %v6977_v49 }
 0x5c3   : > { %v5595_v33 = vmul.f32 0.5, %v5531_v0  ;;  %7155 = vtanh.f32 %v5410_v25  ;;  %v5412_v45 = vmul.f32 0.7978846, %v5348_v61  ;;  %v15344_v28 = vmul.f32 %v5594_v22, %v15107_v23  ;;  %v6978_v23 = vld [vmem:[%s15879_s5 + $0x30] sm:$0xff]  }
 0x5c4   : > { %v5596_v15 = vmul.f32 0.5, %v5532_v53  ;;  %v5413_v34 = vmul.f32 0.7978846, %v5349_v9  ;;  %v5351_v58 = vadd.f32 %v5287_v20, %v15272_v1  ;;  %v5597_v31 = vmul.f32 0.5, %v5533_v59  ;;  %v6980_v20 = vld [vmem:[%s15879_s5 + $0x38] sm:$0xff]  }
 0x5c5   : > { %v5414_v18 = vmul.f32 0.7978846, %v5350_v52  ;;  %v5352_v41 = vadd.f32 %v5288_v36, %v15278_v46  ;;  %v5807_v17 = vadd.f32 %v15293_v30, %v5718_v55  ;;  %v5720_v13 = vmul.f32 %v15320_v62, %v15320_v62  ;;  %v6979_v30 = vld [vmem:[%s15879_s5 + $0x78] sm:$0xff]   ;;  %6790 = vmatpush3.bf16.msra.mxu1 %v6978_v23 }
 0x5c6   : > { %v7150_v51 = vpop.eup %7149  ;;  %v5598_v16 = vmul.f32 0.5, %v5534_v3  ;;  %7157 = vtanh.f32 %v5411_v8  ;;  %v5787_v29 = vadd.f32 %v5786_v54, %v5719_v50  ;;  %v5721_v0 = vmul.f32 %v15338_v6, %v15338_v6  ;;  %6791 = vmatprep.subr.bf16.mxu1 %v6979_v30 }
 0x5c7   : > { %v15357_v25 = vmul.f32 %v5595_v33, %v15119_v14  ;;  %7159 = vtanh.f32 %v5412_v45  ;;  %v5722_v55 = vmul.f32 %v15344_v28, %v15344_v28  ;;  %v15365_v61 = vmul.f32 %v5596_v15, %v15126_v2 }
 0x5c8   : > { %7161 = vtanh.f32 %v5413_v34  ;;  %v5415_v54 = vmul.f32 0.7978846, %v5351_v58  ;;  %v15368_v37 = vmul.f32 %v5597_v31, %v15134_v40  ;;  %v5535_v22 = vadd.f32 1.0, %v7150_v51 }
 0x5c9   : > { %7163 = vtanh.f32 %v5414_v18  ;;  %v5416_v14 = vmul.f32 0.7978846, %v5352_v41  ;;  %v5808_v53 = vadd.f32 %v5807_v17, %v5720_v13  ;;  %v15371_v9 = vmul.f32 %v5598_v16, %v15142_v35  ;;  %6792 = vmatpush3.bf16.msra.mxu1 %v6980_v20 }
 0x5ca   : > { %v5788_v2 = vadd.f32 %v5787_v29, %v5721_v0  ;;  %v5723_v52 = vmul.f32 %v15357_v25, %v15357_v25  ;;  %v5724_v3 = vmul.f32 %v15365_v61, %v15365_v61  ;;  %7165 = vtanh.f32 %v5415_v54 }
 0x5cb   : > { %v7152_v59 = vpop.eup %7151  ;;  %v5809_v50 = vadd.f32 %v5808_v53, %v5722_v55  ;;  %v5725_v33 = vmul.f32 %v15368_v37, %v15368_v37  ;;  %v5599_v45 = vmul.f32 0.5, %v5535_v22  ;;  %7167 = vtanh.f32 %v5416_v14 }
 0x5cc   : > { %v7154_v40 = vpop.eup %7153  ;;  %v5726_v34 = vmul.f32 %v15371_v9, %v15371_v9  ;;  %v5536_v58 = vadd.f32 1.0, %v7152_v59  ;;  %v5789_v51 = vadd.f32 %v5788_v2, %v5723_v52 }
 0x5cd   : > { %v7156_v26 = vpop.eup %7155  ;;  %v5537_v17 = vadd.f32 1.0, %v7154_v40  ;;  %v5810_v29 = vadd.f32 %v5809_v50, %v5724_v3  ;;  %v15404_v22 = vmul.f32 %v5599_v45, %v15177_v11 }
 0x5ce   : > { %v5538_v0 = vadd.f32 1.0, %v7156_v26  ;;  %v5790_v54 = vadd.f32 %v5789_v51, %v5725_v33  ;;  %v5600_v59 = vmul.f32 0.5, %v5536_v58 }
 0x5cf   : > { %v5811_v20 = vadd.f32 %v5810_v29, %v5726_v34  ;;  %v5601_v40 = vmul.f32 0.5, %v5537_v17 }
 0x5d0   : > { %v7158_v23 = vpop.eup %7157  ;;  %v5602_v26 = vmul.f32 0.5, %v5538_v0  ;;  %v15416_v51 = vmul.f32 %v5600_v59, %v15193_v24 }
 0x5d1   : > { %v5539_v50 = vadd.f32 1.0, %v7158_v23  ;;  %v15420_v0 = vmul.f32 %v5601_v40, %v15200_v19 }
 0x5d3   : > { %v5729_v40 = vmul.f32 %v15420_v0, %v15420_v0 }
 0x5da   : > { %v5092_v36 = vpop.f32.mrb[60].mxu0 }
 0x5db   : > { %v15381_v35 = vadd.f32 %v5092_v36, %v14522_v60  ;;  %v5094_v8 = vpop.f32.mrb[61].mxu0 }
 0x5dc   : > { %v15386_v49 = vadd.f32 %v5094_v8, %v14525_v38  ;;  %v5096_v15 = vpop.f32.mrb[62].mxu0 }
 0x5dd   : > { %v5161_v31 = vmul.f32 %v15381_v35, %v15381_v35  ;;  %v15393_v18 = vadd.f32 %v5096_v15, %v14522_v60  ;;  %v5098_v41 = vpop.f32.mrb[63].mxu0  ;;  %v7160_v60 = vpop.eup %7159  ;;  %v5727_v15 = vmul.f32 %v15404_v22, %v15404_v22 }
 0x5de   : > { %v5162_v13 = vmul.f32 %v15386_v49, %v15386_v49  ;;  %v15398_v16 = vadd.f32 %v5098_v41, %v14525_v38  ;;  %v7162_v38 = vpop.eup %7161  ;;  %v5540_v11 = vadd.f32 1.0, %v7160_v60 }
 0x5df   : > { %v5225_v30 = vmul.f32 %v5161_v31, %v15381_v35  ;;  %v5163_v55 = vmul.f32 %v15393_v18, %v15393_v18  ;;  %v7164_v36 = vpop.eup %7163  ;;  %v5541_v31 = vadd.f32 1.0, %v7162_v38 }
 0x5e0   : > { %v5226_v14 = vmul.f32 %v5162_v13, %v15386_v49  ;;  %v5164_v53 = vmul.f32 %v15398_v16, %v15398_v16  ;;  %v7166_v41 = vpop.eup %7165  ;;  %v5542_v17 = vadd.f32 1.0, %v7164_v36 }
 0x5e1   : > { %v5289_v2 = vmul.f32 0.044715, %v5225_v30  ;;  %v5227_v52 = vmul.f32 %v5163_v55, %v15393_v18  ;;  %v7168_v29 = vpop.eup %7167  ;;  %v5603_v30 = vmul.f32 0.5, %v5539_v50  ;;  %v5605_v24 = vmul.f32 0.5, %v5541_v31 }
 0x5e2   : > { %v5290_v3 = vmul.f32 0.044715, %v5226_v14  ;;  %v5228_v8 = vmul.f32 %v5164_v53, %v15398_v16  ;;  %v15424_v14 = vmul.f32 %v5602_v26, %v15207_v43  ;;  %v5604_v53 = vmul.f32 0.5, %v5540_v11 }
 0x5e3   : > { %v5353_v33 = vadd.f32 %v5289_v2, %v15381_v35  ;;  %v5291_v45 = vmul.f32 0.044715, %v5227_v52  ;;  %v5543_v59 = vadd.f32 1.0, %v7166_v41  ;;  %v5728_v52 = vmul.f32 %v15416_v51, %v15416_v51 }
 0x5e4   : > { %v5354_v34 = vadd.f32 %v5290_v3, %v15386_v49  ;;  %v5292_v58 = vmul.f32 0.044715, %v5228_v8  ;;  %v5606_v36 = vmul.f32 0.5, %v5542_v17  ;;  %v5544_v19 = vadd.f32 1.0, %v7168_v29 }
 0x5e5   : > { %v5417_v13 = vmul.f32 0.7978846, %v5353_v33  ;;  %v5355_v23 = vadd.f32 %v5291_v45, %v15393_v18  ;;  %v15431_v50 = vmul.f32 %v5603_v30, %v15224_v5  ;;  %v5730_v43 = vmul.f32 %v15424_v14, %v15424_v14 }
 0x5e6   : > { %v5418_v55 = vmul.f32 0.7978846, %v5354_v34  ;;  %v5356_v60 = vadd.f32 %v5292_v58, %v15398_v16  ;;  %v15436_v3 = vmul.f32 %v5604_v53, %v15230_v32  ;;  %v5791_v8 = vadd.f32 %v5790_v54, %v5727_v15 }
 0x5e7   : > { %7169 = vtanh.f32 %v5417_v13  ;;  %v5419_v38 = vmul.f32 0.7978846, %v5355_v23  ;;  %v15439_v26 = vmul.f32 %v5605_v24, %v15244_v56  ;;  %v5607_v11 = vmul.f32 0.5, %v5543_v59 }
 0x5e8   : > { %7171 = vtanh.f32 %v5418_v55  ;;  %v5420_v2 = vmul.f32 0.7978846, %v5356_v60  ;;  %v5812_v33 = vadd.f32 %v5811_v20, %v5728_v52  ;;  %v15442_v45 = vmul.f32 %v5606_v36, %v15250_v42 }
 0x5e9   : > { %7173 = vtanh.f32 %v5419_v38  ;;  %v5608_v31 = vmul.f32 0.5, %v5544_v19  ;;  %v5792_v34 = vadd.f32 %v5791_v8, %v5729_v40  ;;  %v5731_v5 = vmul.f32 %v15431_v50, %v15431_v50 }
 0x5ea   : > { %7175 = vtanh.f32 %v5420_v2  ;;  %v5813_v58 = vadd.f32 %v5812_v33, %v5730_v43  ;;  %v5732_v41 = vmul.f32 %v15436_v3, %v15436_v3  ;;  %v5733_v32 = vmul.f32 %v15439_v26, %v15439_v26 }
 0x5eb   : > { %v15451_v56 = vmul.f32 %v5607_v11, %v15272_v1  ;;  %v5734_v42 = vmul.f32 %v15442_v45, %v15442_v45  ;;  %v15456_v20 = vmul.f32 %v5608_v31, %v15278_v46  ;;  %v5793_v17 = vadd.f32 %v5792_v34, %v5731_v5 }
 0x5ec   : > { %v5814_v29 = vadd.f32 %v5813_v58, %v5732_v41 }
 0x5ed   : > { %v5794_v60 = vadd.f32 %v5793_v17, %v5733_v32  ;;  %v5735_v53 = vmul.f32 %v15451_v56, %v15451_v56  ;;  %v5736_v59 = vmul.f32 %v15456_v20, %v15456_v20 }
 0x5ee   : > { %v5815_v24 = vadd.f32 %v5814_v29, %v5734_v42 }
 0x5ef   : > { %v5795_v43 = vadd.f32 %v5794_v60, %v5735_v53 }
 0x5f0   : > { %v5816_v33 = vadd.f32 %v5815_v24, %v5736_v59 }
 0x5f1   : > { %v7170_v54 = vpop.eup %7169 }
 0x5f2   : > { %v7172_v15 = vpop.eup %7171  ;;  %v5545_v13 = vadd.f32 1.0, %v7170_v54 }
 0x5f3   : > { %v7174_v23 = vpop.eup %7173  ;;  %v5546_v30 = vadd.f32 1.0, %v7172_v15 }
 0x5f4   : > { %v7176_v55 = vpop.eup %7175  ;;  %v5609_v1 = vmul.f32 0.5, %v5545_v13  ;;  %v5547_v38 = vadd.f32 1.0, %v7174_v23 }
 0x5f5   : > { %v5610_v2 = vmul.f32 0.5, %v5546_v30  ;;  %v5548_v46 = vadd.f32 1.0, %v7176_v55 }
 0x5f6   : > { %v15463_v52 = vmul.f32 %v5609_v1, %v15381_v35  ;;  %v5611_v36 = vmul.f32 0.5, %v5547_v38 }
 0x5f7   : > { %v15466_v19 = vmul.f32 %v5610_v2, %v15386_v49  ;;  %v5612_v40 = vmul.f32 0.5, %v5548_v46 }
 0x5f8   : > { %v5737_v8 = vmul.f32 %v15463_v52, %v15463_v52  ;;  %v15471_v11 = vmul.f32 %v5611_v36, %v15393_v18 }
 0x5f9   : > { %v5738_v31 = vmul.f32 %v15466_v19, %v15466_v19  ;;  %v15476_v34 = vmul.f32 %v5612_v40, %v15398_v16 }
 0x5fa   : > { %v5796_v35 = vadd.f32 %v5795_v43, %v5737_v8  ;;  %v5739_v49 = vmul.f32 %v15471_v11, %v15471_v11 }
 0x5fb   : > { %v5817_v5 = vadd.f32 %v5816_v33, %v5738_v31  ;;  %v5740_v58 = vmul.f32 %v15476_v34, %v15476_v34 }
 0x5fc   : > { %v5797_v41 = vadd.f32 %v5796_v35, %v5739_v49  ;;  %v7375_v49 = vmov 1966171168  }
 0x5fd   : > { %v5818_v32 = vadd.f32 %v5817_v5, %v5740_v58  ;;  %v5878_v5 = vunpack.c.l.s4 %v7375_v49 }
 0x5fe   : > { %v5798_v54 = vrot.slane %v5797_v41, 4 }
 0x5ff   : > { %v5819_v18 = vrot.slane %v5818_v32, 4  ;;  %v5879_v58 = vunpack.c.0.s8 %v5878_v5  ;;  %v17652_v5 = vld [vmem:[#allocation23_spill] sm:$0xff] }
 0x600   : > { %v5799_v42 = vadd.f32 %v5798_v54, %v5797_v41 }
 0x601   : > { %v5820_v15 = vadd.f32 %v5819_v18, %v5818_v32  ;;  %v15489_v32 = vsub.s32 %v5879_v58, %v14510_v4  ;;  %v6717_v4 = vld [vmem:[%s15878_s4 + $0x2] ss:$4 sm:$0x3] }
 0x602   : > { %v5800_v17 = vrot.slane %v5799_v42, 2 }
 0x603   : > { %v5821_v13 = vrot.slane %v5820_v15, 2 }
 0x604   : > { %v5801_v23 = vadd.f32 %v5800_v17, %v5799_v42  ;;  %v15497_v17 = vld [vmem:[%s15878_s4 + $0x1] ss:$4 sm:$0x3] }
 0x605   : > { %v5822_v29 = vadd.f32 %v5821_v13, %v5820_v15 }
 0x606   : > { %v5802_v16 = vrot.slane %v5801_v23, 1 }
 0x607   : > { %v5823_v30 = vrot.slane %v5822_v29, 1 }
 0x608   : > { %v5803_v55 = vadd.f32 %v5802_v16, %v5801_v23  ;;  %v15511_v16 = vrot.slane %v6717_v4, %v14513_v39 }
 0x609   : > { %v5824_v60 = vadd.f32 %v5823_v30, %v5822_v29  ;;  %v15514_v30 = vrot.slane %v6717_v4, %v14519_v7  ;;  %v17654_v4 = vld [vmem:[#allocation55_spill] sm:$0xff] }
 0x60a   : > { %7177 = vrsqrt.f32 %v5803_v55  ;;  %vm5841_vm11 = vcmp.eq.f32.partialorder %v5803_v55, inf  ;;  %v5844_v24 = vand.u32 2147483648, %v5803_v55  ;;  %vm5843_vm12 = vcmp.eq.f32.partialorder %v5803_v55, 0.0 }
 0x60b   : > { %7179 = vrsqrt.f32 %v5824_v60  ;;  %vm5848_vm13 = vcmp.eq.f32.partialorder %v5824_v60, inf  ;;  %v5851_v46 = vand.u32 2147483648, %v5824_v60  ;;  %vm5850_vm14 = vcmp.eq.f32.partialorder %v5824_v60, 0.0 }
 0x614   : > { %v7178_v53 = vpop.eup %7177 }
 0x615   : > { %v7180_v1 = vpop.eup %7179  ;;  %v5840_v38 = vmul.f32 %v7178_v53, %v5803_v55 }
 0x616   : > { %v5847_v59 = vmul.f32 %v7180_v1, %v5824_v60 }
 0x617   : > { %v5842_v2 = vsel %vm5841_vm11, %v5803_v55, %v5840_v38 }
 0x618   : > { %v15482_v36 = vsel %vm5843_vm12, %v5844_v24, %v5842_v2  ;;  %v5849_v40 = vsel %vm5848_vm13, %v5824_v60, %v5847_v59 }
 0x619   : > { %v15484_v43 = vsel %vm5850_vm14, %v5851_v46, %v5849_v40 }
 0x61a   : > { %v5856_v8 = vadd.f32 %v15484_v43, %v15482_v36 }
 0x61c   : > { %5857 = vadd.xlane.f32.xlu1 %v5856_v8  ;;  %v17649_v8 = vld [vmem:[#allocation52_spill] sm:$0xff] }
 0x621   : > { %v5855_v33 = vpop.xlane.xlu0 %5854 }
 0x622   : > { %v5860_v31 = vmul.f32 0.00390625, %v5855_v33  ;;  %v17650_v33 = vld [vmem:[#allocation57_spill] sm:$0xff] }
 0x624   : > { %v5862_v35 = vadd.f32 1e-06, %v5860_v31 }
 0x626   : > { %7181 = vrcp.f32 %v5862_v35  ;;  %v17651_v35 = vld [vmem:[#allocation59_spill] sm:$0xff] }
 0x630   : > { %v7182_v41 = vpop.eup %7181 }
 0x631   : > { %v5865_v54 = vmul.f32 %v7182_v41, %v15061_v48  ;;  %v5866_v18 = vmul.f32 %v7182_v41, %v15063_v10 }
 0x633   : > { %v5876_v42 = vcombine.low %v5865_v54, %v5866_v18 }
 0x635   : > { %v5883_v15 = vrot.slane %v5876_v42, %v15489_v32 }
 0x637   : > { %v5890_v13 = vrot.slane %v5883_v15, %v15489_v32 }
 0x639   : > { %v5908_v23 = vmul.f32 %v15497_v17, %v5890_v13  ;;  %v17653_v13 = vld [vmem:[#allocation60_spill] sm:$0xff] }
 0x63b   : > { %v5910_v29 = vadd.f32 1.0, %v5908_v23 }
 0x63d   : > { %v15505_v48 = vrot.slane %v5910_v29, %v14513_v39  ;;  %v15508_v10 = vrot.slane %v5910_v29, %v14519_v7 }
 0x63f   : > { %v5935_v55 = vmul.f32 %v15508_v10, %v14695_v27  ;;  %v5937_v60 = vmul.f32 %v15508_v10, %v14706_v44  ;;  %v5934_v53 = vmul.f32 %v15505_v48, %v14688_v47  ;;  %v5936_v1 = vmul.f32 %v15505_v48, %v14698_v21 }
 0x640   : > { %v5939_v38 = vmul.f32 %v15508_v10, %v14731_v63  ;;  %v5941_v24 = vmul.f32 %v15508_v10, %v14756_v57  ;;  %v5938_v63 = vmul.f32 %v15505_v48, %v17649_v8  ;;  %v5940_v57 = vmul.f32 %v15505_v48, %v17650_v33 }
 0x641   : > { %v6012_v59 = vadd.f32 %v15514_v30, %v5935_v55  ;;  %v6014_v2 = vadd.f32 %v15514_v30, %v5937_v60  ;;  %v6011_v27 = vadd.f32 %v15511_v16, %v5934_v53  ;;  %v6013_v44 = vadd.f32 %v15511_v16, %v5936_v1  ;;  %v17655_v60 = vld [vmem:[#allocation29_spill] sm:$0xff]  ;;  %v17656_v1 = vld [vmem:[#allocation11_spill] sm:$0xff] }
 0x642   : > { %v6016_v46 = vadd.f32 %v15514_v30, %v5939_v38  ;;  %v6018_v47 = vadd.f32 %v15514_v30, %v5941_v24  ;;  %v5943_v49 = vmul.f32 %v15508_v10, %v17651_v35  ;;  %v5945_v58 = vmul.f32 %v15508_v10, %v17652_v5 }
 0x643   : > { %v6076_v40 = vpack.c.bf16 %v6014_v2, %v6012_v59  ;;  %v6075_v21 = vpack.c.bf16 %v6013_v44, %v6011_v27  ;;  %v6015_v41 = vadd.f32 %v15511_v16, %v5938_v63  ;;  %v6017_v54 = vadd.f32 %v15511_v16, %v5940_v57  ;;  %v17659_v63 = vld [vmem:[#allocation41_spill] sm:$0xff] }
 0x644   : > { %v6078_v31 = vpack.c.bf16 %v6018_v47, %v6016_v46  ;;  %v6020_v18 = vadd.f32 %v15514_v30, %v5943_v49  ;;  %v6022_v42 = vadd.f32 %v15514_v30, %v5945_v58  ;;  %v5942_v23 = vmul.f32 %v15505_v48, %v17653_v13  ;;  %v17657_v46 = vld [vmem:[#allocation25_spill] sm:$0xff] }
 0x645   : > { %6272 = vmatprep.mubr.bf16.mxu1 %v6076_v40  ;;  %v6077_v15 = vpack.c.bf16 %v6017_v54, %v6015_v41  ;;  %v5944_v29 = vmul.f32 %v15505_v48, %v17654_v4  ;;  %v5947_v53 = vmul.f32 %v15508_v10, %v17655_v60  ;;  %v5949_v38 = vmul.f32 %v15508_v10, %v17656_v1  ;;  %v17658_v40 = vld [vmem:[#allocation38_spill] sm:$0xff]  ;;  %v17660_v57 = vld [vmem:[#allocation13_spill] sm:$0xff]  ;;  %v17661_v54 = vld [vmem:[#allocation35_spill] sm:$0xff] }
 0x646   : > { %6273 = vmatmul.mubr.bf16.vlgmr.msra.gmra.mrb[0].mxu1 %v6075_v21  ;;  %v6080_v55 = vpack.c.bf16 %v6022_v42, %v6020_v18  ;;  %v6019_v24 = vadd.f32 %v15511_v16, %v5942_v23  ;;  %v5946_v47 = vmul.f32 %v15505_v48, %v17657_v46  ;;  %v5948_v21 = vmul.f32 %v15505_v48, %v17658_v40  ;;  %v17662_v42 = vld [vmem:[#allocation40_spill] sm:$0xff]  ;;  %v17663_v23 = vld [vmem:[#allocation45_spill] sm:$0xff] }
 0x647   : > { %6280 = vmatprep.mubr.bf16.mxu1 %v6078_v31  ;;  %v6021_v59 = vadd.f32 %v15511_v16, %v5944_v29  ;;  %v6024_v2 = vadd.f32 %v15514_v30, %v5947_v53  ;;  %v6026_v27 = vadd.f32 %v15514_v30, %v5949_v38  ;;  %v5951_v33 = vmul.f32 %v15508_v10, %v17659_v63  ;;  %v17664_v29 = vld [vmem:[#allocation48_spill] sm:$0xff] }
 0x648   : > { %v5953_v31 = vmul.f32 %v15508_v10, %v17660_v57  ;;  %v6023_v35 = vadd.f32 %v15511_v16, %v5946_v47  ;;  %v6025_v49 = vadd.f32 %v15511_v16, %v5948_v21  ;;  %v5950_v18 = vmul.f32 %v15505_v48, %v17661_v54  ;;  %v17667_v47 = vld [vmem:[#allocation10_spill] sm:$0xff] }
 0x649   : > { %v6079_v44 = vpack.c.bf16 %v6021_v59, %v6019_v24  ;;  %v6082_v8 = vpack.c.bf16 %v6026_v27, %v6024_v2  ;;  %v6028_v5 = vadd.f32 %v15514_v30, %v5951_v33  ;;  %v5955_v4 = vmul.f32 %v15508_v10, %v17663_v23  ;;  %v17665_v59 = vld [vmem:[#allocation39_spill] sm:$0xff]  ;;  %v17666_v27 = vld [vmem:[#allocation46_spill] sm:$0xff] }
 0x64a   : > { %v6030_v58 = vadd.f32 %v15514_v30, %v5953_v31  ;;  %v6081_v41 = vpack.c.bf16 %v6025_v49, %v6023_v35  ;;  %v6027_v60 = vadd.f32 %v15511_v16, %v5950_v18  ;;  %v5954_v2 = vmul.f32 %v15505_v48, %v17665_v59  ;;  %v17668_v21 = vld [vmem:[#allocation50_spill] sm:$0xff]  ;;  %v17669_v49 = vld [vmem:[#allocation36_spill] sm:$0xff] }
 0x64b   : > { %v6032_v1 = vadd.f32 %v15514_v30, %v5955_v4  ;;  %v5959_v40 = vmul.f32 %v15508_v10, %v17667_v47  ;;  %v17671_v18 = vld [vmem:[#allocation26_spill] sm:$0xff] }
 0x64c   : > { %v6084_v13 = vpack.c.bf16 %v6030_v58, %v6028_v5  ;;  %v6031_v63 = vadd.f32 %v15511_v16, %v5954_v2  ;;  %v5958_v5 = vmul.f32 %v15505_v48, %v17669_v49  ;;  %v17670_v58 = vld [vmem:[#allocation49_spill] sm:$0xff] }
 0x64d   : > { %v6036_v57 = vadd.f32 %v15514_v30, %v5959_v40 }
 0x64e   : > { %6281 = vmatmul.mubr.bf16.gmra.mrb[4].mxu1 %v6077_v15  ;;  %v5952_v15 = vmul.f32 %v15505_v48, %v17662_v42  ;;  %v5963_v42 = vmul.f32 %v15508_v10, %v17671_v18  ;;  %v6035_v23 = vadd.f32 %v15511_v16, %v5958_v5  ;;  %v17675_v5 = vld [vmem:[#allocation37_spill] sm:$0xff] }
 0x64f   : > { %6288 = vmatprep.mubr.bf16.mxu1 %v6080_v55  ;;  %v5957_v55 = vmul.f32 %v15508_v10, %v17664_v29  ;;  %v17678_v18 = vld [vmem:[#allocation9_spill] sm:$0xff] }
 0x650   : > { %v6029_v53 = vadd.f32 %v15511_v16, %v5952_v15  ;;  %v17672_v15 = vld [vmem:[#allocation19_spill] sm:$0xff]  ;;  %v6040_v29 = vadd.f32 %v15514_v30, %v5963_v42 }
 0x651   : > { %v6034_v38 = vadd.f32 %v15514_v30, %v5957_v55 }
 0x652   : > { %v6083_v24 = vpack.c.bf16 %v6029_v53, %v6027_v60  ;;  %v17673_v53 = vld [vmem:[#allocation34_spill] sm:$0xff] }
 0x653   : > { %v6086_v46 = vpack.c.bf16 %v6034_v38, %v6032_v1  ;;  %v5962_v1 = vmul.f32 %v15505_v48, %v17673_v53  ;;  %v17674_v38 = vld [vmem:[#allocation51_spill] sm:$0xff] }
 0x656   : > { %6289 = vmatmul.mubr.bf16.gmra.mrb[8].mxu1 %v6079_v44  ;;  %v5956_v44 = vmul.f32 %v15505_v48, %v17666_v27 }
 0x657   : > { %6296 = vmatprep.mubr.bf16.mxu1 %v6082_v8  ;;  %v5961_v8 = vmul.f32 %v15508_v10, %v17668_v21 }
 0x658   : > { %v6033_v33 = vadd.f32 %v15511_v16, %v5956_v44 }
 0x659   : > { %v6038_v31 = vadd.f32 %v15514_v30, %v5961_v8 }
 0x65a   : > { %v6085_v35 = vpack.c.bf16 %v6033_v33, %v6031_v63 }
 0x65b   : > { %v6088_v54 = vpack.c.bf16 %v6038_v31, %v6036_v57 }
 0x65e   : > { %6297 = vmatmul.mubr.bf16.gmra.mrb[12].mxu1 %v6081_v41  ;;  %v5960_v41 = vmul.f32 %v15505_v48, %v17670_v58 }
 0x65f   : > { %6304 = vmatprep.mubr.bf16.mxu1 %v6084_v13  ;;  %v5965_v13 = vmul.f32 %v15508_v10, %v17672_v15  ;;  %v6039_v10 = vadd.f32 %v15511_v16, %v5962_v1  ;;  %v17681_v1 = vld [vmem:[#allocation56_spill] sm:$0xff] }
 0x660   : > { %v6037_v4 = vadd.f32 %v15511_v16, %v5960_v41  ;;  %v17677_v41 = vld [vmem:[#allocation18_spill] sm:$0xff] }
 0x661   : > { %v6042_v55 = vadd.f32 %v15514_v30, %v5965_v13 }
 0x662   : > { %v6087_v60 = vpack.c.bf16 %v6037_v4, %v6035_v23 }
 0x663   : > { %v6090_v59 = vpack.c.bf16 %v6042_v55, %v6040_v29 }
 0x666   : > { %6305 = vmatmul.mubr.bf16.gmra.mrb[16].mxu1 %v6083_v24  ;;  %v5964_v24 = vmul.f32 %v15505_v48, %v17674_v38 }
 0x667   : > { %6312 = vmatprep.mubr.bf16.mxu1 %v6086_v46 }
 0x668   : > { %v6041_v2 = vadd.f32 %v15511_v16, %v5964_v24  ;;  %v17682_v24 = vld [vmem:[#allocation47_spill] sm:$0xff] }
 0x66a   : > { %v6089_v27 = vpack.c.bf16 %v6041_v2, %v6039_v10  ;;  %v17683_v2 = vld [vmem:[#allocation12_spill] sm:$0xff] }
 0x66e   : > { %6313 = vmatmul.mubr.bf16.gmra.mrb[20].mxu1 %v6085_v35 }
 0x66f   : > { %6320 = vmatprep.mubr.bf16.mxu1 %v6088_v54 }
 0x676   : > { %6321 = vmatmul.mubr.bf16.gmra.mrb[24].mxu1 %v6087_v60 }
 0x677   : > { %6328 = vmatprep.mubr.bf16.mxu1 %v6090_v59 }
 0x67e   : > { %6329 = vmatmul.mubr.bf16.gmra.mrb[28].mxu1 %v6089_v27 }
 0x6a9   : > { %v5858_v44 = vpop.xlane.xlu1 %5857 }
 0x6aa   : > { %v5861_v46 = vmul.f32 0.00390625, %v5858_v44 }
 0x6ac   : > { %v5863_v47 = vadd.f32 1e-06, %v5861_v46 }
 0x6ae   : > { %7183 = vrcp.f32 %v5863_v47 }
 0x6b8   : > { %v7184_v40 = vpop.eup %7183 }
 0x6b9   : > { %v5868_v21 = vmul.f32 %v7184_v40, %v15482_v36  ;;  %v5869_v8 = vmul.f32 %v7184_v40, %v15484_v43  ;;  %v17676_v36 = vld [vmem:[#allocation28_spill] sm:$0xff] }
 0x6bb   : > { %v5891_v63 = vcombine.low %v5868_v21, %v5869_v8 }
 0x6bd   : > { %v5898_v48 = vrot.slane %v5891_v63, %v15489_v32  ;;  %v17684_v63 = vld [vmem:[#allocation16_spill] sm:$0xff] }
 0x6bf   : > { %v5905_v33 = vrot.slane %v5898_v48, %v15489_v32 }
 0x6c1   : > { %v5909_v57 = vmul.f32 %v15497_v17, %v5905_v33  ;;  %v17679_v17 = vld [vmem:[#allocation32_spill] sm:$0xff] }
 0x6c3   : > { %v5911_v31 = vadd.f32 1.0, %v5909_v57 }
 0x6c5   : > { %v15618_v35 = vrot.slane %v5911_v31, %v14513_v39  ;;  %v15621_v49 = vrot.slane %v5911_v31, %v14519_v7  ;;  %v17680_v39 = vld [vmem:[#allocation53_spill] sm:$0xff] }
 0x6c7   : > { %v5967_v58 = vmul.f32 %v15621_v49, %v17675_v5  ;;  %v5969_v43 = vmul.f32 %v15621_v49, %v17676_v36  ;;  %v5966_v54 = vmul.f32 %v15618_v35, %v17677_v41  ;;  %v5968_v32 = vmul.f32 %v15618_v35, %v17678_v18 }
 0x6c8   : > { %v5971_v42 = vmul.f32 %v15621_v49, %v17679_v17  ;;  %v5973_v15 = vmul.f32 %v15621_v49, %v17680_v39  ;;  %v5970_v38 = vmul.f32 %v15618_v35, %v17681_v1  ;;  %v5972_v59 = vmul.f32 %v15618_v35, %v17682_v24 }
 0x6c9   : > { %v6044_v7 = vadd.f32 %v15514_v30, %v5967_v58  ;;  %v6046_v13 = vadd.f32 %v15514_v30, %v5969_v43  ;;  %v6043_v23 = vadd.f32 %v15511_v16, %v5966_v54  ;;  %v6045_v4 = vadd.f32 %v15511_v16, %v5968_v32 }
 0x6ca   : > { %v6048_v29 = vadd.f32 %v15514_v30, %v5971_v42  ;;  %v6050_v55 = vadd.f32 %v15514_v30, %v5973_v15  ;;  %v5975_v27 = vmul.f32 %v15621_v49, %v17683_v2  ;;  %v5977_v44 = vmul.f32 %v15621_v49, %v15320_v62 }
 0x6cb   : > { %v6092_v60 = vpack.c.bf16 %v6046_v13, %v6044_v7  ;;  %v6091_v53 = vpack.c.bf16 %v6045_v4, %v6043_v23  ;;  %v6047_v46 = vadd.f32 %v15511_v16, %v5970_v38  ;;  %v6049_v47 = vadd.f32 %v15511_v16, %v5972_v59 }
 0x6cc   : > { %v6094_v10 = vpack.c.bf16 %v6050_v55, %v6048_v29  ;;  %v6052_v40 = vadd.f32 %v15514_v30, %v5975_v27  ;;  %v6054_v21 = vadd.f32 %v15514_v30, %v5977_v44  ;;  %v5974_v48 = vmul.f32 %v15618_v35, %v17684_v63 }
 0x6cd   : > { %6336 = vmatprep.mubr.bf16.mxu1 %v6092_v60  ;;  %v6093_v8 = vpack.c.bf16 %v6049_v47, %v6047_v46  ;;  %v5976_v33 = vmul.f32 %v15618_v35, %v15317_v12  ;;  %v5979_v62 = vmul.f32 %v15621_v49, %v15344_v28  ;;  %v5981_v31 = vmul.f32 %v15621_v49, %v15365_v61 }
 0x6ce   : > { %6337 = vmatmul.mubr.bf16.gmra.mrb[32].mxu1 %v6091_v53  ;;  %v6096_v57 = vpack.c.bf16 %v6054_v21, %v6052_v40  ;;  %v6051_v5 = vadd.f32 %v15511_v16, %v5974_v48  ;;  %v5978_v12 = vmul.f32 %v15618_v35, %v15338_v6  ;;  %v5980_v28 = vmul.f32 %v15618_v35, %v15357_v25 }
 0x6cf   : > { %6344 = vmatprep.mubr.bf16.mxu1 %v6094_v10  ;;  %v6053_v58 = vadd.f32 %v15511_v16, %v5976_v33  ;;  %v6056_v36 = vadd.f32 %v15514_v30, %v5979_v62  ;;  %v6058_v43 = vadd.f32 %v15514_v30, %v5981_v31  ;;  %v5983_v61 = vmul.f32 %v15621_v49, %v15371_v9 }
 0x6d0   : > { %v5985_v18 = vmul.f32 %v15621_v49, %v15416_v51  ;;  %v6055_v32 = vadd.f32 %v15511_v16, %v5978_v12  ;;  %v6057_v17 = vadd.f32 %v15511_v16, %v5980_v28  ;;  %v5982_v25 = vmul.f32 %v15618_v35, %v15368_v37 }
 0x6d1   : > { %v6095_v41 = vpack.c.bf16 %v6053_v58, %v6051_v5  ;;  %v6098_v54 = vpack.c.bf16 %v6058_v43, %v6056_v36  ;;  %v6060_v42 = vadd.f32 %v15514_v30, %v5983_v61  ;;  %v5984_v9 = vmul.f32 %v15618_v35, %v15404_v22 }
 0x6d2   : > { %v6062_v6 = vadd.f32 %v15514_v30, %v5985_v18  ;;  %v6097_v39 = vpack.c.bf16 %v6057_v17, %v6055_v32  ;;  %v5987_v51 = vmul.f32 %v15621_v49, %v15424_v14  ;;  %v5989_v7 = vmul.f32 %v15621_v49, %v15436_v3 }
 0x6d3   : > { %v6059_v13 = vadd.f32 %v15511_v16, %v5982_v25  ;;  %v6061_v23 = vadd.f32 %v15511_v16, %v5984_v9  ;;  %v5986_v22 = vmul.f32 %v15618_v35, %v15420_v0  ;;  %v5988_v14 = vmul.f32 %v15618_v35, %v15431_v50 }
 0x6d4   : > { %v6100_v15 = vpack.c.bf16 %v6062_v6, %v6060_v42  ;;  %v6064_v4 = vadd.f32 %v15514_v30, %v5987_v51  ;;  %v6066_v37 = vadd.f32 %v15514_v30, %v5989_v7  ;;  %v5991_v3 = vmul.f32 %v15621_v49, %v15442_v45 }
 0x6d5   : > { %v6099_v29 = vpack.c.bf16 %v6061_v23, %v6059_v13  ;;  %v5993_v60 = vmul.f32 %v15621_v49, %v15456_v20  ;;  %v6063_v53 = vadd.f32 %v15511_v16, %v5986_v22  ;;  %v6065_v1 = vadd.f32 %v15511_v16, %v5988_v14 }
 0x6d6   : > { %6345 = vmatmul.mubr.bf16.gmra.mrb[36].mxu1 %v6093_v8  ;;  %v6102_v55 = vpack.c.bf16 %v6066_v37, %v6064_v4  ;;  %v6068_v38 = vadd.f32 %v15514_v30, %v5991_v3  ;;  %v5990_v50 = vmul.f32 %v15618_v35, %v15439_v26  ;;  %v5992_v45 = vmul.f32 %v15618_v35, %v15451_v56 }
 0x6d7   : > { %6352 = vmatprep.mubr.bf16.mxu1 %v6096_v57  ;;  %v6070_v0 = vadd.f32 %v15514_v30, %v5993_v60  ;;  %v6101_v24 = vpack.c.bf16 %v6065_v1, %v6063_v53  ;;  %v5995_v20 = vmul.f32 %v15621_v49, %v15466_v19  ;;  %v5997_v10 = vmul.f32 %v15621_v49, %v15476_v34 }
 0x6d8   : > { %v6067_v2 = vadd.f32 %v15511_v16, %v5990_v50  ;;  %v6069_v27 = vadd.f32 %v15511_v16, %v5992_v45  ;;  %v5994_v56 = vmul.f32 %v15618_v35, %v15463_v52  ;;  %v5996_v19 = vmul.f32 %v15618_v35, %v15471_v11 }
 0x6d9   : > { %v6104_v59 = vpack.c.bf16 %v6070_v0, %v6068_v38  ;;  %v6072_v44 = vadd.f32 %v15514_v30, %v5995_v20  ;;  %v6074_v26 = vadd.f32 %v15514_v30, %v5997_v10  ;;  %v15722_v30 = vld [vmem:[%s15876_s2 + $0x3] ss:$0 sm:$0xff] }
 0x6da   : > { %v6103_v46 = vpack.c.bf16 %v6069_v27, %v6067_v2  ;;  %v6071_v34 = vadd.f32 %v15511_v16, %v5994_v56  ;;  %v6073_v49 = vadd.f32 %v15511_v16, %v5996_v19 }
 0x6db   : > { %v6106_v47 = vpack.c.bf16 %v6074_v26, %v6072_v44 }
 0x6dc   : > { %v6105_v40 = vpack.c.bf16 %v6073_v49, %v6071_v34 }
 0x6de   : > { %6353 = vmatmul.mubr.bf16.gmra.mrb[40].mxu1 %v6095_v41 }
 0x6df   : > { %6360 = vmatprep.mubr.bf16.mxu1 %v6098_v54 }
 0x6e6   : > { %6361 = vmatmul.mubr.bf16.gmra.mrb[44].mxu1 %v6097_v39 }
 0x6e7   : > { %6368 = vmatprep.mubr.bf16.mxu1 %v6100_v15 }
 0x6ee   : > { %6369 = vmatmul.mubr.bf16.gmra.mrb[48].mxu1 %v6099_v29 }
 0x6ef   : > { %6376 = vmatprep.mubr.bf16.mxu1 %v6102_v55 }
 0x6f6   : > { %6377 = vmatmul.mubr.bf16.gmra.mrb[52].mxu1 %v6101_v24 }
 0x6f7   : > { %6384 = vmatprep.mubr.bf16.mxu1 %v6104_v59 }
 0x6fe   : > { %6385 = vmatmul.mubr.bf16.gmra.mrb[56].mxu1 %v6103_v46 }
 0x6ff   : > { %6392 = vmatprep.mubr.bf16.mxu1 %v6106_v47 }
 0x706   : > { %6393 = vmatmul.mubr.bf16.gmra.mrb[60].mxu1 %v6105_v40 }
 0x719   : > { %v6793_v21 = vpop.f32.mrb[0].mxu1 }
 0x71a   : > { %v6794_v8 = vpop.f32.mrb[1].mxu1 }
 0x71b   : > { %v6795_v52 = vadd.f32 %v6794_v8, %v6793_v21  ;;  %v6796_v63 = vpop.f32.mrb[2].mxu1 }
 0x71c   : > { %v6797_v48 = vpop.f32.mrb[3].mxu1 }
 0x71d   : > { %v6275_v11 = vadd.f32 %v6795_v52, %v15722_v30  ;;  %v6798_v35 = vadd.f32 %v6797_v48, %v6796_v63 }
 0x71f   : > { %6401 = vxpose.xlu0.b32.start [1/16] %v6275_v11, 128  ;;  %v6278_v33 = vadd.f32 %v6798_v35, %v15722_v30 }
 0x721   : > { %v6799_v57 = vpop.f32.mrb[4].mxu1 }
 0x722   : > { %v6800_v16 = vpop.f32.mrb[5].mxu1 }
 0x723   : > { %v6801_v62 = vadd.f32 %v6800_v16, %v6799_v57  ;;  %v6802_v31 = vpop.f32.mrb[6].mxu1  ;;  %6402 = vxpose.xlu0.b32.cont [2/16] %v6278_v33, 128 }
 0x724   : > { %v6803_v5 = vpop.f32.mrb[7].mxu1 }
 0x725   : > { %v6283_v58 = vadd.f32 %v6801_v62, %v15722_v30  ;;  %v6804_v36 = vadd.f32 %v6803_v5, %v6802_v31  ;;  %v6433_v31 = vld [vmem:[%s7523_s13] sm:$0xff] }
 0x727   : > { %6403 = vxpose.xlu0.b32.cont [3/16] %v6283_v58, 128  ;;  %v6286_v43 = vadd.f32 %v6804_v36, %v15722_v30 }
 0x729   : > { %v6805_v41 = vpop.f32.mrb[8].mxu1 }
 0x72a   : > { %v6806_v12 = vpop.f32.mrb[9].mxu1 }
 0x72b   : > { %v6807_v28 = vadd.f32 %v6806_v12, %v6805_v41  ;;  %v6808_v54 = vpop.f32.mrb[10].mxu1  ;;  %6404 = vxpose.xlu0.b32.cont [4/16] %v6286_v43, 128 }
 0x72c   : > { %v6809_v61 = vpop.f32.mrb[11].mxu1 }
 0x72d   : > { %v6291_v18 = vadd.f32 %v6807_v28, %v15722_v30  ;;  %v6810_v32 = vadd.f32 %v6809_v61, %v6808_v54  ;;  %v6434_v54 = vld [vmem:[%s7523_s13 + $0x8] sm:$0xff] }
 0x72f   : > { %6405 = vxpose.xlu0.b32.cont [5/16] %v6291_v18, 128  ;;  %v6294_v17 = vadd.f32 %v6810_v32, %v15722_v30 }
 0x731   : > { %v6811_v42 = vpop.f32.mrb[12].mxu1 }
 0x732   : > { %v6812_v6 = vpop.f32.mrb[13].mxu1 }
 0x733   : > { %v6813_v39 = vadd.f32 %v6812_v6, %v6811_v42  ;;  %v6814_v25 = vpop.f32.mrb[14].mxu1  ;;  %6406 = vxpose.xlu0.b32.cont [6/16] %v6294_v17, 128  ;;  %v6435_v6 = vld [vmem:[%s7523_s13 + $0x10] sm:$0xff] }
 0x734   : > { %v6815_v9 = vpop.f32.mrb[15].mxu1 }
 0x735   : > { %v6299_v15 = vadd.f32 %v6813_v39, %v15722_v30  ;;  %v6816_v51 = vadd.f32 %v6815_v9, %v6814_v25 }
 0x737   : > { %6407 = vxpose.xlu0.b32.cont [7/16] %v6299_v15, 128  ;;  %v6302_v7 = vadd.f32 %v6816_v51, %v15722_v30 }
 0x739   : > { %v6817_v13 = vpop.f32.mrb[16].mxu1 }
 0x73a   : > { %v6818_v23 = vpop.f32.mrb[17].mxu1 }
 0x73b   : > { %v6819_v4 = vadd.f32 %v6818_v23, %v6817_v13  ;;  %v6820_v37 = vpop.f32.mrb[18].mxu1  ;;  %6408 = vxpose.xlu0.b32.cont [8/16] %v6302_v7, 128  ;;  %v6436_v23 = vld [vmem:[%s7523_s13 + $0x18] sm:$0xff] }
 0x73c   : > { %v6821_v29 = vpop.f32.mrb[19].mxu1 }
 0x73d   : > { %v6307_v22 = vadd.f32 %v6819_v4, %v15722_v30  ;;  %v6822_v14 = vadd.f32 %v6821_v29, %v6820_v37 }
 0x73f   : > { %6409 = vxpose.xlu0.b32.cont [9/16] %v6307_v22, 128  ;;  %v6310_v55 = vadd.f32 %v6822_v14, %v15722_v30 }
 0x741   : > { %v6823_v3 = vpop.f32.mrb[20].mxu1 }
 0x742   : > { %v6824_v60 = vpop.f32.mrb[21].mxu1 }
 0x743   : > { %v6825_v53 = vadd.f32 %v6824_v60, %v6823_v3  ;;  %v6826_v1 = vpop.f32.mrb[22].mxu1  ;;  %6410 = vxpose.xlu0.b32.cont [10/16] %v6310_v55, 128  ;;  %v6437_v55 = vld [vmem:[%s7523_s13 + $0x20] sm:$0xff] }
 0x744   : > { %v6827_v38 = vpop.f32.mrb[23].mxu1 }
 0x745   : > { %v6315_v0 = vadd.f32 %v6825_v53, %v15722_v30  ;;  %v6828_v24 = vadd.f32 %v6827_v38, %v6826_v1 }
 0x747   : > { %6411 = vxpose.xlu0.b32.cont [11/16] %v6315_v0, 128  ;;  %v6318_v50 = vadd.f32 %v6828_v24, %v15722_v30 }
 0x749   : > { %v6829_v45 = vpop.f32.mrb[24].mxu1 }
 0x74a   : > { %v6830_v59 = vpop.f32.mrb[25].mxu1 }
 0x74b   : > { %v6831_v20 = vadd.f32 %v6830_v59, %v6829_v45  ;;  %v6832_v10 = vpop.f32.mrb[26].mxu1  ;;  %6412 = vxpose.xlu0.b32.cont [12/16] %v6318_v50, 128  ;;  %v6438_v50 = vld [vmem:[%s7523_s13 + $0x28] sm:$0xff] }
 0x74c   : > { %v6833_v2 = vpop.f32.mrb[27].mxu1 }
 0x74d   : > { %v6323_v27 = vadd.f32 %v6831_v20, %v15722_v30  ;;  %v6834_v44 = vadd.f32 %v6833_v2, %v6832_v10 }
 0x74f   : > { %6413 = vxpose.xlu0.b32.cont [13/16] %v6323_v27, 128  ;;  %v6326_v26 = vadd.f32 %v6834_v44, %v15722_v30  ;;  %v6439_v27 = vld [vmem:[%s7523_s13 + $0x30] sm:$0xff] }
 0x751   : > { %v6835_v46 = vpop.f32.mrb[28].mxu1 }
 0x752   : > { %v6836_v56 = vpop.f32.mrb[29].mxu1 }
 0x753   : > { %v6837_v19 = vadd.f32 %v6836_v56, %v6835_v46  ;;  %v6838_v47 = vpop.f32.mrb[30].mxu1  ;;  %6414 = vxpose.xlu0.b32.cont [14/16] %v6326_v26, 128 }
 0x754   : > { %v6839_v34 = vpop.f32.mrb[31].mxu1 }
 0x755   : > { %v6331_v49 = vadd.f32 %v6837_v19, %v15722_v30  ;;  %v6840_v40 = vadd.f32 %v6839_v34, %v6838_v47 }
 0x757   : > { %6415 = vxpose.xlu0.b32.cont [15/16] %v6331_v49, 128  ;;  %v6334_v21 = vadd.f32 %v6840_v40, %v15722_v30  ;;  %v6440_v49 = vld [vmem:[%s7523_s13 + $0x38] sm:$0xff] }
 0x75b   : > { %6416 = vxpose.xlu0.b32.end [16/16] %v6334_v21, 128 }
 0x79f   : > { %v6417_v5 = vpop.trf.xlu0 }
 0x7a0   : > { %v6449_v43 = vadd.f32 %v6433_v31, %v6417_v5  ;;  %v6442_v5 = vld [vmem:[%s7523_s13 + $0x48] sm:$0xff] }
 0x7a1   : > { %v6841_v8 = vpop.f32.mrb[32].mxu1 }
 0x7a2   : > { %v6842_v52 = vpop.f32.mrb[33].mxu1  ;;  %6465 = vst [vmem:[%s15746_s17] sm:$0xff] %v6449_v43 }
 0x7a3   : > { %v6843_v63 = vadd.f32 %v6842_v52, %v6841_v8  ;;  %v6844_v48 = vpop.f32.mrb[34].mxu1  ;;  %v6418_v61 = vpop.trf.xlu0 }
 0x7a4   : > { %v6845_v11 = vpop.f32.mrb[35].mxu1  ;;  %v6450_v18 = vadd.f32 %v6434_v54, %v6418_v61 }
 0x7a5   : > { %v6339_v35 = vadd.f32 %v6843_v63, %v15722_v30  ;;  %v6846_v33 = vadd.f32 %v6845_v11, %v6844_v48  ;;  %v6441_v48 = vld [vmem:[%s7523_s13 + $0x40] sm:$0xff] }
 0x7a6   : > { %6466 = vst [vmem:[%s15746_s17 + $0x8] sm:$0xff] %v6450_v18 }
 0x7a7   : > { %6481 = vxpose.xlu1.b32.start [1/16] %v6339_v35, 128  ;;  %v6342_v57 = vadd.f32 %v6846_v33, %v15722_v30  ;;  %v6419_v39 = vpop.trf.xlu0 }
 0x7a8   : > { %v6451_v15 = vadd.f32 %v6435_v6, %v6419_v39  ;;  %v6444_v39 = vld [vmem:[%s7523_s13 + $0x58] sm:$0xff] }
 0x7a9   : > { %v6847_v16 = vpop.f32.mrb[36].mxu1 }
 0x7aa   : > { %v6848_v62 = vpop.f32.mrb[37].mxu1  ;;  %6467 = vst [vmem:[%s15746_s17 + $0x10] sm:$0xff] %v6451_v15 }
 0x7ab   : > { %v6849_v58 = vadd.f32 %v6848_v62, %v6847_v16  ;;  %v6850_v36 = vpop.f32.mrb[38].mxu1  ;;  %6482 = vxpose.xlu1.b32.cont [2/16] %v6342_v57, 128  ;;  %v6420_v4 = vpop.trf.xlu0 }
 0x7ac   : > { %v6851_v41 = vpop.f32.mrb[39].mxu1  ;;  %v6452_v37 = vadd.f32 %v6436_v23, %v6420_v4 }
 0x7ad   : > { %v6347_v12 = vadd.f32 %v6849_v58, %v15722_v30  ;;  %v6852_v28 = vadd.f32 %v6851_v41, %v6850_v36 }
 0x7ae   : > { %6468 = vst [vmem:[%s15746_s17 + $0x18] sm:$0xff] %v6452_v37 }
 0x7af   : > { %6483 = vxpose.xlu1.b32.cont [3/16] %v6347_v12, 128  ;;  %v6350_v32 = vadd.f32 %v6852_v28, %v15722_v30  ;;  %v6421_v3 = vpop.trf.xlu0  ;;  %v6443_v28 = vld [vmem:[%s7523_s13 + $0x50] sm:$0xff] }
 0x7b0   : > { %v6453_v1 = vadd.f32 %v6437_v55, %v6421_v3  ;;  %v6446_v3 = vld [vmem:[%s7523_s13 + $0x68] sm:$0xff] }
 0x7b1   : > { %v6853_v17 = vpop.f32.mrb[40].mxu1 }
 0x7b2   : > { %v6854_v42 = vpop.f32.mrb[41].mxu1  ;;  %6469 = vst [vmem:[%s15746_s17 + $0x20] sm:$0xff] %v6453_v1 }
 0x7b3   : > { %v6855_v25 = vadd.f32 %v6854_v42, %v6853_v17  ;;  %v6856_v9 = vpop.f32.mrb[42].mxu1  ;;  %6484 = vxpose.xlu1.b32.cont [4/16] %v6350_v32, 128  ;;  %v6422_v45 = vpop.trf.xlu0 }
 0x7b4   : > { %v6857_v51 = vpop.f32.mrb[43].mxu1  ;;  %v6454_v59 = vadd.f32 %v6438_v50, %v6422_v45  ;;  %v6448_v50 = vld [vmem:[%s7523_s13 + $0x78] sm:$0xff] }
 0x7b5   : > { %v6355_v7 = vadd.f32 %v6855_v25, %v15722_v30  ;;  %v6858_v13 = vadd.f32 %v6857_v51, %v6856_v9 }
 0x7b6   : > { %6470 = vst [vmem:[%s15746_s17 + $0x28] sm:$0xff] %v6454_v59 }
 0x7b7   : > { %6485 = vxpose.xlu1.b32.cont [5/16] %v6355_v7, 128  ;;  %v6358_v29 = vadd.f32 %v6858_v13, %v15722_v30  ;;  %v6423_v44 = vpop.trf.xlu0  ;;  %v6445_v13 = vld [vmem:[%s7523_s13 + $0x60] sm:$0xff] }
 0x7b8   : > { %v6455_v56 = vadd.f32 %v6439_v27, %v6423_v44 }
 0x7b9   : > { %v6859_v22 = vpop.f32.mrb[44].mxu1 }
 0x7ba   : > { %v6860_v14 = vpop.f32.mrb[45].mxu1  ;;  %6471 = vst [vmem:[%s15746_s17 + $0x30] sm:$0xff] %v6455_v56 }
 0x7bb   : > { %v6861_v60 = vadd.f32 %v6860_v14, %v6859_v22  ;;  %v6862_v53 = vpop.f32.mrb[46].mxu1  ;;  %6486 = vxpose.xlu1.b32.cont [6/16] %v6358_v29, 128  ;;  %v6424_v40 = vpop.trf.xlu0 }
 0x7bc   : > { %v6863_v38 = vpop.f32.mrb[47].mxu1  ;;  %v6456_v21 = vadd.f32 %v6440_v49, %v6424_v40  ;;  %v6739_v49 = vld [vmem:[%s7523_s13 + $0xa0] sm:$0xff] }
 0x7bd   : > { %v6363_v0 = vadd.f32 %v6861_v60, %v15722_v30  ;;  %v6864_v24 = vadd.f32 %v6863_v38, %v6862_v53  ;;  %v6447_v38 = vld [vmem:[%s7523_s13 + $0x70] sm:$0xff] }
 0x7be   : > { %6472 = vst [vmem:[%s15746_s17 + $0x38] sm:$0xff] %v6456_v21 }
 0x7bf   : > { %6487 = vxpose.xlu1.b32.cont [7/16] %v6363_v0, 128  ;;  %v6366_v20 = vadd.f32 %v6864_v24, %v15722_v30  ;;  %v6425_v11 = vpop.trf.xlu0 }
 0x7c0   : > { %v6457_v57 = vadd.f32 %v6441_v48, %v6425_v11  ;;  %v6741_v48 = vld [vmem:[%s7523_s13 + $0xb0] sm:$0xff] }
 0x7c1   : > { %v6865_v10 = vpop.f32.mrb[48].mxu1 }
 0x7c2   : > { %v6866_v2 = vpop.f32.mrb[49].mxu1  ;;  %6473 = vst [vmem:[%s15746_s17 + $0x40] sm:$0xff] %v6457_v57 }
 0x7c3   : > { %v6867_v26 = vadd.f32 %v6866_v2, %v6865_v10  ;;  %v6868_v46 = vpop.f32.mrb[50].mxu1  ;;  %6488 = vxpose.xlu1.b32.cont [8/16] %v6366_v20, 128  ;;  %v6426_v58 = vpop.trf.xlu0  ;;  %v6735_v20 = vld [vmem:[%s7523_s13 + $0x80] sm:$0xff] }
 0x7c4   : > { %v6869_v19 = vpop.f32.mrb[51].mxu1  ;;  %v6458_v36 = vadd.f32 %v6442_v5, %v6426_v58  ;;  %v6744_v58 = vld [vmem:[%s7523_s13 + $0xc8] sm:$0xff] }
 0x7c5   : > { %v6371_v47 = vadd.f32 %v6867_v26, %v15722_v30  ;;  %v6870_v34 = vadd.f32 %v6869_v19, %v6868_v46  ;;  %v6737_v26 = vld [vmem:[%s7523_s13 + $0x90] sm:$0xff]  ;;  %v6738_v19 = vld [vmem:[%s7523_s13 + $0x98] sm:$0xff] }
 0x7c6   : > { %6474 = vst [vmem:[%s15746_s17 + $0x48] sm:$0xff] %v6458_v36 }
 0x7c7   : > { %6489 = vxpose.xlu1.b32.cont [9/16] %v6371_v47, 128  ;;  %v6374_v8 = vadd.f32 %v6870_v34, %v15722_v30  ;;  %v6427_v54 = vpop.trf.xlu0 }
 0x7c8   : > { %v6459_v32 = vadd.f32 %v6443_v28, %v6427_v54  ;;  %v6746_v54 = vld [vmem:[%s7523_s13 + $0xd8] sm:$0xff] }
 0x7c9   : > { %v6871_v52 = vpop.f32.mrb[52].mxu1 }
 0x7ca   : > { %v6872_v63 = vpop.f32.mrb[53].mxu1  ;;  %6475 = vst [vmem:[%s15746_s17 + $0x50] sm:$0xff] %v6459_v32  ;;  %v6747_v32 = vld [vmem:[%s7523_s13 + $0xe0] sm:$0xff] }
 0x7cb   : > { %v6873_v35 = vadd.f32 %v6872_v63, %v6871_v52  ;;  %v6874_v33 = vpop.f32.mrb[54].mxu1  ;;  %6490 = vxpose.xlu1.b32.cont [10/16] %v6374_v8, 128  ;;  %v6428_v25 = vpop.trf.xlu0  ;;  %v6740_v8 = vld [vmem:[%s7523_s13 + $0xa8] sm:$0xff] }
 0x7cc   : > { %v6875_v16 = vpop.f32.mrb[55].mxu1  ;;  %v6460_v9 = vadd.f32 %v6444_v39, %v6428_v25 }
 0x7cd   : > { %v6379_v62 = vadd.f32 %v6873_v35, %v15722_v30  ;;  %v6876_v31 = vadd.f32 %v6875_v16, %v6874_v33  ;;  %v6742_v33 = vld [vmem:[%s7523_s13 + $0xb8] sm:$0xff] }
 0x7ce   : > { %6476 = vst [vmem:[%s15746_s17 + $0x58] sm:$0xff] %v6460_v9  ;;  %v6749_v9 = vld [vmem:[%s7523_s13 + $0xf0] sm:$0xff] }
 0x7cf   : > { %6491 = vxpose.xlu1.b32.cont [11/16] %v6379_v62, 128  ;;  %v6382_v43 = vadd.f32 %v6876_v31, %v15722_v30  ;;  %v6429_v23 = vpop.trf.xlu0  ;;  %v6743_v62 = vld [vmem:[%s7523_s13 + $0xc0] sm:$0xff] }
 0x7d0   : > { %v6461_v29 = vadd.f32 %v6445_v13, %v6429_v23 }
 0x7d1   : > { %v6877_v41 = vpop.f32.mrb[56].mxu1 }
 0x7d2   : > { %v6878_v12 = vpop.f32.mrb[57].mxu1  ;;  %6477 = vst [vmem:[%s15746_s17 + $0x60] sm:$0xff] %v6461_v29 }
 0x7d3   : > { %v6879_v61 = vadd.f32 %v6878_v12, %v6877_v41  ;;  %v6880_v18 = vpop.f32.mrb[58].mxu1  ;;  %6492 = vxpose.xlu1.b32.cont [12/16] %v6382_v43, 128  ;;  %v6430_v60 = vpop.trf.xlu0  ;;  %v6745_v41 = vld [vmem:[%s7523_s13 + $0xd0] sm:$0xff] }
 0x7d4   : > { %v6881_v17 = vpop.f32.mrb[59].mxu1  ;;  %v6462_v53 = vadd.f32 %v6446_v3, %v6430_v60 }
 0x7d5   : > { %v6387_v42 = vadd.f32 %v6879_v61, %v15722_v30  ;;  %v6882_v6 = vadd.f32 %v6881_v17, %v6880_v18 }
 0x7d6   : > { %6478 = vst [vmem:[%s15746_s17 + $0x68] sm:$0xff] %v6462_v53 }
 0x7d7   : > { %6493 = vxpose.xlu1.b32.cont [13/16] %v6387_v42, 128  ;;  %v6390_v15 = vadd.f32 %v6882_v6, %v15722_v30  ;;  %v6431_v0 = vpop.trf.xlu0  ;;  %v6748_v6 = vld [vmem:[%s7523_s13 + $0xe8] sm:$0xff] }
 0x7d8   : > { %v6463_v24 = vadd.f32 %v6447_v38, %v6431_v0 }
 0x7d9   : > { %v6883_v51 = vpop.f32.mrb[60].mxu1 }
 0x7da   : > { %v6884_v7 = vpop.f32.mrb[61].mxu1  ;;  %6479 = vst [vmem:[%s15746_s17 + $0x70] sm:$0xff] %v6463_v24 }
 0x7db   : > { %v6885_v4 = vadd.f32 %v6884_v7, %v6883_v51  ;;  %v6886_v37 = vpop.f32.mrb[62].mxu1  ;;  %6494 = vxpose.xlu1.b32.cont [14/16] %v6390_v15, 128  ;;  %v6432_v45 = vpop.trf.xlu0  ;;  %v6750_v7 = vld [vmem:[%s7523_s13 + $0xf8] sm:$0xff] }
 0x7dc   : > { %v6887_v22 = vpop.f32.mrb[63].mxu1  ;;  %v6464_v59 = vadd.f32 %v6448_v50, %v6432_v45 }
 0x7dd   : > { %v6395_v14 = vadd.f32 %v6885_v4, %v15722_v30  ;;  %v6888_v55 = vadd.f32 %v6887_v22, %v6886_v37 }
 0x7de   : > { %6480 = vst [vmem:[%s15746_s17 + $0x78] sm:$0xff] %v6464_v59 }
 0x7df   : > { %6495 = vxpose.xlu1.b32.cont [15/16] %v6395_v14, 128  ;;  %v6398_v1 = vadd.f32 %v6888_v55, %v15722_v30  ;;  %v6736_v30 = vld [vmem:[%s7523_s13 + $0x88] sm:$0xff]  ;;  %s7307_s13 = sshll.u32 %s7376_s25, 4  ;;  %s7308_s13 = int_to_ptr.vmem [resolvable:$false] %s7307_s13 }
 0x7e0   : > { %s7309_s19 = scalar_lea.vmem %s7308_s13, 8192  ;;  %p7310_p8 = scmp.lt.s32.totalorder %s15830_s26, %s7308_s13 }
 0x7e1   : > { %p7311_p9 = scmp.lt.s32.totalorder %s7309_s19, %s7303_s18 }
 0x7e3   : > { %6496 = vxpose.xlu1.b32.end [16/16] %v6398_v1, 128  ;;  %p7312_p13 = por %p7311_p9, %p7310_p8 }
 0x7e5   : > { %p7313_p1 = pnand %p7312_p13, %p7306_p12 }
 0x827   : > { %v6497_v10 = vpop.trf.xlu1 }
 0x828   : > { %v6529_v2 = vadd.f32 %v6735_v20, %v6497_v10 }
 0x82a   : > { %6751 = vst [vmem:[%s15746_s17 + $0x80] sm:$0xff] %v6529_v2 }
 0x82b   : > { %v6498_v27 = vpop.trf.xlu1 }
 0x82c   : > { %v6530_v44 = vadd.f32 %v6736_v30, %v6498_v27 }
 0x82e   : > { %6752 = vst [vmem:[%s15746_s17 + $0x88] sm:$0xff] %v6530_v44 }
 0x82f   : > { %v6499_v46 = vpop.trf.xlu1 }
 0x830   : > { %v6531_v56 = vadd.f32 %v6737_v26, %v6499_v46 }
 0x832   : > { %6753 = vst [vmem:[%s15746_s17 + $0x90] sm:$0xff] %v6531_v56 }
 0x833   : > { %v6500_v47 = vpop.trf.xlu1 }
 0x834   : > { %v6532_v34 = vadd.f32 %v6738_v19, %v6500_v47 }
 0x836   : > { %6754 = vst [vmem:[%s15746_s17 + $0x98] sm:$0xff] %v6532_v34 }
 0x837   : > { %v6501_v40 = vpop.trf.xlu1 }
 0x838   : > { %v6533_v21 = vadd.f32 %v6739_v49, %v6501_v40 }
 0x83a   : > { %6755 = vst [vmem:[%s15746_s17 + $0xa0] sm:$0xff] %v6533_v21 }
 0x83b   : > { %v6502_v52 = vpop.trf.xlu1 }
 0x83c   : > { %v6534_v63 = vadd.f32 %v6740_v8, %v6502_v52 }
 0x83e   : > { %6756 = vst [vmem:[%s15746_s17 + $0xa8] sm:$0xff] %v6534_v63 }
 0x83f   : > { %v6503_v11 = vpop.trf.xlu1 }
 0x840   : > { %v6535_v35 = vadd.f32 %v6741_v48, %v6503_v11 }
 0x842   : > { %6757 = vst [vmem:[%s15746_s17 + $0xb0] sm:$0xff] %v6535_v35 }
 0x843   : > { %v6504_v57 = vpop.trf.xlu1 }
 0x844   : > { %v6536_v16 = vadd.f32 %v6742_v33, %v6504_v57 }
 0x846   : > { %6758 = vst [vmem:[%s15746_s17 + $0xb8] sm:$0xff] %v6536_v16 }
 0x847   : > { %v6505_v31 = vpop.trf.xlu1 }
 0x848   : > { %v6537_v5 = vadd.f32 %v6743_v62, %v6505_v31 }
 0x84a   : > { %6759 = vst [vmem:[%s15746_s17 + $0xc0] sm:$0xff] %v6537_v5 }
 0x84b   : > { %v6506_v36 = vpop.trf.xlu1 }
 0x84c   : > { %v6538_v43 = vadd.f32 %v6744_v58, %v6506_v36 }
 0x84e   : > { %6760 = vst [vmem:[%s15746_s17 + $0xc8] sm:$0xff] %v6538_v43 }
 0x84f   : > { %v6507_v12 = vpop.trf.xlu1 }
 0x850   : > { %v6539_v28 = vadd.f32 %v6745_v41, %v6507_v12 }
 0x852   : > { %6761 = vst [vmem:[%s15746_s17 + $0xd0] sm:$0xff] %v6539_v28 }
 0x853   : > { %v6508_v61 = vpop.trf.xlu1 }
 0x854   : > { %v6540_v18 = vadd.f32 %v6746_v54, %v6508_v61 }
 0x856   : > { %6762 = vst [vmem:[%s15746_s17 + $0xd8] sm:$0xff] %v6540_v18 }
 0x857   : > { %v6509_v17 = vpop.trf.xlu1 }
 0x858   : > { %v6541_v42 = vadd.f32 %v6747_v32, %v6509_v17 }
 0x85a   : > { %6763 = vst [vmem:[%s15746_s17 + $0xe0] sm:$0xff] %v6541_v42 }
 0x85b   : > { %v6510_v39 = vpop.trf.xlu1 }
 0x85c   : > { %v6542_v25 = vadd.f32 %v6748_v6, %v6510_v39 }
 0x85e   : > { %6764 = vst [vmem:[%s15746_s17 + $0xe8] sm:$0xff] %v6542_v25 }
 0x85f   : > { %v6511_v15 = vpop.trf.xlu1 }
 0x860   : > { %v6543_v51 = vadd.f32 %v6749_v9, %v6511_v15 }
 0x862   : > { %6765 = vst [vmem:[%s15746_s17 + $0xf0] sm:$0xff] %v6543_v51 }
 0x863   : > { %v6512_v13 = vpop.trf.xlu1 }
 0x864   : > { %v6544_v23 = vadd.f32 %v6750_v7, %v6512_v13 }
 0x866   : > { %6766 = vst [vmem:[%s15746_s17 + $0xf8] sm:$0xff] %v6544_v23 }
 0x867   : > { %7316 = shalt.err (!%p7313_p1)
}
 0x868   : > { %s7317_s20 = scalar_lea.hbm %s15828_s8, 4096  ;;  %s7321_s15 = scalar_lea.hbm %s15880_s6, 16384 }
 0x869   : > { %p7318_p3 = scmp.ne.s32.totalorder %s15828_s8, %s7317_s20  ;;  %p7322_p0 = scmp.lt.u32.totalorder %s15828_s8, %s15880_s6 }
 0x86a   : > { %p7323_p2 = scmp.lt.u32.totalorder %s7321_s15, %s7317_s20  ;;  %p7325_p6 = scmp.lt.u32.totalorder %s7317_s20, %s15828_s8 }
 0x86b   : > { %p7319_p4 = pnand %p7318_p3, %p17685_p10 }
 0x86c   : > { %p7324_p7 = por %p7323_p2, %p7322_p0 }
 0x86d   : > { %p7320_p5 = pneg %p7319_p4 }
 0x86e   : > { %p7326_p11 = por %p7325_p6, %p7324_p7 }
 0x870   : > { %p7327_p12 = pnand %p7326_p11, %p7320_p5 }
 0x872   : > { %7330 = shalt.err (!%p7327_p12)
}
 0x873   : > { %s7377_s28 = smov 128   ;;  %s7378_s12 = smov 8  }
 0x874   : > { %6891 = dma.vmem_to_hbm [thread:$0]  (%p17685_p10), %s15830_s26, 4096, %s15828_s8, %s6563_s16, %s7377_s28, %s7377_s28, %s7378_s12  }
 0x875 PF: > { %p6902_p8 = scmp.ge.s32.totalorder %s7369_s24, 2  ;;  %s6592_s18 = sand.u32 1, %s7357_s21  }
 0x876   : > { %p17686_p9 = scmp.ne.s32.totalorder %s16408_s10, 0  ;;  %s6593_s25 = scalar_lea.sflag [#allocation5], %s6592_s18 }
 0x878   : > { %p6898_p13 = pnand %p6902_p8, %p17686_p9 }
 0x87a   : > { %7352 = dma.done.wait (!%p6898_p13), %s6593_s25, 4096  }
 0x87b   : > { %7354 = vsyncadd (!%p6898_p13), %s6593_s25, 4294963200  ;;  %p19_p1 = scmp.ge.s32.totalorder %s7439_s27, 6   ;;  %s17687_s21 = smov %s7361_s22 }
 0x87c   : > { %s17688_s22 = smov %s7365_s23  ;;  %s17689_s23 = smov %s7451_s30 }
 0x87d   : > { %s17690_s24 = smov %s7439_s27  ;;  %21 = sbr.rel (!%p19_p1) target bundleno = 5 (0x5), region = 94 }
 0x884   :  { %6598 = vsyncpa [#allocation4], 1 }
 0x885   :  { %6600 = vsyncpa [#allocation4 + $0x1], 1 }
 0x886   :  { %6601 = vsyncpa [#allocation5], 1 }
 0x887   :  { %6603 = vsyncpa [#allocation5 + $0x1], 1 }

</bundles_post_ra>
